<compile_context>
chip_gen: v7x
topology: tpu7x:2x2x1
jax: 0.10.0
libtpu: 0.0.40
codegen_flags: <defaults>
</compile_context>

<pallas_src>
import numpy as np
import jax
import jax.numpy as jnp
from jax import lax
from jax.experimental import pallas as pl
from jax.experimental.pallas import tpu as pltpu

EPS = 1e-5  # nn.BatchNorm2d default


def _interp_matrix(out_size, in_size):
    """1-D bilinear interpolation matrix (align_corners=True): out = A @ in."""
    a = np.zeros((out_size, in_size), np.float32)
    if out_size == 1 or in_size == 1:
        a[:, 0] = 1.0
        return a
    ratio = (in_size - 1) / (out_size - 1)
    for o in range(out_size):
        src = o * ratio
        i0 = min(int(np.floor(src)), in_size - 1)
        i1 = min(i0 + 1, in_size - 1)
        frac = np.float32(src - i0)
        a[o, i0] += 1.0 - frac
        a[o, i1] += frac
    return a


def _upsample_kernel(xp_ref, wdw_ref, b1_ref, wpw_ref, b2_ref, ah_ref, awt_ref,
                     o_ref, y1_ref):
    """Fused dwconv3x3 + pwconv1x1 + bilinear x-scale upsample for one batch element.

    xp_ref : (C_in, H+2, W+2)  zero-padded input             (VMEM)
    wdw_ref: (C_in, 9)         BN-folded depthwise weights   (SMEM scalars)
    b1_ref : (C_in,)           folded dwconv/BN1 bias        (SMEM scalars)
    wpw_ref: (C_out, C_in)     BN-folded pointwise weights   (VMEM)
    b2_ref : (C_out, 1)        folded pwconv/BN2 bias        (VMEM)
    ah_ref : (H_out, H)        row-interpolation matrix      (VMEM)
    awt_ref: (W, W_out)        col-interpolation matrix^T    (VMEM)
    o_ref  : (C_out, H_out, W_out) output block
    y1_ref : (C_in, H, W)      f32 scratch for dwconv result
    """
    c_in, hp, wp = xp_ref.shape
    h, w = hp - 2, wp - 2
    c_out = o_ref.shape[0]

    # ---- depthwise 3x3 conv (BN scale folded) + bias + ReLU, per channel ----
    for c in range(c_in):
        xc = xp_ref[c].astype(jnp.float32)                 # (H+2, W+2)
        acc = jnp.zeros((h, w), jnp.float32)
        for dy in range(3):
            for dx in range(3):
                acc = acc + wdw_ref[c, 3 * dy + dx] * xc[dy:dy + h, dx:dx + w]
        y1_ref[c, :, :] = jnp.maximum(acc + b1_ref[c], 0.0)

    # ---- pointwise 1x1 conv (BN folded) + bias + ReLU via one MXU matmul ----
    y1_2d = y1_ref[...].reshape(c_in, h * w)               # (C_in, H*W)
    z = jnp.dot(wpw_ref[...].astype(jnp.float32), y1_2d,
                preferred_element_type=jnp.float32)        # (C_out, H*W)
    z = jnp.maximum(z + b2_ref[...], 0.0)                  # (C_out, 1) lane-broadcast
    z3 = z.reshape(c_out, h, w)

    # ---- bilinear x2 upsample (align_corners=True) as separable matmuls ----
    ah = ah_ref[...]                                       # (H_out, H)
    awt = awt_ref[...]                                     # (W, W_out)
    for c in range(c_out):
        t = jnp.dot(ah, z3[c], preferred_element_type=jnp.float32)    # (H_out, W)
        o_c = jnp.dot(t, awt, preferred_element_type=jnp.float32)     # (H_out, W_out)
        o_ref[c, :, :] = o_c.astype(o_ref.dtype)


def upsample_forward(x, dw_w, dw_b, bn1_g, bn1_b, bn1_m, bn1_v,
                     pw_w, pw_b, bn2_g, bn2_b, bn2_m, bn2_v,
                     *, scale_factor=2, eps=EPS):
    """Forward pass of the `upsample` module (BatchNorm in inference mode)."""
    b, c_in, h, w = x.shape
    c_out = pw_w.shape[0]
    h_out, w_out = scale_factor * h, scale_factor * w

    # Fold BatchNorm running statistics into the conv weights / biases.
    s1 = bn1_g / jnp.sqrt(bn1_v + eps)                                   # (C_in,)
    wdw = dw_w.reshape(c_in, 9).astype(jnp.float32) * s1[:, None]        # (C_in, 9)
    b1 = ((dw_b - bn1_m) * s1 + bn1_b).astype(jnp.float32)               # (C_in,)
    s2 = bn2_g / jnp.sqrt(bn2_v + eps)                                   # (C_out,)
    wpw = pw_w.reshape(c_out, c_in).astype(jnp.float32) * s2[:, None]    # (C_out, C_in)
    b2 = (((pw_b - bn2_m) * s2 + bn2_b).reshape(c_out, 1)).astype(jnp.float32)

    # Compile-time bilinear interpolation matrices.
    a_h = jnp.asarray(_interp_matrix(h_out, h))                          # (H_out, H)
    a_wt = jnp.asarray(_interp_matrix(w_out, w).T)                       # (W, W_out)

    # Zero-pad spatial dims for the 3x3 depthwise conv halo.
    xp = jnp.pad(x, ((0, 0), (0, 0), (1, 1), (1, 1)))

    return pl.pallas_call(
        _upsample_kernel,
        out_shape=jax.ShapeDtypeStruct((b, c_out, h_out, w_out), x.dtype),
        grid_spec=pltpu.PrefetchScalarGridSpec(
            num_scalar_prefetch=0,
            grid=(b,),
            in_specs=[
                pl.BlockSpec((None, c_in, h + 2, w + 2), lambda i: (i, 0, 0, 0)),
                pl.BlockSpec(memory_space=pltpu.MemorySpace.SMEM),   # wdw scalars
                pl.BlockSpec(memory_space=pltpu.MemorySpace.SMEM),   # b1 scalars
                pl.BlockSpec((c_out, c_in), lambda i: (0, 0)),       # wpw
                pl.BlockSpec((c_out, 1), lambda i: (0, 0)),          # b2
                pl.BlockSpec((h_out, h), lambda i: (0, 0)),          # a_h
                pl.BlockSpec((w, w_out), lambda i: (0, 0)),          # a_wt
            ],
            out_specs=pl.BlockSpec((None, c_out, h_out, w_out),
                                   lambda i: (i, 0, 0, 0)),
            scratch_shapes=[pltpu.VMEM((c_in, h, w), jnp.float32)],
        ),
        compiler_params=pltpu.CompilerParams(
            dimension_semantics=("parallel",)),
    )(xp, wdw, b1, wpw, b2, a_h, a_wt)


if __name__ == "__main__":
    key = jax.random.PRNGKey(0)
    ks = jax.random.split(key, 13)

    B, C_IN, C_OUT, H, W, SCALE = 2, 18, 12, 16, 16, 2

    x = jax.random.normal(ks[0], (B, C_IN, H, W), jnp.float32)
    dw_w = 0.2 * jax.random.normal(ks[1], (C_IN, 1, 3, 3), jnp.float32)
    dw_b = 0.1 * jax.random.normal(ks[2], (C_IN,), jnp.float32)
    g1 = 1.0 + 0.1 * jax.random.normal(ks[3], (C_IN,), jnp.float32)
    be1 = 0.1 * jax.random.normal(ks[4], (C_IN,), jnp.float32)
    m1 = 0.1 * jax.random.normal(ks[5], (C_IN,), jnp.float32)
    v1 = 0.5 + jax.random.uniform(ks[6], (C_IN,), jnp.float32)
    pw_w = 0.2 * jax.random.normal(ks[7], (C_OUT, C_IN, 1, 1), jnp.float32)
    pw_b = 0.1 * jax.random.normal(ks[8], (C_OUT,), jnp.float32)
    g2 = 1.0 + 0.1 * jax.random.normal(ks[9], (C_OUT,), jnp.float32)
    be2 = 0.1 * jax.random.normal(ks[10], (C_OUT,), jnp.float32)
    m2 = 0.1 * jax.random.normal(ks[11], (C_OUT,), jnp.float32)
    v2 = 0.5 + jax.random.uniform(ks[12], (C_OUT,), jnp.float32)

    out = jax.block_until_ready(
        upsample_forward(x, dw_w, dw_b, g1, be1, m1, v1,
                         pw_w, pw_b, g2, be2, m2, v2, scale_factor=SCALE))

    # ---- pure-JAX reference (same inference-mode semantics) ----
    y = lax.conv_general_dilated(
        x, dw_w, (1, 1), ((1, 1), (1, 1)),
        dimension_numbers=('NCHW', 'OIHW', 'NCHW'),
        feature_group_count=C_IN, precision=lax.Precision.HIGHEST)
    y = y + dw_b[None, :, None, None]
    y = (y - m1[None, :, None, None]) * (g1 / jnp.sqrt(v1 + EPS))[None, :, None, None] \
        + be1[None, :, None, None]
    y = jnp.maximum(y, 0.0)

    z = jnp.einsum('oc,bchw->bohw', pw_w.reshape(C_OUT, C_IN), y,
                   precision='highest') + pw_b[None, :, None, None]
    z = (z - m2[None, :, None, None]) * (g2 / jnp.sqrt(v2 + EPS))[None, :, None, None] \
        + be2[None, :, None, None]
    z = jnp.maximum(z, 0.0)

    a_h = jnp.asarray(_interp_matrix(SCALE * H, H))
    a_w = jnp.asarray(_interp_matrix(SCALE * W, W))
    ref = jnp.einsum('ph,bchw,qw->bcpq', a_h, z, a_w, precision='highest')

    assert out.shape == (B, C_OUT, SCALE * H, SCALE * W)
    max_err = jnp.max(jnp.abs(out - ref))
    assert max_err < 2e-2, f"max abs err {max_err}"

    print("KERNEL_OK")
</pallas_src>

<mosaic_0001>
module attributes {stable_mosaic.version = 11 : i64} {
  func.func @_upsample_kernel(%arg0: i32, %arg1: memref<1x18x18x18xf32, #tpu.memory_space<vmem>>, %arg2: memref<18x9xf32, #tpu.memory_space<smem>>, %arg3: memref<18xf32, #tpu.memory_space<smem>>, %arg4: memref<12x18xf32, #tpu.memory_space<vmem>>, %arg5: memref<12x1xf32, #tpu.memory_space<vmem>>, %arg6: memref<32x16xf32, #tpu.memory_space<vmem>>, %arg7: memref<16x32xf32, #tpu.memory_space<vmem>>, %arg8: memref<1x12x32x32xf32, #tpu.memory_space<vmem>>, %arg9: memref<18x16x16xf32, #tpu.memory_space<vmem>>) attributes {dimension_semantics = [#tpu.dimension_semantics<parallel>], iteration_bounds = array<i64: 2>, scalar_prefetch = 0 : i64, scratch_operands = 1 : i64, tpu.core_type = #tpu.core_type<tc>, window_params = [{transform_indices = @transform_0, window_bounds = array<i64: 1, 18, 18, 18>}, {transform_indices = @transform_1, window_bounds = array<i64: 18, 9>}, {transform_indices = @transform_2, window_bounds = array<i64: 18>}, {pipeline_mode = #tpu.pipeline_mode<synchronous>, transform_indices = @transform_3, window_bounds = array<i64: 12, 18>}, {pipeline_mode = #tpu.pipeline_mode<synchronous>, transform_indices = @transform_4, window_bounds = array<i64: 12, 1>}, {pipeline_mode = #tpu.pipeline_mode<synchronous>, transform_indices = @transform_5, window_bounds = array<i64: 32, 16>}, {pipeline_mode = #tpu.pipeline_mode<synchronous>, transform_indices = @transform_6, window_bounds = array<i64: 16, 32>}, {transform_indices = @transform_7, window_bounds = array<i64: 1, 12, 32, 32>}]} {
    %c0 = arith.constant 0 : index
    %c0_0 = arith.constant 0 : index
    %c0_1 = arith.constant 0 : index
    %c0_2 = arith.constant 0 : index
    %0 = vector.load %arg1[%c0, %c0_0, %c0_1, %c0_2] : memref<1x18x18x18xf32, #tpu.memory_space<vmem>>, vector<1x1x18x18xf32>
    %1 = vector.shape_cast %0 : vector<1x1x18x18xf32> to vector<18x18xf32>
    %cst = arith.constant 0.000000e+00 : f32
    %2 = vector.broadcast %cst : f32 to vector<16x16xf32>
    %c0_3 = arith.constant 0 : index
    %c0_4 = arith.constant 0 : index
    %3 = memref.load %arg2[%c0_3, %c0_4] : memref<18x9xf32, #tpu.memory_space<smem>>
    %4 = vector.extract_strided_slice %1 {offsets = [0, 0], sizes = [16, 16], strides = [1, 1]} : vector<18x18xf32> to vector<16x16xf32>
    %5 = vector.broadcast %3 : f32 to vector<16x16xf32>
    %6 = arith.mulf %5, %4 : vector<16x16xf32>
    %7 = arith.addf %2, %6 : vector<16x16xf32>
    %c0_5 = arith.constant 0 : index
    %c1 = arith.constant 1 : index
    %8 = memref.load %arg2[%c0_5, %c1] : memref<18x9xf32, #tpu.memory_space<smem>>
    %9 = vector.extract_strided_slice %1 {offsets = [0, 1], sizes = [16, 16], strides = [1, 1]} : vector<18x18xf32> to vector<16x16xf32>
    %10 = vector.broadcast %8 : f32 to vector<16x16xf32>
    %11 = arith.mulf %10, %9 : vector<16x16xf32>
    %12 = arith.addf %7, %11 : vector<16x16xf32>
    %c0_6 = arith.constant 0 : index
    %c2 = arith.constant 2 : index
    %13 = memref.load %arg2[%c0_6, %c2] : memref<18x9xf32, #tpu.memory_space<smem>>
    %14 = vector.extract_strided_slice %1 {offsets = [0, 2], sizes = [16, 16], strides = [1, 1]} : vector<18x18xf32> to vector<16x16xf32>
    %15 = vector.broadcast %13 : f32 to vector<16x16xf32>
    %16 = arith.mulf %15, %14 : vector<16x16xf32>
    %17 = arith.addf %12, %16 : vector<16x16xf32>
    %c0_7 = arith.constant 0 : index
    %c3 = arith.constant 3 : index
    %18 = memref.load %arg2[%c0_7, %c3] : memref<18x9xf32, #tpu.memory_space<smem>>
    %19 = vector.extract_strided_slice %1 {offsets = [1, 0], sizes = [16, 16], strides = [1, 1]} : vector<18x18xf32> to vector<16x16xf32>
    %20 = vector.broadcast %18 : f32 to vector<16x16xf32>
    %21 = arith.mulf %20, %19 : vector<16x16xf32>
    %22 = arith.addf %17, %21 : vector<16x16xf32>
    %c0_8 = arith.constant 0 : index
    %c4 = arith.constant 4 : index
    %23 = memref.load %arg2[%c0_8, %c4] : memref<18x9xf32, #tpu.memory_space<smem>>
    %24 = vector.extract_strided_slice %1 {offsets = [1, 1], sizes = [16, 16], strides = [1, 1]} : vector<18x18xf32> to vector<16x16xf32>
    %25 = vector.broadcast %23 : f32 to vector<16x16xf32>
    %26 = arith.mulf %25, %24 : vector<16x16xf32>
    %27 = arith.addf %22, %26 : vector<16x16xf32>
    %c0_9 = arith.constant 0 : index
    %c5 = arith.constant 5 : index
    %28 = memref.load %arg2[%c0_9, %c5] : memref<18x9xf32, #tpu.memory_space<smem>>
    %29 = vector.extract_strided_slice %1 {offsets = [1, 2], sizes = [16, 16], strides = [1, 1]} : vector<18x18xf32> to vector<16x16xf32>
    %30 = vector.broadcast %28 : f32 to vector<16x16xf32>
    %31 = arith.mulf %30, %29 : vector<16x16xf32>
    %32 = arith.addf %27, %31 : vector<16x16xf32>
    %c0_10 = arith.constant 0 : index
    %c6 = arith.constant 6 : index
    %33 = memref.load %arg2[%c0_10, %c6] : memref<18x9xf32, #tpu.memory_space<smem>>
    %34 = vector.extract_strided_slice %1 {offsets = [2, 0], sizes = [16, 16], strides = [1, 1]} : vector<18x18xf32> to vector<16x16xf32>
    %35 = vector.broadcast %33 : f32 to vector<16x16xf32>
    %36 = arith.mulf %35, %34 : vector<16x16xf32>
    %37 = arith.addf %32, %36 : vector<16x16xf32>
    %c0_11 = arith.constant 0 : index
    %c7 = arith.constant 7 : index
    %38 = memref.load %arg2[%c0_11, %c7] : memref<18x9xf32, #tpu.memory_space<smem>>
    %39 = vector.extract_strided_slice %1 {offsets = [2, 1], sizes = [16, 16], strides = [1, 1]} : vector<18x18xf32> to vector<16x16xf32>
    %40 = vector.broadcast %38 : f32 to vector<16x16xf32>
    %41 = arith.mulf %40, %39 : vector<16x16xf32>
    %42 = arith.addf %37, %41 : vector<16x16xf32>
    %c0_12 = arith.constant 0 : index
    %c8 = arith.constant 8 : index
    %43 = memref.load %arg2[%c0_12, %c8] : memref<18x9xf32, #tpu.memory_space<smem>>
    %44 = vector.extract_strided_slice %1 {offsets = [2, 2], sizes = [16, 16], strides = [1, 1]} : vector<18x18xf32> to vector<16x16xf32>
    %45 = vector.broadcast %43 : f32 to vector<16x16xf32>
    %46 = arith.mulf %45, %44 : vector<16x16xf32>
    %47 = arith.addf %42, %46 : vector<16x16xf32>
    %c0_13 = arith.constant 0 : index
    %48 = memref.load %arg3[%c0_13] : memref<18xf32, #tpu.memory_space<smem>>
    %49 = vector.broadcast %48 : f32 to vector<16x16xf32>
    %50 = arith.addf %47, %49 : vector<16x16xf32>
    %cst_14 = arith.constant 0.000000e+00 : f32
    %51 = vector.broadcast %cst_14 : f32 to vector<16x16xf32>
    %52 = arith.maximumf %50, %51 : vector<16x16xf32>
    %c0_15 = arith.constant 0 : index
    %c0_16 = arith.constant 0 : index
    %c0_17 = arith.constant 0 : index
    %53 = vector.load %arg9[%c0_15, %c0_16, %c0_17] : memref<18x16x16xf32, #tpu.memory_space<vmem>>, vector<1x16x16xf32>
    %54 = vector.shape_cast %53 : vector<1x16x16xf32> to vector<16x16xf32>
    %55 = vector.shape_cast %52 : vector<16x16xf32> to vector<1x16x16xf32>
    tpu.vector_store %arg9[%c0_15, %c0_16, %c0_17], %55 {strides = array<i32>} : memref<18x16x16xf32, #tpu.memory_space<vmem>>, vector<1x16x16xf32>,
    %c0_18 = arith.constant 0 : index
    %c1_19 = arith.constant 1 : index
    %c0_20 = arith.constant 0 : index
    %c0_21 = arith.constant 0 : index
    %56 = vector.load %arg1[%c0_18, %c1_19, %c0_20, %c0_21] : memref<1x18x18x18xf32, #tpu.memory_space<vmem>>, vector<1x1x18x18xf32>
    %57 = vector.shape_cast %56 : vector<1x1x18x18xf32> to vector<18x18xf32>
    %cst_22 = arith.constant 0.000000e+00 : f32
    %58 = vector.broadcast %cst_22 : f32 to vector<16x16xf32>
    %c1_23 = arith.constant 1 : index
    %c0_24 = arith.constant 0 : index
    %59 = memref.load %arg2[%c1_23, %c0_24] : memref<18x9xf32, #tpu.memory_space<smem>>
    %60 = vector.extract_strided_slice %57 {offsets = [0, 0], sizes = [16, 16], strides = [1, 1]} : vector<18x18xf32> to vector<16x16xf32>
    %61 = vector.broadcast %59 : f32 to vector<16x16xf32>
    %62 = arith.mulf %61, %60 : vector<16x16xf32>
    %63 = arith.addf %58, %62 : vector<16x16xf32>
    %c1_25 = arith.constant 1 : index
    %c1_26 = arith.constant 1 : index
    %64 = memref.load %arg2[%c1_25, %c1_26] : memref<18x9xf32, #tpu.memory_space<smem>>
    %65 = vector.extract_strided_slice %57 {offsets = [0, 1], sizes = [16, 16], strides = [1, 1]} : vector<18x18xf32> to vector<16x16xf32>
    %66 = vector.broadcast %64 : f32 to vector<16x16xf32>
    %67 = arith.mulf %66, %65 : vector<16x16xf32>
    %68 = arith.addf %63, %67 : vector<16x16xf32>
    %c1_27 = arith.constant 1 : index
    %c2_28 = arith.constant 2 : index
    %69 = memref.load %arg2[%c1_27, %c2_28] : memref<18x9xf32, #tpu.memory_space<smem>>
    %70 = vector.extract_strided_slice %57 {offsets = [0, 2], sizes = [16, 16], strides = [1, 1]} : vector<18x18xf32> to vector<16x16xf32>
    %71 = vector.broadcast %69 : f32 to vector<16x16xf32>
    %72 = arith.mulf %71, %70 : vector<16x16xf32>
    %73 = arith.addf %68, %72 : vector<16x16xf32>
    %c1_29 = arith.constant 1 : index
    %c3_30 = arith.constant 3 : index
    %74 = memref.load %arg2[%c1_29, %c3_30] : memref<18x9xf32, #tpu.memory_space<smem>>
    %75 = vector.extract_strided_slice %57 {offsets = [1, 0], sizes = [16, 16], strides = [1, 1]} : vector<18x18xf32> to vector<16x16xf32>
    %76 = vector.broadcast %74 : f32 to vector<16x16xf32>
    %77 = arith.mulf %76, %75 : vector<16x16xf32>
    %78 = arith.addf %73, %77 : vector<16x16xf32>
    %c1_31 = arith.constant 1 : index
    %c4_32 = arith.constant 4 : index
    %79 = memref.load %arg2[%c1_31, %c4_32] : memref<18x9xf32, #tpu.memory_space<smem>>
    %80 = vector.extract_strided_slice %57 {offsets = [1, 1], sizes = [16, 16], strides = [1, 1]} : vector<18x18xf32> to vector<16x16xf32>
    %81 = vector.broadcast %79 : f32 to vector<16x16xf32>
    %82 = arith.mulf %81, %80 : vector<16x16xf32>
    %83 = arith.addf %78, %82 : vector<16x16xf32>
    %c1_33 = arith.constant 1 : index
    %c5_34 = arith.constant 5 : index
    %84 = memref.load %arg2[%c1_33, %c5_34] : memref<18x9xf32, #tpu.memory_space<smem>>
    %85 = vector.extract_strided_slice %57 {offsets = [1, 2], sizes = [16, 16], strides = [1, 1]} : vector<18x18xf32> to vector<16x16xf32>
    %86 = vector.broadcast %84 : f32 to vector<16x16xf32>
    %87 = arith.mulf %86, %85 : vector<16x16xf32>
    %88 = arith.addf %83, %87 : vector<16x16xf32>
    %c1_35 = arith.constant 1 : index
    %c6_36 = arith.constant 6 : index
    %89 = memref.load %arg2[%c1_35, %c6_36] : memref<18x9xf32, #tpu.memory_space<smem>>
    %90 = vector.extract_strided_slice %57 {offsets = [2, 0], sizes = [16, 16], strides = [1, 1]} : vector<18x18xf32> to vector<16x16xf32>
    %91 = vector.broadcast %89 : f32 to vector<16x16xf32>
    %92 = arith.mulf %91, %90 : vector<16x16xf32>
    %93 = arith.addf %88, %92 : vector<16x16xf32>
    %c1_37 = arith.constant 1 : index
    %c7_38 = arith.constant 7 : index
    %94 = memref.load %arg2[%c1_37, %c7_38] : memref<18x9xf32, #tpu.memory_space<smem>>
    %95 = vector.extract_strided_slice %57 {offsets = [2, 1], sizes = [16, 16], strides = [1, 1]} : vector<18x18xf32> to vector<16x16xf32>
    %96 = vector.broadcast %94 : f32 to vector<16x16xf32>
    %97 = arith.mulf %96, %95 : vector<16x16xf32>
    %98 = arith.addf %93, %97 : vector<16x16xf32>
    %c1_39 = arith.constant 1 : index
    %c8_40 = arith.constant 8 : index
    %99 = memref.load %arg2[%c1_39, %c8_40] : memref<18x9xf32, #tpu.memory_space<smem>>
    %100 = vector.extract_strided_slice %57 {offsets = [2, 2], sizes = [16, 16], strides = [1, 1]} : vector<18x18xf32> to vector<16x16xf32>
    %101 = vector.broadcast %99 : f32 to vector<16x16xf32>
    %102 = arith.mulf %101, %100 : vector<16x16xf32>
    %103 = arith.addf %98, %102 : vector<16x16xf32>
    %c1_41 = arith.constant 1 : index
    %104 = memref.load %arg3[%c1_41] : memref<18xf32, #tpu.memory_space<smem>>
    %105 = vector.broadcast %104 : f32 to vector<16x16xf32>
    %106 = arith.addf %103, %105 : vector<16x16xf32>
    %cst_42 = arith.constant 0.000000e+00 : f32
    %107 = vector.broadcast %cst_42 : f32 to vector<16x16xf32>
    %108 = arith.maximumf %106, %107 : vector<16x16xf32>
    %c1_43 = arith.constant 1 : index
    %c0_44 = arith.constant 0 : index
    %c0_45 = arith.constant 0 : index
    %109 = vector.load %arg9[%c1_43, %c0_44, %c0_45] : memref<18x16x16xf32, #tpu.memory_space<vmem>>, vector<1x16x16xf32>
    %110 = vector.shape_cast %109 : vector<1x16x16xf32> to vector<16x16xf32>
    %111 = vector.shape_cast %108 : vector<16x16xf32> to vector<1x16x16xf32>
    tpu.vector_store %arg9[%c1_43, %c0_44, %c0_45], %111 {strides = array<i32>} : memref<18x16x16xf32, #tpu.memory_space<vmem>>, vector<1x16x16xf32>,
    %c0_46 = arith.constant 0 : index
    %c2_47 = arith.constant 2 : index
    %c0_48 = arith.constant 0 : index
    %c0_49 = arith.constant 0 : index
    %112 = vector.load %arg1[%c0_46, %c2_47, %c0_48, %c0_49] : memref<1x18x18x18xf32, #tpu.memory_space<vmem>>, vector<1x1x18x18xf32>
    %113 = vector.shape_cast %112 : vector<1x1x18x18xf32> to vector<18x18xf32>
    %cst_50 = arith.constant 0.000000e+00 : f32
    %114 = vector.broadcast %cst_50 : f32 to vector<16x16xf32>
    %c2_51 = arith.constant 2 : index
    %c0_52 = arith.constant 0 : index
    %115 = memref.load %arg2[%c2_51, %c0_52] : memref<18x9xf32, #tpu.memory_space<smem>>
    %116 = vector.extract_strided_slice %113 {offsets = [0, 0], sizes = [16, 16], strides = [1, 1]} : vector<18x18xf32> to vector<16x16xf32>
    %117 = vector.broadcast %115 : f32 to vector<16x16xf32>
    %118 = arith.mulf %117, %116 : vector<16x16xf32>
    %119 = arith.addf %114, %118 : vector<16x16xf32>
    %c2_53 = arith.constant 2 : index
    %c1_54 = arith.constant 1 : index
    %120 = memref.load %arg2[%c2_53, %c1_54] : memref<18x9xf32, #tpu.memory_space<smem>>
    %121 = vector.extract_strided_slice %113 {offsets = [0, 1], sizes = [16, 16], strides = [1, 1]} : vector<18x18xf32> to vector<16x16xf32>
    %122 = vector.broadcast %120 : f32 to vector<16x16xf32>
    %123 = arith.mulf %122, %121 : vector<16x16xf32>
    %124 = arith.addf %119, %123 : vector<16x16xf32>
    %c2_55 = arith.constant 2 : index
    %c2_56 = arith.constant 2 : index
    %125 = memref.load %arg2[%c2_55, %c2_56] : memref<18x9xf32, #tpu.memory_space<smem>>
    %126 = vector.extract_strided_slice %113 {offsets = [0, 2], sizes = [16, 16], strides = [1, 1]} : vector<18x18xf32> to vector<16x16xf32>
    %127 = vector.broadcast %125 : f32 to vector<16x16xf32>
    %128 = arith.mulf %127, %126 : vector<16x16xf32>
    %129 = arith.addf %124, %128 : vector<16x16xf32>
    %c2_57 = arith.constant 2 : index
    %c3_58 = arith.constant 3 : index
    %130 = memref.load %arg2[%c2_57, %c3_58] : memref<18x9xf32, #tpu.memory_space<smem>>
    %131 = vector.extract_strided_slice %113 {offsets = [1, 0], sizes = [16, 16], strides = [1, 1]} : vector<18x18xf32> to vector<16x16xf32>
    %132 = vector.broadcast %130 : f32 to vector<16x16xf32>
    %133 = arith.mulf %132, %131 : vector<16x16xf32>
    %134 = arith.addf %129, %133 : vector<16x16xf32>
    %c2_59 = arith.constant 2 : index
    %c4_60 = arith.constant 4 : index
    %135 = memref.load %arg2[%c2_59, %c4_60] : memref<18x9xf32, #tpu.memory_space<smem>>
    %136 = vector.extract_strided_slice %113 {offsets = [1, 1], sizes = [16, 16], strides = [1, 1]} : vector<18x18xf32> to vector<16x16xf32>
    %137 = vector.broadcast %135 : f32 to vector<16x16xf32>
    %138 = arith.mulf %137, %136 : vector<16x16xf32>
    %139 = arith.addf %134, %138 : vector<16x16xf32>
    %c2_61 = arith.constant 2 : index
    %c5_62 = arith.constant 5 : index
    %140 = memref.load %arg2[%c2_61, %c5_62] : memref<18x9xf32, #tpu.memory_space<smem>>
    %141 = vector.extract_strided_slice %113 {offsets = [1, 2], sizes = [16, 16], strides = [1, 1]} : vector<18x18xf32> to vector<16x16xf32>
    %142 = vector.broadcast %140 : f32 to vector<16x16xf32>
    %143 = arith.mulf %142, %141 : vector<16x16xf32>
    %144 = arith.addf %139, %143 : vector<16x16xf32>
    %c2_63 = arith.constant 2 : index
    %c6_64 = arith.constant 6 : index
    %145 = memref.load %arg2[%c2_63, %c6_64] : memref<18x9xf32, #tpu.memory_space<smem>>
    %146 = vector.extract_strided_slice %113 {offsets = [2, 0], sizes = [16, 16], strides = [1, 1]} : vector<18x18xf32> to vector<16x16xf32>
    %147 = vector.broadcast %145 : f32 to vector<16x16xf32>
    %148 = arith.mulf %147, %146 : vector<16x16xf32>
    %149 = arith.addf %144, %148 : vector<16x16xf32>
    %c2_65 = arith.constant 2 : index
    %c7_66 = arith.constant 7 : index
    %150 = memref.load %arg2[%c2_65, %c7_66] : memref<18x9xf32, #tpu.memory_space<smem>>
    %151 = vector.extract_strided_slice %113 {offsets = [2, 1], sizes = [16, 16], strides = [1, 1]} : vector<18x18xf32> to vector<16x16xf32>
    %152 = vector.broadcast %150 : f32 to vector<16x16xf32>
    %153 = arith.mulf %152, %151 : vector<16x16xf32>
    %154 = arith.addf %149, %153 : vector<16x16xf32>
    %c2_67 = arith.constant 2 : index
    %c8_68 = arith.constant 8 : index
    %155 = memref.load %arg2[%c2_67, %c8_68] : memref<18x9xf32, #tpu.memory_space<smem>>
    %156 = vector.extract_strided_slice %113 {offsets = [2, 2], sizes = [16, 16], strides = [1, 1]} : vector<18x18xf32> to vector<16x16xf32>
    %157 = vector.broadcast %155 : f32 to vector<16x16xf32>
    %158 = arith.mulf %157, %156 : vector<16x16xf32>
    %159 = arith.addf %154, %158 : vector<16x16xf32>
    %c2_69 = arith.constant 2 : index
    %160 = memref.load %arg3[%c2_69] : memref<18xf32, #tpu.memory_space<smem>>
    %161 = vector.broadcast %160 : f32 to vector<16x16xf32>
    %162 = arith.addf %159, %161 : vector<16x16xf32>
    %cst_70 = arith.constant 0.000000e+00 : f32
    %163 = vector.broadcast %cst_70 : f32 to vector<16x16xf32>
    %164 = arith.maximumf %162, %163 : vector<16x16xf32>
    %c2_71 = arith.constant 2 : index
    %c0_72 = arith.constant 0 : index
    %c0_73 = arith.constant 0 : index
    %165 = vector.load %arg9[%c2_71, %c0_72, %c0_73] : memref<18x16x16xf32, #tpu.memory_space<vmem>>, vector<1x16x16xf32>
    %166 = vector.shape_cast %165 : vector<1x16x16xf32> to vector<16x16xf32>
    %167 = vector.shape_cast %164 : vector<16x16xf32> to vector<1x16x16xf32>
    tpu.vector_store %arg9[%c2_71, %c0_72, %c0_73], %167 {strides = array<i32>} : memref<18x16x16xf32, #tpu.memory_space<vmem>>, vector<1x16x16xf32>,
    %c0_74 = arith.constant 0 : index
    %c3_75 = arith.constant 3 : index
    %c0_76 = arith.constant 0 : index
    %c0_77 = arith.constant 0 : index
    %168 = vector.load %arg1[%c0_74, %c3_75, %c0_76, %c0_77] : memref<1x18x18x18xf32, #tpu.memory_space<vmem>>, vector<1x1x18x18xf32>
    %169 = vector.shape_cast %168 : vector<1x1x18x18xf32> to vector<18x18xf32>
    %cst_78 = arith.constant 0.000000e+00 : f32
    %170 = vector.broadcast %cst_78 : f32 to vector<16x16xf32>
    %c3_79 = arith.constant 3 : index
    %c0_80 = arith.constant 0 : index
    %171 = memref.load %arg2[%c3_79, %c0_80] : memref<18x9xf32, #tpu.memory_space<smem>>
    %172 = vector.extract_strided_slice %169 {offsets = [0, 0], sizes = [16, 16], strides = [1, 1]} : vector<18x18xf32> to vector<16x16xf32>
    %173 = vector.broadcast %171 : f32 to vector<16x16xf32>
    %174 = arith.mulf %173, %172 : vector<16x16xf32>
    %175 = arith.addf %170, %174 : vector<16x16xf32>
    %c3_81 = arith.constant 3 : index
    %c1_82 = arith.constant 1 : index
    %176 = memref.load %arg2[%c3_81, %c1_82] : memref<18x9xf32, #tpu.memory_space<smem>>
    %177 = vector.extract_strided_slice %169 {offsets = [0, 1], sizes = [16, 16], strides = [1, 1]} : vector<18x18xf32> to vector<16x16xf32>
    %178 = vector.broadcast %176 : f32 to vector<16x16xf32>
    %179 = arith.mulf %178, %177 : vector<16x16xf32>
    %180 = arith.addf %175, %179 : vector<16x16xf32>
    %c3_83 = arith.constant 3 : index
    %c2_84 = arith.constant 2 : index
    %181 = memref.load %arg2[%c3_83, %c2_84] : memref<18x9xf32, #tpu.memory_space<smem>>
    %182 = vector.extract_strided_slice %169 {offsets = [0, 2], sizes = [16, 16], strides = [1, 1]} : vector<18x18xf32> to vector<16x16xf32>
    %183 = vector.broadcast %181 : f32 to vector<16x16xf32>
    %184 = arith.mulf %183, %182 : vector<16x16xf32>
    %185 = arith.addf %180, %184 : vector<16x16xf32>
    %c3_85 = arith.constant 3 : index
    %c3_86 = arith.constant 3 : index
    %186 = memref.load %arg2[%c3_85, %c3_86] : memref<18x9xf32, #tpu.memory_space<smem>>
    %187 = vector.extract_strided_slice %169 {offsets = [1, 0], sizes = [16, 16], strides = [1, 1]} : vector<18x18xf32> to vector<16x16xf32>
    %188 = vector.broadcast %186 : f32 to vector<16x16xf32>
    %189 = arith.mulf %188, %187 : vector<16x16xf32>
    %190 = arith.addf %185, %189 : vector<16x16xf32>
    %c3_87 = arith.constant 3 : index
    %c4_88 = arith.constant 4 : index
    %191 = memref.load %arg2[%c3_87, %c4_88] : memref<18x9xf32, #tpu.memory_space<smem>>
    %192 = vector.extract_strided_slice %169 {offsets = [1, 1], sizes = [16, 16], strides = [1, 1]} : vector<18x18xf32> to vector<16x16xf32>
    %193 = vector.broadcast %191 : f32 to vector<16x16xf32>
    %194 = arith.mulf %193, %192 : vector<16x16xf32>
    %195 = arith.addf %190, %194 : vector<16x16xf32>
    %c3_89 = arith.constant 3 : index
    %c5_90 = arith.constant 5 : index
    %196 = memref.load %arg2[%c3_89, %c5_90] : memref<18x9xf32, #tpu.memory_space<smem>>
    %197 = vector.extract_strided_slice %169 {offsets = [1, 2], sizes = [16, 16], strides = [1, 1]} : vector<18x18xf32> to vector<16x16xf32>
    %198 = vector.broadcast %196 : f32 to vector<16x16xf32>
    %199 = arith.mulf %198, %197 : vector<16x16xf32>
    %200 = arith.addf %195, %199 : vector<16x16xf32>
    %c3_91 = arith.constant 3 : index
    %c6_92 = arith.constant 6 : index
    %201 = memref.load %arg2[%c3_91, %c6_92] : memref<18x9xf32, #tpu.memory_space<smem>>
    %202 = vector.extract_strided_slice %169 {offsets = [2, 0], sizes = [16, 16], strides = [1, 1]} : vector<18x18xf32> to vector<16x16xf32>
    %203 = vector.broadcast %201 : f32 to vector<16x16xf32>
    %204 = arith.mulf %203, %202 : vector<16x16xf32>
    %205 = arith.addf %200, %204 : vector<16x16xf32>
    %c3_93 = arith.constant 3 : index
    %c7_94 = arith.constant 7 : index
    %206 = memref.load %arg2[%c3_93, %c7_94] : memref<18x9xf32, #tpu.memory_space<smem>>
    %207 = vector.extract_strided_slice %169 {offsets = [2, 1], sizes = [16, 16], strides = [1, 1]} : vector<18x18xf32> to vector<16x16xf32>
    %208 = vector.broadcast %206 : f32 to vector<16x16xf32>
    %209 = arith.mulf %208, %207 : vector<16x16xf32>
    %210 = arith.addf %205, %209 : vector<16x16xf32>
    %c3_95 = arith.constant 3 : index
    %c8_96 = arith.constant 8 : index
    %211 = memref.load %arg2[%c3_95, %c8_96] : memref<18x9xf32, #tpu.memory_space<smem>>
    %212 = vector.extract_strided_slice %169 {offsets = [2, 2], sizes = [16, 16], strides = [1, 1]} : vector<18x18xf32> to vector<16x16xf32>
    %213 = vector.broadcast %211 : f32 to vector<16x16xf32>
    %214 = arith.mulf %213, %212 : vector<16x16xf32>
    %215 = arith.addf %210, %214 : vector<16x16xf32>
    %c3_97 = arith.constant 3 : index
    %216 = memref.load %arg3[%c3_97] : memref<18xf32, #tpu.memory_space<smem>>
    %217 = vector.broadcast %216 : f32 to vector<16x16xf32>
    %218 = arith.addf %215, %217 : vector<16x16xf32>
    %cst_98 = arith.constant 0.000000e+00 : f32
    %219 = vector.broadcast %cst_98 : f32 to vector<16x16xf32>
    %220 = arith.maximumf %218, %219 : vector<16x16xf32>
    %c3_99 = arith.constant 3 : index
    %c0_100 = arith.constant 0 : index
    %c0_101 = arith.constant 0 : index
    %221 = vector.load %arg9[%c3_99, %c0_100, %c0_101] : memref<18x16x16xf32, #tpu.memory_space<vmem>>, vector<1x16x16xf32>
    %222 = vector.shape_cast %221 : vector<1x16x16xf32> to vector<16x16xf32>
    %223 = vector.shape_cast %220 : vector<16x16xf32> to vector<1x16x16xf32>
    tpu.vector_store %arg9[%c3_99, %c0_100, %c0_101], %223 {strides = array<i32>} : memref<18x16x16xf32, #tpu.memory_space<vmem>>, vector<1x16x16xf32>,
    %c0_102 = arith.constant 0 : index
    %c4_103 = arith.constant 4 : index
    %c0_104 = arith.constant 0 : index
    %c0_105 = arith.constant 0 : index
    %224 = vector.load %arg1[%c0_102, %c4_103, %c0_104, %c0_105] : memref<1x18x18x18xf32, #tpu.memory_space<vmem>>, vector<1x1x18x18xf32>
    %225 = vector.shape_cast %224 : vector<1x1x18x18xf32> to vector<18x18xf32>
    %cst_106 = arith.constant 0.000000e+00 : f32
    %226 = vector.broadcast %cst_106 : f32 to vector<16x16xf32>
    %c4_107 = arith.constant 4 : index
    %c0_108 = arith.constant 0 : index
    %227 = memref.load %arg2[%c4_107, %c0_108] : memref<18x9xf32, #tpu.memory_space<smem>>
    %228 = vector.extract_strided_slice %225 {offsets = [0, 0], sizes = [16, 16], strides = [1, 1]} : vector<18x18xf32> to vector<16x16xf32>
    %229 = vector.broadcast %227 : f32 to vector<16x16xf32>
    %230 = arith.mulf %229, %228 : vector<16x16xf32>
    %231 = arith.addf %226, %230 : vector<16x16xf32>
    %c4_109 = arith.constant 4 : index
    %c1_110 = arith.constant 1 : index
    %232 = memref.load %arg2[%c4_109, %c1_110] : memref<18x9xf32, #tpu.memory_space<smem>>
    %233 = vector.extract_strided_slice %225 {offsets = [0, 1], sizes = [16, 16], strides = [1, 1]} : vector<18x18xf32> to vector<16x16xf32>
    %234 = vector.broadcast %232 : f32 to vector<16x16xf32>
    %235 = arith.mulf %234, %233 : vector<16x16xf32>
    %236 = arith.addf %231, %235 : vector<16x16xf32>
    %c4_111 = arith.constant 4 : index
    %c2_112 = arith.constant 2 : index
    %237 = memref.load %arg2[%c4_111, %c2_112] : memref<18x9xf32, #tpu.memory_space<smem>>
    %238 = vector.extract_strided_slice %225 {offsets = [0, 2], sizes = [16, 16], strides = [1, 1]} : vector<18x18xf32> to vector<16x16xf32>
    %239 = vector.broadcast %237 : f32 to vector<16x16xf32>
    %240 = arith.mulf %239, %238 : vector<16x16xf32>
    %241 = arith.addf %236, %240 : vector<16x16xf32>
    %c4_113 = arith.constant 4 : index
    %c3_114 = arith.constant 3 : index
    %242 = memref.load %arg2[%c4_113, %c3_114] : memref<18x9xf32, #tpu.memory_space<smem>>
    %243 = vector.extract_strided_slice %225 {offsets = [1, 0], sizes = [16, 16], strides = [1, 1]} : vector<18x18xf32> to vector<16x16xf32>
    %244 = vector.broadcast %242 : f32 to vector<16x16xf32>
    %245 = arith.mulf %244, %243 : vector<16x16xf32>
    %246 = arith.addf %241, %245 : vector<16x16xf32>
    %c4_115 = arith.constant 4 : index
    %c4_116 = arith.constant 4 : index
    %247 = memref.load %arg2[%c4_115, %c4_116] : memref<18x9xf32, #tpu.memory_space<smem>>
    %248 = vector.extract_strided_slice %225 {offsets = [1, 1], sizes = [16, 16], strides = [1, 1]} : vector<18x18xf32> to vector<16x16xf32>
    %249 = vector.broadcast %247 : f32 to vector<16x16xf32>
    %250 = arith.mulf %249, %248 : vector<16x16xf32>
    %251 = arith.addf %246, %250 : vector<16x16xf32>
    %c4_117 = arith.constant 4 : index
    %c5_118 = arith.constant 5 : index
    %252 = memref.load %arg2[%c4_117, %c5_118] : memref<18x9xf32, #tpu.memory_space<smem>>
    %253 = vector.extract_strided_slice %225 {offsets = [1, 2], sizes = [16, 16], strides = [1, 1]} : vector<18x18xf32> to vector<16x16xf32>
    %254 = vector.broadcast %252 : f32 to vector<16x16xf32>
    %255 = arith.mulf %254, %253 : vector<16x16xf32>
    %256 = arith.addf %251, %255 : vector<16x16xf32>
    %c4_119 = arith.constant 4 : index
    %c6_120 = arith.constant 6 : index
    %257 = memref.load %arg2[%c4_119, %c6_120] : memref<18x9xf32, #tpu.memory_space<smem>>
    %258 = vector.extract_strided_slice %225 {offsets = [2, 0], sizes = [16, 16], strides = [1, 1]} : vector<18x18xf32> to vector<16x16xf32>
    %259 = vector.broadcast %257 : f32 to vector<16x16xf32>
    %260 = arith.mulf %259, %258 : vector<16x16xf32>
    %261 = arith.addf %256, %260 : vector<16x16xf32>
    %c4_121 = arith.constant 4 : index
    %c7_122 = arith.constant 7 : index
    %262 = memref.load %arg2[%c4_121, %c7_122] : memref<18x9xf32, #tpu.memory_space<smem>>
    %263 = vector.extract_strided_slice %225 {offsets = [2, 1], sizes = [16, 16], strides = [1, 1]} : vector<18x18xf32> to vector<16x16xf32>
    %264 = vector.broadcast %262 : f32 to vector<16x16xf32>
    %265 = arith.mulf %264, %263 : vector<16x16xf32>
    %266 = arith.addf %261, %265 : vector<16x16xf32>
    %c4_123 = arith.constant 4 : index
    %c8_124 = arith.constant 8 : index
    %267 = memref.load %arg2[%c4_123, %c8_124] : memref<18x9xf32, #tpu.memory_space<smem>>
    %268 = vector.extract_strided_slice %225 {offsets = [2, 2], sizes = [16, 16], strides = [1, 1]} : vector<18x18xf32> to vector<16x16xf32>
    %269 = vector.broadcast %267 : f32 to vector<16x16xf32>
    %270 = arith.mulf %269, %268 : vector<16x16xf32>
    %271 = arith.addf %266, %270 : vector<16x16xf32>
    %c4_125 = arith.constant 4 : index
    %272 = memref.load %arg3[%c4_125] : memref<18xf32, #tpu.memory_space<smem>>
    %273 = vector.broadcast %272 : f32 to vector<16x16xf32>
    %274 = arith.addf %271, %273 : vector<16x16xf32>
    %cst_126 = arith.constant 0.000000e+00 : f32
    %275 = vector.broadcast %cst_126 : f32 to vector<16x16xf32>
    %276 = arith.maximumf %274, %275 : vector<16x16xf32>
    %c4_127 = arith.constant 4 : index
    %c0_128 = arith.constant 0 : index
    %c0_129 = arith.constant 0 : index
    %277 = vector.load %arg9[%c4_127, %c0_128, %c0_129] : memref<18x16x16xf32, #tpu.memory_space<vmem>>, vector<1x16x16xf32>
    %278 = vector.shape_cast %277 : vector<1x16x16xf32> to vector<16x16xf32>
    %279 = vector.shape_cast %276 : vector<16x16xf32> to vector<1x16x16xf32>
    tpu.vector_store %arg9[%c4_127, %c0_128, %c0_129], %279 {strides = array<i32>} : memref<18x16x16xf32, #tpu.memory_space<vmem>>, vector<1x16x16xf32>,
    %c0_130 = arith.constant 0 : index
    %c5_131 = arith.constant 5 : index
    %c0_132 = arith.constant 0 : index
    %c0_133 = arith.constant 0 : index
    %280 = vector.load %arg1[%c0_130, %c5_131, %c0_132, %c0_133] : memref<1x18x18x18xf32, #tpu.memory_space<vmem>>, vector<1x1x18x18xf32>
    %281 = vector.shape_cast %280 : vector<1x1x18x18xf32> to vector<18x18xf32>
    %cst_134 = arith.constant 0.000000e+00 : f32
    %282 = vector.broadcast %cst_134 : f32 to vector<16x16xf32>
    %c5_135 = arith.constant 5 : index
    %c0_136 = arith.constant 0 : index
    %283 = memref.load %arg2[%c5_135, %c0_136] : memref<18x9xf32, #tpu.memory_space<smem>>
    %284 = vector.extract_strided_slice %281 {offsets = [0, 0], sizes = [16, 16], strides = [1, 1]} : vector<18x18xf32> to vector<16x16xf32>
    %285 = vector.broadcast %283 : f32 to vector<16x16xf32>
    %286 = arith.mulf %285, %284 : vector<16x16xf32>
    %287 = arith.addf %282, %286 : vector<16x16xf32>
    %c5_137 = arith.constant 5 : index
    %c1_138 = arith.constant 1 : index
    %288 = memref.load %arg2[%c5_137, %c1_138] : memref<18x9xf32, #tpu.memory_space<smem>>
    %289 = vector.extract_strided_slice %281 {offsets = [0, 1], sizes = [16, 16], strides = [1, 1]} : vector<18x18xf32> to vector<16x16xf32>
    %290 = vector.broadcast %288 : f32 to vector<16x16xf32>
    %291 = arith.mulf %290, %289 : vector<16x16xf32>
    %292 = arith.addf %287, %291 : vector<16x16xf32>
    %c5_139 = arith.constant 5 : index
    %c2_140 = arith.constant 2 : index
    %293 = memref.load %arg2[%c5_139, %c2_140] : memref<18x9xf32, #tpu.memory_space<smem>>
    %294 = vector.extract_strided_slice %281 {offsets = [0, 2], sizes = [16, 16], strides = [1, 1]} : vector<18x18xf32> to vector<16x16xf32>
    %295 = vector.broadcast %293 : f32 to vector<16x16xf32>
    %296 = arith.mulf %295, %294 : vector<16x16xf32>
    %297 = arith.addf %292, %296 : vector<16x16xf32>
    %c5_141 = arith.constant 5 : index
    %c3_142 = arith.constant 3 : index
    %298 = memref.load %arg2[%c5_141, %c3_142] : memref<18x9xf32, #tpu.memory_space<smem>>
    %299 = vector.extract_strided_slice %281 {offsets = [1, 0], sizes = [16, 16], strides = [1, 1]} : vector<18x18xf32> to vector<16x16xf32>
    %300 = vector.broadcast %298 : f32 to vector<16x16xf32>
    %301 = arith.mulf %300, %299 : vector<16x16xf32>
    %302 = arith.addf %297, %301 : vector<16x16xf32>
    %c5_143 = arith.constant 5 : index
    %c4_144 = arith.constant 4 : index
    %303 = memref.load %arg2[%c5_143, %c4_144] : memref<18x9xf32, #tpu.memory_space<smem>>
    %304 = vector.extract_strided_slice %281 {offsets = [1, 1], sizes = [16, 16], strides = [1, 1]} : vector<18x18xf32> to vector<16x16xf32>
    %305 = vector.broadcast %303 : f32 to vector<16x16xf32>
    %306 = arith.mulf %305, %304 : vector<16x16xf32>
    %307 = arith.addf %302, %306 : vector<16x16xf32>
    %c5_145 = arith.constant 5 : index
    %c5_146 = arith.constant 5 : index
    %308 = memref.load %arg2[%c5_145, %c5_146] : memref<18x9xf32, #tpu.memory_space<smem>>
    %309 = vector.extract_strided_slice %281 {offsets = [1, 2], sizes = [16, 16], strides = [1, 1]} : vector<18x18xf32> to vector<16x16xf32>
    %310 = vector.broadcast %308 : f32 to vector<16x16xf32>
    %311 = arith.mulf %310, %309 : vector<16x16xf32>
    %312 = arith.addf %307, %311 : vector<16x16xf32>
    %c5_147 = arith.constant 5 : index
    %c6_148 = arith.constant 6 : index
    %313 = memref.load %arg2[%c5_147, %c6_148] : memref<18x9xf32, #tpu.memory_space<smem>>
    %314 = vector.extract_strided_slice %281 {offsets = [2, 0], sizes = [16, 16], strides = [1, 1]} : vector<18x18xf32> to vector<16x16xf32>
    %315 = vector.broadcast %313 : f32 to vector<16x16xf32>
    %316 = arith.mulf %315, %314 : vector<16x16xf32>
    %317 = arith.addf %312, %316 : vector<16x16xf32>
    %c5_149 = arith.constant 5 : index
    %c7_150 = arith.constant 7 : index
    %318 = memref.load %arg2[%c5_149, %c7_150] : memref<18x9xf32, #tpu.memory_space<smem>>
    %319 = vector.extract_strided_slice %281 {offsets = [2, 1], sizes = [16, 16], strides = [1, 1]} : vector<18x18xf32> to vector<16x16xf32>
    %320 = vector.broadcast %318 : f32 to vector<16x16xf32>
    %321 = arith.mulf %320, %319 : vector<16x16xf32>
    %322 = arith.addf %317, %321 : vector<16x16xf32>
    %c5_151 = arith.constant 5 : index
    %c8_152 = arith.constant 8 : index
    %323 = memref.load %arg2[%c5_151, %c8_152] : memref<18x9xf32, #tpu.memory_space<smem>>
    %324 = vector.extract_strided_slice %281 {offsets = [2, 2], sizes = [16, 16], strides = [1, 1]} : vector<18x18xf32> to vector<16x16xf32>
    %325 = vector.broadcast %323 : f32 to vector<16x16xf32>
    %326 = arith.mulf %325, %324 : vector<16x16xf32>
    %327 = arith.addf %322, %326 : vector<16x16xf32>
    %c5_153 = arith.constant 5 : index
    %328 = memref.load %arg3[%c5_153] : memref<18xf32, #tpu.memory_space<smem>>
    %329 = vector.broadcast %328 : f32 to vector<16x16xf32>
    %330 = arith.addf %327, %329 : vector<16x16xf32>
    %cst_154 = arith.constant 0.000000e+00 : f32
    %331 = vector.broadcast %cst_154 : f32 to vector<16x16xf32>
    %332 = arith.maximumf %330, %331 : vector<16x16xf32>
    %c5_155 = arith.constant 5 : index
    %c0_156 = arith.constant 0 : index
    %c0_157 = arith.constant 0 : index
    %333 = vector.load %arg9[%c5_155, %c0_156, %c0_157] : memref<18x16x16xf32, #tpu.memory_space<vmem>>, vector<1x16x16xf32>
    %334 = vector.shape_cast %333 : vector<1x16x16xf32> to vector<16x16xf32>
    %335 = vector.shape_cast %332 : vector<16x16xf32> to vector<1x16x16xf32>
    tpu.vector_store %arg9[%c5_155, %c0_156, %c0_157], %335 {strides = array<i32>} : memref<18x16x16xf32, #tpu.memory_space<vmem>>, vector<1x16x16xf32>,
    %c0_158 = arith.constant 0 : index
    %c6_159 = arith.constant 6 : index
    %c0_160 = arith.constant 0 : index
    %c0_161 = arith.constant 0 : index
    %336 = vector.load %arg1[%c0_158, %c6_159, %c0_160, %c0_161] : memref<1x18x18x18xf32, #tpu.memory_space<vmem>>, vector<1x1x18x18xf32>
    %337 = vector.shape_cast %336 : vector<1x1x18x18xf32> to vector<18x18xf32>
    %cst_162 = arith.constant 0.000000e+00 : f32
    %338 = vector.broadcast %cst_162 : f32 to vector<16x16xf32>
    %c6_163 = arith.constant 6 : index
    %c0_164 = arith.constant 0 : index
    %339 = memref.load %arg2[%c6_163, %c0_164] : memref<18x9xf32, #tpu.memory_space<smem>>
    %340 = vector.extract_strided_slice %337 {offsets = [0, 0], sizes = [16, 16], strides = [1, 1]} : vector<18x18xf32> to vector<16x16xf32>
    %341 = vector.broadcast %339 : f32 to vector<16x16xf32>
    %342 = arith.mulf %341, %340 : vector<16x16xf32>
    %343 = arith.addf %338, %342 : vector<16x16xf32>
    %c6_165 = arith.constant 6 : index
    %c1_166 = arith.constant 1 : index
    %344 = memref.load %arg2[%c6_165, %c1_166] : memref<18x9xf32, #tpu.memory_space<smem>>
    %345 = vector.extract_strided_slice %337 {offsets = [0, 1], sizes = [16, 16], strides = [1, 1]} : vector<18x18xf32> to vector<16x16xf32>
    %346 = vector.broadcast %344 : f32 to vector<16x16xf32>
    %347 = arith.mulf %346, %345 : vector<16x16xf32>
    %348 = arith.addf %343, %347 : vector<16x16xf32>
    %c6_167 = arith.constant 6 : index
    %c2_168 = arith.constant 2 : index
    %349 = memref.load %arg2[%c6_167, %c2_168] : memref<18x9xf32, #tpu.memory_space<smem>>
    %350 = vector.extract_strided_slice %337 {offsets = [0, 2], sizes = [16, 16], strides = [1, 1]} : vector<18x18xf32> to vector<16x16xf32>
    %351 = vector.broadcast %349 : f32 to vector<16x16xf32>
    %352 = arith.mulf %351, %350 : vector<16x16xf32>
    %353 = arith.addf %348, %352 : vector<16x16xf32>
    %c6_169 = arith.constant 6 : index
    %c3_170 = arith.constant 3 : index
    %354 = memref.load %arg2[%c6_169, %c3_170] : memref<18x9xf32, #tpu.memory_space<smem>>
    %355 = vector.extract_strided_slice %337 {offsets = [1, 0], sizes = [16, 16], strides = [1, 1]} : vector<18x18xf32> to vector<16x16xf32>
    %356 = vector.broadcast %354 : f32 to vector<16x16xf32>
    %357 = arith.mulf %356, %355 : vector<16x16xf32>
    %358 = arith.addf %353, %357 : vector<16x16xf32>
    %c6_171 = arith.constant 6 : index
    %c4_172 = arith.constant 4 : index
    %359 = memref.load %arg2[%c6_171, %c4_172] : memref<18x9xf32, #tpu.memory_space<smem>>
    %360 = vector.extract_strided_slice %337 {offsets = [1, 1], sizes = [16, 16], strides = [1, 1]} : vector<18x18xf32> to vector<16x16xf32>
    %361 = vector.broadcast %359 : f32 to vector<16x16xf32>
    %362 = arith.mulf %361, %360 : vector<16x16xf32>
    %363 = arith.addf %358, %362 : vector<16x16xf32>
    %c6_173 = arith.constant 6 : index
    %c5_174 = arith.constant 5 : index
    %364 = memref.load %arg2[%c6_173, %c5_174] : memref<18x9xf32, #tpu.memory_space<smem>>
    %365 = vector.extract_strided_slice %337 {offsets = [1, 2], sizes = [16, 16], strides = [1, 1]} : vector<18x18xf32> to vector<16x16xf32>
    %366 = vector.broadcast %364 : f32 to vector<16x16xf32>
    %367 = arith.mulf %366, %365 : vector<16x16xf32>
    %368 = arith.addf %363, %367 : vector<16x16xf32>
    %c6_175 = arith.constant 6 : index
    %c6_176 = arith.constant 6 : index
    %369 = memref.load %arg2[%c6_175, %c6_176] : memref<18x9xf32, #tpu.memory_space<smem>>
    %370 = vector.extract_strided_slice %337 {offsets = [2, 0], sizes = [16, 16], strides = [1, 1]} : vector<18x18xf32> to vector<16x16xf32>
    %371 = vector.broadcast %369 : f32 to vector<16x16xf32>
    %372 = arith.mulf %371, %370 : vector<16x16xf32>
    %373 = arith.addf %368, %372 : vector<16x16xf32>
    %c6_177 = arith.constant 6 : index
    %c7_178 = arith.constant 7 : index
    %374 = memref.load %arg2[%c6_177, %c7_178] : memref<18x9xf32, #tpu.memory_space<smem>>
    %375 = vector.extract_strided_slice %337 {offsets = [2, 1], sizes = [16, 16], strides = [1, 1]} : vector<18x18xf32> to vector<16x16xf32>
    %376 = vector.broadcast %374 : f32 to vector<16x16xf32>
    %377 = arith.mulf %376, %375 : vector<16x16xf32>
    %378 = arith.addf %373, %377 : vector<16x16xf32>
    %c6_179 = arith.constant 6 : index
    %c8_180 = arith.constant 8 : index
    %379 = memref.load %arg2[%c6_179, %c8_180] : memref<18x9xf32, #tpu.memory_space<smem>>
    %380 = vector.extract_strided_slice %337 {offsets = [2, 2], sizes = [16, 16], strides = [1, 1]} : vector<18x18xf32> to vector<16x16xf32>
    %381 = vector.broadcast %379 : f32 to vector<16x16xf32>
    %382 = arith.mulf %381, %380 : vector<16x16xf32>
    %383 = arith.addf %378, %382 : vector<16x16xf32>
    %c6_181 = arith.constant 6 : index
    %384 = memref.load %arg3[%c6_181] : memref<18xf32, #tpu.memory_space<smem>>
    %385 = vector.broadcast %384 : f32 to vector<16x16xf32>
    %386 = arith.addf %383, %385 : vector<16x16xf32>
    %cst_182 = arith.constant 0.000000e+00 : f32
    %387 = vector.broadcast %cst_182 : f32 to vector<16x16xf32>
    %388 = arith.maximumf %386, %387 : vector<16x16xf32>
    %c6_183 = arith.constant 6 : index
    %c0_184 = arith.constant 0 : index
    %c0_185 = arith.constant 0 : index
    %389 = vector.load %arg9[%c6_183, %c0_184, %c0_185] : memref<18x16x16xf32, #tpu.memory_space<vmem>>, vector<1x16x16xf32>
    %390 = vector.shape_cast %389 : vector<1x16x16xf32> to vector<16x16xf32>
    %391 = vector.shape_cast %388 : vector<16x16xf32> to vector<1x16x16xf32>
    tpu.vector_store %arg9[%c6_183, %c0_184, %c0_185], %391 {strides = array<i32>} : memref<18x16x16xf32, #tpu.memory_space<vmem>>, vector<1x16x16xf32>,
    %c0_186 = arith.constant 0 : index
    %c7_187 = arith.constant 7 : index
    %c0_188 = arith.constant 0 : index
    %c0_189 = arith.constant 0 : index
    %392 = vector.load %arg1[%c0_186, %c7_187, %c0_188, %c0_189] : memref<1x18x18x18xf32, #tpu.memory_space<vmem>>, vector<1x1x18x18xf32>
    %393 = vector.shape_cast %392 : vector<1x1x18x18xf32> to vector<18x18xf32>
    %cst_190 = arith.constant 0.000000e+00 : f32
    %394 = vector.broadcast %cst_190 : f32 to vector<16x16xf32>
    %c7_191 = arith.constant 7 : index
    %c0_192 = arith.constant 0 : index
    %395 = memref.load %arg2[%c7_191, %c0_192] : memref<18x9xf32, #tpu.memory_space<smem>>
    %396 = vector.extract_strided_slice %393 {offsets = [0, 0], sizes = [16, 16], strides = [1, 1]} : vector<18x18xf32> to vector<16x16xf32>
    %397 = vector.broadcast %395 : f32 to vector<16x16xf32>
    %398 = arith.mulf %397, %396 : vector<16x16xf32>
    %399 = arith.addf %394, %398 : vector<16x16xf32>
    %c7_193 = arith.constant 7 : index
    %c1_194 = arith.constant 1 : index
    %400 = memref.load %arg2[%c7_193, %c1_194] : memref<18x9xf32, #tpu.memory_space<smem>>
    %401 = vector.extract_strided_slice %393 {offsets = [0, 1], sizes = [16, 16], strides = [1, 1]} : vector<18x18xf32> to vector<16x16xf32>
    %402 = vector.broadcast %400 : f32 to vector<16x16xf32>
    %403 = arith.mulf %402, %401 : vector<16x16xf32>
    %404 = arith.addf %399, %403 : vector<16x16xf32>
    %c7_195 = arith.constant 7 : index
    %c2_196 = arith.constant 2 : index
    %405 = memref.load %arg2[%c7_195, %c2_196] : memref<18x9xf32, #tpu.memory_space<smem>>
    %406 = vector.extract_strided_slice %393 {offsets = [0, 2], sizes = [16, 16], strides = [1, 1]} : vector<18x18xf32> to vector<16x16xf32>
    %407 = vector.broadcast %405 : f32 to vector<16x16xf32>
    %408 = arith.mulf %407, %406 : vector<16x16xf32>
    %409 = arith.addf %404, %408 : vector<16x16xf32>
    %c7_197 = arith.constant 7 : index
    %c3_198 = arith.constant 3 : index
    %410 = memref.load %arg2[%c7_197, %c3_198] : memref<18x9xf32, #tpu.memory_space<smem>>
    %411 = vector.extract_strided_slice %393 {offsets = [1, 0], sizes = [16, 16], strides = [1, 1]} : vector<18x18xf32> to vector<16x16xf32>
    %412 = vector.broadcast %410 : f32 to vector<16x16xf32>
    %413 = arith.mulf %412, %411 : vector<16x16xf32>
    %414 = arith.addf %409, %413 : vector<16x16xf32>
    %c7_199 = arith.constant 7 : index
    %c4_200 = arith.constant 4 : index
    %415 = memref.load %arg2[%c7_199, %c4_200] : memref<18x9xf32, #tpu.memory_space<smem>>
    %416 = vector.extract_strided_slice %393 {offsets = [1, 1], sizes = [16, 16], strides = [1, 1]} : vector<18x18xf32> to vector<16x16xf32>
    %417 = vector.broadcast %415 : f32 to vector<16x16xf32>
    %418 = arith.mulf %417, %416 : vector<16x16xf32>
    %419 = arith.addf %414, %418 : vector<16x16xf32>
    %c7_201 = arith.constant 7 : index
    %c5_202 = arith.constant 5 : index
    %420 = memref.load %arg2[%c7_201, %c5_202] : memref<18x9xf32, #tpu.memory_space<smem>>
    %421 = vector.extract_strided_slice %393 {offsets = [1, 2], sizes = [16, 16], strides = [1, 1]} : vector<18x18xf32> to vector<16x16xf32>
    %422 = vector.broadcast %420 : f32 to vector<16x16xf32>
    %423 = arith.mulf %422, %421 : vector<16x16xf32>
    %424 = arith.addf %419, %423 : vector<16x16xf32>
    %c7_203 = arith.constant 7 : index
    %c6_204 = arith.constant 6 : index
    %425 = memref.load %arg2[%c7_203, %c6_204] : memref<18x9xf32, #tpu.memory_space<smem>>
    %426 = vector.extract_strided_slice %393 {offsets = [2, 0], sizes = [16, 16], strides = [1, 1]} : vector<18x18xf32> to vector<16x16xf32>
    %427 = vector.broadcast %425 : f32 to vector<16x16xf32>
    %428 = arith.mulf %427, %426 : vector<16x16xf32>
    %429 = arith.addf %424, %428 : vector<16x16xf32>
    %c7_205 = arith.constant 7 : index
    %c7_206 = arith.constant 7 : index
    %430 = memref.load %arg2[%c7_205, %c7_206] : memref<18x9xf32, #tpu.memory_space<smem>>
    %431 = vector.extract_strided_slice %393 {offsets = [2, 1], sizes = [16, 16], strides = [1, 1]} : vector<18x18xf32> to vector<16x16xf32>
    %432 = vector.broadcast %430 : f32 to vector<16x16xf32>
    %433 = arith.mulf %432, %431 : vector<16x16xf32>
    %434 = arith.addf %429, %433 : vector<16x16xf32>
    %c7_207 = arith.constant 7 : index
    %c8_208 = arith.constant 8 : index
    %435 = memref.load %arg2[%c7_207, %c8_208] : memref<18x9xf32, #tpu.memory_space<smem>>
    %436 = vector.extract_strided_slice %393 {offsets = [2, 2], sizes = [16, 16], strides = [1, 1]} : vector<18x18xf32> to vector<16x16xf32>
    %437 = vector.broadcast %435 : f32 to vector<16x16xf32>
    %438 = arith.mulf %437, %436 : vector<16x16xf32>
    %439 = arith.addf %434, %438 : vector<16x16xf32>
    %c7_209 = arith.constant 7 : index
    %440 = memref.load %arg3[%c7_209] : memref<18xf32, #tpu.memory_space<smem>>
    %441 = vector.broadcast %440 : f32 to vector<16x16xf32>
    %442 = arith.addf %439, %441 : vector<16x16xf32>
    %cst_210 = arith.constant 0.000000e+00 : f32
    %443 = vector.broadcast %cst_210 : f32 to vector<16x16xf32>
    %444 = arith.maximumf %442, %443 : vector<16x16xf32>
    %c7_211 = arith.constant 7 : index
    %c0_212 = arith.constant 0 : index
    %c0_213 = arith.constant 0 : index
    %445 = vector.load %arg9[%c7_211, %c0_212, %c0_213] : memref<18x16x16xf32, #tpu.memory_space<vmem>>, vector<1x16x16xf32>
    %446 = vector.shape_cast %445 : vector<1x16x16xf32> to vector<16x16xf32>
    %447 = vector.shape_cast %444 : vector<16x16xf32> to vector<1x16x16xf32>
    tpu.vector_store %arg9[%c7_211, %c0_212, %c0_213], %447 {strides = array<i32>} : memref<18x16x16xf32, #tpu.memory_space<vmem>>, vector<1x16x16xf32>,
    %c0_214 = arith.constant 0 : index
    %c8_215 = arith.constant 8 : index
    %c0_216 = arith.constant 0 : index
    %c0_217 = arith.constant 0 : index
    %448 = vector.load %arg1[%c0_214, %c8_215, %c0_216, %c0_217] : memref<1x18x18x18xf32, #tpu.memory_space<vmem>>, vector<1x1x18x18xf32>
    %449 = vector.shape_cast %448 : vector<1x1x18x18xf32> to vector<18x18xf32>
    %cst_218 = arith.constant 0.000000e+00 : f32
    %450 = vector.broadcast %cst_218 : f32 to vector<16x16xf32>
    %c8_219 = arith.constant 8 : index
    %c0_220 = arith.constant 0 : index
    %451 = memref.load %arg2[%c8_219, %c0_220] : memref<18x9xf32, #tpu.memory_space<smem>>
    %452 = vector.extract_strided_slice %449 {offsets = [0, 0], sizes = [16, 16], strides = [1, 1]} : vector<18x18xf32> to vector<16x16xf32>
    %453 = vector.broadcast %451 : f32 to vector<16x16xf32>
    %454 = arith.mulf %453, %452 : vector<16x16xf32>
    %455 = arith.addf %450, %454 : vector<16x16xf32>
    %c8_221 = arith.constant 8 : index
    %c1_222 = arith.constant 1 : index
    %456 = memref.load %arg2[%c8_221, %c1_222] : memref<18x9xf32, #tpu.memory_space<smem>>
    %457 = vector.extract_strided_slice %449 {offsets = [0, 1], sizes = [16, 16], strides = [1, 1]} : vector<18x18xf32> to vector<16x16xf32>
    %458 = vector.broadcast %456 : f32 to vector<16x16xf32>
    %459 = arith.mulf %458, %457 : vector<16x16xf32>
    %460 = arith.addf %455, %459 : vector<16x16xf32>
    %c8_223 = arith.constant 8 : index
    %c2_224 = arith.constant 2 : index
    %461 = memref.load %arg2[%c8_223, %c2_224] : memref<18x9xf32, #tpu.memory_space<smem>>
    %462 = vector.extract_strided_slice %449 {offsets = [0, 2], sizes = [16, 16], strides = [1, 1]} : vector<18x18xf32> to vector<16x16xf32>
    %463 = vector.broadcast %461 : f32 to vector<16x16xf32>
    %464 = arith.mulf %463, %462 : vector<16x16xf32>
    %465 = arith.addf %460, %464 : vector<16x16xf32>
    %c8_225 = arith.constant 8 : index
    %c3_226 = arith.constant 3 : index
    %466 = memref.load %arg2[%c8_225, %c3_226] : memref<18x9xf32, #tpu.memory_space<smem>>
    %467 = vector.extract_strided_slice %449 {offsets = [1, 0], sizes = [16, 16], strides = [1, 1]} : vector<18x18xf32> to vector<16x16xf32>
    %468 = vector.broadcast %466 : f32 to vector<16x16xf32>
    %469 = arith.mulf %468, %467 : vector<16x16xf32>
    %470 = arith.addf %465, %469 : vector<16x16xf32>
    %c8_227 = arith.constant 8 : index
    %c4_228 = arith.constant 4 : index
    %471 = memref.load %arg2[%c8_227, %c4_228] : memref<18x9xf32, #tpu.memory_space<smem>>
    %472 = vector.extract_strided_slice %449 {offsets = [1, 1], sizes = [16, 16], strides = [1, 1]} : vector<18x18xf32> to vector<16x16xf32>
    %473 = vector.broadcast %471 : f32 to vector<16x16xf32>
    %474 = arith.mulf %473, %472 : vector<16x16xf32>
    %475 = arith.addf %470, %474 : vector<16x16xf32>
    %c8_229 = arith.constant 8 : index
    %c5_230 = arith.constant 5 : index
    %476 = memref.load %arg2[%c8_229, %c5_230] : memref<18x9xf32, #tpu.memory_space<smem>>
    %477 = vector.extract_strided_slice %449 {offsets = [1, 2], sizes = [16, 16], strides = [1, 1]} : vector<18x18xf32> to vector<16x16xf32>
    %478 = vector.broadcast %476 : f32 to vector<16x16xf32>
    %479 = arith.mulf %478, %477 : vector<16x16xf32>
    %480 = arith.addf %475, %479 : vector<16x16xf32>
    %c8_231 = arith.constant 8 : index
    %c6_232 = arith.constant 6 : index
    %481 = memref.load %arg2[%c8_231, %c6_232] : memref<18x9xf32, #tpu.memory_space<smem>>
    %482 = vector.extract_strided_slice %449 {offsets = [2, 0], sizes = [16, 16], strides = [1, 1]} : vector<18x18xf32> to vector<16x16xf32>
    %483 = vector.broadcast %481 : f32 to vector<16x16xf32>
    %484 = arith.mulf %483, %482 : vector<16x16xf32>
    %485 = arith.addf %480, %484 : vector<16x16xf32>
    %c8_233 = arith.constant 8 : index
    %c7_234 = arith.constant 7 : index
    %486 = memref.load %arg2[%c8_233, %c7_234] : memref<18x9xf32, #tpu.memory_space<smem>>
    %487 = vector.extract_strided_slice %449 {offsets = [2, 1], sizes = [16, 16], strides = [1, 1]} : vector<18x18xf32> to vector<16x16xf32>
    %488 = vector.broadcast %486 : f32 to vector<16x16xf32>
    %489 = arith.mulf %488, %487 : vector<16x16xf32>
    %490 = arith.addf %485, %489 : vector<16x16xf32>
    %c8_235 = arith.constant 8 : index
    %c8_236 = arith.constant 8 : index
    %491 = memref.load %arg2[%c8_235, %c8_236] : memref<18x9xf32, #tpu.memory_space<smem>>
    %492 = vector.extract_strided_slice %449 {offsets = [2, 2], sizes = [16, 16], strides = [1, 1]} : vector<18x18xf32> to vector<16x16xf32>
    %493 = vector.broadcast %491 : f32 to vector<16x16xf32>
    %494 = arith.mulf %493, %492 : vector<16x16xf32>
    %495 = arith.addf %490, %494 : vector<16x16xf32>
    %c8_237 = arith.constant 8 : index
    %496 = memref.load %arg3[%c8_237] : memref<18xf32, #tpu.memory_space<smem>>
    %497 = vector.broadcast %496 : f32 to vector<16x16xf32>
    %498 = arith.addf %495, %497 : vector<16x16xf32>
    %cst_238 = arith.constant 0.000000e+00 : f32
    %499 = vector.broadcast %cst_238 : f32 to vector<16x16xf32>
    %500 = arith.maximumf %498, %499 : vector<16x16xf32>
    %c8_239 = arith.constant 8 : index
    %c0_240 = arith.constant 0 : index
    %c0_241 = arith.constant 0 : index
    %501 = vector.load %arg9[%c8_239, %c0_240, %c0_241] : memref<18x16x16xf32, #tpu.memory_space<vmem>>, vector<1x16x16xf32>
    %502 = vector.shape_cast %501 : vector<1x16x16xf32> to vector<16x16xf32>
    %503 = vector.shape_cast %500 : vector<16x16xf32> to vector<1x16x16xf32>
    tpu.vector_store %arg9[%c8_239, %c0_240, %c0_241], %503 {strides = array<i32>} : memref<18x16x16xf32, #tpu.memory_space<vmem>>, vector<1x16x16xf32>,
    %c0_242 = arith.constant 0 : index
    %c9 = arith.constant 9 : index
    %c0_243 = arith.constant 0 : index
    %c0_244 = arith.constant 0 : index
    %504 = vector.load %arg1[%c0_242, %c9, %c0_243, %c0_244] : memref<1x18x18x18xf32, #tpu.memory_space<vmem>>, vector<1x1x18x18xf32>
    %505 = vector.shape_cast %504 : vector<1x1x18x18xf32> to vector<18x18xf32>
    %cst_245 = arith.constant 0.000000e+00 : f32
    %506 = vector.broadcast %cst_245 : f32 to vector<16x16xf32>
    %c9_246 = arith.constant 9 : index
    %c0_247 = arith.constant 0 : index
    %507 = memref.load %arg2[%c9_246, %c0_247] : memref<18x9xf32, #tpu.memory_space<smem>>
    %508 = vector.extract_strided_slice %505 {offsets = [0, 0], sizes = [16, 16], strides = [1, 1]} : vector<18x18xf32> to vector<16x16xf32>
    %509 = vector.broadcast %507 : f32 to vector<16x16xf32>
    %510 = arith.mulf %509, %508 : vector<16x16xf32>
    %511 = arith.addf %506, %510 : vector<16x16xf32>
    %c9_248 = arith.constant 9 : index
    %c1_249 = arith.constant 1 : index
    %512 = memref.load %arg2[%c9_248, %c1_249] : memref<18x9xf32, #tpu.memory_space<smem>>
    %513 = vector.extract_strided_slice %505 {offsets = [0, 1], sizes = [16, 16], strides = [1, 1]} : vector<18x18xf32> to vector<16x16xf32>
    %514 = vector.broadcast %512 : f32 to vector<16x16xf32>
    %515 = arith.mulf %514, %513 : vector<16x16xf32>
    %516 = arith.addf %511, %515 : vector<16x16xf32>
    %c9_250 = arith.constant 9 : index
    %c2_251 = arith.constant 2 : index
    %517 = memref.load %arg2[%c9_250, %c2_251] : memref<18x9xf32, #tpu.memory_space<smem>>
    %518 = vector.extract_strided_slice %505 {offsets = [0, 2], sizes = [16, 16], strides = [1, 1]} : vector<18x18xf32> to vector<16x16xf32>
    %519 = vector.broadcast %517 : f32 to vector<16x16xf32>
    %520 = arith.mulf %519, %518 : vector<16x16xf32>
    %521 = arith.addf %516, %520 : vector<16x16xf32>
    %c9_252 = arith.constant 9 : index
    %c3_253 = arith.constant 3 : index
    %522 = memref.load %arg2[%c9_252, %c3_253] : memref<18x9xf32, #tpu.memory_space<smem>>
    %523 = vector.extract_strided_slice %505 {offsets = [1, 0], sizes = [16, 16], strides = [1, 1]} : vector<18x18xf32> to vector<16x16xf32>
    %524 = vector.broadcast %522 : f32 to vector<16x16xf32>
    %525 = arith.mulf %524, %523 : vector<16x16xf32>
    %526 = arith.addf %521, %525 : vector<16x16xf32>
    %c9_254 = arith.constant 9 : index
    %c4_255 = arith.constant 4 : index
    %527 = memref.load %arg2[%c9_254, %c4_255] : memref<18x9xf32, #tpu.memory_space<smem>>
    %528 = vector.extract_strided_slice %505 {offsets = [1, 1], sizes = [16, 16], strides = [1, 1]} : vector<18x18xf32> to vector<16x16xf32>
    %529 = vector.broadcast %527 : f32 to vector<16x16xf32>
    %530 = arith.mulf %529, %528 : vector<16x16xf32>
    %531 = arith.addf %526, %530 : vector<16x16xf32>
    %c9_256 = arith.constant 9 : index
    %c5_257 = arith.constant 5 : index
    %532 = memref.load %arg2[%c9_256, %c5_257] : memref<18x9xf32, #tpu.memory_space<smem>>
    %533 = vector.extract_strided_slice %505 {offsets = [1, 2], sizes = [16, 16], strides = [1, 1]} : vector<18x18xf32> to vector<16x16xf32>
    %534 = vector.broadcast %532 : f32 to vector<16x16xf32>
    %535 = arith.mulf %534, %533 : vector<16x16xf32>
    %536 = arith.addf %531, %535 : vector<16x16xf32>
    %c9_258 = arith.constant 9 : index
    %c6_259 = arith.constant 6 : index
    %537 = memref.load %arg2[%c9_258, %c6_259] : memref<18x9xf32, #tpu.memory_space<smem>>
    %538 = vector.extract_strided_slice %505 {offsets = [2, 0], sizes = [16, 16], strides = [1, 1]} : vector<18x18xf32> to vector<16x16xf32>
    %539 = vector.broadcast %537 : f32 to vector<16x16xf32>
    %540 = arith.mulf %539, %538 : vector<16x16xf32>
    %541 = arith.addf %536, %540 : vector<16x16xf32>
    %c9_260 = arith.constant 9 : index
    %c7_261 = arith.constant 7 : index
    %542 = memref.load %arg2[%c9_260, %c7_261] : memref<18x9xf32, #tpu.memory_space<smem>>
    %543 = vector.extract_strided_slice %505 {offsets = [2, 1], sizes = [16, 16], strides = [1, 1]} : vector<18x18xf32> to vector<16x16xf32>
    %544 = vector.broadcast %542 : f32 to vector<16x16xf32>
    %545 = arith.mulf %544, %543 : vector<16x16xf32>
    %546 = arith.addf %541, %545 : vector<16x16xf32>
    %c9_262 = arith.constant 9 : index
    %c8_263 = arith.constant 8 : index
    %547 = memref.load %arg2[%c9_262, %c8_263] : memref<18x9xf32, #tpu.memory_space<smem>>
    %548 = vector.extract_strided_slice %505 {offsets = [2, 2], sizes = [16, 16], strides = [1, 1]} : vector<18x18xf32> to vector<16x16xf32>
    %549 = vector.broadcast %547 : f32 to vector<16x16xf32>
    %550 = arith.mulf %549, %548 : vector<16x16xf32>
    %551 = arith.addf %546, %550 : vector<16x16xf32>
    %c9_264 = arith.constant 9 : index
    %552 = memref.load %arg3[%c9_264] : memref<18xf32, #tpu.memory_space<smem>>
    %553 = vector.broadcast %552 : f32 to vector<16x16xf32>
    %554 = arith.addf %551, %553 : vector<16x16xf32>
    %cst_265 = arith.constant 0.000000e+00 : f32
    %555 = vector.broadcast %cst_265 : f32 to vector<16x16xf32>
    %556 = arith.maximumf %554, %555 : vector<16x16xf32>
    %c9_266 = arith.constant 9 : index
    %c0_267 = arith.constant 0 : index
    %c0_268 = arith.constant 0 : index
    %557 = vector.load %arg9[%c9_266, %c0_267, %c0_268] : memref<18x16x16xf32, #tpu.memory_space<vmem>>, vector<1x16x16xf32>
    %558 = vector.shape_cast %557 : vector<1x16x16xf32> to vector<16x16xf32>
    %559 = vector.shape_cast %556 : vector<16x16xf32> to vector<1x16x16xf32>
    tpu.vector_store %arg9[%c9_266, %c0_267, %c0_268], %559 {strides = array<i32>} : memref<18x16x16xf32, #tpu.memory_space<vmem>>, vector<1x16x16xf32>,
    %c0_269 = arith.constant 0 : index
    %c10 = arith.constant 10 : index
    %c0_270 = arith.constant 0 : index
    %c0_271 = arith.constant 0 : index
    %560 = vector.load %arg1[%c0_269, %c10, %c0_270, %c0_271] : memref<1x18x18x18xf32, #tpu.memory_space<vmem>>, vector<1x1x18x18xf32>
    %561 = vector.shape_cast %560 : vector<1x1x18x18xf32> to vector<18x18xf32>
    %cst_272 = arith.constant 0.000000e+00 : f32
    %562 = vector.broadcast %cst_272 : f32 to vector<16x16xf32>
    %c10_273 = arith.constant 10 : index
    %c0_274 = arith.constant 0 : index
    %563 = memref.load %arg2[%c10_273, %c0_274] : memref<18x9xf32, #tpu.memory_space<smem>>
    %564 = vector.extract_strided_slice %561 {offsets = [0, 0], sizes = [16, 16], strides = [1, 1]} : vector<18x18xf32> to vector<16x16xf32>
    %565 = vector.broadcast %563 : f32 to vector<16x16xf32>
    %566 = arith.mulf %565, %564 : vector<16x16xf32>
    %567 = arith.addf %562, %566 : vector<16x16xf32>
    %c10_275 = arith.constant 10 : index
    %c1_276 = arith.constant 1 : index
    %568 = memref.load %arg2[%c10_275, %c1_276] : memref<18x9xf32, #tpu.memory_space<smem>>
    %569 = vector.extract_strided_slice %561 {offsets = [0, 1], sizes = [16, 16], strides = [1, 1]} : vector<18x18xf32> to vector<16x16xf32>
    %570 = vector.broadcast %568 : f32 to vector<16x16xf32>
    %571 = arith.mulf %570, %569 : vector<16x16xf32>
    %572 = arith.addf %567, %571 : vector<16x16xf32>
    %c10_277 = arith.constant 10 : index
    %c2_278 = arith.constant 2 : index
    %573 = memref.load %arg2[%c10_277, %c2_278] : memref<18x9xf32, #tpu.memory_space<smem>>
    %574 = vector.extract_strided_slice %561 {offsets = [0, 2], sizes = [16, 16], strides = [1, 1]} : vector<18x18xf32> to vector<16x16xf32>
    %575 = vector.broadcast %573 : f32 to vector<16x16xf32>
    %576 = arith.mulf %575, %574 : vector<16x16xf32>
    %577 = arith.addf %572, %576 : vector<16x16xf32>
    %c10_279 = arith.constant 10 : index
    %c3_280 = arith.constant 3 : index
    %578 = memref.load %arg2[%c10_279, %c3_280] : memref<18x9xf32, #tpu.memory_space<smem>>
    %579 = vector.extract_strided_slice %561 {offsets = [1, 0], sizes = [16, 16], strides = [1, 1]} : vector<18x18xf32> to vector<16x16xf32>
    %580 = vector.broadcast %578 : f32 to vector<16x16xf32>
    %581 = arith.mulf %580, %579 : vector<16x16xf32>
    %582 = arith.addf %577, %581 : vector<16x16xf32>
    %c10_281 = arith.constant 10 : index
    %c4_282 = arith.constant 4 : index
    %583 = memref.load %arg2[%c10_281, %c4_282] : memref<18x9xf32, #tpu.memory_space<smem>>
    %584 = vector.extract_strided_slice %561 {offsets = [1, 1], sizes = [16, 16], strides = [1, 1]} : vector<18x18xf32> to vector<16x16xf32>
    %585 = vector.broadcast %583 : f32 to vector<16x16xf32>
    %586 = arith.mulf %585, %584 : vector<16x16xf32>
    %587 = arith.addf %582, %586 : vector<16x16xf32>
    %c10_283 = arith.constant 10 : index
    %c5_284 = arith.constant 5 : index
    %588 = memref.load %arg2[%c10_283, %c5_284] : memref<18x9xf32, #tpu.memory_space<smem>>
    %589 = vector.extract_strided_slice %561 {offsets = [1, 2], sizes = [16, 16], strides = [1, 1]} : vector<18x18xf32> to vector<16x16xf32>
    %590 = vector.broadcast %588 : f32 to vector<16x16xf32>
    %591 = arith.mulf %590, %589 : vector<16x16xf32>
    %592 = arith.addf %587, %591 : vector<16x16xf32>
    %c10_285 = arith.constant 10 : index
    %c6_286 = arith.constant 6 : index
    %593 = memref.load %arg2[%c10_285, %c6_286] : memref<18x9xf32, #tpu.memory_space<smem>>
    %594 = vector.extract_strided_slice %561 {offsets = [2, 0], sizes = [16, 16], strides = [1, 1]} : vector<18x18xf32> to vector<16x16xf32>
    %595 = vector.broadcast %593 : f32 to vector<16x16xf32>
    %596 = arith.mulf %595, %594 : vector<16x16xf32>
    %597 = arith.addf %592, %596 : vector<16x16xf32>
    %c10_287 = arith.constant 10 : index
    %c7_288 = arith.constant 7 : index
    %598 = memref.load %arg2[%c10_287, %c7_288] : memref<18x9xf32, #tpu.memory_space<smem>>
    %599 = vector.extract_strided_slice %561 {offsets = [2, 1], sizes = [16, 16], strides = [1, 1]} : vector<18x18xf32> to vector<16x16xf32>
    %600 = vector.broadcast %598 : f32 to vector<16x16xf32>
    %601 = arith.mulf %600, %599 : vector<16x16xf32>
    %602 = arith.addf %597, %601 : vector<16x16xf32>
    %c10_289 = arith.constant 10 : index
    %c8_290 = arith.constant 8 : index
    %603 = memref.load %arg2[%c10_289, %c8_290] : memref<18x9xf32, #tpu.memory_space<smem>>
    %604 = vector.extract_strided_slice %561 {offsets = [2, 2], sizes = [16, 16], strides = [1, 1]} : vector<18x18xf32> to vector<16x16xf32>
    %605 = vector.broadcast %603 : f32 to vector<16x16xf32>
    %606 = arith.mulf %605, %604 : vector<16x16xf32>
    %607 = arith.addf %602, %606 : vector<16x16xf32>
    %c10_291 = arith.constant 10 : index
    %608 = memref.load %arg3[%c10_291] : memref<18xf32, #tpu.memory_space<smem>>
    %609 = vector.broadcast %608 : f32 to vector<16x16xf32>
    %610 = arith.addf %607, %609 : vector<16x16xf32>
    %cst_292 = arith.constant 0.000000e+00 : f32
    %611 = vector.broadcast %cst_292 : f32 to vector<16x16xf32>
    %612 = arith.maximumf %610, %611 : vector<16x16xf32>
    %c10_293 = arith.constant 10 : index
    %c0_294 = arith.constant 0 : index
    %c0_295 = arith.constant 0 : index
    %613 = vector.load %arg9[%c10_293, %c0_294, %c0_295] : memref<18x16x16xf32, #tpu.memory_space<vmem>>, vector<1x16x16xf32>
    %614 = vector.shape_cast %613 : vector<1x16x16xf32> to vector<16x16xf32>
    %615 = vector.shape_cast %612 : vector<16x16xf32> to vector<1x16x16xf32>
    tpu.vector_store %arg9[%c10_293, %c0_294, %c0_295], %615 {strides = array<i32>} : memref<18x16x16xf32, #tpu.memory_space<vmem>>, vector<1x16x16xf32>,
    %c0_296 = arith.constant 0 : index
    %c11 = arith.constant 11 : index
    %c0_297 = arith.constant 0 : index
    %c0_298 = arith.constant 0 : index
    %616 = vector.load %arg1[%c0_296, %c11, %c0_297, %c0_298] : memref<1x18x18x18xf32, #tpu.memory_space<vmem>>, vector<1x1x18x18xf32>
    %617 = vector.shape_cast %616 : vector<1x1x18x18xf32> to vector<18x18xf32>
    %cst_299 = arith.constant 0.000000e+00 : f32
    %618 = vector.broadcast %cst_299 : f32 to vector<16x16xf32>
    %c11_300 = arith.constant 11 : index
    %c0_301 = arith.constant 0 : index
    %619 = memref.load %arg2[%c11_300, %c0_301] : memref<18x9xf32, #tpu.memory_space<smem>>
    %620 = vector.extract_strided_slice %617 {offsets = [0, 0], sizes = [16, 16], strides = [1, 1]} : vector<18x18xf32> to vector<16x16xf32>
    %621 = vector.broadcast %619 : f32 to vector<16x16xf32>
    %622 = arith.mulf %621, %620 : vector<16x16xf32>
    %623 = arith.addf %618, %622 : vector<16x16xf32>
    %c11_302 = arith.constant 11 : index
    %c1_303 = arith.constant 1 : index
    %624 = memref.load %arg2[%c11_302, %c1_303] : memref<18x9xf32, #tpu.memory_space<smem>>
    %625 = vector.extract_strided_slice %617 {offsets = [0, 1], sizes = [16, 16], strides = [1, 1]} : vector<18x18xf32> to vector<16x16xf32>
    %626 = vector.broadcast %624 : f32 to vector<16x16xf32>
    %627 = arith.mulf %626, %625 : vector<16x16xf32>
    %628 = arith.addf %623, %627 : vector<16x16xf32>
    %c11_304 = arith.constant 11 : index
    %c2_305 = arith.constant 2 : index
    %629 = memref.load %arg2[%c11_304, %c2_305] : memref<18x9xf32, #tpu.memory_space<smem>>
    %630 = vector.extract_strided_slice %617 {offsets = [0, 2], sizes = [16, 16], strides = [1, 1]} : vector<18x18xf32> to vector<16x16xf32>
    %631 = vector.broadcast %629 : f32 to vector<16x16xf32>
    %632 = arith.mulf %631, %630 : vector<16x16xf32>
    %633 = arith.addf %628, %632 : vector<16x16xf32>
    %c11_306 = arith.constant 11 : index
    %c3_307 = arith.constant 3 : index
    %634 = memref.load %arg2[%c11_306, %c3_307] : memref<18x9xf32, #tpu.memory_space<smem>>
    %635 = vector.extract_strided_slice %617 {offsets = [1, 0], sizes = [16, 16], strides = [1, 1]} : vector<18x18xf32> to vector<16x16xf32>
    %636 = vector.broadcast %634 : f32 to vector<16x16xf32>
    %637 = arith.mulf %636, %635 : vector<16x16xf32>
    %638 = arith.addf %633, %637 : vector<16x16xf32>
    %c11_308 = arith.constant 11 : index
    %c4_309 = arith.constant 4 : index
    %639 = memref.load %arg2[%c11_308, %c4_309] : memref<18x9xf32, #tpu.memory_space<smem>>
    %640 = vector.extract_strided_slice %617 {offsets = [1, 1], sizes = [16, 16], strides = [1, 1]} : vector<18x18xf32> to vector<16x16xf32>
    %641 = vector.broadcast %639 : f32 to vector<16x16xf32>
    %642 = arith.mulf %641, %640 : vector<16x16xf32>
    %643 = arith.addf %638, %642 : vector<16x16xf32>
    %c11_310 = arith.constant 11 : index
    %c5_311 = arith.constant 5 : index
    %644 = memref.load %arg2[%c11_310, %c5_311] : memref<18x9xf32, #tpu.memory_space<smem>>
    %645 = vector.extract_strided_slice %617 {offsets = [1, 2], sizes = [16, 16], strides = [1, 1]} : vector<18x18xf32> to vector<16x16xf32>
    %646 = vector.broadcast %644 : f32 to vector<16x16xf32>
    %647 = arith.mulf %646, %645 : vector<16x16xf32>
    %648 = arith.addf %643, %647 : vector<16x16xf32>
    %c11_312 = arith.constant 11 : index
    %c6_313 = arith.constant 6 : index
    %649 = memref.load %arg2[%c11_312, %c6_313] : memref<18x9xf32, #tpu.memory_space<smem>>
    %650 = vector.extract_strided_slice %617 {offsets = [2, 0], sizes = [16, 16], strides = [1, 1]} : vector<18x18xf32> to vector<16x16xf32>
    %651 = vector.broadcast %649 : f32 to vector<16x16xf32>
    %652 = arith.mulf %651, %650 : vector<16x16xf32>
    %653 = arith.addf %648, %652 : vector<16x16xf32>
    %c11_314 = arith.constant 11 : index
    %c7_315 = arith.constant 7 : index
    %654 = memref.load %arg2[%c11_314, %c7_315] : memref<18x9xf32, #tpu.memory_space<smem>>
    %655 = vector.extract_strided_slice %617 {offsets = [2, 1], sizes = [16, 16], strides = [1, 1]} : vector<18x18xf32> to vector<16x16xf32>
    %656 = vector.broadcast %654 : f32 to vector<16x16xf32>
    %657 = arith.mulf %656, %655 : vector<16x16xf32>
    %658 = arith.addf %653, %657 : vector<16x16xf32>
    %c11_316 = arith.constant 11 : index
    %c8_317 = arith.constant 8 : index
    %659 = memref.load %arg2[%c11_316, %c8_317] : memref<18x9xf32, #tpu.memory_space<smem>>
    %660 = vector.extract_strided_slice %617 {offsets = [2, 2], sizes = [16, 16], strides = [1, 1]} : vector<18x18xf32> to vector<16x16xf32>
    %661 = vector.broadcast %659 : f32 to vector<16x16xf32>
    %662 = arith.mulf %661, %660 : vector<16x16xf32>
    %663 = arith.addf %658, %662 : vector<16x16xf32>
    %c11_318 = arith.constant 11 : index
    %664 = memref.load %arg3[%c11_318] : memref<18xf32, #tpu.memory_space<smem>>
    %665 = vector.broadcast %664 : f32 to vector<16x16xf32>
    %666 = arith.addf %663, %665 : vector<16x16xf32>
    %cst_319 = arith.constant 0.000000e+00 : f32
    %667 = vector.broadcast %cst_319 : f32 to vector<16x16xf32>
    %668 = arith.maximumf %666, %667 : vector<16x16xf32>
    %c11_320 = arith.constant 11 : index
    %c0_321 = arith.constant 0 : index
    %c0_322 = arith.constant 0 : index
    %669 = vector.load %arg9[%c11_320, %c0_321, %c0_322] : memref<18x16x16xf32, #tpu.memory_space<vmem>>, vector<1x16x16xf32>
    %670 = vector.shape_cast %669 : vector<1x16x16xf32> to vector<16x16xf32>
    %671 = vector.shape_cast %668 : vector<16x16xf32> to vector<1x16x16xf32>
    tpu.vector_store %arg9[%c11_320, %c0_321, %c0_322], %671 {strides = array<i32>} : memref<18x16x16xf32, #tpu.memory_space<vmem>>, vector<1x16x16xf32>,
    %c0_323 = arith.constant 0 : index
    %c12 = arith.constant 12 : index
    %c0_324 = arith.constant 0 : index
    %c0_325 = arith.constant 0 : index
    %672 = vector.load %arg1[%c0_323, %c12, %c0_324, %c0_325] : memref<1x18x18x18xf32, #tpu.memory_space<vmem>>, vector<1x1x18x18xf32>
    %673 = vector.shape_cast %672 : vector<1x1x18x18xf32> to vector<18x18xf32>
    %cst_326 = arith.constant 0.000000e+00 : f32
    %674 = vector.broadcast %cst_326 : f32 to vector<16x16xf32>
    %c12_327 = arith.constant 12 : index
    %c0_328 = arith.constant 0 : index
    %675 = memref.load %arg2[%c12_327, %c0_328] : memref<18x9xf32, #tpu.memory_space<smem>>
    %676 = vector.extract_strided_slice %673 {offsets = [0, 0], sizes = [16, 16], strides = [1, 1]} : vector<18x18xf32> to vector<16x16xf32>
    %677 = vector.broadcast %675 : f32 to vector<16x16xf32>
    %678 = arith.mulf %677, %676 : vector<16x16xf32>
    %679 = arith.addf %674, %678 : vector<16x16xf32>
    %c12_329 = arith.constant 12 : index
    %c1_330 = arith.constant 1 : index
    %680 = memref.load %arg2[%c12_329, %c1_330] : memref<18x9xf32, #tpu.memory_space<smem>>
    %681 = vector.extract_strided_slice %673 {offsets = [0, 1], sizes = [16, 16], strides = [1, 1]} : vector<18x18xf32> to vector<16x16xf32>
    %682 = vector.broadcast %680 : f32 to vector<16x16xf32>
    %683 = arith.mulf %682, %681 : vector<16x16xf32>
    %684 = arith.addf %679, %683 : vector<16x16xf32>
    %c12_331 = arith.constant 12 : index
    %c2_332 = arith.constant 2 : index
    %685 = memref.load %arg2[%c12_331, %c2_332] : memref<18x9xf32, #tpu.memory_space<smem>>
    %686 = vector.extract_strided_slice %673 {offsets = [0, 2], sizes = [16, 16], strides = [1, 1]} : vector<18x18xf32> to vector<16x16xf32>
    %687 = vector.broadcast %685 : f32 to vector<16x16xf32>
    %688 = arith.mulf %687, %686 : vector<16x16xf32>
    %689 = arith.addf %684, %688 : vector<16x16xf32>
    %c12_333 = arith.constant 12 : index
    %c3_334 = arith.constant 3 : index
    %690 = memref.load %arg2[%c12_333, %c3_334] : memref<18x9xf32, #tpu.memory_space<smem>>
    %691 = vector.extract_strided_slice %673 {offsets = [1, 0], sizes = [16, 16], strides = [1, 1]} : vector<18x18xf32> to vector<16x16xf32>
    %692 = vector.broadcast %690 : f32 to vector<16x16xf32>
    %693 = arith.mulf %692, %691 : vector<16x16xf32>
    %694 = arith.addf %689, %693 : vector<16x16xf32>
    %c12_335 = arith.constant 12 : index
    %c4_336 = arith.constant 4 : index
    %695 = memref.load %arg2[%c12_335, %c4_336] : memref<18x9xf32, #tpu.memory_space<smem>>
    %696 = vector.extract_strided_slice %673 {offsets = [1, 1], sizes = [16, 16], strides = [1, 1]} : vector<18x18xf32> to vector<16x16xf32>
    %697 = vector.broadcast %695 : f32 to vector<16x16xf32>
    %698 = arith.mulf %697, %696 : vector<16x16xf32>
    %699 = arith.addf %694, %698 : vector<16x16xf32>
    %c12_337 = arith.constant 12 : index
    %c5_338 = arith.constant 5 : index
    %700 = memref.load %arg2[%c12_337, %c5_338] : memref<18x9xf32, #tpu.memory_space<smem>>
    %701 = vector.extract_strided_slice %673 {offsets = [1, 2], sizes = [16, 16], strides = [1, 1]} : vector<18x18xf32> to vector<16x16xf32>
    %702 = vector.broadcast %700 : f32 to vector<16x16xf32>
    %703 = arith.mulf %702, %701 : vector<16x16xf32>
    %704 = arith.addf %699, %703 : vector<16x16xf32>
    %c12_339 = arith.constant 12 : index
    %c6_340 = arith.constant 6 : index
    %705 = memref.load %arg2[%c12_339, %c6_340] : memref<18x9xf32, #tpu.memory_space<smem>>
    %706 = vector.extract_strided_slice %673 {offsets = [2, 0], sizes = [16, 16], strides = [1, 1]} : vector<18x18xf32> to vector<16x16xf32>
    %707 = vector.broadcast %705 : f32 to vector<16x16xf32>
    %708 = arith.mulf %707, %706 : vector<16x16xf32>
    %709 = arith.addf %704, %708 : vector<16x16xf32>
    %c12_341 = arith.constant 12 : index
    %c7_342 = arith.constant 7 : index
    %710 = memref.load %arg2[%c12_341, %c7_342] : memref<18x9xf32, #tpu.memory_space<smem>>
    %711 = vector.extract_strided_slice %673 {offsets = [2, 1], sizes = [16, 16], strides = [1, 1]} : vector<18x18xf32> to vector<16x16xf32>
    %712 = vector.broadcast %710 : f32 to vector<16x16xf32>
    %713 = arith.mulf %712, %711 : vector<16x16xf32>
    %714 = arith.addf %709, %713 : vector<16x16xf32>
    %c12_343 = arith.constant 12 : index
    %c8_344 = arith.constant 8 : index
    %715 = memref.load %arg2[%c12_343, %c8_344] : memref<18x9xf32, #tpu.memory_space<smem>>
    %716 = vector.extract_strided_slice %673 {offsets = [2, 2], sizes = [16, 16], strides = [1, 1]} : vector<18x18xf32> to vector<16x16xf32>
    %717 = vector.broadcast %715 : f32 to vector<16x16xf32>
    %718 = arith.mulf %717, %716 : vector<16x16xf32>
    %719 = arith.addf %714, %718 : vector<16x16xf32>
    %c12_345 = arith.constant 12 : index
    %720 = memref.load %arg3[%c12_345] : memref<18xf32, #tpu.memory_space<smem>>
    %721 = vector.broadcast %720 : f32 to vector<16x16xf32>
    %722 = arith.addf %719, %721 : vector<16x16xf32>
    %cst_346 = arith.constant 0.000000e+00 : f32
    %723 = vector.broadcast %cst_346 : f32 to vector<16x16xf32>
    %724 = arith.maximumf %722, %723 : vector<16x16xf32>
    %c12_347 = arith.constant 12 : index
    %c0_348 = arith.constant 0 : index
    %c0_349 = arith.constant 0 : index
    %725 = vector.load %arg9[%c12_347, %c0_348, %c0_349] : memref<18x16x16xf32, #tpu.memory_space<vmem>>, vector<1x16x16xf32>
    %726 = vector.shape_cast %725 : vector<1x16x16xf32> to vector<16x16xf32>
    %727 = vector.shape_cast %724 : vector<16x16xf32> to vector<1x16x16xf32>
    tpu.vector_store %arg9[%c12_347, %c0_348, %c0_349], %727 {strides = array<i32>} : memref<18x16x16xf32, #tpu.memory_space<vmem>>, vector<1x16x16xf32>,
    %c0_350 = arith.constant 0 : index
    %c13 = arith.constant 13 : index
    %c0_351 = arith.constant 0 : index
    %c0_352 = arith.constant 0 : index
    %728 = vector.load %arg1[%c0_350, %c13, %c0_351, %c0_352] : memref<1x18x18x18xf32, #tpu.memory_space<vmem>>, vector<1x1x18x18xf32>
    %729 = vector.shape_cast %728 : vector<1x1x18x18xf32> to vector<18x18xf32>
    %cst_353 = arith.constant 0.000000e+00 : f32
    %730 = vector.broadcast %cst_353 : f32 to vector<16x16xf32>
    %c13_354 = arith.constant 13 : index
    %c0_355 = arith.constant 0 : index
    %731 = memref.load %arg2[%c13_354, %c0_355] : memref<18x9xf32, #tpu.memory_space<smem>>
    %732 = vector.extract_strided_slice %729 {offsets = [0, 0], sizes = [16, 16], strides = [1, 1]} : vector<18x18xf32> to vector<16x16xf32>
    %733 = vector.broadcast %731 : f32 to vector<16x16xf32>
    %734 = arith.mulf %733, %732 : vector<16x16xf32>
    %735 = arith.addf %730, %734 : vector<16x16xf32>
    %c13_356 = arith.constant 13 : index
    %c1_357 = arith.constant 1 : index
    %736 = memref.load %arg2[%c13_356, %c1_357] : memref<18x9xf32, #tpu.memory_space<smem>>
    %737 = vector.extract_strided_slice %729 {offsets = [0, 1], sizes = [16, 16], strides = [1, 1]} : vector<18x18xf32> to vector<16x16xf32>
    %738 = vector.broadcast %736 : f32 to vector<16x16xf32>
    %739 = arith.mulf %738, %737 : vector<16x16xf32>
    %740 = arith.addf %735, %739 : vector<16x16xf32>
    %c13_358 = arith.constant 13 : index
    %c2_359 = arith.constant 2 : index
    %741 = memref.load %arg2[%c13_358, %c2_359] : memref<18x9xf32, #tpu.memory_space<smem>>
    %742 = vector.extract_strided_slice %729 {offsets = [0, 2], sizes = [16, 16], strides = [1, 1]} : vector<18x18xf32> to vector<16x16xf32>
    %743 = vector.broadcast %741 : f32 to vector<16x16xf32>
    %744 = arith.mulf %743, %742 : vector<16x16xf32>
    %745 = arith.addf %740, %744 : vector<16x16xf32>
    %c13_360 = arith.constant 13 : index
    %c3_361 = arith.constant 3 : index
    %746 = memref.load %arg2[%c13_360, %c3_361] : memref<18x9xf32, #tpu.memory_space<smem>>
    %747 = vector.extract_strided_slice %729 {offsets = [1, 0], sizes = [16, 16], strides = [1, 1]} : vector<18x18xf32> to vector<16x16xf32>
    %748 = vector.broadcast %746 : f32 to vector<16x16xf32>
    %749 = arith.mulf %748, %747 : vector<16x16xf32>
    %750 = arith.addf %745, %749 : vector<16x16xf32>
    %c13_362 = arith.constant 13 : index
    %c4_363 = arith.constant 4 : index
    %751 = memref.load %arg2[%c13_362, %c4_363] : memref<18x9xf32, #tpu.memory_space<smem>>
    %752 = vector.extract_strided_slice %729 {offsets = [1, 1], sizes = [16, 16], strides = [1, 1]} : vector<18x18xf32> to vector<16x16xf32>
    %753 = vector.broadcast %751 : f32 to vector<16x16xf32>
    %754 = arith.mulf %753, %752 : vector<16x16xf32>
    %755 = arith.addf %750, %754 : vector<16x16xf32>
    %c13_364 = arith.constant 13 : index
    %c5_365 = arith.constant 5 : index
    %756 = memref.load %arg2[%c13_364, %c5_365] : memref<18x9xf32, #tpu.memory_space<smem>>
    %757 = vector.extract_strided_slice %729 {offsets = [1, 2], sizes = [16, 16], strides = [1, 1]} : vector<18x18xf32> to vector<16x16xf32>
    %758 = vector.broadcast %756 : f32 to vector<16x16xf32>
    %759 = arith.mulf %758, %757 : vector<16x16xf32>
    %760 = arith.addf %755, %759 : vector<16x16xf32>
    %c13_366 = arith.constant 13 : index
    %c6_367 = arith.constant 6 : index
    %761 = memref.load %arg2[%c13_366, %c6_367] : memref<18x9xf32, #tpu.memory_space<smem>>
    %762 = vector.extract_strided_slice %729 {offsets = [2, 0], sizes = [16, 16], strides = [1, 1]} : vector<18x18xf32> to vector<16x16xf32>
    %763 = vector.broadcast %761 : f32 to vector<16x16xf32>
    %764 = arith.mulf %763, %762 : vector<16x16xf32>
    %765 = arith.addf %760, %764 : vector<16x16xf32>
    %c13_368 = arith.constant 13 : index
    %c7_369 = arith.constant 7 : index
    %766 = memref.load %arg2[%c13_368, %c7_369] : memref<18x9xf32, #tpu.memory_space<smem>>
    %767 = vector.extract_strided_slice %729 {offsets = [2, 1], sizes = [16, 16], strides = [1, 1]} : vector<18x18xf32> to vector<16x16xf32>
    %768 = vector.broadcast %766 : f32 to vector<16x16xf32>
    %769 = arith.mulf %768, %767 : vector<16x16xf32>
    %770 = arith.addf %765, %769 : vector<16x16xf32>
    %c13_370 = arith.constant 13 : index
    %c8_371 = arith.constant 8 : index
    %771 = memref.load %arg2[%c13_370, %c8_371] : memref<18x9xf32, #tpu.memory_space<smem>>
    %772 = vector.extract_strided_slice %729 {offsets = [2, 2], sizes = [16, 16], strides = [1, 1]} : vector<18x18xf32> to vector<16x16xf32>
    %773 = vector.broadcast %771 : f32 to vector<16x16xf32>
    %774 = arith.mulf %773, %772 : vector<16x16xf32>
    %775 = arith.addf %770, %774 : vector<16x16xf32>
    %c13_372 = arith.constant 13 : index
    %776 = memref.load %arg3[%c13_372] : memref<18xf32, #tpu.memory_space<smem>>
    %777 = vector.broadcast %776 : f32 to vector<16x16xf32>
    %778 = arith.addf %775, %777 : vector<16x16xf32>
    %cst_373 = arith.constant 0.000000e+00 : f32
    %779 = vector.broadcast %cst_373 : f32 to vector<16x16xf32>
    %780 = arith.maximumf %778, %779 : vector<16x16xf32>
    %c13_374 = arith.constant 13 : index
    %c0_375 = arith.constant 0 : index
    %c0_376 = arith.constant 0 : index
    %781 = vector.load %arg9[%c13_374, %c0_375, %c0_376] : memref<18x16x16xf32, #tpu.memory_space<vmem>>, vector<1x16x16xf32>
    %782 = vector.shape_cast %781 : vector<1x16x16xf32> to vector<16x16xf32>
    %783 = vector.shape_cast %780 : vector<16x16xf32> to vector<1x16x16xf32>
    tpu.vector_store %arg9[%c13_374, %c0_375, %c0_376], %783 {strides = array<i32>} : memref<18x16x16xf32, #tpu.memory_space<vmem>>, vector<1x16x16xf32>,
    %c0_377 = arith.constant 0 : index
    %c14 = arith.constant 14 : index
    %c0_378 = arith.constant 0 : index
    %c0_379 = arith.constant 0 : index
    %784 = vector.load %arg1[%c0_377, %c14, %c0_378, %c0_379] : memref<1x18x18x18xf32, #tpu.memory_space<vmem>>, vector<1x1x18x18xf32>
    %785 = vector.shape_cast %784 : vector<1x1x18x18xf32> to vector<18x18xf32>
    %cst_380 = arith.constant 0.000000e+00 : f32
    %786 = vector.broadcast %cst_380 : f32 to vector<16x16xf32>
    %c14_381 = arith.constant 14 : index
    %c0_382 = arith.constant 0 : index
    %787 = memref.load %arg2[%c14_381, %c0_382] : memref<18x9xf32, #tpu.memory_space<smem>>
    %788 = vector.extract_strided_slice %785 {offsets = [0, 0], sizes = [16, 16], strides = [1, 1]} : vector<18x18xf32> to vector<16x16xf32>
    %789 = vector.broadcast %787 : f32 to vector<16x16xf32>
    %790 = arith.mulf %789, %788 : vector<16x16xf32>
    %791 = arith.addf %786, %790 : vector<16x16xf32>
    %c14_383 = arith.constant 14 : index
    %c1_384 = arith.constant 1 : index
    %792 = memref.load %arg2[%c14_383, %c1_384] : memref<18x9xf32, #tpu.memory_space<smem>>
    %793 = vector.extract_strided_slice %785 {offsets = [0, 1], sizes = [16, 16], strides = [1, 1]} : vector<18x18xf32> to vector<16x16xf32>
    %794 = vector.broadcast %792 : f32 to vector<16x16xf32>
    %795 = arith.mulf %794, %793 : vector<16x16xf32>
    %796 = arith.addf %791, %795 : vector<16x16xf32>
    %c14_385 = arith.constant 14 : index
    %c2_386 = arith.constant 2 : index
    %797 = memref.load %arg2[%c14_385, %c2_386] : memref<18x9xf32, #tpu.memory_space<smem>>
    %798 = vector.extract_strided_slice %785 {offsets = [0, 2], sizes = [16, 16], strides = [1, 1]} : vector<18x18xf32> to vector<16x16xf32>
    %799 = vector.broadcast %797 : f32 to vector<16x16xf32>
    %800 = arith.mulf %799, %798 : vector<16x16xf32>
    %801 = arith.addf %796, %800 : vector<16x16xf32>
    %c14_387 = arith.constant 14 : index
    %c3_388 = arith.constant 3 : index
    %802 = memref.load %arg2[%c14_387, %c3_388] : memref<18x9xf32, #tpu.memory_space<smem>>
    %803 = vector.extract_strided_slice %785 {offsets = [1, 0], sizes = [16, 16], strides = [1, 1]} : vector<18x18xf32> to vector<16x16xf32>
    %804 = vector.broadcast %802 : f32 to vector<16x16xf32>
    %805 = arith.mulf %804, %803 : vector<16x16xf32>
    %806 = arith.addf %801, %805 : vector<16x16xf32>
    %c14_389 = arith.constant 14 : index
    %c4_390 = arith.constant 4 : index
    %807 = memref.load %arg2[%c14_389, %c4_390] : memref<18x9xf32, #tpu.memory_space<smem>>
    %808 = vector.extract_strided_slice %785 {offsets = [1, 1], sizes = [16, 16], strides = [1, 1]} : vector<18x18xf32> to vector<16x16xf32>
    %809 = vector.broadcast %807 : f32 to vector<16x16xf32>
    %810 = arith.mulf %809, %808 : vector<16x16xf32>
    %811 = arith.addf %806, %810 : vector<16x16xf32>
    %c14_391 = arith.constant 14 : index
    %c5_392 = arith.constant 5 : index
    %812 = memref.load %arg2[%c14_391, %c5_392] : memref<18x9xf32, #tpu.memory_space<smem>>
    %813 = vector.extract_strided_slice %785 {offsets = [1, 2], sizes = [16, 16], strides = [1, 1]} : vector<18x18xf32> to vector<16x16xf32>
    %814 = vector.broadcast %812 : f32 to vector<16x16xf32>
    %815 = arith.mulf %814, %813 : vector<16x16xf32>
    %816 = arith.addf %811, %815 : vector<16x16xf32>
    %c14_393 = arith.constant 14 : index
    %c6_394 = arith.constant 6 : index
    %817 = memref.load %arg2[%c14_393, %c6_394] : memref<18x9xf32, #tpu.memory_space<smem>>
    %818 = vector.extract_strided_slice %785 {offsets = [2, 0], sizes = [16, 16], strides = [1, 1]} : vector<18x18xf32> to vector<16x16xf32>
    %819 = vector.broadcast %817 : f32 to vector<16x16xf32>
    %820 = arith.mulf %819, %818 : vector<16x16xf32>
    %821 = arith.addf %816, %820 : vector<16x16xf32>
    %c14_395 = arith.constant 14 : index
    %c7_396 = arith.constant 7 : index
    %822 = memref.load %arg2[%c14_395, %c7_396] : memref<18x9xf32, #tpu.memory_space<smem>>
    %823 = vector.extract_strided_slice %785 {offsets = [2, 1], sizes = [16, 16], strides = [1, 1]} : vector<18x18xf32> to vector<16x16xf32>
    %824 = vector.broadcast %822 : f32 to vector<16x16xf32>
    %825 = arith.mulf %824, %823 : vector<16x16xf32>
    %826 = arith.addf %821, %825 : vector<16x16xf32>
    %c14_397 = arith.constant 14 : index
    %c8_398 = arith.constant 8 : index
    %827 = memref.load %arg2[%c14_397, %c8_398] : memref<18x9xf32, #tpu.memory_space<smem>>
    %828 = vector.extract_strided_slice %785 {offsets = [2, 2], sizes = [16, 16], strides = [1, 1]} : vector<18x18xf32> to vector<16x16xf32>
    %829 = vector.broadcast %827 : f32 to vector<16x16xf32>
    %830 = arith.mulf %829, %828 : vector<16x16xf32>
    %831 = arith.addf %826, %830 : vector<16x16xf32>
    %c14_399 = arith.constant 14 : index
    %832 = memref.load %arg3[%c14_399] : memref<18xf32, #tpu.memory_space<smem>>
    %833 = vector.broadcast %832 : f32 to vector<16x16xf32>
    %834 = arith.addf %831, %833 : vector<16x16xf32>
    %cst_400 = arith.constant 0.000000e+00 : f32
    %835 = vector.broadcast %cst_400 : f32 to vector<16x16xf32>
    %836 = arith.maximumf %834, %835 : vector<16x16xf32>
    %c14_401 = arith.constant 14 : index
    %c0_402 = arith.constant 0 : index
    %c0_403 = arith.constant 0 : index
    %837 = vector.load %arg9[%c14_401, %c0_402, %c0_403] : memref<18x16x16xf32, #tpu.memory_space<vmem>>, vector<1x16x16xf32>
    %838 = vector.shape_cast %837 : vector<1x16x16xf32> to vector<16x16xf32>
    %839 = vector.shape_cast %836 : vector<16x16xf32> to vector<1x16x16xf32>
    tpu.vector_store %arg9[%c14_401, %c0_402, %c0_403], %839 {strides = array<i32>} : memref<18x16x16xf32, #tpu.memory_space<vmem>>, vector<1x16x16xf32>,
    %c0_404 = arith.constant 0 : index
    %c15 = arith.constant 15 : index
    %c0_405 = arith.constant 0 : index
    %c0_406 = arith.constant 0 : index
    %840 = vector.load %arg1[%c0_404, %c15, %c0_405, %c0_406] : memref<1x18x18x18xf32, #tpu.memory_space<vmem>>, vector<1x1x18x18xf32>
    %841 = vector.shape_cast %840 : vector<1x1x18x18xf32> to vector<18x18xf32>
    %cst_407 = arith.constant 0.000000e+00 : f32
    %842 = vector.broadcast %cst_407 : f32 to vector<16x16xf32>
    %c15_408 = arith.constant 15 : index
    %c0_409 = arith.constant 0 : index
    %843 = memref.load %arg2[%c15_408, %c0_409] : memref<18x9xf32, #tpu.memory_space<smem>>
    %844 = vector.extract_strided_slice %841 {offsets = [0, 0], sizes = [16, 16], strides = [1, 1]} : vector<18x18xf32> to vector<16x16xf32>
    %845 = vector.broadcast %843 : f32 to vector<16x16xf32>
    %846 = arith.mulf %845, %844 : vector<16x16xf32>
    %847 = arith.addf %842, %846 : vector<16x16xf32>
    %c15_410 = arith.constant 15 : index
    %c1_411 = arith.constant 1 : index
    %848 = memref.load %arg2[%c15_410, %c1_411] : memref<18x9xf32, #tpu.memory_space<smem>>
    %849 = vector.extract_strided_slice %841 {offsets = [0, 1], sizes = [16, 16], strides = [1, 1]} : vector<18x18xf32> to vector<16x16xf32>
    %850 = vector.broadcast %848 : f32 to vector<16x16xf32>
    %851 = arith.mulf %850, %849 : vector<16x16xf32>
    %852 = arith.addf %847, %851 : vector<16x16xf32>
    %c15_412 = arith.constant 15 : index
    %c2_413 = arith.constant 2 : index
    %853 = memref.load %arg2[%c15_412, %c2_413] : memref<18x9xf32, #tpu.memory_space<smem>>
    %854 = vector.extract_strided_slice %841 {offsets = [0, 2], sizes = [16, 16], strides = [1, 1]} : vector<18x18xf32> to vector<16x16xf32>
    %855 = vector.broadcast %853 : f32 to vector<16x16xf32>
    %856 = arith.mulf %855, %854 : vector<16x16xf32>
    %857 = arith.addf %852, %856 : vector<16x16xf32>
    %c15_414 = arith.constant 15 : index
    %c3_415 = arith.constant 3 : index
    %858 = memref.load %arg2[%c15_414, %c3_415] : memref<18x9xf32, #tpu.memory_space<smem>>
    %859 = vector.extract_strided_slice %841 {offsets = [1, 0], sizes = [16, 16], strides = [1, 1]} : vector<18x18xf32> to vector<16x16xf32>
    %860 = vector.broadcast %858 : f32 to vector<16x16xf32>
    %861 = arith.mulf %860, %859 : vector<16x16xf32>
    %862 = arith.addf %857, %861 : vector<16x16xf32>
    %c15_416 = arith.constant 15 : index
    %c4_417 = arith.constant 4 : index
    %863 = memref.load %arg2[%c15_416, %c4_417] : memref<18x9xf32, #tpu.memory_space<smem>>
    %864 = vector.extract_strided_slice %841 {offsets = [1, 1], sizes = [16, 16], strides = [1, 1]} : vector<18x18xf32> to vector<16x16xf32>
    %865 = vector.broadcast %863 : f32 to vector<16x16xf32>
    %866 = arith.mulf %865, %864 : vector<16x16xf32>
    %867 = arith.addf %862, %866 : vector<16x16xf32>
    %c15_418 = arith.constant 15 : index
    %c5_419 = arith.constant 5 : index
    %868 = memref.load %arg2[%c15_418, %c5_419] : memref<18x9xf32, #tpu.memory_space<smem>>
    %869 = vector.extract_strided_slice %841 {offsets = [1, 2], sizes = [16, 16], strides = [1, 1]} : vector<18x18xf32> to vector<16x16xf32>
    %870 = vector.broadcast %868 : f32 to vector<16x16xf32>
    %871 = arith.mulf %870, %869 : vector<16x16xf32>
    %872 = arith.addf %867, %871 : vector<16x16xf32>
    %c15_420 = arith.constant 15 : index
    %c6_421 = arith.constant 6 : index
    %873 = memref.load %arg2[%c15_420, %c6_421] : memref<18x9xf32, #tpu.memory_space<smem>>
    %874 = vector.extract_strided_slice %841 {offsets = [2, 0], sizes = [16, 16], strides = [1, 1]} : vector<18x18xf32> to vector<16x16xf32>
    %875 = vector.broadcast %873 : f32 to vector<16x16xf32>
    %876 = arith.mulf %875, %874 : vector<16x16xf32>
    %877 = arith.addf %872, %876 : vector<16x16xf32>
    %c15_422 = arith.constant 15 : index
    %c7_423 = arith.constant 7 : index
    %878 = memref.load %arg2[%c15_422, %c7_423] : memref<18x9xf32, #tpu.memory_space<smem>>
    %879 = vector.extract_strided_slice %841 {offsets = [2, 1], sizes = [16, 16], strides = [1, 1]} : vector<18x18xf32> to vector<16x16xf32>
    %880 = vector.broadcast %878 : f32 to vector<16x16xf32>
    %881 = arith.mulf %880, %879 : vector<16x16xf32>
    %882 = arith.addf %877, %881 : vector<16x16xf32>
    %c15_424 = arith.constant 15 : index
    %c8_425 = arith.constant 8 : index
    %883 = memref.load %arg2[%c15_424, %c8_425] : memref<18x9xf32, #tpu.memory_space<smem>>
    %884 = vector.extract_strided_slice %841 {offsets = [2, 2], sizes = [16, 16], strides = [1, 1]} : vector<18x18xf32> to vector<16x16xf32>
    %885 = vector.broadcast %883 : f32 to vector<16x16xf32>
    %886 = arith.mulf %885, %884 : vector<16x16xf32>
    %887 = arith.addf %882, %886 : vector<16x16xf32>
    %c15_426 = arith.constant 15 : index
    %888 = memref.load %arg3[%c15_426] : memref<18xf32, #tpu.memory_space<smem>>
    %889 = vector.broadcast %888 : f32 to vector<16x16xf32>
    %890 = arith.addf %887, %889 : vector<16x16xf32>
    %cst_427 = arith.constant 0.000000e+00 : f32
    %891 = vector.broadcast %cst_427 : f32 to vector<16x16xf32>
    %892 = arith.maximumf %890, %891 : vector<16x16xf32>
    %c15_428 = arith.constant 15 : index
    %c0_429 = arith.constant 0 : index
    %c0_430 = arith.constant 0 : index
    %893 = vector.load %arg9[%c15_428, %c0_429, %c0_430] : memref<18x16x16xf32, #tpu.memory_space<vmem>>, vector<1x16x16xf32>
    %894 = vector.shape_cast %893 : vector<1x16x16xf32> to vector<16x16xf32>
    %895 = vector.shape_cast %892 : vector<16x16xf32> to vector<1x16x16xf32>
    tpu.vector_store %arg9[%c15_428, %c0_429, %c0_430], %895 {strides = array<i32>} : memref<18x16x16xf32, #tpu.memory_space<vmem>>, vector<1x16x16xf32>,
    %c0_431 = arith.constant 0 : index
    %c16 = arith.constant 16 : index
    %c0_432 = arith.constant 0 : index
    %c0_433 = arith.constant 0 : index
    %896 = vector.load %arg1[%c0_431, %c16, %c0_432, %c0_433] : memref<1x18x18x18xf32, #tpu.memory_space<vmem>>, vector<1x1x18x18xf32>
    %897 = vector.shape_cast %896 : vector<1x1x18x18xf32> to vector<18x18xf32>
    %cst_434 = arith.constant 0.000000e+00 : f32
    %898 = vector.broadcast %cst_434 : f32 to vector<16x16xf32>
    %c16_435 = arith.constant 16 : index
    %c0_436 = arith.constant 0 : index
    %899 = memref.load %arg2[%c16_435, %c0_436] : memref<18x9xf32, #tpu.memory_space<smem>>
    %900 = vector.extract_strided_slice %897 {offsets = [0, 0], sizes = [16, 16], strides = [1, 1]} : vector<18x18xf32> to vector<16x16xf32>
    %901 = vector.broadcast %899 : f32 to vector<16x16xf32>
    %902 = arith.mulf %901, %900 : vector<16x16xf32>
    %903 = arith.addf %898, %902 : vector<16x16xf32>
    %c16_437 = arith.constant 16 : index
    %c1_438 = arith.constant 1 : index
    %904 = memref.load %arg2[%c16_437, %c1_438] : memref<18x9xf32, #tpu.memory_space<smem>>
    %905 = vector.extract_strided_slice %897 {offsets = [0, 1], sizes = [16, 16], strides = [1, 1]} : vector<18x18xf32> to vector<16x16xf32>
    %906 = vector.broadcast %904 : f32 to vector<16x16xf32>
    %907 = arith.mulf %906, %905 : vector<16x16xf32>
    %908 = arith.addf %903, %907 : vector<16x16xf32>
    %c16_439 = arith.constant 16 : index
    %c2_440 = arith.constant 2 : index
    %909 = memref.load %arg2[%c16_439, %c2_440] : memref<18x9xf32, #tpu.memory_space<smem>>
    %910 = vector.extract_strided_slice %897 {offsets = [0, 2], sizes = [16, 16], strides = [1, 1]} : vector<18x18xf32> to vector<16x16xf32>
    %911 = vector.broadcast %909 : f32 to vector<16x16xf32>
    %912 = arith.mulf %911, %910 : vector<16x16xf32>
    %913 = arith.addf %908, %912 : vector<16x16xf32>
    %c16_441 = arith.constant 16 : index
    %c3_442 = arith.constant 3 : index
    %914 = memref.load %arg2[%c16_441, %c3_442] : memref<18x9xf32, #tpu.memory_space<smem>>
    %915 = vector.extract_strided_slice %897 {offsets = [1, 0], sizes = [16, 16], strides = [1, 1]} : vector<18x18xf32> to vector<16x16xf32>
    %916 = vector.broadcast %914 : f32 to vector<16x16xf32>
    %917 = arith.mulf %916, %915 : vector<16x16xf32>
    %918 = arith.addf %913, %917 : vector<16x16xf32>
    %c16_443 = arith.constant 16 : index
    %c4_444 = arith.constant 4 : index
    %919 = memref.load %arg2[%c16_443, %c4_444] : memref<18x9xf32, #tpu.memory_space<smem>>
    %920 = vector.extract_strided_slice %897 {offsets = [1, 1], sizes = [16, 16], strides = [1, 1]} : vector<18x18xf32> to vector<16x16xf32>
    %921 = vector.broadcast %919 : f32 to vector<16x16xf32>
    %922 = arith.mulf %921, %920 : vector<16x16xf32>
    %923 = arith.addf %918, %922 : vector<16x16xf32>
    %c16_445 = arith.constant 16 : index
    %c5_446 = arith.constant 5 : index
    %924 = memref.load %arg2[%c16_445, %c5_446] : memref<18x9xf32, #tpu.memory_space<smem>>
    %925 = vector.extract_strided_slice %897 {offsets = [1, 2], sizes = [16, 16], strides = [1, 1]} : vector<18x18xf32> to vector<16x16xf32>
    %926 = vector.broadcast %924 : f32 to vector<16x16xf32>
    %927 = arith.mulf %926, %925 : vector<16x16xf32>
    %928 = arith.addf %923, %927 : vector<16x16xf32>
    %c16_447 = arith.constant 16 : index
    %c6_448 = arith.constant 6 : index
    %929 = memref.load %arg2[%c16_447, %c6_448] : memref<18x9xf32, #tpu.memory_space<smem>>
    %930 = vector.extract_strided_slice %897 {offsets = [2, 0], sizes = [16, 16], strides = [1, 1]} : vector<18x18xf32> to vector<16x16xf32>
    %931 = vector.broadcast %929 : f32 to vector<16x16xf32>
    %932 = arith.mulf %931, %930 : vector<16x16xf32>
    %933 = arith.addf %928, %932 : vector<16x16xf32>
    %c16_449 = arith.constant 16 : index
    %c7_450 = arith.constant 7 : index
    %934 = memref.load %arg2[%c16_449, %c7_450] : memref<18x9xf32, #tpu.memory_space<smem>>
    %935 = vector.extract_strided_slice %897 {offsets = [2, 1], sizes = [16, 16], strides = [1, 1]} : vector<18x18xf32> to vector<16x16xf32>
    %936 = vector.broadcast %934 : f32 to vector<16x16xf32>
    %937 = arith.mulf %936, %935 : vector<16x16xf32>
    %938 = arith.addf %933, %937 : vector<16x16xf32>
    %c16_451 = arith.constant 16 : index
    %c8_452 = arith.constant 8 : index
    %939 = memref.load %arg2[%c16_451, %c8_452] : memref<18x9xf32, #tpu.memory_space<smem>>
    %940 = vector.extract_strided_slice %897 {offsets = [2, 2], sizes = [16, 16], strides = [1, 1]} : vector<18x18xf32> to vector<16x16xf32>
    %941 = vector.broadcast %939 : f32 to vector<16x16xf32>
    %942 = arith.mulf %941, %940 : vector<16x16xf32>
    %943 = arith.addf %938, %942 : vector<16x16xf32>
    %c16_453 = arith.constant 16 : index
    %944 = memref.load %arg3[%c16_453] : memref<18xf32, #tpu.memory_space<smem>>
    %945 = vector.broadcast %944 : f32 to vector<16x16xf32>
    %946 = arith.addf %943, %945 : vector<16x16xf32>
    %cst_454 = arith.constant 0.000000e+00 : f32
    %947 = vector.broadcast %cst_454 : f32 to vector<16x16xf32>
    %948 = arith.maximumf %946, %947 : vector<16x16xf32>
    %c16_455 = arith.constant 16 : index
    %c0_456 = arith.constant 0 : index
    %c0_457 = arith.constant 0 : index
    %949 = vector.load %arg9[%c16_455, %c0_456, %c0_457] : memref<18x16x16xf32, #tpu.memory_space<vmem>>, vector<1x16x16xf32>
    %950 = vector.shape_cast %949 : vector<1x16x16xf32> to vector<16x16xf32>
    %951 = vector.shape_cast %948 : vector<16x16xf32> to vector<1x16x16xf32>
    tpu.vector_store %arg9[%c16_455, %c0_456, %c0_457], %951 {strides = array<i32>} : memref<18x16x16xf32, #tpu.memory_space<vmem>>, vector<1x16x16xf32>,
    %c0_458 = arith.constant 0 : index
    %c17 = arith.constant 17 : index
    %c0_459 = arith.constant 0 : index
    %c0_460 = arith.constant 0 : index
    %952 = vector.load %arg1[%c0_458, %c17, %c0_459, %c0_460] : memref<1x18x18x18xf32, #tpu.memory_space<vmem>>, vector<1x1x18x18xf32>
    %953 = vector.shape_cast %952 : vector<1x1x18x18xf32> to vector<18x18xf32>
    %cst_461 = arith.constant 0.000000e+00 : f32
    %954 = vector.broadcast %cst_461 : f32 to vector<16x16xf32>
    %c17_462 = arith.constant 17 : index
    %c0_463 = arith.constant 0 : index
    %955 = memref.load %arg2[%c17_462, %c0_463] : memref<18x9xf32, #tpu.memory_space<smem>>
    %956 = vector.extract_strided_slice %953 {offsets = [0, 0], sizes = [16, 16], strides = [1, 1]} : vector<18x18xf32> to vector<16x16xf32>
    %957 = vector.broadcast %955 : f32 to vector<16x16xf32>
    %958 = arith.mulf %957, %956 : vector<16x16xf32>
    %959 = arith.addf %954, %958 : vector<16x16xf32>
    %c17_464 = arith.constant 17 : index
    %c1_465 = arith.constant 1 : index
    %960 = memref.load %arg2[%c17_464, %c1_465] : memref<18x9xf32, #tpu.memory_space<smem>>
    %961 = vector.extract_strided_slice %953 {offsets = [0, 1], sizes = [16, 16], strides = [1, 1]} : vector<18x18xf32> to vector<16x16xf32>
    %962 = vector.broadcast %960 : f32 to vector<16x16xf32>
    %963 = arith.mulf %962, %961 : vector<16x16xf32>
    %964 = arith.addf %959, %963 : vector<16x16xf32>
    %c17_466 = arith.constant 17 : index
    %c2_467 = arith.constant 2 : index
    %965 = memref.load %arg2[%c17_466, %c2_467] : memref<18x9xf32, #tpu.memory_space<smem>>
    %966 = vector.extract_strided_slice %953 {offsets = [0, 2], sizes = [16, 16], strides = [1, 1]} : vector<18x18xf32> to vector<16x16xf32>
    %967 = vector.broadcast %965 : f32 to vector<16x16xf32>
    %968 = arith.mulf %967, %966 : vector<16x16xf32>
    %969 = arith.addf %964, %968 : vector<16x16xf32>
    %c17_468 = arith.constant 17 : index
    %c3_469 = arith.constant 3 : index
    %970 = memref.load %arg2[%c17_468, %c3_469] : memref<18x9xf32, #tpu.memory_space<smem>>
    %971 = vector.extract_strided_slice %953 {offsets = [1, 0], sizes = [16, 16], strides = [1, 1]} : vector<18x18xf32> to vector<16x16xf32>
    %972 = vector.broadcast %970 : f32 to vector<16x16xf32>
    %973 = arith.mulf %972, %971 : vector<16x16xf32>
    %974 = arith.addf %969, %973 : vector<16x16xf32>
    %c17_470 = arith.constant 17 : index
    %c4_471 = arith.constant 4 : index
    %975 = memref.load %arg2[%c17_470, %c4_471] : memref<18x9xf32, #tpu.memory_space<smem>>
    %976 = vector.extract_strided_slice %953 {offsets = [1, 1], sizes = [16, 16], strides = [1, 1]} : vector<18x18xf32> to vector<16x16xf32>
    %977 = vector.broadcast %975 : f32 to vector<16x16xf32>
    %978 = arith.mulf %977, %976 : vector<16x16xf32>
    %979 = arith.addf %974, %978 : vector<16x16xf32>
    %c17_472 = arith.constant 17 : index
    %c5_473 = arith.constant 5 : index
    %980 = memref.load %arg2[%c17_472, %c5_473] : memref<18x9xf32, #tpu.memory_space<smem>>
    %981 = vector.extract_strided_slice %953 {offsets = [1, 2], sizes = [16, 16], strides = [1, 1]} : vector<18x18xf32> to vector<16x16xf32>
    %982 = vector.broadcast %980 : f32 to vector<16x16xf32>
    %983 = arith.mulf %982, %981 : vector<16x16xf32>
    %984 = arith.addf %979, %983 : vector<16x16xf32>
    %c17_474 = arith.constant 17 : index
    %c6_475 = arith.constant 6 : index
    %985 = memref.load %arg2[%c17_474, %c6_475] : memref<18x9xf32, #tpu.memory_space<smem>>
    %986 = vector.extract_strided_slice %953 {offsets = [2, 0], sizes = [16, 16], strides = [1, 1]} : vector<18x18xf32> to vector<16x16xf32>
    %987 = vector.broadcast %985 : f32 to vector<16x16xf32>
    %988 = arith.mulf %987, %986 : vector<16x16xf32>
    %989 = arith.addf %984, %988 : vector<16x16xf32>
    %c17_476 = arith.constant 17 : index
    %c7_477 = arith.constant 7 : index
    %990 = memref.load %arg2[%c17_476, %c7_477] : memref<18x9xf32, #tpu.memory_space<smem>>
    %991 = vector.extract_strided_slice %953 {offsets = [2, 1], sizes = [16, 16], strides = [1, 1]} : vector<18x18xf32> to vector<16x16xf32>
    %992 = vector.broadcast %990 : f32 to vector<16x16xf32>
    %993 = arith.mulf %992, %991 : vector<16x16xf32>
    %994 = arith.addf %989, %993 : vector<16x16xf32>
    %c17_478 = arith.constant 17 : index
    %c8_479 = arith.constant 8 : index
    %995 = memref.load %arg2[%c17_478, %c8_479] : memref<18x9xf32, #tpu.memory_space<smem>>
    %996 = vector.extract_strided_slice %953 {offsets = [2, 2], sizes = [16, 16], strides = [1, 1]} : vector<18x18xf32> to vector<16x16xf32>
    %997 = vector.broadcast %995 : f32 to vector<16x16xf32>
    %998 = arith.mulf %997, %996 : vector<16x16xf32>
    %999 = arith.addf %994, %998 : vector<16x16xf32>
    %c17_480 = arith.constant 17 : index
    %1000 = memref.load %arg3[%c17_480] : memref<18xf32, #tpu.memory_space<smem>>
    %1001 = vector.broadcast %1000 : f32 to vector<16x16xf32>
    %1002 = arith.addf %999, %1001 : vector<16x16xf32>
    %cst_481 = arith.constant 0.000000e+00 : f32
    %1003 = vector.broadcast %cst_481 : f32 to vector<16x16xf32>
    %1004 = arith.maximumf %1002, %1003 : vector<16x16xf32>
    %c17_482 = arith.constant 17 : index
    %c0_483 = arith.constant 0 : index
    %c0_484 = arith.constant 0 : index
    %1005 = vector.load %arg9[%c17_482, %c0_483, %c0_484] : memref<18x16x16xf32, #tpu.memory_space<vmem>>, vector<1x16x16xf32>
    %1006 = vector.shape_cast %1005 : vector<1x16x16xf32> to vector<16x16xf32>
    %1007 = vector.shape_cast %1004 : vector<16x16xf32> to vector<1x16x16xf32>
    tpu.vector_store %arg9[%c17_482, %c0_483, %c0_484], %1007 {strides = array<i32>} : memref<18x16x16xf32, #tpu.memory_space<vmem>>, vector<1x16x16xf32>,
    %c0_485 = arith.constant 0 : index
    %c0_486 = arith.constant 0 : index
    %c0_487 = arith.constant 0 : index
    %1008 = vector.load %arg9[%c0_485, %c0_486, %c0_487] : memref<18x16x16xf32, #tpu.memory_space<vmem>>, vector<18x16x16xf32>
    %1009 = vector.shape_cast %1008 : vector<18x16x16xf32> to vector<18x256xf32>
    %c0_488 = arith.constant 0 : index
    %c0_489 = arith.constant 0 : index
    %1010 = vector.load %arg4[%c0_488, %c0_489] : memref<12x18xf32, #tpu.memory_space<vmem>>, vector<12x18xf32>
    %cst_490 = arith.constant dense<0.000000e+00> : vector<12x256xf32>
    %1011 = tpu.matmul %1010, %1009, %cst_490 {dimension_numbers = #tpu.dot_dimension_numbers<[1], [0], [0], [1], [0, 0, 1, 1], [], []>} : vector<12x18xf32>, vector<18x256xf32>, vector<12x256xf32> -> vector<12x256xf32>
    %c0_491 = arith.constant 0 : index
    %c0_492 = arith.constant 0 : index
    %1012 = vector.load %arg5[%c0_491, %c0_492] : memref<12x1xf32, #tpu.memory_space<vmem>>, vector<12x1xf32>
    %1013 = vector.broadcast %1012 : vector<12x1xf32> to vector<12x256xf32>
    %1014 = arith.addf %1011, %1013 : vector<12x256xf32>
    %cst_493 = arith.constant 0.000000e+00 : f32
    %1015 = vector.broadcast %cst_493 : f32 to vector<12x256xf32>
    %1016 = arith.maximumf %1014, %1015 : vector<12x256xf32>
    %1017 = vector.shape_cast %1016 : vector<12x256xf32> to vector<12x16x16xf32>
    %c0_494 = arith.constant 0 : index
    %c0_495 = arith.constant 0 : index
    %1018 = vector.load %arg6[%c0_494, %c0_495] : memref<32x16xf32, #tpu.memory_space<vmem>>, vector<32x16xf32>
    %c0_496 = arith.constant 0 : index
    %c0_497 = arith.constant 0 : index
    %1019 = vector.load %arg7[%c0_496, %c0_497] : memref<16x32xf32, #tpu.memory_space<vmem>>, vector<16x32xf32>
    %1020 = vector.extract_strided_slice %1017 {offsets = [0, 0, 0], sizes = [1, 16, 16], strides = [1, 1, 1]} : vector<12x16x16xf32> to vector<1x16x16xf32>
    %1021 = vector.shape_cast %1020 : vector<1x16x16xf32> to vector<16x16xf32>
    %cst_498 = arith.constant dense<0.000000e+00> : vector<32x16xf32>
    %1022 = tpu.matmul %1018, %1021, %cst_498 {dimension_numbers = #tpu.dot_dimension_numbers<[1], [0], [0], [1], [0, 0, 1, 1], [], []>} : vector<32x16xf32>, vector<16x16xf32>, vector<32x16xf32> -> vector<32x16xf32>
    %cst_499 = arith.constant dense<0.000000e+00> : vector<32x32xf32>
    %1023 = tpu.matmul %1022, %1019, %cst_499 {dimension_numbers = #tpu.dot_dimension_numbers<[1], [0], [0], [1], [0, 0, 1, 1], [], []>} : vector<32x16xf32>, vector<16x32xf32>, vector<32x32xf32> -> vector<32x32xf32>
    %c0_500 = arith.constant 0 : index
    %c0_501 = arith.constant 0 : index
    %c0_502 = arith.constant 0 : index
    %c0_503 = arith.constant 0 : index
    %1024 = vector.load %arg8[%c0_500, %c0_501, %c0_502, %c0_503] : memref<1x12x32x32xf32, #tpu.memory_space<vmem>>, vector<1x1x32x32xf32>
    %1025 = vector.shape_cast %1024 : vector<1x1x32x32xf32> to vector<32x32xf32>
    %1026 = vector.shape_cast %1023 : vector<32x32xf32> to vector<1x1x32x32xf32>
    tpu.vector_store %arg8[%c0_500, %c0_501, %c0_502, %c0_503], %1026 {strides = array<i32>} : memref<1x12x32x32xf32, #tpu.memory_space<vmem>>, vector<1x1x32x32xf32>,
    %1027 = vector.extract_strided_slice %1017 {offsets = [1, 0, 0], sizes = [1, 16, 16], strides = [1, 1, 1]} : vector<12x16x16xf32> to vector<1x16x16xf32>
    %1028 = vector.shape_cast %1027 : vector<1x16x16xf32> to vector<16x16xf32>
    %cst_504 = arith.constant dense<0.000000e+00> : vector<32x16xf32>
    %1029 = tpu.matmul %1018, %1028, %cst_504 {dimension_numbers = #tpu.dot_dimension_numbers<[1], [0], [0], [1], [0, 0, 1, 1], [], []>} : vector<32x16xf32>, vector<16x16xf32>, vector<32x16xf32> -> vector<32x16xf32>
    %cst_505 = arith.constant dense<0.000000e+00> : vector<32x32xf32>
    %1030 = tpu.matmul %1029, %1019, %cst_505 {dimension_numbers = #tpu.dot_dimension_numbers<[1], [0], [0], [1], [0, 0, 1, 1], [], []>} : vector<32x16xf32>, vector<16x32xf32>, vector<32x32xf32> -> vector<32x32xf32>
    %c0_506 = arith.constant 0 : index
    %c1_507 = arith.constant 1 : index
    %c0_508 = arith.constant 0 : index
    %c0_509 = arith.constant 0 : index
    %1031 = vector.load %arg8[%c0_506, %c1_507, %c0_508, %c0_509] : memref<1x12x32x32xf32, #tpu.memory_space<vmem>>, vector<1x1x32x32xf32>
    %1032 = vector.shape_cast %1031 : vector<1x1x32x32xf32> to vector<32x32xf32>
    %1033 = vector.shape_cast %1030 : vector<32x32xf32> to vector<1x1x32x32xf32>
    tpu.vector_store %arg8[%c0_506, %c1_507, %c0_508, %c0_509], %1033 {strides = array<i32>} : memref<1x12x32x32xf32, #tpu.memory_space<vmem>>, vector<1x1x32x32xf32>,
    %1034 = vector.extract_strided_slice %1017 {offsets = [2, 0, 0], sizes = [1, 16, 16], strides = [1, 1, 1]} : vector<12x16x16xf32> to vector<1x16x16xf32>
    %1035 = vector.shape_cast %1034 : vector<1x16x16xf32> to vector<16x16xf32>
    %cst_510 = arith.constant dense<0.000000e+00> : vector<32x16xf32>
    %1036 = tpu.matmul %1018, %1035, %cst_510 {dimension_numbers = #tpu.dot_dimension_numbers<[1], [0], [0], [1], [0, 0, 1, 1], [], []>} : vector<32x16xf32>, vector<16x16xf32>, vector<32x16xf32> -> vector<32x16xf32>
    %cst_511 = arith.constant dense<0.000000e+00> : vector<32x32xf32>
    %1037 = tpu.matmul %1036, %1019, %cst_511 {dimension_numbers = #tpu.dot_dimension_numbers<[1], [0], [0], [1], [0, 0, 1, 1], [], []>} : vector<32x16xf32>, vector<16x32xf32>, vector<32x32xf32> -> vector<32x32xf32>
    %c0_512 = arith.constant 0 : index
    %c2_513 = arith.constant 2 : index
    %c0_514 = arith.constant 0 : index
    %c0_515 = arith.constant 0 : index
    %1038 = vector.load %arg8[%c0_512, %c2_513, %c0_514, %c0_515] : memref<1x12x32x32xf32, #tpu.memory_space<vmem>>, vector<1x1x32x32xf32>
    %1039 = vector.shape_cast %1038 : vector<1x1x32x32xf32> to vector<32x32xf32>
    %1040 = vector.shape_cast %1037 : vector<32x32xf32> to vector<1x1x32x32xf32>
    tpu.vector_store %arg8[%c0_512, %c2_513, %c0_514, %c0_515], %1040 {strides = array<i32>} : memref<1x12x32x32xf32, #tpu.memory_space<vmem>>, vector<1x1x32x32xf32>,
    %1041 = vector.extract_strided_slice %1017 {offsets = [3, 0, 0], sizes = [1, 16, 16], strides = [1, 1, 1]} : vector<12x16x16xf32> to vector<1x16x16xf32>
    %1042 = vector.shape_cast %1041 : vector<1x16x16xf32> to vector<16x16xf32>
    %cst_516 = arith.constant dense<0.000000e+00> : vector<32x16xf32>
    %1043 = tpu.matmul %1018, %1042, %cst_516 {dimension_numbers = #tpu.dot_dimension_numbers<[1], [0], [0], [1], [0, 0, 1, 1], [], []>} : vector<32x16xf32>, vector<16x16xf32>, vector<32x16xf32> -> vector<32x16xf32>
    %cst_517 = arith.constant dense<0.000000e+00> : vector<32x32xf32>
    %1044 = tpu.matmul %1043, %1019, %cst_517 {dimension_numbers = #tpu.dot_dimension_numbers<[1], [0], [0], [1], [0, 0, 1, 1], [], []>} : vector<32x16xf32>, vector<16x32xf32>, vector<32x32xf32> -> vector<32x32xf32>
    %c0_518 = arith.constant 0 : index
    %c3_519 = arith.constant 3 : index
    %c0_520 = arith.constant 0 : index
    %c0_521 = arith.constant 0 : index
    %1045 = vector.load %arg8[%c0_518, %c3_519, %c0_520, %c0_521] : memref<1x12x32x32xf32, #tpu.memory_space<vmem>>, vector<1x1x32x32xf32>
    %1046 = vector.shape_cast %1045 : vector<1x1x32x32xf32> to vector<32x32xf32>
    %1047 = vector.shape_cast %1044 : vector<32x32xf32> to vector<1x1x32x32xf32>
    tpu.vector_store %arg8[%c0_518, %c3_519, %c0_520, %c0_521], %1047 {strides = array<i32>} : memref<1x12x32x32xf32, #tpu.memory_space<vmem>>, vector<1x1x32x32xf32>,
    %1048 = vector.extract_strided_slice %1017 {offsets = [4, 0, 0], sizes = [1, 16, 16], strides = [1, 1, 1]} : vector<12x16x16xf32> to vector<1x16x16xf32>
    %1049 = vector.shape_cast %1048 : vector<1x16x16xf32> to vector<16x16xf32>
    %cst_522 = arith.constant dense<0.000000e+00> : vector<32x16xf32>
    %1050 = tpu.matmul %1018, %1049, %cst_522 {dimension_numbers = #tpu.dot_dimension_numbers<[1], [0], [0], [1], [0, 0, 1, 1], [], []>} : vector<32x16xf32>, vector<16x16xf32>, vector<32x16xf32> -> vector<32x16xf32>
    %cst_523 = arith.constant dense<0.000000e+00> : vector<32x32xf32>
    %1051 = tpu.matmul %1050, %1019, %cst_523 {dimension_numbers = #tpu.dot_dimension_numbers<[1], [0], [0], [1], [0, 0, 1, 1], [], []>} : vector<32x16xf32>, vector<16x32xf32>, vector<32x32xf32> -> vector<32x32xf32>
    %c0_524 = arith.constant 0 : index
    %c4_525 = arith.constant 4 : index
    %c0_526 = arith.constant 0 : index
    %c0_527 = arith.constant 0 : index
    %1052 = vector.load %arg8[%c0_524, %c4_525, %c0_526, %c0_527] : memref<1x12x32x32xf32, #tpu.memory_space<vmem>>, vector<1x1x32x32xf32>
    %1053 = vector.shape_cast %1052 : vector<1x1x32x32xf32> to vector<32x32xf32>
    %1054 = vector.shape_cast %1051 : vector<32x32xf32> to vector<1x1x32x32xf32>
    tpu.vector_store %arg8[%c0_524, %c4_525, %c0_526, %c0_527], %1054 {strides = array<i32>} : memref<1x12x32x32xf32, #tpu.memory_space<vmem>>, vector<1x1x32x32xf32>,
    %1055 = vector.extract_strided_slice %1017 {offsets = [5, 0, 0], sizes = [1, 16, 16], strides = [1, 1, 1]} : vector<12x16x16xf32> to vector<1x16x16xf32>
    %1056 = vector.shape_cast %1055 : vector<1x16x16xf32> to vector<16x16xf32>
    %cst_528 = arith.constant dense<0.000000e+00> : vector<32x16xf32>
    %1057 = tpu.matmul %1018, %1056, %cst_528 {dimension_numbers = #tpu.dot_dimension_numbers<[1], [0], [0], [1], [0, 0, 1, 1], [], []>} : vector<32x16xf32>, vector<16x16xf32>, vector<32x16xf32> -> vector<32x16xf32>
    %cst_529 = arith.constant dense<0.000000e+00> : vector<32x32xf32>
    %1058 = tpu.matmul %1057, %1019, %cst_529 {dimension_numbers = #tpu.dot_dimension_numbers<[1], [0], [0], [1], [0, 0, 1, 1], [], []>} : vector<32x16xf32>, vector<16x32xf32>, vector<32x32xf32> -> vector<32x32xf32>
    %c0_530 = arith.constant 0 : index
    %c5_531 = arith.constant 5 : index
    %c0_532 = arith.constant 0 : index
    %c0_533 = arith.constant 0 : index
    %1059 = vector.load %arg8[%c0_530, %c5_531, %c0_532, %c0_533] : memref<1x12x32x32xf32, #tpu.memory_space<vmem>>, vector<1x1x32x32xf32>
    %1060 = vector.shape_cast %1059 : vector<1x1x32x32xf32> to vector<32x32xf32>
    %1061 = vector.shape_cast %1058 : vector<32x32xf32> to vector<1x1x32x32xf32>
    tpu.vector_store %arg8[%c0_530, %c5_531, %c0_532, %c0_533], %1061 {strides = array<i32>} : memref<1x12x32x32xf32, #tpu.memory_space<vmem>>, vector<1x1x32x32xf32>,
    %1062 = vector.extract_strided_slice %1017 {offsets = [6, 0, 0], sizes = [1, 16, 16], strides = [1, 1, 1]} : vector<12x16x16xf32> to vector<1x16x16xf32>
    %1063 = vector.shape_cast %1062 : vector<1x16x16xf32> to vector<16x16xf32>
    %cst_534 = arith.constant dense<0.000000e+00> : vector<32x16xf32>
    %1064 = tpu.matmul %1018, %1063, %cst_534 {dimension_numbers = #tpu.dot_dimension_numbers<[1], [0], [0], [1], [0, 0, 1, 1], [], []>} : vector<32x16xf32>, vector<16x16xf32>, vector<32x16xf32> -> vector<32x16xf32>
    %cst_535 = arith.constant dense<0.000000e+00> : vector<32x32xf32>
    %1065 = tpu.matmul %1064, %1019, %cst_535 {dimension_numbers = #tpu.dot_dimension_numbers<[1], [0], [0], [1], [0, 0, 1, 1], [], []>} : vector<32x16xf32>, vector<16x32xf32>, vector<32x32xf32> -> vector<32x32xf32>
    %c0_536 = arith.constant 0 : index
    %c6_537 = arith.constant 6 : index
    %c0_538 = arith.constant 0 : index
    %c0_539 = arith.constant 0 : index
    %1066 = vector.load %arg8[%c0_536, %c6_537, %c0_538, %c0_539] : memref<1x12x32x32xf32, #tpu.memory_space<vmem>>, vector<1x1x32x32xf32>
    %1067 = vector.shape_cast %1066 : vector<1x1x32x32xf32> to vector<32x32xf32>
    %1068 = vector.shape_cast %1065 : vector<32x32xf32> to vector<1x1x32x32xf32>
    tpu.vector_store %arg8[%c0_536, %c6_537, %c0_538, %c0_539], %1068 {strides = array<i32>} : memref<1x12x32x32xf32, #tpu.memory_space<vmem>>, vector<1x1x32x32xf32>,
    %1069 = vector.extract_strided_slice %1017 {offsets = [7, 0, 0], sizes = [1, 16, 16], strides = [1, 1, 1]} : vector<12x16x16xf32> to vector<1x16x16xf32>
    %1070 = vector.shape_cast %1069 : vector<1x16x16xf32> to vector<16x16xf32>
    %cst_540 = arith.constant dense<0.000000e+00> : vector<32x16xf32>
    %1071 = tpu.matmul %1018, %1070, %cst_540 {dimension_numbers = #tpu.dot_dimension_numbers<[1], [0], [0], [1], [0, 0, 1, 1], [], []>} : vector<32x16xf32>, vector<16x16xf32>, vector<32x16xf32> -> vector<32x16xf32>
    %cst_541 = arith.constant dense<0.000000e+00> : vector<32x32xf32>
    %1072 = tpu.matmul %1071, %1019, %cst_541 {dimension_numbers = #tpu.dot_dimension_numbers<[1], [0], [0], [1], [0, 0, 1, 1], [], []>} : vector<32x16xf32>, vector<16x32xf32>, vector<32x32xf32> -> vector<32x32xf32>
    %c0_542 = arith.constant 0 : index
    %c7_543 = arith.constant 7 : index
    %c0_544 = arith.constant 0 : index
    %c0_545 = arith.constant 0 : index
    %1073 = vector.load %arg8[%c0_542, %c7_543, %c0_544, %c0_545] : memref<1x12x32x32xf32, #tpu.memory_space<vmem>>, vector<1x1x32x32xf32>
    %1074 = vector.shape_cast %1073 : vector<1x1x32x32xf32> to vector<32x32xf32>
    %1075 = vector.shape_cast %1072 : vector<32x32xf32> to vector<1x1x32x32xf32>
    tpu.vector_store %arg8[%c0_542, %c7_543, %c0_544, %c0_545], %1075 {strides = array<i32>} : memref<1x12x32x32xf32, #tpu.memory_space<vmem>>, vector<1x1x32x32xf32>,
    %1076 = vector.extract_strided_slice %1017 {offsets = [8, 0, 0], sizes = [1, 16, 16], strides = [1, 1, 1]} : vector<12x16x16xf32> to vector<1x16x16xf32>
    %1077 = vector.shape_cast %1076 : vector<1x16x16xf32> to vector<16x16xf32>
    %cst_546 = arith.constant dense<0.000000e+00> : vector<32x16xf32>
    %1078 = tpu.matmul %1018, %1077, %cst_546 {dimension_numbers = #tpu.dot_dimension_numbers<[1], [0], [0], [1], [0, 0, 1, 1], [], []>} : vector<32x16xf32>, vector<16x16xf32>, vector<32x16xf32> -> vector<32x16xf32>
    %cst_547 = arith.constant dense<0.000000e+00> : vector<32x32xf32>
    %1079 = tpu.matmul %1078, %1019, %cst_547 {dimension_numbers = #tpu.dot_dimension_numbers<[1], [0], [0], [1], [0, 0, 1, 1], [], []>} : vector<32x16xf32>, vector<16x32xf32>, vector<32x32xf32> -> vector<32x32xf32>
    %c0_548 = arith.constant 0 : index
    %c8_549 = arith.constant 8 : index
    %c0_550 = arith.constant 0 : index
    %c0_551 = arith.constant 0 : index
    %1080 = vector.load %arg8[%c0_548, %c8_549, %c0_550, %c0_551] : memref<1x12x32x32xf32, #tpu.memory_space<vmem>>, vector<1x1x32x32xf32>
    %1081 = vector.shape_cast %1080 : vector<1x1x32x32xf32> to vector<32x32xf32>
    %1082 = vector.shape_cast %1079 : vector<32x32xf32> to vector<1x1x32x32xf32>
    tpu.vector_store %arg8[%c0_548, %c8_549, %c0_550, %c0_551], %1082 {strides = array<i32>} : memref<1x12x32x32xf32, #tpu.memory_space<vmem>>, vector<1x1x32x32xf32>,
    %1083 = vector.extract_strided_slice %1017 {offsets = [9, 0, 0], sizes = [1, 16, 16], strides = [1, 1, 1]} : vector<12x16x16xf32> to vector<1x16x16xf32>
    %1084 = vector.shape_cast %1083 : vector<1x16x16xf32> to vector<16x16xf32>
    %cst_552 = arith.constant dense<0.000000e+00> : vector<32x16xf32>
    %1085 = tpu.matmul %1018, %1084, %cst_552 {dimension_numbers = #tpu.dot_dimension_numbers<[1], [0], [0], [1], [0, 0, 1, 1], [], []>} : vector<32x16xf32>, vector<16x16xf32>, vector<32x16xf32> -> vector<32x16xf32>
    %cst_553 = arith.constant dense<0.000000e+00> : vector<32x32xf32>
    %1086 = tpu.matmul %1085, %1019, %cst_553 {dimension_numbers = #tpu.dot_dimension_numbers<[1], [0], [0], [1], [0, 0, 1, 1], [], []>} : vector<32x16xf32>, vector<16x32xf32>, vector<32x32xf32> -> vector<32x32xf32>
    %c0_554 = arith.constant 0 : index
    %c9_555 = arith.constant 9 : index
    %c0_556 = arith.constant 0 : index
    %c0_557 = arith.constant 0 : index
    %1087 = vector.load %arg8[%c0_554, %c9_555, %c0_556, %c0_557] : memref<1x12x32x32xf32, #tpu.memory_space<vmem>>, vector<1x1x32x32xf32>
    %1088 = vector.shape_cast %1087 : vector<1x1x32x32xf32> to vector<32x32xf32>
    %1089 = vector.shape_cast %1086 : vector<32x32xf32> to vector<1x1x32x32xf32>
    tpu.vector_store %arg8[%c0_554, %c9_555, %c0_556, %c0_557], %1089 {strides = array<i32>} : memref<1x12x32x32xf32, #tpu.memory_space<vmem>>, vector<1x1x32x32xf32>,
    %1090 = vector.extract_strided_slice %1017 {offsets = [10, 0, 0], sizes = [1, 16, 16], strides = [1, 1, 1]} : vector<12x16x16xf32> to vector<1x16x16xf32>
    %1091 = vector.shape_cast %1090 : vector<1x16x16xf32> to vector<16x16xf32>
    %cst_558 = arith.constant dense<0.000000e+00> : vector<32x16xf32>
    %1092 = tpu.matmul %1018, %1091, %cst_558 {dimension_numbers = #tpu.dot_dimension_numbers<[1], [0], [0], [1], [0, 0, 1, 1], [], []>} : vector<32x16xf32>, vector<16x16xf32>, vector<32x16xf32> -> vector<32x16xf32>
    %cst_559 = arith.constant dense<0.000000e+00> : vector<32x32xf32>
    %1093 = tpu.matmul %1092, %1019, %cst_559 {dimension_numbers = #tpu.dot_dimension_numbers<[1], [0], [0], [1], [0, 0, 1, 1], [], []>} : vector<32x16xf32>, vector<16x32xf32>, vector<32x32xf32> -> vector<32x32xf32>
    %c0_560 = arith.constant 0 : index
    %c10_561 = arith.constant 10 : index
    %c0_562 = arith.constant 0 : index
    %c0_563 = arith.constant 0 : index
    %1094 = vector.load %arg8[%c0_560, %c10_561, %c0_562, %c0_563] : memref<1x12x32x32xf32, #tpu.memory_space<vmem>>, vector<1x1x32x32xf32>
    %1095 = vector.shape_cast %1094 : vector<1x1x32x32xf32> to vector<32x32xf32>
    %1096 = vector.shape_cast %1093 : vector<32x32xf32> to vector<1x1x32x32xf32>
    tpu.vector_store %arg8[%c0_560, %c10_561, %c0_562, %c0_563], %1096 {strides = array<i32>} : memref<1x12x32x32xf32, #tpu.memory_space<vmem>>, vector<1x1x32x32xf32>,
    %1097 = vector.extract_strided_slice %1017 {offsets = [11, 0, 0], sizes = [1, 16, 16], strides = [1, 1, 1]} : vector<12x16x16xf32> to vector<1x16x16xf32>
    %1098 = vector.shape_cast %1097 : vector<1x16x16xf32> to vector<16x16xf32>
    %cst_564 = arith.constant dense<0.000000e+00> : vector<32x16xf32>
    %1099 = tpu.matmul %1018, %1098, %cst_564 {dimension_numbers = #tpu.dot_dimension_numbers<[1], [0], [0], [1], [0, 0, 1, 1], [], []>} : vector<32x16xf32>, vector<16x16xf32>, vector<32x16xf32> -> vector<32x16xf32>
    %cst_565 = arith.constant dense<0.000000e+00> : vector<32x32xf32>
    %1100 = tpu.matmul %1099, %1019, %cst_565 {dimension_numbers = #tpu.dot_dimension_numbers<[1], [0], [0], [1], [0, 0, 1, 1], [], []>} : vector<32x16xf32>, vector<16x32xf32>, vector<32x32xf32> -> vector<32x32xf32>
    %c0_566 = arith.constant 0 : index
    %c11_567 = arith.constant 11 : index
    %c0_568 = arith.constant 0 : index
    %c0_569 = arith.constant 0 : index
    %1101 = vector.load %arg8[%c0_566, %c11_567, %c0_568, %c0_569] : memref<1x12x32x32xf32, #tpu.memory_space<vmem>>, vector<1x1x32x32xf32>
    %1102 = vector.shape_cast %1101 : vector<1x1x32x32xf32> to vector<32x32xf32>
    %1103 = vector.shape_cast %1100 : vector<32x32xf32> to vector<1x1x32x32xf32>
    tpu.vector_store %arg8[%c0_566, %c11_567, %c0_568, %c0_569], %1103 {strides = array<i32>} : memref<1x12x32x32xf32, #tpu.memory_space<vmem>>, vector<1x1x32x32xf32>,
    return
  }
  func.func @transform_0(%arg0: i32) -> (i32, i32, i32, i32) {
    %c0_i32 = arith.constant 0 : i32
    %c0_i32_0 = arith.constant 0 : i32
    %c0_i32_1 = arith.constant 0 : i32
    %c0_i32_2 = arith.constant 0 : i32
    return %arg0, %c0_i32, %c0_i32_0, %c0_i32_1 : i32, i32, i32, i32
  }
  func.func @transform_1(%arg0: i32) -> (i32, i32) {
    %c0_i32 = arith.constant 0 : i32
    %c0_i32_0 = arith.constant 0 : i32
    %c0_i32_1 = arith.constant 0 : i32
    return %c0_i32, %c0_i32_0 : i32, i32
  }
  func.func @transform_2(%arg0: i32) -> i32 {
    %c0_i32 = arith.constant 0 : i32
    %c0_i32_0 = arith.constant 0 : i32
    return %c0_i32 : i32
  }
  func.func @transform_3(%arg0: i32) -> (i32, i32) {
    %c0_i32 = arith.constant 0 : i32
    %c0_i32_0 = arith.constant 0 : i32
    %c0_i32_1 = arith.constant 0 : i32
    return %c0_i32, %c0_i32_0 : i32, i32
  }
  func.func @transform_4(%arg0: i32) -> (i32, i32) {
    %c0_i32 = arith.constant 0 : i32
    %c0_i32_0 = arith.constant 0 : i32
    %c0_i32_1 = arith.constant 0 : i32
    return %c0_i32, %c0_i32_0 : i32, i32
  }
  func.func @transform_5(%arg0: i32) -> (i32, i32) {
    %c0_i32 = arith.constant 0 : i32
    %c0_i32_0 = arith.constant 0 : i32
    %c0_i32_1 = arith.constant 0 : i32
    return %c0_i32, %c0_i32_0 : i32, i32
  }
  func.func @transform_6(%arg0: i32) -> (i32, i32) {
    %c0_i32 = arith.constant 0 : i32
    %c0_i32_0 = arith.constant 0 : i32
    %c0_i32_1 = arith.constant 0 : i32
    return %c0_i32, %c0_i32_0 : i32, i32
  }
  func.func @transform_7(%arg0: i32) -> (i32, i32, i32, i32) {
    %c0_i32 = arith.constant 0 : i32
    %c0_i32_0 = arith.constant 0 : i32
    %c0_i32_1 = arith.constant 0 : i32
    %c0_i32_2 = arith.constant 0 : i32
    return %arg0, %c0_i32, %c0_i32_0, %c0_i32_1 : i32, i32, i32, i32
  }
}

</mosaic_0001>

<bundles_post_ra>
// kernel: tpu_custom_call.1
= control target key start
LH: loop header
LB: loop body
LE: loop exit
PB: predicated region body
PF: predicated region fallthrough
CT: control target
= control target key end

     0   :  { %s14033_s0 = inlined_call_operand.vmem [shape: f32[2,18,18,18], index: 0, kind: input, shape index: {}]   ;;  %s14034_s1 = inlined_call_operand.vmem [shape: f32[18,9], index: 1, kind: input, shape index: {}]   ;;  %s14035_s2 = inlined_call_operand.vmem [shape: f32[18], index: 2, kind: input, shape index: {}]   ;;  %s14036_s3 = inlined_call_operand.vmem [shape: f32[12,18], index: 3, kind: input, shape index: {}]   ;;  %s14037_s4 = inlined_call_operand.vmem [shape: f32[12,1], index: 4, kind: input, shape index: {}]   ;;  %s14038_s5 = inlined_call_operand.vmem [shape: f32[32,16], index: 5, kind: input, shape index: {}]   ;;  %s14039_s6 = inlined_call_operand.vmem [shape: f32[16,32], index: 6, kind: input, shape index: {}]   ;;  %s14040_s7 = inlined_call_operand.hbm [shape: f32[2,12,32,32], index: 7, kind: output, shape index: {}]  }
   0x1   :  { %14250 = sst [smem:[#allocation190_spill]] %s14033_s0 }
   0x2   :  { %14251 = sst [smem:[#allocation191_spill]] %s14034_s1 }
   0x3   :  { %14252 = sst [smem:[#allocation192_spill]] %s14035_s2 }
   0x4   :  { %14253 = sst [smem:[#allocation193_spill]] %s14040_s7 }
   0x5   :  { %12 = vsyncpa [#allocation5], 0 }
   0x6   :  { %13 = vsyncpa [#allocation7], 0 }
   0x7   :  { %14 = vsyncpa [#allocation4], 0 }
   0x8   :  { %16 = vsyncpa [#allocation4 + $0x1], 0  ;;  %s8455_s24 = smov 0   ;;  %s8457_s25 = smov 0  }
   0x9   :  { %s8459_s26 = smov 0   ;;  %s8461_s27 = smov 0  }
   0xa LB: > { %14254 = sst [smem:[#allocation12_spill]] %s8381_s24  ;;  %s8476_s28 = sadd.s32 4294967295, %s8393_s27   ;;  %s8393_s27 = sphi %s8461_s27, %s15433_s27   ;;  %s8389_s26 = sphi %s8459_s26, %s15435_s26   ;;  %s8385_s25 = sphi %s8457_s25, %s15437_s25   ;;  %s8381_s24 = sphi %s8455_s24, %s15436_s24  }
   0xb   : > { %14255 = sst [smem:[#allocation13_spill]] %s8389_s26  ;;  %s7169_s29 = sadd.s32 4294967294, %s8393_s27  }
   0xc   : > { %14256 = sst [smem:[#allocation14_spill]] %s8393_s27  ;;  %s8480_s30 = sadd.s32 1, %s8393_s27  }
   0xd   : > { %14257 = sst [smem:[#allocation15_spill]] %s8480_s30  ;;  %s181_s8 = sadd.s32 1, %s8389_s26 }
   0xe   : > { %s178_s9 = ssub.s32 %s8393_s27, %s8480_s30  ;;  %p191_p0 = scmp.ne.s32.totalorder %s8389_s26, %s8385_s25 }
   0xf   : > { %p179_p1 = scmp.eq.s32.totalorder %s178_s9, 0  ;;  %p192_p2 = scmp.eq.s32.totalorder %s8476_s28, 1 }
  0x10   : > { %p197_p3 = scmp.ne.s32.totalorder %s8385_s25, %s8381_s24  ;;  %p198_p4 = scmp.eq.s32.totalorder %s7169_s29, 1 }
  0x11   : > { %s8491_s10 = scalar_select %p179_p1, %s8389_s26, %s181_s8  }
  0x12   : > { %p8493_p5 = por %p192_p2, %p191_p0  ;;  %p8497_p6 = por %p198_p4, %p197_p3 }
  0x13   : > { %14258 = sst [smem:[#allocation16_spill]] %s8491_s10  ;;  %p7170_p7 = scmp.ge.s32.totalorder %s8393_s27, 1 }
  0x14   : > { %s14259_s11 = scalar_select %p8493_p5, 1, 0 }
  0x15   : > { %s14260_s12 = scalar_select %p8497_p6, 1, 0 }
  0x16   : > { %p205_p8 = scmp.lt.s32.totalorder %s8393_s27, 3  ;;  %p14041_p9 = scmp.eq.s32.totalorder %s8476_s28, 0 }
  0x17   : > { %14261 = sst [smem:[#allocation17_spill]] %s14260_s12  ;;  %s14264_s2 = sld [smem:[#allocation192_spill]] }
  0x18   : > { %p8504_p10 = pnand %p7170_p7, %p205_p8  ;;  %s14263_s1 = sld [smem:[#allocation191_spill]] }
  0x1a   : > { %s14262_s13 = scalar_select %p8504_p10, 1, 0 }
  0x1b   : > { %p8053_p11 = pneg %p8504_p10 }
  0x1d   : > { %s231_s19 = sshll.u32 %s14264_s2, 4  ;;  %p8518_p12 = pnand %p14041_p9, %p8053_p11  ;;  %s232_s19 = int_to_ptr.vmem [resolvable:$true] %s231_s19 }
  0x1e   : > { %s217_s16 = sshll.u32 %s14263_s1, 4  ;;  %s218_s16 = int_to_ptr.vmem [resolvable:$true] %s217_s16 }
  0x1f   : > { %s8293_s21 = scalar_lea.vmem %s218_s16, 384  ;;  %p8295_p0 = pneg %p8518_p12 }
  0x20   : > { %p8294_p13 = scmp.ne.s32.totalorder %s218_s16, %s8293_s21  ;;  %p8301_p3 = scmp.lt.s32.totalorder %s218_s16, %s218_s16 }
  0x21   : > { %p8302_p4 = scmp.lt.s32.totalorder %s8293_s21, %s8293_s21 }
  0x22   : > { %p8296_p1 = pnand %p8295_p0, %p8294_p13 }
  0x23   : > { %p8303_p7 = por %p8302_p4, %p8301_p3 }
  0x24   : > { %p8297_p2 = pneg %p8296_p1 }
  0x26   : > { %p8304_p8 = pnand %p8303_p7, %p8297_p2 }
  0x28   : > { %8307 = shalt.err (!%p8304_p8)
}
  0x29   : > { %s8395_s22 = smov [#allocation3]   ;;  %s8396_s23 = smov 128  }
  0x2a   : > { %s8397_s29 = smov 8   ;;  %s8308_s8 = scalar_lea.vmem %s232_s19, 16 }
  0x2b   : > { %8056 = dma.vmem_to_smem (!%p8518_p12), %s218_s16, 384, %s8395_s22, [#allocation5], %s8396_s23, %s8396_s23, %s8397_s29  }
  0x2c   : > { %p8309_p11 = scmp.ne.s32.totalorder %s232_s19, %s8308_s8  ;;  %p8316_p13 = scmp.lt.s32.totalorder %s232_s19, %s232_s19 }
  0x2d   : > { %p8317_p1 = scmp.lt.s32.totalorder %s8308_s8, %s8308_s8 }
  0x2e   : > { %p8311_p9 = pnand %p8309_p11, %p8295_p0 }
  0x2f   : > { %p8318_p5 = por %p8317_p1, %p8316_p13 }
  0x30   : > { %p8312_p6 = pneg %p8311_p9 }
  0x32   : > { %p8319_p10 = pnand %p8318_p5, %p8312_p6 }
  0x34   : > { %8322 = shalt.err (!%p8319_p10)
}
  0x35   : > { %s8398_s9 = smov [#allocation6]   ;;  %p14266_p2 = scmp.ne.s32.totalorder %s14262_s13, 0 }
  0x36   : > { %8059 = dma.vmem_to_smem (!%p8518_p12), %s232_s19, 16, %s8398_s9, [#allocation7]  }
  0x37   : > { %264 = sbr.rel (%p14266_p2) target bundleno = 1751 (0x6d7), region = 48 }
  0x3e   : > { %p14267_p3 = scmp.eq.s32.totalorder %s8476_s28, 0 }
  0x40   : > { %8368 = dma.done.wait (%p14267_p3), [#allocation5], 384   ;;  %p14268_p4 = pmov %p14267_p3 }
  0x41   : > { %p14269_p9 = pmov %p14267_p3 }
  0x42   : > { %8370 = vsyncadd (%p14268_p4), [#allocation5], 4294966912 }
  0x43   : > { %8372 = dma.done.wait (%p14269_p9), [#allocation7], 16   ;;  %p14270_p0 = pmov %p14267_p3 }
  0x45   : > { %8374 = vsyncadd (%p14270_p0), [#allocation7], 4294967280 }
  0x46   : > { %274 = sfence }
  0x47   : > { %p301_p5 = scmp.lt.s32.totalorder %s8476_s28, 1  ;;  %s8545_s14 = sld [smem:[#allocation3 + $0x101]]  ;;  %vm351_vm0 = vcmask 1046528   ;;  %vm411_vm1 = vcmask 1045504   ;;  %vm469_vm2 = vcmask 130048   ;;  %vm4160_vm3 = vcmask 261120  }
  0x48   : > { %s8547_s13 = sld [smem:[#allocation3 + $0x1]]  ;;  %s14271_s0 = sld [smem:[#allocation190_spill]]  ;;  %vm4164_vm4 = vcmask 392192   ;;  %vm4168_vm5 = vcmask 523264   ;;  %vm4172_vm6 = vcmask 654336   ;;  %vm4176_vm7 = vcmask 785408  }
  0x49   : > { %s302_s15 = scalar_select %p301_p5, %s8476_s28, 1  ;;  %vm4180_vm8 = vcmask 916480   ;;  %vm4226_vm9 = vcmask 1041408   ;;  %vm4219_vm10 = vcmask 146432  }
  0x4a   : > { %s8550_s16 = sld [smem:[#allocation3 + $0x181]]  ;;  %s14085_s9 = smov 127  }
  0x4b   : > { %s8552_s17 = sld [smem:[#allocation3 + $0x81]]  ;;  %s8041_s18 = smul.u32 432, %s302_s15 }
  0x4c   : > { %s8554_s19 = sld [smem:[#allocation3 + $0x281]]  ;;  %s14405_s2 = smov 126  }
  0x4d   : > { %s8556_s20 = sld [smem:[#allocation3 + $0x201]]  ;;  %v648_v1 = vstv %s8545_s14  ;;  %s8786_s14 = sld [smem:[#allocation3 + $0x182]] }
  0x4e   : > { %s8561_s23 = scalar_lea.vmem %s14271_s0, %s8041_s18  ;;  %s8570_s29 = sld [smem:[#allocation3 + $0x381]]  ;;  %v316_v4 = vstv %s8547_s13 }
  0x4f   : > { %v8564_v0 = vld [vmem:[%s8561_s23 + $0x38] sm:$0xff]  ;;  %v8568_v2 = vld [vmem:[%s8561_s23 + $0x8] sm:$0xff]  ;;  %v8577_v5 = vld [vmem:[%s8561_s23 + $0x50] sm:$0xff]  ;;  %s8582_s8 = sld [smem:[#allocation3 + $0x301]]  ;;  %s8791_s13 = sld [smem:[#allocation3 + $0x102]] }
  0x50   : > { %14272 = vst [vmem:[#allocation18_spill] sm:$0xff] %v8564_v0  ;;  %14273 = vst [vmem:[#allocation19_spill] sm:$0xff] %v8568_v2  ;;  %v650_v3 = vmul.f32 %v8564_v0, %v648_v1  ;;  %v8580_v6 = vld [vmem:[%s8561_s23 + $0x20] sm:$0xff]  ;;  %v318_v7 = vmul.f32 %v316_v4, %v8568_v2  ;;  %v813_v8 = vstv %s8550_s16  ;;  %s8601_s15 = sld [smem:[#allocation3 + $0x481]]  ;;  %v8604_v14 = vld [vmem:[%s8561_s23 + $0x68] sm:$0xff]  ;;  %s8798_s16 = sld [smem:[#allocation3 + $0x282]] }
  0x51   : > { %14274 = vst [vmem:[#allocation20_spill] sm:$0xff] %v8577_v5  ;;  %14275 = vst [vmem:[#allocation21_spill] sm:$0xff] %v8580_v6  ;;  %v483_v9 = vstv %s8552_s17  ;;  %v815_v10 = vmul.f32 %v8577_v5, %v813_v8  ;;  %v8598_v12 = vld [vmem:[%s8561_s23 + $0x80] sm:$0xff]  ;;  %s8607_s18 = sld [smem:[#allocation3 + $0x401]]  ;;  %v8618_v18 = vld [vmem:[%s8561_s23 + $0xb0] sm:$0xff]  ;;  %s8801_s17 = sld [smem:[#allocation3 + $0x202]] }
  0x52   : > { %655 = vrot.lane.b32.xlu1 %v650_v3, %s14085_s9  ;;  %323 = vrot.lane.b32.xlu0 %v318_v7, %s14085_s9  ;;  %v485_v11 = vmul.f32 %v8580_v6, %v483_v9  ;;  %14276 = vst [vmem:[#allocation22_spill] sm:$0xff] %v8598_v12  ;;  %v1143_v13 = vstv %s8554_s19  ;;  %14277 = vst [vmem:[#allocation23_spill] sm:$0xff] %v8604_v14  ;;  %s8621_s21 = sld [smem:[#allocation3 + $0x581]]  ;;  %v8624_v20 = vld [vmem:[%s8561_s23 + $0x98] sm:$0xff]  ;;  %s8808_s19 = sld [smem:[#allocation3 + $0x382]] }
  0x53   : > { %v978_v15 = vstv %s8556_s20  ;;  %v1145_v16 = vmul.f32 %v8598_v12, %v1143_v13  ;;  %14278 = vst [vmem:[#allocation24_spill] sm:$0xff] %v8618_v18  ;;  %14279 = vst [vmem:[#allocation25_spill] sm:$0xff] %v8624_v20  ;;  %s8627_s22 = sld [smem:[#allocation3 + $0x501]]  ;;  %v8638_v24 = vld [vmem:[%s8561_s23 + $0xe0] sm:$0xff]  ;;  %v8644_v26 = vld [vmem:[%s8561_s23 + $0xc8] sm:$0xff]  ;;  %s8811_s20 = sld [smem:[#allocation3 + $0x302]] }
  0x54   : > { %v980_v17 = vmul.f32 %v8604_v14, %v978_v15  ;;  %v1473_v19 = vstv %s8570_s29  ;;  %14280 = vst [vmem:[#allocation26_spill] sm:$0xff] %v8638_v24  ;;  %s8641_s0 = sld [smem:[#allocation3 + $0x681]]  ;;  %14281 = vst [vmem:[#allocation27_spill] sm:$0xff] %v8644_v26  ;;  %v8654_v30 = vld [vmem:[%s8561_s23 + $0x110] sm:$0xff]  ;;  %v8660_v32 = vld [vmem:[%s8561_s23 + $0xf8] sm:$0xff]  ;;  %s14087_s29 = smov 126  }
  0x55   : > { %v1308_v21 = vstv %s8582_s8  ;;  %v1475_v22 = vmul.f32 %v8618_v18, %v1473_v19  ;;  %s8647_s1 = sld [smem:[#allocation3 + $0x601]]  ;;  %14282 = vst [vmem:[#allocation28_spill] sm:$0xff] %v8654_v30  ;;  %14283 = vst [vmem:[#allocation29_spill] sm:$0xff] %v8660_v32  ;;  %v8670_v36 = vld [vmem:[%s8561_s23 + $0x140] sm:$0xff]  ;;  %v8674_v38 = vld [vmem:[%s8561_s23 + $0x128] sm:$0xff]  ;;  %s8818_s8 = sld [smem:[#allocation3 + $0x482]] }
  0x56   : > { %820 = vrot.lane.b32.xlu1 %v815_v10, %s14085_s9  ;;  %490 = vrot.lane.b32.xlu0 %v485_v11, %s14085_s9  ;;  %v1310_v23 = vmul.f32 %v8624_v20, %v1308_v21  ;;  %v1803_v25 = vstv %s8601_s15  ;;  %s8657_s15 = sld [smem:[#allocation3 + $0x781]]  ;;  %v8682_v42 = vld [vmem:[%s8561_s23 + $0x170] sm:$0xff]  ;;  %s9647_s10 = sld [smem:[#allocation3 + $0x780]] }
  0x57   : > { %v1638_v27 = vstv %s8607_s18  ;;  %v1805_v28 = vmul.f32 %v8638_v24, %v1803_v25  ;;  %s8663_s18 = sld [smem:[#allocation3 + $0x701]]  ;;  %v8686_v44 = vld [vmem:[%s8561_s23 + $0x158] sm:$0xff]  ;;  %v8697_v49 = vld [vmem:[%s8561_s23] sm:$0xff]  ;;  %v8708_v52 = vld [vmem:[%s8561_s23 + $0x48] sm:$0xff]  ;;  %s9680_s30 = sld [smem:[#allocation3 + $0x700]] }
  0x58   : > { %v1640_v29 = vmul.f32 %v8644_v26, %v1638_v27  ;;  %v2133_v31 = vstv %s8621_s21  ;;  %v8694_v48 = vld [vmem:[%s8561_s23 + $0x18] sm:$0xff]  ;;  %v317_v51 = vmul.f32 %v316_v4, %v8697_v49  ;;  %v8711_v53 = vld [vmem:[%s8561_s23 + $0x30] sm:$0xff]  ;;  %v814_v54 = vmul.f32 %v8708_v52, %v813_v8  ;;  %v8725_v57 = vld [vmem:[%s8561_s23 + $0x60] sm:$0xff]  ;;  %s8821_s21 = sld [smem:[#allocation3 + $0x402]]  ;;  %s9661_s26 = sld [smem:[#allocation3 + $0x801]] }
  0x59   : > { %v1968_v33 = vstv %s8627_s22  ;;  %v2135_v34 = vmul.f32 %v8654_v30, %v2133_v31  ;;  %v484_v50 = vmul.f32 %v8694_v48, %v483_v9  ;;  %v649_v55 = vmul.f32 %v8711_v53, %v648_v1  ;;  %v8722_v56 = vld [vmem:[%s8561_s23 + $0x78] sm:$0xff]  ;;  %v8736_v60 = vld [vmem:[%s8561_s23 + $0xa8] sm:$0xff]  ;;  %v8739_v61 = vld [vmem:[%s8561_s23 + $0x90] sm:$0xff]  ;;  %s8828_s22 = sld [smem:[#allocation3 + $0x582]]  ;;  %s9755_s12 = sld [smem:[#allocation3 + $0x83]] }
  0x5a   : > { %1150 = vrot.lane.b32.xlu1 %v1145_v16, %s14085_s9  ;;  %985 = vrot.lane.b32.xlu0 %v980_v17, %s14085_s9  ;;  %v1970_v35 = vmul.f32 %v8660_v32, %v1968_v33  ;;  %v2463_v37 = vstv %s8641_s0  ;;  %v1144_v58 = vmul.f32 %v8722_v56, %v1143_v13  ;;  %v979_v59 = vmul.f32 %v8725_v57, %v978_v15  ;;  %v8750_v1 = vld [vmem:[%s8561_s23 + $0xd8] sm:$0xff]  ;;  %s8772_s0 = sld [smem:[#allocation3 + $0x82]]  ;;  %s9835_s24 = sld [smem:[#allocation3 + $0x3]] }
  0x5b   : > { %v2298_v39 = vstv %s8647_s1  ;;  %v2465_v40 = vmul.f32 %v8670_v36, %v2463_v37  ;;  %v1474_v62 = vmul.f32 %v8736_v60, %v1473_v19  ;;  %v1309_v63 = vmul.f32 %v8739_v61, %v1308_v21  ;;  %v8753_v3 = vld [vmem:[%s8561_s23 + $0xc0] sm:$0xff]  ;;  %v8760_v8 = vld [vmem:[%s8561_s23 + $0x108] sm:$0xff]  ;;  %v8763_v9 = vld [vmem:[%s8561_s23 + $0xf0] sm:$0xff]  ;;  %s8777_s1 = sld [smem:[#allocation3 + $0x2]]  ;;  %s9837_s27 = sld [smem:[#allocation3 + $0x183]] }
  0x5c   : > { %v2300_v41 = vmul.f32 %v8674_v38, %v2298_v39  ;;  %v2793_v43 = vstv %s8657_s15  ;;  %v1804_v4 = vmul.f32 %v8750_v1, %v1803_v25  ;;  %v1639_v7 = vmul.f32 %v8753_v3, %v1638_v27  ;;  %v8770_v13 = vld [vmem:[%s8561_s23 + $0x138] sm:$0xff]  ;;  %v8775_v15 = vld [vmem:[%s8561_s23 + $0x120] sm:$0xff]  ;;  %v8784_v19 = vld [vmem:[%s8561_s23 + $0x168] sm:$0xff]  ;;  %s8831_s15 = sld [smem:[#allocation3 + $0x502]]  ;;  %s9853_s7 = sld [smem:[#allocation3 + $0x103]] }
  0x5d   : > { %v2628_v45 = vstv %s8663_s18  ;;  %v2795_v46 = vmul.f32 %v8682_v42, %v2793_v43  ;;  %v2134_v10 = vmul.f32 %v8760_v8, %v2133_v31  ;;  %v1969_v11 = vmul.f32 %v8763_v9, %v1968_v33  ;;  %v8789_v21 = vld [vmem:[%s8561_s23 + $0x150] sm:$0xff]  ;;  %s8838_s18 = sld [smem:[#allocation3 + $0x682]]  ;;  %p15428_p10 = scmp.ne.s32.totalorder %s14259_s11, 0 }
  0x5e   : > { %1480 = vrot.lane.b32.xlu1 %v1475_v22, %s14085_s9  ;;  %1315 = vrot.lane.b32.xlu0 %v1310_v23, %s14085_s9  ;;  %v2630_v47 = vmul.f32 %v8686_v44, %v2628_v45  ;;  %v2464_v16 = vmul.f32 %v8770_v13, %v2463_v37  ;;  %v2299_v17 = vmul.f32 %v8775_v15, %v2298_v39  ;;  %v827_v31 = vstv %s8786_s14  ;;  %s8851_s14 = sld [smem:[#allocation3 + $0x702]] }
  0x5f   : > { %v2794_v22 = vmul.f32 %v8784_v19, %v2793_v43  ;;  %v2629_v23 = vmul.f32 %v8789_v21, %v2628_v45  ;;  %v662_v33 = vstv %s8791_s13  ;;  %v1157_v37 = vstv %s8798_s16  ;;  %s7193_s13 = sld [smem:[#allocation3 + $0x84]] }
  0x60   : > { %v497_v25 = vstv %s8772_s0  ;;  %v992_v39 = vstv %s8801_s17  ;;  %v1487_v43 = vstv %s8808_s19  ;;  %v1322_v45 = vstv %s8811_s20  ;;  %s8841_s0 = sld [smem:[#allocation3 + $0x602]]  ;;  %s7181_s16 = sld [smem:[#allocation3 + $0x4]] }
  0x61   : > { %v330_v27 = vstv %s8777_s1  ;;  %s8848_s1 = sld [smem:[#allocation3 + $0x782]]  ;;  %s7219_s17 = sld [smem:[#allocation3 + $0x184]] }
  0x62   : > { %1810 = vrot.lane.b32.xlu1 %v1805_v28, %s14085_s9  ;;  %1645 = vrot.lane.b32.xlu0 %v1640_v29, %s14085_s9  ;;  %v499_v28 = vmul.f32 %v8580_v6, %v497_v25  ;;  %v332_v29 = vmul.f32 %v330_v27, %v8568_v2  ;;  %s7206_s19 = sld [smem:[#allocation3 + $0x104]] }
  0x63   : > { %s8891_s20 = sld [smem:[#allocation3 + $0x284]] }
  0x66   : > { %2140 = vrot.lane.b32.xlu1 %v2135_v34, %s14085_s9  ;;  %1975 = vrot.lane.b32.xlu0 %v1970_v35, %s14085_s9  ;;  %v829_v34 = vmul.f32 %v8577_v5, %v827_v31  ;;  %v664_v35 = vmul.f32 %v8564_v0, %v662_v33 }
  0x6a   : > { %2470 = vrot.lane.b32.xlu1 %v2465_v40, %s14085_s9  ;;  %2305 = vrot.lane.b32.xlu0 %v2300_v41, %s14085_s9  ;;  %v1159_v40 = vmul.f32 %v8598_v12, %v1157_v37  ;;  %v994_v41 = vmul.f32 %v8604_v14, %v992_v39 }
  0x6e   : > { %2800 = vrot.lane.b32.xlu1 %v2795_v46, %s14085_s9  ;;  %2635 = vrot.lane.b32.xlu0 %v2630_v47, %s14085_s9  ;;  %v1489_v46 = vmul.f32 %v8618_v18, %v1487_v43  ;;  %v1324_v47 = vmul.f32 %v8624_v20, %v1322_v45 }
  0x72   : > { %488 = vrot.lane.b32.xlu1 %v484_v50, %s14085_s9  ;;  %321 = vrot.lane.b32.xlu0 %v317_v51, %s14085_s9  ;;  %v1817_v50 = vstv %s8818_s8  ;;  %v1652_v51 = vstv %s8821_s21  ;;  %s8897_s8 = sld [smem:[#allocation3 + $0x204]] }
  0x73   : > { %s8921_s21 = sld [smem:[#allocation3 + $0x384]] }
  0x76   : > { %818 = vrot.lane.b32.xlu1 %v814_v54, %s14085_s9  ;;  %653 = vrot.lane.b32.xlu0 %v649_v55, %s14085_s9  ;;  %v1819_v54 = vmul.f32 %v8638_v24, %v1817_v50  ;;  %v1654_v55 = vmul.f32 %v8644_v26, %v1652_v51 }
  0x7a   : > { %1148 = vrot.lane.b32.xlu1 %v1144_v58, %s14085_s9  ;;  %983 = vrot.lane.b32.xlu0 %v979_v59, %s14085_s9  ;;  %v2147_v58 = vstv %s8828_s22  ;;  %v1982_v59 = vstv %s8831_s15  ;;  %s8943_s22 = sld [smem:[#allocation3 + $0x304]] }
  0x7b   : > { %s8977_s15 = sld [smem:[#allocation3 + $0x484]] }
  0x7e   : > { %1478 = vrot.lane.b32.xlu1 %v1474_v62, %s14085_s9  ;;  %1313 = vrot.lane.b32.xlu0 %v1309_v63, %s14085_s9  ;;  %v2149_v62 = vmul.f32 %v8654_v30, %v2147_v58  ;;  %v1984_v63 = vmul.f32 %v8660_v32, %v1982_v59 }
  0x82   : > { %1808 = vrot.lane.b32.xlu1 %v1804_v4, %s14085_s9  ;;  %1643 = vrot.lane.b32.xlu0 %v1639_v7, %s14085_s9  ;;  %v2477_v4 = vstv %s8838_s18  ;;  %v2312_v7 = vstv %s8841_s0  ;;  %s8987_s18 = sld [smem:[#allocation3 + $0x404]] }
  0x83   : > { %s9007_s0 = sld [smem:[#allocation3 + $0x584]] }
  0x86   : > { %2138 = vrot.lane.b32.xlu1 %v2134_v10, %s14085_s9  ;;  %1973 = vrot.lane.b32.xlu0 %v1969_v11, %s14085_s9  ;;  %v2479_v10 = vmul.f32 %v8670_v36, %v2477_v4  ;;  %v2314_v11 = vmul.f32 %v8674_v38, %v2312_v7 }
  0x8a   : > { %2468 = vrot.lane.b32.xlu1 %v2464_v16, %s14085_s9  ;;  %2303 = vrot.lane.b32.xlu0 %v2299_v17, %s14085_s9  ;;  %v2807_v16 = vstv %s8848_s1  ;;  %v2642_v17 = vstv %s8851_s14  ;;  %s9009_s1 = sld [smem:[#allocation3 + $0x504]] }
  0x8b   : > { %s9055_s14 = sld [smem:[#allocation3 + $0x684]] }
  0x8e   : > { %2798 = vrot.lane.b32.xlu1 %v2794_v22, %s14085_s9  ;;  %2633 = vrot.lane.b32.xlu0 %v2629_v23, %s14085_s9  ;;  %v2809_v22 = vmul.f32 %v8682_v42, %v2807_v16  ;;  %v2644_v23 = vmul.f32 %v8686_v44, %v2642_v17 }
  0x92   : > { %504 = vrot.lane.b32.xlu1 %v499_v28, %s14087_s29  ;;  %337 = vrot.lane.b32.xlu0 %v332_v29, %s14087_s29  ;;  %v498_v28 = vmul.f32 %v8694_v48, %v497_v25  ;;  %v331_v29 = vmul.f32 %v330_v27, %v8697_v49  ;;  %v993_v25 = vmul.f32 %v8725_v57, %v992_v39 }
  0x93   : > { %v1488_v27 = vmul.f32 %v8736_v60, %v1487_v43  ;;  %v2148_v39 = vmul.f32 %v8760_v8, %v2147_v58  ;;  %v8895_v43 = vstv %s7193_s13  ;;  %v2313_v58 = vmul.f32 %v8775_v15, %v2312_v7  ;;  %s9065_s13 = sld [smem:[#allocation3 + $0x604]] }
  0x96   : > { %834 = vrot.lane.b32.xlu1 %v829_v34, %s14087_s29  ;;  %669 = vrot.lane.b32.xlu0 %v664_v35, %s14087_s29  ;;  %v828_v34 = vmul.f32 %v8708_v52, %v827_v31  ;;  %v663_v35 = vmul.f32 %v8711_v53, %v662_v33  ;;  %v1323_v31 = vmul.f32 %v8739_v61, %v1322_v45 }
  0x97   : > { %v1818_v33 = vmul.f32 %v8750_v1, %v1817_v50  ;;  %v8907_v50 = vld [vmem:[%s8561_s23 + $0x10] sm:$0x3] }
  0x98   : > { %14287 = vst [vmem:[#allocation33_spill] sm:$0xff] %v8907_v50 }
  0x9a   : > { %1164 = vrot.lane.b32.xlu1 %v1159_v40, %s14087_s29  ;;  %999 = vrot.lane.b32.xlu0 %v994_v41, %s14087_s29  ;;  %v1158_v40 = vmul.f32 %v8722_v56, %v1157_v37  ;;  %v1653_v37 = vmul.f32 %v8753_v3, %v1652_v51  ;;  %v1983_v41 = vmul.f32 %v8763_v9, %v1982_v59  ;;  %v8909_v51 = vstv %s7181_s16  ;;  %s9103_s16 = sld [smem:[#allocation3 + $0x784]] }
  0x9e   : > { %1494 = vrot.lane.b32.xlu1 %v1489_v46, %s14087_s29  ;;  %1329 = vrot.lane.b32.xlu0 %v1324_v47, %s14087_s29  ;;  %v8902_v46 = vld [vmem:[%s8561_s23 + $0x28] sm:$0x3] }
  0x9f   : > { %14285 = vst [vmem:[#allocation31_spill] sm:$0xff] %v8902_v46  ;;  %v531_v59 = vmul.f32 %v8902_v46, %v8895_v43 }
  0xa2   : > { %1824 = vrot.lane.b32.xlu1 %v1819_v54, %s14087_s29  ;;  %1659 = vrot.lane.b32.xlu0 %v1654_v55, %s14087_s29  ;;  %v2478_v54 = vmul.f32 %v8770_v13, %v2477_v4  ;;  %v8915_v55 = vmul.f32 %v8580_v6, %v8895_v43  ;;  %v365_v4 = vmul.f32 %v8909_v51, %v8907_v50 }
  0xa6   : > { %2154 = vrot.lane.b32.xlu1 %v2149_v62, %s14087_s29  ;;  %1989 = vrot.lane.b32.xlu0 %v1984_v63, %s14087_s29  ;;  %v8927_v63 = vmul.f32 %v8909_v51, %v8568_v2  ;;  %v9134_v2 = vld [vmem:[%s8561_s23 + $0x148] sm:$0x3] }
  0xa7   : > { %14317 = vst [vmem:[#allocation55_spill] sm:$0xff] %v9134_v2 }
  0xaa   : > { %2484 = vrot.lane.b32.xlu1 %v2479_v10, %s14087_s29  ;;  %2319 = vrot.lane.b32.xlu0 %v2314_v11, %s14087_s29  ;;  %v8932_v10 = vld [vmem:[%s8561_s23 + $0x58] sm:$0x3]  ;;  %v8934_v11 = vstv %s7219_s17  ;;  %s9107_s17 = sld [smem:[#allocation3 + $0x704]] }
  0xab   : > { %14289 = vst [vmem:[#allocation35_spill] sm:$0xff] %v8932_v10 }
  0xae   : > { %2814 = vrot.lane.b32.xlu1 %v2809_v22, %s14087_s29  ;;  %2649 = vrot.lane.b32.xlu0 %v2644_v23, %s14087_s29  ;;  %v8939_v22 = vld [vmem:[%s8561_s23 + $0x40] sm:$0x3]  ;;  %v8941_v23 = vstv %s7206_s19  ;;  %s7194_s19 = sld [smem:[#allocation3 + $0x85]] }
  0xaf   : > { %14291 = vst [vmem:[#allocation37_spill] sm:$0xff] %v8939_v22 }
  0xb2   : > { %502 = vrot.lane.b32.xlu1 %v498_v28, %s14087_s29  ;;  %335 = vrot.lane.b32.xlu0 %v331_v29, %s14087_s29  ;;  %v2808_v28 = vmul.f32 %v8784_v19, %v2807_v16  ;;  %v2643_v29 = vmul.f32 %v8789_v21, %v2642_v17  ;;  %v8963_v16 = vld [vmem:[%s8561_s23 + $0x70] sm:$0x3]  ;;  %v8966_v17 = vstv %s8897_s8  ;;  %s7220_s8 = sld [smem:[#allocation3 + $0x185]] }
  0xb3   : > { %14293 = vst [vmem:[#allocation39_spill] sm:$0xff] %v8963_v16 }
  0xb6   : > { %832 = vrot.lane.b32.xlu1 %v828_v34, %s14087_s29  ;;  %667 = vrot.lane.b32.xlu0 %v663_v35, %s14087_s29  ;;  %v8950_v35 = vld [vmem:[%s8561_s23 + $0x88] sm:$0x3]  ;;  %v1026_v34 = vmul.f32 %v8963_v16, %v8966_v17  ;;  %v14299_v16 = vrot.slane %v8927_v63, 1 }
  0xb7   : > { %14292 = vst [vmem:[#allocation38_spill] sm:$0xff] %v8950_v35 }
  0xba   : > { %1162 = vrot.lane.b32.xlu1 %v1158_v40, %s14087_s29  ;;  %997 = vrot.lane.b32.xlu0 %v993_v25, %s14087_s29  ;;  %v8953_v40 = vstv %s8891_s20  ;;  %v538_v25 = vrot.slane %v531_v59, 1  ;;  %s7182_s20 = sld [smem:[#allocation3 + $0x5]] }
  0xbb   : > { %v8983_v59 = vmul.f32 %v8598_v12, %v8953_v40 }
  0xbe   : > { %1492 = vrot.lane.b32.xlu1 %v1488_v27, %s14087_s29  ;;  %1327 = vrot.lane.b32.xlu0 %v1323_v31, %s14087_s29  ;;  %v8958_v27 = vmul.f32 %v8577_v5, %v8934_v11  ;;  %v861_v31 = vmul.f32 %v8932_v10, %v8934_v11  ;;  %v9086_v10 = vstv %s9007_s0  ;;  %s9379_s0 = sld [smem:[#allocation3 + $0x305]] }
  0xc2   : > { %1822 = vrot.lane.b32.xlu1 %v1818_v33, %s14087_s29  ;;  %1657 = vrot.lane.b32.xlu0 %v1653_v37, %s14087_s29  ;;  %v1191_v37 = vmul.f32 %v8950_v35, %v8953_v40 }
  0xc4   : > { %v8899_v45 = vpop.permute.xlu1 %655  ;;  %v8904_v47 = vpop.permute.xlu0 %323 }
  0xc5   : > { %14284 = vst [vmem:[#allocation30_spill] sm:$0xff] %v8899_v45  ;;  %14286 = vst [vmem:[#allocation32_spill] sm:$0xff] %v8904_v47  ;;  %v9005_v47 = vstv %s8921_s21  ;;  %s7207_s21 = sld [smem:[#allocation3 + $0x105]] }
  0xc6   : > { %2152 = vrot.lane.b32.xlu1 %v2148_v39, %s14087_s29  ;;  %1987 = vrot.lane.b32.xlu0 %v1983_v41, %s14087_s29  ;;  %v372_v39 = vrot.slane %v365_v4, 1  ;;  %v8973_v41 = vmul.f32 %v8564_v0, %v8941_v23  ;;  %v8992_v4 = vmul.f32 %v8604_v14, %v8966_v17 }
  0xc8   : > { %v8923_v62 = vpop.permute.xlu1 %820  ;;  %v8936_v7 = vpop.permute.xlu0 %490  ;;  %v373_v14 = vsel %vm351_vm0, %v14299_v16, %v372_v39  ;;  %v1033_v39 = vrot.slane %v1026_v34, 1 }
  0xc9   : > { %14288 = vst [vmem:[#allocation34_spill] sm:$0xff] %v8923_v62  ;;  %14290 = vst [vmem:[#allocation36_spill] sm:$0xff] %v8936_v7  ;;  %v9024_v62 = vstv %s8943_s22  ;;  %s9330_s22 = sld [smem:[#allocation3 + $0x285]] }
  0xca   : > { %2482 = vrot.lane.b32.xlu1 %v2478_v54, %s14087_s29  ;;  %2317 = vrot.lane.b32.xlu0 %v2313_v58, %s14087_s29  ;;  %v696_v54 = vmul.f32 %v8939_v22, %v8941_v23  ;;  %v9045_v16 = vmul.f32 %v8624_v20, %v9024_v62 }
  0xcc   : > { %v8968_v33 = vpop.permute.xlu1 %1150  ;;  %v8979_v58 = vpop.permute.xlu0 %985  ;;  %v703_v35 = vrot.slane %v696_v54, 1  ;;  %v9030_v54 = vmul.f32 %v8618_v18, %v9005_v47 }
  0xcd   : > { %14294 = vst [vmem:[#allocation40_spill] sm:$0xff] %v8968_v33  ;;  %14295 = vst [vmem:[#allocation41_spill] sm:$0xff] %v8979_v58  ;;  %v8997_v58 = vld [vmem:[%s8561_s23 + $0xb8] sm:$0x3]  ;;  %v14297_v33 = vrot.slane %v8915_v55, 1 }
  0xce   : > { %2812 = vrot.lane.b32.xlu1 %v2808_v28, %s14087_s29  ;;  %14296 = vst [vmem:[#allocation42_spill] sm:$0xff] %v8997_v58  ;;  %2647 = vrot.lane.b32.xlu0 %v2643_v29, %s14087_s29  ;;  %v868_v28 = vrot.slane %v861_v31, 1  ;;  %v1198_v31 = vrot.slane %v1191_v37, 1  ;;  %v14302_v37 = vrot.slane %v8958_v27, 1 }
  0xcf   : > { %v539_v7 = vsel %vm351_vm0, %v14297_v33, %v538_v25  ;;  %v9021_v33 = vld [vmem:[%s8561_s23 + $0xa0] sm:$0x3]  ;;  %v1521_v25 = vmul.f32 %v8997_v58, %v9005_v47  ;;  %v9050_v58 = vld [vmem:[%s8561_s23 + $0xe8] sm:$0x3] }
  0xd0   : > { %v9011_v45 = vpop.permute.xlu1 %1480  ;;  %v9017_v12 = vpop.permute.xlu0 %1315  ;;  %14301 = vst [vmem:[#allocation45_spill] sm:$0xff] %v9021_v33  ;;  %v869_v29 = vsel %vm351_vm0, %v14302_v37, %v868_v28  ;;  %14305 = vst [vmem:[#allocation47_spill] sm:$0xff] %v9050_v58  ;;  %v9060_v37 = vld [vmem:[%s8561_s23 + $0xd0] sm:$0x3] }
  0xd1   : > { %14298 = vst [vmem:[#allocation43_spill] sm:$0xff] %v9011_v45  ;;  %14300 = vst [vmem:[#allocation44_spill] sm:$0xff] %v9017_v12  ;;  %v1356_v45 = vmul.f32 %v9021_v33, %v9024_v62  ;;  %v14309_v33 = vrot.slane %v8992_v4, 1  ;;  %v1528_v22 = vrot.slane %v1521_v25, 1 }
  0xd2   : > { %542 = vrot.lane.b32.xlu1 %v539_v7, %s14085_s9  ;;  %376 = vrot.lane.b32.xlu0 %v373_v14, %s14085_s9  ;;  %v14304_v7 = vrot.slane %v8973_v41, 1  ;;  %v9053_v14 = vstv %s8977_s15  ;;  %14307 = vst [vmem:[#allocation49_spill] sm:$0xff] %v9060_v37  ;;  %s9338_s15 = sld [smem:[#allocation3 + $0x205]] }
  0xd3   : > { %v1034_v20 = vsel %vm351_vm0, %v14309_v33, %v1033_v39  ;;  %v9081_v0 = vmul.f32 %v8638_v24, %v9053_v14  ;;  %v1363_v39 = vrot.slane %v1356_v45, 1  ;;  %v9112_v45 = vmul.f32 %v8654_v30, %v9086_v10 }
  0xd4   : > { %v9038_v12 = vpop.permute.xlu1 %1810  ;;  %v704_v34 = vsel %vm351_vm0, %v14304_v7, %v703_v35  ;;  %v9057_v28 = vpop.permute.xlu0 %1645  ;;  %v9063_v35 = vstv %s8987_s18  ;;  %v14308_v7 = vrot.slane %v8983_v59, 1  ;;  %s9360_s18 = sld [smem:[#allocation3 + $0x385]] }
  0xd5   : > { %14303 = vst [vmem:[#allocation46_spill] sm:$0xff] %v9038_v12  ;;  %14306 = vst [vmem:[#allocation48_spill] sm:$0xff] %v9057_v28  ;;  %v9076_v28 = vld [vmem:[%s8561_s23 + $0x118] sm:$0x3]  ;;  %v1686_v18 = vmul.f32 %v9060_v37, %v9063_v35  ;;  %v14070_v30 = vrot.slane %v9081_v0, 1 }
  0xd6   : > { %872 = vrot.lane.b32.xlu1 %v869_v29, %s14085_s9  ;;  %v1199_v12 = vsel %vm351_vm0, %v14308_v7, %v1198_v31  ;;  %14310 = vst [vmem:[#allocation50_spill] sm:$0xff] %v9076_v28  ;;  %707 = vrot.lane.b32.xlu0 %v704_v34, %s14085_s9  ;;  %v1851_v29 = vmul.f32 %v9050_v58, %v9053_v14  ;;  %v9089_v31 = vld [vmem:[%s8561_s23 + $0x100] sm:$0x3]  ;;  %v9092_v7 = vstv %s9009_s1  ;;  %s9411_s1 = sld [smem:[#allocation3 + $0x485]] }
  0xd7   : > { %14311 = vst [vmem:[#allocation51_spill] sm:$0xff] %v9089_v31  ;;  %v9099_v34 = vmul.f32 %v8644_v26, %v9063_v35  ;;  %v2181_v25 = vmul.f32 %v9076_v28, %v9086_v10  ;;  %v14316_v28 = vrot.slane %v9045_v16, 1  ;;  %v1693_v50 = vrot.slane %v1686_v18, 1 }
  0xd8   : > { %v9094_v33 = vpop.permute.xlu1 %2140  ;;  %v9105_v58 = vpop.permute.xlu0 %1975  ;;  %v1858_v26 = vrot.slane %v1851_v29, 1  ;;  %v9145_v29 = vstv %s9065_s13  ;;  %s9438_s13 = sld [smem:[#allocation3 + $0x585]] }
  0xd9   : > { %14312 = vst [vmem:[#allocation52_spill] sm:$0xff] %v9094_v33  ;;  %14313 = vst [vmem:[#allocation53_spill] sm:$0xff] %v9105_v58  ;;  %v9118_v33 = vmul.f32 %v8660_v32, %v9092_v7  ;;  %v2016_v58 = vmul.f32 %v9089_v31, %v9092_v7  ;;  %v1364_v5 = vsel %vm351_vm0, %v14316_v28, %v1363_v39  ;;  %v9137_v31 = vstv %s9055_s14  ;;  %v9180_v28 = vld [vmem:[%s8561_s23 + $0x160] sm:$0x3]  ;;  %s9421_s14 = sld [smem:[#allocation3 + $0x405]] }
  0xda   : > { %1202 = vrot.lane.b32.xlu1 %v1199_v12, %s14085_s9  ;;  %1037 = vrot.lane.b32.xlu0 %v1034_v20, %s14085_s9  ;;  %v14314_v12 = vrot.slane %v9030_v54, 1  ;;  %v2188_v39 = vrot.slane %v2181_v25, 1  ;;  %v1859_v32 = vsel %vm351_vm0, %v14070_v30, %v1858_v26  ;;  %v14321_v25 = vrot.slane %v9099_v34, 1  ;;  %14324 = vst [vmem:[#allocation61_spill] sm:$0xff] %v9180_v28 }
  0xdc   : > { %v1529_v37 = vsel %vm351_vm0, %v14314_v12, %v1528_v22  ;;  %v9127_v24 = vpop.permute.xlu1 %2470  ;;  %v9139_v20 = vpop.permute.xlu0 %2305  ;;  %v9142_v22 = vld [vmem:[%s8561_s23 + $0x130] sm:$0x3]  ;;  %v2023_v12 = vrot.slane %v2016_v58, 1  ;;  %v1694_v18 = vsel %vm351_vm0, %v14321_v25, %v1693_v50  ;;  %v9172_v58 = vld [vmem:[%s8561_s23 + $0x178] sm:$0x3]  ;;  %v14325_v50 = vrot.slane %v9112_v45, 1 }
  0xdd   : > { %14315 = vst [vmem:[#allocation54_spill] sm:$0xff] %v9127_v24  ;;  %14318 = vst [vmem:[#allocation56_spill] sm:$0xff] %v9139_v20  ;;  %v9156_v20 = vmul.f32 %v8670_v36, %v9137_v31  ;;  %v2346_v26 = vmul.f32 %v9142_v22, %v9145_v29  ;;  %v9175_v36 = vstv %s9103_s16  ;;  %v14326_v25 = vrot.slane %v9118_v33, 1  ;;  %s9440_s16 = sld [smem:[#allocation3 + $0x505]] }
  0xde   : > { %14319 = vst [vmem:[#allocation57_spill] sm:$0xff] %v9142_v22  ;;  %1532 = vrot.lane.b32.xlu1 %v1529_v37, %s14085_s9  ;;  %1367 = vrot.lane.b32.xlu0 %v1364_v5, %s14085_s9  ;;  %v2511_v37 = vmul.f32 %v9134_v2, %v9137_v31  ;;  %v9167_v5 = vmul.f32 %v8674_v38, %v9145_v29  ;;  %14322 = vst [vmem:[#allocation59_spill] sm:$0xff] %v9172_v58 }
  0xdf   : > { %v2189_v38 = vsel %vm351_vm0, %v14325_v50, %v2188_v39  ;;  %v2024_v22 = vsel %vm351_vm0, %v14326_v25, %v2023_v12  ;;  %v2516_v2 = vrot.slane %v9156_v20, 1  ;;  %v2353_v50 = vrot.slane %v2346_v26, 1  ;;  %v14363_v20 = vld [vmem:[#allocation33_spill] sm:$0xff] }
  0xe0   : > { %v9160_v24 = vpop.permute.xlu1 %2800  ;;  %v9177_v30 = vpop.permute.xlu0 %2635  ;;  %v2518_v46 = vrot.slane %v2511_v37, 1 }
  0xe1   : > { %14320 = vst [vmem:[#allocation58_spill] sm:$0xff] %v9160_v24  ;;  %14323 = vst [vmem:[#allocation60_spill] sm:$0xff] %v9177_v30  ;;  %v9183_v24 = vstv %s9107_s17  ;;  %v9196_v30 = vmul.f32 %v8682_v42, %v9175_v36  ;;  %s9480_s17 = sld [smem:[#allocation3 + $0x685]] }
  0xe2   : > { %1862 = vrot.lane.b32.xlu1 %v1859_v32, %s14085_s9  ;;  %1697 = vrot.lane.b32.xlu0 %v1694_v18, %s14085_s9  ;;  %v2841_v32 = vmul.f32 %v9172_v58, %v9175_v36  ;;  %v9205_v12 = vmul.f32 %v8686_v44, %v9183_v24  ;;  %v2676_v18 = vmul.f32 %v9180_v28, %v9183_v24 }
  0xe3   : > { %v2519_v42 = vsel %vm351_vm0, %v2516_v2, %v2518_v46  ;;  %v2846_v25 = vrot.slane %v9196_v30, 1  ;;  %v529_v44 = vmul.f32 %v8694_v48, %v8895_v43 }
  0xe4   : > { %v9200_v6 = vpop.permute.xlu1 %488  ;;  %v9209_v37 = vpop.permute.xlu0 %321  ;;  %v2848_v26 = vrot.slane %v2841_v32, 1  ;;  %v2683_v28 = vrot.slane %v2676_v18, 1  ;;  %v694_v32 = vmul.f32 %v8711_v53, %v8941_v23  ;;  %v14334_v18 = vrot.slane %v8915_v55, 1 }
  0xe5   : > { %14327 = vst [vmem:[#allocation62_spill] sm:$0xff] %v9200_v6  ;;  %14328 = vst [vmem:[#allocation63_spill] sm:$0xff] %v9209_v37  ;;  %v14330_v6 = vrot.slane %v9167_v5, 1  ;;  %v535_v43 = vrot.slane %v529_v44, 1  ;;  %v14338_v55 = vrot.slane %v8958_v27, 1  ;;  %v14342_v27 = vrot.slane %v8983_v59, 1 }
  0xe6   : > { %2192 = vrot.lane.b32.xlu1 %v2189_v38, %s14085_s9  ;;  %2027 = vrot.lane.b32.xlu0 %v2024_v22, %s14085_s9  ;;  %v2681_v38 = vrot.slane %v9205_v12, 1  ;;  %v363_v22 = vmul.f32 %v8909_v51, %v8697_v49  ;;  %v2849_v48 = vsel %vm351_vm0, %v2846_v25, %v2848_v26  ;;  %v700_v23 = vrot.slane %v694_v32, 1 }
  0xe7   : > { %v2354_v37 = vsel %vm351_vm0, %v14330_v6, %v2353_v50  ;;  %v859_v6 = vmul.f32 %v8708_v52, %v8934_v11  ;;  %v537_v52 = vsel %vm351_vm0, %v535_v43, %v14334_v18  ;;  %v1024_v26 = vmul.f32 %v8725_v57, %v8966_v17 }
  0xe8   : > { %v9219_v39 = vpop.permute.xlu1 %818  ;;  %v9227_v58 = vpop.permute.xlu0 %653  ;;  %v2684_v49 = vsel %vm351_vm0, %v2681_v38, %v2683_v28  ;;  %v369_v51 = vrot.slane %v363_v22, 1  ;;  %v14336_v28 = vrot.slane %v8927_v63, 1  ;;  %v1519_v63 = vmul.f32 %v8736_v60, %v9005_v47 }
  0xe9   : > { %14329 = vst [vmem:[#allocation64_spill] sm:$0xff] %v9219_v39  ;;  %14331 = vst [vmem:[#allocation65_spill] sm:$0xff] %v9227_v58  ;;  %v865_v11 = vrot.slane %v859_v6, 1  ;;  %v1030_v17 = vrot.slane %v1024_v26, 1  ;;  %v1354_v43 = vmul.f32 %v8739_v61, %v9024_v62  ;;  %v1684_v32 = vmul.f32 %v8753_v3, %v9063_v35 }
  0xea   : > { %2522 = vrot.lane.b32.xlu1 %v2519_v42, %s14085_s9  ;;  %2357 = vrot.lane.b32.xlu0 %v2354_v37, %s14085_s9  ;;  %v1189_v37 = vmul.f32 %v8722_v56, %v8953_v40  ;;  %v371_v53 = vsel %vm351_vm0, %v369_v51, %v14336_v28  ;;  %v1525_v47 = vrot.slane %v1519_v63, 1  ;;  %v14344_v51 = vrot.slane %v8992_v4, 1 }
  0xeb   : > { %v867_v56 = vsel %vm351_vm0, %v865_v11, %v14338_v55  ;;  %v1360_v62 = vrot.slane %v1354_v43, 1  ;;  %v14346_v59 = vrot.slane %v9030_v54, 1  ;;  %v2179_v4 = vmul.f32 %v8760_v8, %v9086_v10 }
  0xec   : > { %v9236_v46 = vpop.permute.xlu1 %1148  ;;  %v9243_v50 = vpop.permute.xlu0 %983  ;;  %v1195_v40 = vrot.slane %v1189_v37, 1  ;;  %v1032_v61 = vsel %vm351_vm0, %v1030_v17, %v14344_v51  ;;  %v14348_v11 = vrot.slane %v9045_v16, 1  ;;  %v1690_v35 = vrot.slane %v1684_v32, 1  ;;  %v14359_v17 = vld [vmem:[#allocation31_spill] sm:$0xff] }
  0xed   : > { %14332 = vst [vmem:[#allocation66_spill] sm:$0xff] %v9236_v46  ;;  %14333 = vst [vmem:[#allocation67_spill] sm:$0xff] %v9243_v50  ;;  %v2014_v37 = vmul.f32 %v8763_v9, %v9092_v7  ;;  %v14350_v8 = vrot.slane %v9081_v0, 1  ;;  %v2185_v54 = vrot.slane %v2179_v4, 1  ;;  %v2509_v16 = vmul.f32 %v8770_v13, %v9137_v31 }
  0xee   : > { %2852 = vrot.lane.b32.xlu1 %v2849_v48, %s14085_s9  ;;  %2687 = vrot.lane.b32.xlu0 %v2684_v49, %s14085_s9  ;;  %v14340_v48 = vrot.slane %v8973_v41, 1  ;;  %v1197_v60 = vsel %vm351_vm0, %v1195_v40, %v14342_v27  ;;  %v1849_v41 = vmul.f32 %v8750_v1, %v9053_v14  ;;  %v1527_v1 = vsel %vm351_vm0, %v1525_v47, %v14346_v59 }
  0xef   : > { %v1362_v3 = vsel %vm351_vm0, %v1360_v62, %v14348_v11  ;;  %v2020_v7 = vrot.slane %v2014_v37, 1  ;;  %v2344_v26 = vmul.f32 %v8775_v15, %v9145_v29  ;;  %v2839_v0 = vmul.f32 %v8784_v19, %v9175_v36  ;;  %v14365_v11 = vld [vmem:[#allocation20_spill] sm:$0xff] }
  0xf0   : > { %v9252_v42 = vpop.permute.xlu1 %1478  ;;  %v9259_v44 = vpop.permute.xlu0 %1313  ;;  %v702_v57 = vsel %vm351_vm0, %v700_v23, %v14340_v48  ;;  %v1855_v14 = vrot.slane %v1849_v41, 1  ;;  %v14352_v23 = vrot.slane %v9099_v34, 1  ;;  %v2674_v13 = vmul.f32 %v8789_v21, %v9183_v24  ;;  %v14358_v48 = vld [vmem:[#allocation21_spill] sm:$0xff]  ;;  %v14362_v41 = vld [vmem:[#allocation19_spill] sm:$0xff] }
  0xf1   : > { %14335 = vst [vmem:[#allocation68_spill] sm:$0xff] %v9252_v42  ;;  %14337 = vst [vmem:[#allocation69_spill] sm:$0xff] %v9259_v44  ;;  %v14354_v31 = vrot.slane %v9112_v45, 1  ;;  %v2515_v34 = vrot.slane %v2509_v16, 1  ;;  %v9336_v29 = vstv %s7194_s19  ;;  %v14356_v19 = vrot.slane %v9118_v33, 1  ;;  %s9487_s19 = sld [smem:[#allocation3 + $0x605]] }
  0xf2   : > { %540 = vrot.lane.b32.xlu1 %v537_v52, %s14085_s9  ;;  %374 = vrot.lane.b32.xlu0 %v371_v53, %s14085_s9  ;;  %v1857_v10 = vsel %vm351_vm0, %v1855_v14, %v14350_v8  ;;  %v1692_v9 = vsel %vm351_vm0, %v1690_v35, %v14352_v23  ;;  %v2350_v24 = vrot.slane %v2344_v26, 1  ;;  %v9347_v40 = vstv %s7182_s20  ;;  %v14366_v35 = vld [vmem:[#allocation35_spill] sm:$0xff]  ;;  %v14368_v8 = vld [vmem:[#allocation18_spill] sm:$0xff]  ;;  %s9510_s20 = sld [smem:[#allocation3 + $0x100]] }
  0xf3   : > { %v2187_v15 = vsel %vm351_vm0, %v2185_v54, %v14354_v31  ;;  %v2022_v36 = vsel %vm351_vm0, %v2020_v7, %v14356_v19  ;;  %v2845_v45 = vrot.slane %v2839_v0, 1  ;;  %v2680_v63 = vrot.slane %v2674_v13, 1  ;;  %v14369_v54 = vld [vmem:[#allocation37_spill] sm:$0xff]  ;;  %v14372_v26 = vld [vmem:[#allocation38_spill] sm:$0xff]  ;;  %v14373_v13 = vld [vmem:[#allocation23_spill] sm:$0xff] }
  0xf4   : > { %v9268_v22 = vpop.permute.xlu1 %1808  ;;  %v9275_v6 = vpop.permute.xlu0 %1643  ;;  %v2517_v33 = vsel %vm351_vm0, %v2515_v34, %v2516_v2  ;;  %v552_v43 = vmul.f32 %v14359_v17, %v9336_v29  ;;  %v9369_v51 = vmul.f32 %v9347_v40, %v14362_v41  ;;  %v9373_v2 = vstv %s7220_s8  ;;  %s9521_s8 = sld [smem:[#allocation3 + $0x785]] }
  0xf5   : > { %14339 = vst [vmem:[#allocation70_spill] sm:$0xff] %v9268_v22  ;;  %14341 = vst [vmem:[#allocation71_spill] sm:$0xff] %v9275_v6  ;;  %v9377_v32 = vstv %s7207_s21  ;;  %v2682_v59 = vsel %vm351_vm0, %v2680_v63, %v2681_v38  ;;  %v9390_v14 = vstv %s9330_s22  ;;  %v882_v30 = vmul.f32 %v14366_v35, %v9373_v2  ;;  %s9523_s21 = sld [smem:[#allocation3]]  ;;  %s9527_s22 = sld [smem:[#allocation3 + $0x705]] }
  0xf6   : > { %870 = vrot.lane.b32.xlu1 %v867_v56, %s14085_s9  ;;  %705 = vrot.lane.b32.xlu0 %v702_v57, %s14085_s9  ;;  %v9352_v57 = vmul.f32 %v14358_v48, %v9336_v29  ;;  %v559_v4 = vrot.slane %v552_v43, 1  ;;  %v9400_v37 = vstv %s9338_s15  ;;  %v14080_v12 = vrot.slane %v9369_v51, 1  ;;  %s9529_s15 = sld [smem:[#allocation3 + $0x180]] }
  0xf7   : > { %v717_v16 = vmul.f32 %v14369_v54, %v9377_v32  ;;  %v1212_v0 = vmul.f32 %v14372_v26, %v9390_v14  ;;  %v9426_v31 = vmul.f32 %v14373_v13, %v9400_v37 }
  0xf8   : > { %v9284_v49 = vpop.permute.xlu1 %2138  ;;  %v9291_v18 = vpop.permute.xlu0 %1973 }
  0xf9   : > { %14343 = vst [vmem:[#allocation72_spill] sm:$0xff] %v9284_v49  ;;  %14345 = vst [vmem:[#allocation73_spill] sm:$0xff] %v9291_v18  ;;  %v724_v43 = vrot.slane %v717_v16, 1  ;;  %v1219_v41 = vrot.slane %v1212_v0, 1  ;;  %v14380_v0 = vld [vmem:[#allocation25_spill] sm:$0xff]  ;;  %v9685_v49 = vld [vmem:[%s8561_s23 + $0x50] sm:$0xff] }
  0xfa   : > { %1200 = vrot.lane.b32.xlu1 %v1197_v60, %s14085_s9  ;;  %1035 = vrot.lane.b32.xlu0 %v1032_v61, %s14085_s9  ;;  %v14361_v60 = vrot.slane %v9167_v5, 1  ;;  %v386_v61 = vmul.f32 %v9347_v40, %v14363_v20  ;;  %v2847_v5 = vsel %vm351_vm0, %v2845_v45, %v2846_v25  ;;  %v9436_v45 = vstv %s9360_s18  ;;  %s9531_s18 = sld [smem:[#allocation3 + $0x80]]  ;;  %v9710_v18 = vld [vmem:[%s8561_s23 + $0x80] sm:$0xff] }
  0xfc   : > { %v9300_v52 = vpop.permute.xlu1 %2468  ;;  %v9307_v28 = vpop.permute.xlu0 %2303  ;;  %v2352_v47 = vsel %vm351_vm0, %v2350_v24, %v14361_v60  ;;  %v393_v38 = vrot.slane %v386_v61, 1  ;;  %v889_v24 = vrot.slane %v882_v30, 1  ;;  %v9452_v61 = vstv %s9379_s0  ;;  %v14378_v30 = vld [vmem:[#allocation42_spill] sm:$0xff]  ;;  %s9560_s0 = sld [smem:[#allocation3 + $0x280]] }
  0xfd   : > { %14347 = vst [vmem:[#allocation74_spill] sm:$0xff] %v9300_v52  ;;  %14349 = vst [vmem:[#allocation75_spill] sm:$0xff] %v9307_v28  ;;  %v9473_v13 = vmul.f32 %v14380_v0, %v9452_v61  ;;  %v14417_v28 = vstv %s9523_s21  ;;  %v14420_v6 = vstv %s9529_s15 }
  0xfe   : > { %1530 = vrot.lane.b32.xlu1 %v1527_v1, %s14085_s9  ;;  %1365 = vrot.lane.b32.xlu0 %v1362_v3, %s14085_s9  ;;  %v14081_v1 = vrot.slane %v9352_v57, 1  ;;  %v9395_v3 = vmul.f32 %v14365_v11, %v9373_v2  ;;  %v394_v48 = vsel %vm351_vm0, %v14080_v12, %v393_v38  ;;  %v1542_v38 = vmul.f32 %v14378_v30, %v9436_v45  ;;  %v14391_v30 = vld [vmem:[#allocation29_spill] sm:$0xff] }
  0xff   : > { %v9505_v12 = vstv %s9438_s13  ;;  %s9574_s13 = sld [smem:[#allocation3 + $0x300]]  ;;  %v9690_v22 = vmul.f32 %v9685_v49, %v14420_v6 }
 0x100   : > { %v9316_v53 = vpop.permute.xlu1 %2798  ;;  %v9323_v55 = vpop.permute.xlu0 %2633  ;;  %v560_v19 = vsel %vm351_vm0, %v14081_v1, %v559_v4  ;;  %v14377_v4 = vld [vmem:[#allocation24_spill] sm:$0xff]  ;;  %v1549_v0 = vrot.slane %v1542_v38, 1  ;;  %v9508_v1 = vstv %s9440_s16  ;;  %s9589_s16 = sld [smem:[#allocation3 + $0x480]]  ;;  %v14422_v44 = vstv %s9531_s18 }
 0x101   : > { %14351 = vst [vmem:[#allocation76_spill] sm:$0xff] %v9316_v53  ;;  %14353 = vst [vmem:[#allocation77_spill] sm:$0xff] %v9323_v55  ;;  %v9458_v11 = vmul.f32 %v14377_v4, %v9436_v45  ;;  %v9653_v55 = vld [vmem:[%s8561_s23 + $0x158] sm:$0xff]  ;;  %v14415_v53 = vstv %s9510_s20 }
 0x102   : > { %1860 = vrot.lane.b32.xlu1 %v1857_v10, %s14085_s9  ;;  %1695 = vrot.lane.b32.xlu0 %v1692_v9, %s14085_s9  ;;  %v9407_v10 = vmul.f32 %v14368_v8, %v9377_v32  ;;  %v14371_v9 = vld [vmem:[#allocation22_spill] sm:$0xff]  ;;  %v14425_v42 = vstv %s9560_s0 }
 0x103   : > { %v9417_v7 = vmul.f32 %v14371_v9, %v9390_v14 }
 0x104   : > { %v9340_v56 = vpop.permute.xlu1 %504  ;;  %v9345_v21 = vpop.permute.xlu0 %337 }
 0x105   : > { %14355 = vst [vmem:[#allocation78_spill] sm:$0xff] %v9340_v56  ;;  %14357 = vst [vmem:[#allocation79_spill] sm:$0xff] %v9345_v21 }
 0x106   : > { %2190 = vrot.lane.b32.xlu1 %v2187_v15, %s14085_s9  ;;  %2025 = vrot.lane.b32.xlu0 %v2022_v36, %s14085_s9  ;;  %v14374_v15 = vld [vmem:[#allocation39_spill] sm:$0xff]  ;;  %v14079_v36 = vrot.slane %v9395_v3, 1 }
 0x107   : > { %v1047_v34 = vmul.f32 %v14374_v15, %v9400_v37  ;;  %v14381_v15 = vld [vmem:[#allocation45_spill] sm:$0xff] }
 0x108   : > { %v9362_v27 = vpop.permute.xlu1 %834  ;;  %v9375_v62 = vpop.permute.xlu0 %669  ;;  %v890_v8 = vsel %vm351_vm0, %v14079_v36, %v889_v24  ;;  %v14384_v36 = vld [vmem:[#allocation47_spill] sm:$0xff] }
 0x109   : > { %14360 = vst [vmem:[#allocation21_spill] sm:$0xff] %v9362_v27  ;;  %14364 = vst [vmem:[#allocation31_spill] sm:$0xff] %v9375_v62  ;;  %v9606_v62 = vstv %s9521_s8  ;;  %s9632_s8 = sld [smem:[#allocation3 + $0x600]] }
 0x10a   : > { %2520 = vrot.lane.b32.xlu1 %v2517_v33, %s14085_s9  ;;  %2355 = vrot.lane.b32.xlu0 %v2352_v47, %s14085_s9  ;;  %v14078_v33 = vrot.slane %v9407_v10, 1  ;;  %v14083_v47 = vrot.slane %v9417_v7, 1 }
 0x10c   : > { %v9402_v25 = vpop.permute.xlu1 %1164  ;;  %v9413_v23 = vpop.permute.xlu0 %999  ;;  %v725_v9 = vsel %vm351_vm0, %v14078_v33, %v724_v43  ;;  %v1220_v43 = vsel %vm351_vm0, %v14083_v47, %v1219_v41 }
 0x10d   : > { %14367 = vst [vmem:[#allocation19_spill] sm:$0xff] %v9402_v25  ;;  %14370 = vst [vmem:[#allocation33_spill] sm:$0xff] %v9413_v23 }
 0x10e   : > { %2850 = vrot.lane.b32.xlu1 %v2847_v5, %s14085_s9  ;;  %2685 = vrot.lane.b32.xlu0 %v2682_v59, %s14085_s9  ;;  %v14082_v5 = vrot.slane %v9426_v31, 1  ;;  %v1054_v59 = vrot.slane %v1047_v34, 1  ;;  %v1377_v34 = vmul.f32 %v14381_v15, %v9452_v61  ;;  %v14383_v15 = vld [vmem:[#allocation26_spill] sm:$0xff]  ;;  %s9621_s9 = sld [smem:[#allocation3 + $0x500]] }
 0x110   : > { %v9442_v63 = vpop.permute.xlu1 %1494  ;;  %v9448_v60 = vpop.permute.xlu0 %1329  ;;  %v1055_v4 = vsel %vm351_vm0, %v14082_v5, %v1054_v59  ;;  %v1384_v38 = vrot.slane %v1377_v34, 1  ;;  %v14389_v34 = vld [vmem:[#allocation28_spill] sm:$0xff] }
 0x111   : > { %14375 = vst [vmem:[#allocation20_spill] sm:$0xff] %v9442_v63  ;;  %14376 = vst [vmem:[#allocation35_spill] sm:$0xff] %v9448_v60 }
 0x112   : > { %563 = vrot.lane.b32.xlu1 %v560_v19, %s14087_s29  ;;  %397 = vrot.lane.b32.xlu0 %v394_v48, %s14087_s29  ;;  %v9478_v19 = vstv %s9411_s1  ;;  %v9485_v48 = vstv %s9421_s14  ;;  %s9562_s1 = sld [smem:[#allocation3 + $0x200]]  ;;  %14412 = vst [vmem:[#allocation28_spill] sm:$0xff] %v9653_v55 }
 0x113   : > { %v9500_v33 = vmul.f32 %v14383_v15, %v9478_v19  ;;  %v14387_v15 = vld [vmem:[#allocation49_spill] sm:$0xff]  ;;  %s9569_s14 = sld [smem:[#allocation3 + $0x380]] }
 0x114   : > { %v9466_v16 = vpop.permute.xlu1 %1824  ;;  %v9482_v24 = vpop.permute.xlu0 %1659  ;;  %v1707_v47 = vmul.f32 %v14387_v15, %v9485_v48  ;;  %v14390_v15 = vld [vmem:[#allocation50_spill] sm:$0xff] }
 0x115   : > { %14379 = vst [vmem:[#allocation18_spill] sm:$0xff] %v9466_v16  ;;  %14382 = vst [vmem:[#allocation37_spill] sm:$0xff] %v9482_v24  ;;  %v2202_v59 = vmul.f32 %v14390_v15, %v9505_v12  ;;  %v14393_v16 = vrot.slane %v9458_v11, 1  ;;  %v14395_v15 = vrot.slane %v9473_v13, 1 }
 0x116   : > { %893 = vrot.lane.b32.xlu1 %v890_v8, %s14087_s29  ;;  %728 = vrot.lane.b32.xlu0 %v725_v9, %s14087_s29  ;;  %v1872_v8 = vmul.f32 %v14384_v36, %v9478_v19  ;;  %v14386_v9 = vld [vmem:[#allocation27_spill] sm:$0xff]  ;;  %v1714_v25 = vrot.slane %v1707_v47, 1 }
 0x117   : > { %v9517_v5 = vmul.f32 %v14386_v9, %v9485_v48  ;;  %v9536_v9 = vmul.f32 %v14389_v34, %v9505_v12  ;;  %v14084_v34 = vrot.slane %v9500_v33, 1  ;;  %v1385_v23 = vsel %vm351_vm0, %v14395_v15, %v1384_v38 }
 0x118   : > { %v9512_v41 = vpop.permute.xlu1 %2154  ;;  %v9525_v36 = vpop.permute.xlu0 %1989  ;;  %v1879_v60 = vrot.slane %v1872_v8, 1  ;;  %v2209_v8 = vrot.slane %v2202_v59, 1  ;;  %v14429_v58 = vstv %s9562_s1 }
 0x119   : > { %14385 = vst [vmem:[#allocation22_spill] sm:$0xff] %v9512_v41  ;;  %14388 = vst [vmem:[#allocation38_spill] sm:$0xff] %v9525_v36  ;;  %v9542_v36 = vmul.f32 %v14391_v30, %v9508_v1  ;;  %v14392_v41 = vld [vmem:[#allocation51_spill] sm:$0xff]  ;;  %v9581_v30 = vld [vmem:[%s8561_s23 + $0x140] sm:$0xff] }
 0x11a   : > { %1223 = vrot.lane.b32.xlu1 %v1220_v43, %s14087_s29  ;;  %v2037_v24 = vmul.f32 %v14392_v41, %v9508_v1  ;;  %1058 = vrot.lane.b32.xlu0 %v1055_v4, %s14087_s29  ;;  %v1550_v43 = vsel %vm351_vm0, %v14393_v16, %v1549_v0  ;;  %v9558_v41 = vstv %s9480_s17  ;;  %v9567_v4 = vstv %s9487_s19  ;;  %s9610_s17 = sld [smem:[#allocation3 + $0x400]] }
 0x11b   : > { %v1880_v15 = vsel %vm351_vm0, %v14084_v34, %v1879_v60  ;;  %v9585_v59 = vmul.f32 %v9581_v30, %v9558_v41  ;;  %v9597_v34 = vld [vmem:[%s8561_s23 + $0x128] sm:$0xff]  ;;  %s9612_s19 = sld [smem:[#allocation3 + $0x580]] }
 0x11c   : > { %v9551_v63 = vpop.permute.xlu1 %2484  ;;  %v9564_v16 = vpop.permute.xlu0 %2319  ;;  %v2044_v38 = vrot.slane %v2037_v24, 1  ;;  %14401 = vst [vmem:[#allocation25_spill] sm:$0xff] %v9597_v34  ;;  %v9601_v0 = vmul.f32 %v9597_v34, %v9567_v4 }
 0x11d   : > { %14394 = vst [vmem:[#allocation23_spill] sm:$0xff] %v9551_v63  ;;  %14396 = vst [vmem:[#allocation39_spill] sm:$0xff] %v9564_v16  ;;  %v14403_v16 = vld [vmem:[#allocation57_spill] sm:$0xff]  ;;  %v14424_v6 = vrot.slane %v9585_v59, 1 }
 0x11e   : > { %1553 = vrot.lane.b32.xlu1 %v1550_v43, %s14087_s29  ;;  %1388 = vrot.lane.b32.xlu0 %v1385_v23, %s14087_s29  ;;  %14397 = vst [vmem:[#allocation24_spill] sm:$0xff] %v9585_v59  ;;  %v14398_v43 = vld [vmem:[#allocation55_spill] sm:$0xff]  ;;  %v14400_v23 = vrot.slane %v9517_v5, 1  ;;  %14402 = vst [vmem:[#allocation45_spill] sm:$0xff] %v9601_v0  ;;  %v2367_v63 = vmul.f32 %v14403_v16, %v9567_v4  ;;  %s9623_s29 = sld [smem:[#allocation3 + $0x680]]  ;;  %v14406_v16 = vrot.slane %v9536_v9, 1 }
 0x11f   : > { %v2532_v24 = vmul.f32 %v14398_v43, %v9558_v41  ;;  %v14407_v43 = vrot.slane %v9542_v36, 1  ;;  %14421 = vst [vmem:[#allocation57_spill] sm:$0xff] %v9690_v22 }
 0x120   : > { %v9591_v47 = vpop.permute.xlu1 %2814  ;;  %v1715_v60 = vsel %vm351_vm0, %v14400_v23, %v1714_v25  ;;  %v9617_v25 = vstv %s9527_s22  ;;  %v2210_v27 = vsel %vm351_vm0, %v14406_v16, %v2209_v8  ;;  %s9645_s22 = sld [smem:[#allocation3 + $0x881]]  ;;  %v2374_v16 = vrot.slane %v2367_v63, 1  ;;  %v9672_v63 = vld [vmem:[%s8561_s23 + $0x8] sm:$0xff] }
 0x121   : > { %14399 = vst [vmem:[#allocation42_spill] sm:$0xff] %v9591_v47  ;;  %v9614_v47 = vpop.permute.xlu0 %2649  ;;  %v2045_v21 = vsel %vm351_vm0, %v14407_v43, %v2044_v38  ;;  %v2539_v23 = vrot.slane %v2532_v24, 1  ;;  %v14410_v38 = vld [vmem:[#allocation59_spill] sm:$0xff]  ;;  %v9677_v52 = vmul.f32 %v9672_v63, %v14417_v28 }
 0x122   : > { %14404 = vst [vmem:[#allocation26_spill] sm:$0xff] %v9614_v47  ;;  %1883 = vrot.lane.b32.xlu1 %v1880_v15, %s14405_s2  ;;  %1718 = vrot.lane.b32.xlu0 %v1715_v60, %s14405_s2  ;;  %v9637_v15 = vld [vmem:[%s8561_s23 + $0x170] sm:$0xff]  ;;  %v2862_v43 = vmul.f32 %v14410_v38, %v9606_v62  ;;  %v9657_v38 = vmul.f32 %v9653_v55, %v9617_v25  ;;  %v14414_v47 = vld [vmem:[#allocation61_spill] sm:$0xff] }
 0x123   : > { %14408 = vst [vmem:[#allocation47_spill] sm:$0xff] %v9637_v15  ;;  %v9641_v8 = vmul.f32 %v9637_v15, %v9606_v62  ;;  %v2697_v56 = vmul.f32 %v14414_v47, %v9617_v25  ;;  %14418 = vst [vmem:[#allocation51_spill] sm:$0xff] %v9677_v52  ;;  %v2540_v50 = vsel %vm351_vm0, %v14424_v6, %v2539_v23  ;;  %v9803_v52 = vld [vmem:[%s8561_s23 + $0x110] sm:$0xff] }
 0x124   : > { %v9649_v60 = vpop.permute.xlu1 %502  ;;  %14413 = vst [vmem:[#allocation50_spill] sm:$0xff] %v9657_v38  ;;  %v2869_v46 = vrot.slane %v2862_v43, 1  ;;  %v9724_v43 = vld [vmem:[%s8561_s23 + $0x68] sm:$0xff] }
 0x125   : > { %14409 = vst [vmem:[#allocation27_spill] sm:$0xff] %v9641_v8  ;;  %14411 = vst [vmem:[#allocation49_spill] sm:$0xff] %v9649_v60  ;;  %v9664_v60 = vld [vmem:[%s8561_s23 + $0x38] sm:$0xff]  ;;  %v9682_v47 = vpop.permute.xlu0 %335  ;;  %v9729_v39 = vmul.f32 %v9724_v43, %v14429_v58 }
 0x126   : > { %v9669_v24 = vmul.f32 %v9664_v60, %v14415_v53  ;;  %14419 = vst [vmem:[#allocation55_spill] sm:$0xff] %v9682_v47  ;;  %v9693_v53 = vld [vmem:[%s8561_s23 + $0x20] sm:$0xff]  ;;  %2213 = vrot.lane.b32.xlu1 %v2210_v27, %s14405_s2  ;;  %2048 = vrot.lane.b32.xlu0 %v2045_v21, %s14405_s2  ;;  %v9715_v27 = vmul.f32 %v9710_v18, %v14425_v42  ;;  %v14428_v21 = vrot.slane %v9601_v0, 1  ;;  %v9732_v42 = vld [vmem:[%s8561_s23 + $0xb0] sm:$0xff] }
 0x127   : > { %v9698_v28 = vmul.f32 %v9693_v53, %v14422_v44  ;;  %v2704_v44 = vrot.slane %v2697_v56, 1  ;;  %14430 = vst [vmem:[#allocation81_spill] sm:$0xff] %v9729_v39  ;;  %v9744_v56 = vld [vmem:[%s8561_s23 + $0x98] sm:$0xff]  ;;  %v9763_v39 = vld [vmem:[%s8561_s23 + $0x1a0] sm:$0xff] }
 0x128   : > { %14416 = vst [vmem:[#allocation29_spill] sm:$0xff] %v9669_v24  ;;  %14426 = vst [vmem:[#allocation61_spill] sm:$0xff] %v9715_v27  ;;  %v9717_v47 = vpop.permute.xlu1 %832  ;;  %v2375_v23 = vsel %vm351_vm0, %v14428_v21, %v2374_v16  ;;  %v14431_v27 = vstv %s9569_s14  ;;  %v14436_v21 = vrot.slane %v9641_v8, 1  ;;  %v14439_v16 = vrot.slane %v9657_v38, 1 }
 0x129   : > { %14423 = vst [vmem:[#allocation59_spill] sm:$0xff] %v9698_v28  ;;  %14427 = vst [vmem:[#allocation80_spill] sm:$0xff] %v9717_v47  ;;  %v9737_v47 = vmul.f32 %v9732_v42, %v14431_v27  ;;  %v9741_v6 = vpop.permute.xlu0 %667  ;;  %v14434_v28 = vstv %s9574_s13  ;;  %v14442_v27 = vstv %s9589_s16  ;;  %v14447_v38 = vstv %s9612_s19 }
 0x12a   : > { %14433 = vst [vmem:[#allocation83_spill] sm:$0xff] %v9741_v6  ;;  %v9749_v58 = vmul.f32 %v9744_v56, %v14434_v28  ;;  %2543 = vrot.lane.b32.xlu1 %v2540_v50, %s14405_s2  ;;  %2378 = vrot.lane.b32.xlu0 %v2375_v23, %s14405_s2  ;;  %v2870_v28 = vsel %vm351_vm0, %v14436_v21, %v2869_v46  ;;  %v9767_v50 = vld [vmem:[%s8561_s23 + $0x18] sm:$0xff]  ;;  %v9778_v21 = vld [vmem:[%s8561_s23 + $0x188] sm:$0xff] }
 0x12b   : > { %14432 = vst [vmem:[#allocation82_spill] sm:$0xff] %v9737_v47  ;;  %14437 = vst [vmem:[#allocation85_spill] sm:$0xff] %v9767_v50  ;;  %v550_v22 = vmul.f32 %v9767_v50, %v9336_v29  ;;  %v2705_v46 = vsel %vm351_vm0, %v14439_v16, %v2704_v44  ;;  %v9782_v6 = vld [vmem:[%s8561_s23] sm:$0xff]  ;;  %v9795_v47 = vld [vmem:[%s8561_s23 + $0xc8] sm:$0xff]  ;;  %v14445_v44 = vstv %s9610_s17  ;;  %v14454_v24 = vstv %s9632_s8 }
 0x12c   : > { %14435 = vst [vmem:[#allocation84_spill] sm:$0xff] %v9749_v58  ;;  %v9772_v23 = vpop.permute.xlu1 %1162  ;;  %14440 = vst [vmem:[#allocation87_spill] sm:$0xff] %v9778_v21  ;;  %v384_v29 = vmul.f32 %v9782_v6, %v9347_v40  ;;  %v9787_v58 = vld [vmem:[%s8561_s23 + $0xe0] sm:$0xff]  ;;  %v9800_v16 = vmul.f32 %v9795_v47, %v14445_v44  ;;  %v9808_v40 = vmul.f32 %v9803_v52, %v14447_v38  ;;  %v14452_v44 = vstv %s9623_s29 }
 0x12d   : > { %14438 = vst [vmem:[#allocation86_spill] sm:$0xff] %v9772_v23  ;;  %14441 = vst [vmem:[#allocation88_spill] sm:$0xff] %v9782_v6  ;;  %v9792_v23 = vmul.f32 %v9787_v58, %v14442_v27  ;;  %v9811_v0 = vpop.permute.xlu0 %997  ;;  %v9814_v27 = vld [vmem:[%s8561_s23 + $0xf8] sm:$0xff]  ;;  %v14456_v38 = vstv %s9645_s22 }
 0x12e   : > { %14444 = vst [vmem:[#allocation90_spill] sm:$0xff] %v9795_v47  ;;  %14446 = vst [vmem:[#allocation91_spill] sm:$0xff] %v9800_v16  ;;  %v9824_v16 = vmul.f32 %v9581_v30, %v14452_v44  ;;  %v9829_v47 = vmul.f32 %v9597_v34, %v14454_v24  ;;  %2873 = vrot.lane.b32.xlu1 %v2870_v28, %s14405_s2  ;;  %v3125_v8 = vmul.f32 %v9763_v39, %v14456_v38  ;;  %v9849_v38 = vld [vmem:[%s8561_s23 + $0x48] sm:$0xff] }
 0x12f   : > { %14443 = vst [vmem:[#allocation89_spill] sm:$0xff] %v9792_v23  ;;  %14448 = vst [vmem:[#allocation92_spill] sm:$0xff] %v9808_v40  ;;  %v14450_v23 = vstv %s9621_s9  ;;  %2708 = vrot.lane.b32.xlu0 %v2705_v46, %s14405_s2  ;;  %v14459_v24 = vstv %s9661_s26  ;;  %v14463_v46 = vstv %s9531_s18  ;;  %s10262_s18 = sld [smem:[#allocation3 + $0x882]] }
 0x130   : > { %14449 = vst [vmem:[#allocation93_spill] sm:$0xff] %v9811_v0  ;;  %v9819_v59 = vmul.f32 %v9814_v27, %v14450_v23  ;;  %14453 = vst [vmem:[#allocation95_spill] sm:$0xff] %v9824_v16  ;;  %v14457_v23 = vstv %s9647_s10  ;;  %v2960_v28 = vmul.f32 %v9778_v21, %v14459_v24  ;;  %v556_v0 = vrot.slane %v550_v22, 1  ;;  %v9865_v22 = vpop.permute.xlu1 %1492 }
 0x131   : > { %14455 = vst [vmem:[#allocation96_spill] sm:$0xff] %v9829_v47  ;;  %v9842_v44 = vmul.f32 %v9637_v15, %v14457_v23  ;;  %14460 = vst [vmem:[#allocation98_spill] sm:$0xff] %v9849_v38  ;;  %v880_v47 = vmul.f32 %v9849_v38, %v9373_v2  ;;  %v14461_v23 = vstv %s9680_s30  ;;  %v9863_v24 = vmul.f32 %v9767_v50, %v14463_v46 }
 0x132   : > { %14451 = vst [vmem:[#allocation94_spill] sm:$0xff] %v9819_v59  ;;  %14465 = vst [vmem:[#allocation101_spill] sm:$0xff] %v9865_v22  ;;  %v390_v16 = vrot.slane %v384_v29, 1  ;;  %v9868_v59 = vld [vmem:[%s8561_s23 + $0x30] sm:$0xff]  ;;  %v14467_v40 = vstv %s9523_s21  ;;  %v9888_v29 = vld [vmem:[%s8561_s23 + $0x78] sm:$0xff]  ;;  %v14474_v50 = vstv %s9560_s0  ;;  %s9925_s21 = sld [smem:[#allocation3 + $0x283]] }
 0x133   : > { %14458 = vst [vmem:[#allocation97_spill] sm:$0xff] %v9842_v44  ;;  %v9858_v44 = vmul.f32 %v9653_v55, %v14461_v23  ;;  %14464 = vst [vmem:[#allocation100_spill] sm:$0xff] %v9863_v24  ;;  %v715_v2 = vmul.f32 %v9868_v59, %v9377_v32  ;;  %v9875_v23 = vmul.f32 %v9782_v6, %v14467_v40  ;;  %v14471_v24 = vstv %s9510_s20  ;;  %v9895_v32 = vpop.permute.xlu0 %1327  ;;  %v9898_v40 = vld [vmem:[%s8561_s23 + $0x60] sm:$0xff]  ;;  %s14485_s20 = smov 127   ;;  %s10264_s0 = sld [smem:[#allocation3 + $0x87]] }
 0x134   : > { %14466 = vst [vmem:[#allocation102_spill] sm:$0xff] %v9868_v59  ;;  %v9885_v22 = vmul.f32 %v9868_v59, %v14471_v24  ;;  %14473 = vst [vmem:[#allocation106_spill] sm:$0xff] %v9888_v29  ;;  %v9893_v55 = vmul.f32 %v9888_v29, %v14474_v50  ;;  %v14481_v24 = vstv %s9569_s14  ;;  %v9914_v59 = vld [vmem:[%s8561_s23 + $0x90] sm:$0xff]  ;;  %v14483_v50 = vstv %s9574_s13  ;;  %3130 = vrot.lane.b32.xlu1 %v3125_v8, %s14485_s20  ;;  %s10282_s14 = sld [smem:[#allocation3 + $0x783]]  ;;  %s10293_s13 = sld [smem:[#allocation3 + $0x7]] }
 0x135   : > { %14462 = vst [vmem:[#allocation99_spill] sm:$0xff] %v9858_v44  ;;  %14468 = vst [vmem:[#allocation103_spill] sm:$0xff] %v9875_v23  ;;  %v14469_v44 = vstv %s9529_s15  ;;  %v14478_v23 = vstv %s9562_s1  ;;  %2965 = vrot.lane.b32.xlu0 %v2960_v28, %s14485_s20  ;;  %v14492_v6 = vstv %s9610_s17  ;;  %v14495_v28 = vrot.slane %v9369_v51, 1  ;;  %s10253_s15 = sld [smem:[#allocation3 + $0x603]]  ;;  %s10280_s1 = sld [smem:[#allocation3 + $0x802]] }
 0x136   : > { %v9880_v46 = vmul.f32 %v9849_v38, %v14469_v44  ;;  %14472 = vst [vmem:[#allocation105_spill] sm:$0xff] %v9885_v22  ;;  %14475 = vst [vmem:[#allocation107_spill] sm:$0xff] %v9893_v55  ;;  %v9903_v44 = vmul.f32 %v9898_v40, %v14478_v23  ;;  %v9919_v55 = vmul.f32 %v9914_v59, %v14483_v50  ;;  %v9928_v23 = vld [vmem:[%s8561_s23 + $0xd8] sm:$0xff]  ;;  %v14490_v50 = vrot.slane %v9352_v57, 1  ;;  %v9942_v38 = vld [vmem:[%s8561_s23 + $0xc0] sm:$0xff]  ;;  %s10358_s17 = sld [smem:[#allocation3 + $0x107]] }
 0x137   : > { %14476 = vst [vmem:[#allocation108_spill] sm:$0xff] %v9895_v32  ;;  %14477 = vst [vmem:[#allocation109_spill] sm:$0xff] %v9898_v40  ;;  %v9923_v32 = vstv %s9755_s12  ;;  %v9947_v15 = vmul.f32 %v9942_v38, %v14492_v6  ;;  %v392_v57 = vsel %vm351_vm0, %v390_v16, %v14495_v28  ;;  %v9965_v6 = vld [vmem:[%s8561_s23 + $0xf0] sm:$0xff]  ;;  %v9973_v51 = vld [vmem:[%s8561_s23 + $0x138] sm:$0xff]  ;;  %v14503_v16 = vstv %s9623_s29  ;;  %s10005_s12 = sld [smem:[#allocation3 + $0x203]] }
 0x138   : > { %14470 = vst [vmem:[#allocation104_spill] sm:$0xff] %v9880_v46  ;;  %14479 = vst [vmem:[#allocation110_spill] sm:$0xff] %v9903_v44  ;;  %v9906_v46 = vld [vmem:[%s8561_s23 + $0xa8] sm:$0xff]  ;;  %v558_v8 = vsel %vm351_vm0, %v556_v0, %v14490_v50  ;;  %v1210_v44 = vmul.f32 %v9888_v29, %v9390_v14  ;;  %v721_v0 = vrot.slane %v715_v2, 1  ;;  %v14497_v50 = vstv %s9612_s19  ;;  %s10199_s29 = sld [smem:[#allocation3 + $0x683]]  ;;  %s10369_s19 = sld [smem:[#allocation3 + $0x287]] }
 0x139   : > { %14480 = vst [vmem:[#allocation111_spill] sm:$0xff] %v9906_v46  ;;  %v9911_v22 = vmul.f32 %v9906_v46, %v14481_v24  ;;  %14484 = vst [vmem:[#allocation113_spill] sm:$0xff] %v9919_v55  ;;  %v14488_v24 = vstv %s9589_s16  ;;  %v886_v55 = vrot.slane %v880_v47, 1  ;;  %v1045_v47 = vmul.f32 %v9898_v40, %v9400_v37  ;;  %v9957_v14 = vld [vmem:[%s8561_s23 + $0x108] sm:$0xff]  ;;  %v9980_v37 = vpop.permute.xlu0 %1657  ;;  %561 = vrot.lane.b32.xlu1 %v558_v8, %s14405_s2  ;;  %s10337_s16 = sld [smem:[#allocation3 + $0x187]] }
 0x13a   : > { %14486 = vst [vmem:[#allocation114_spill] sm:$0xff] %v9923_v32  ;;  %14487 = vst [vmem:[#allocation115_spill] sm:$0xff] %v9928_v23  ;;  %v9978_v2 = vmul.f32 %v9973_v51, %v14503_v16  ;;  %v9984_v28 = vmul.f32 %v9693_v53, %v9923_v32  ;;  %v9997_v16 = vmul.f32 %v14359_v17, %v9923_v32  ;;  %395 = vrot.lane.b32.xlu0 %v392_v57, %s14405_s2  ;;  %v10019_v40 = vld [vmem:[%s8561_s23 + $0x168] sm:$0xff] }
 0x13b   : > { %14482 = vst [vmem:[#allocation112_spill] sm:$0xff] %v9911_v22  ;;  %v9933_v22 = vmul.f32 %v9928_v23, %v14488_v24  ;;  %14491 = vst [vmem:[#allocation117_spill] sm:$0xff] %v9942_v38  ;;  %v9949_v24 = vpop.permute.xlu1 %1822  ;;  %v1540_v8 = vmul.f32 %v9906_v46, %v9436_v45  ;;  %v10014_v17 = vstv %s9853_s7  ;;  %v14511_v29 = vstv %s9647_s10  ;;  %s10071_s7 = sld [smem:[#allocation3 + $0x303]] }
 0x13c   : > { %14493 = vst [vmem:[#allocation118_spill] sm:$0xff] %v9947_v15  ;;  %14494 = vst [vmem:[#allocation119_spill] sm:$0xff] %v9949_v24  ;;  %v14500_v15 = vstv %s9621_s9  ;;  %s10016_s9 = sld [smem:[#allocation3 + $0x383]]  ;;  %v10024_v32 = vmul.f32 %v10019_v40, %v14511_v29  ;;  %v1375_v45 = vmul.f32 %v9914_v59, %v9452_v61  ;;  %v14516_v46 = vstv %s9680_s30 }
 0x13d   : > { %14489 = vst [vmem:[#allocation116_spill] sm:$0xff] %v9933_v22  ;;  %14496 = vst [vmem:[#allocation120_spill] sm:$0xff] %v9957_v14  ;;  %v9962_v22 = vmul.f32 %v9957_v14, %v14497_v50  ;;  %v9970_v24 = vmul.f32 %v9965_v6, %v14500_v15  ;;  %v9987_v50 = vld [vmem:[%s8561_s23 + $0x120] sm:$0xff]  ;;  %v10041_v21 = vpop.permute.xlu0 %1987  ;;  %v521_v29 = vrot.slane %v9997_v16, 1  ;;  %s10129_s30 = sld [smem:[#allocation3 + $0x583]] }
 0x13e   : > { %14499 = vst [vmem:[#allocation122_spill] sm:$0xff] %v9965_v6  ;;  %14502 = vst [vmem:[#allocation124_spill] sm:$0xff] %v9973_v51  ;;  %s10160_s10 = sld [smem:[#allocation3 + $0x503]] }
 0x13f   : > { %14498 = vst [vmem:[#allocation121_spill] sm:$0xff] %v9962_v22  ;;  %14501 = vst [vmem:[#allocation123_spill] sm:$0xff] %v9970_v24  ;;  %v14507_v22 = vstv %s9632_s8  ;;  %v14509_v24 = vrot.slane %v9395_v3, 1  ;;  %v10026_v57 = vpop.permute.xlu1 %2152  ;;  %v14514_v3 = vrot.slane %v9407_v10, 1  ;;  %s10383_s8 = sld [smem:[#allocation3 + $0x207]] }
 0x140   : > { %14504 = vst [vmem:[#allocation125_spill] sm:$0xff] %v9978_v2  ;;  %14505 = vst [vmem:[#allocation126_spill] sm:$0xff] %v9980_v37  ;;  %v9992_v15 = vmul.f32 %v9987_v50, %v14507_v22  ;;  %v10000_v2 = vstv %s9835_s24  ;;  %v10003_v37 = vstv %s9837_s27  ;;  %s10091_s24 = sld [smem:[#allocation3 + $0x483]] }
 0x141   : > { %14506 = vst [vmem:[#allocation127_spill] sm:$0xff] %v9987_v50  ;;  %v888_v22 = vsel %vm351_vm0, %v886_v55, %v14509_v24  ;;  %14510 = vst [vmem:[#allocation129_spill] sm:$0xff] %v10019_v40  ;;  %v723_v55 = vsel %vm351_vm0, %v721_v0, %v14514_v3  ;;  %v10034_v24 = vld [vmem:[%s8561_s23 + $0x150] sm:$0xff]  ;;  %v347_v10 = vmul.f32 %v10000_v2, %v14363_v20  ;;  %v14519_v3 = vrot.slane %v9417_v7, 1  ;;  %v10082_v16 = vpop.permute.xlu0 %2317  ;;  %s10099_s27 = sld [smem:[#allocation3 + $0x403]] }
 0x142   : > { %14508 = vst [vmem:[#allocation128_spill] sm:$0xff] %v9992_v15  ;;  %v1216_v15 = vrot.slane %v1210_v44, 1  ;;  %14512 = vst [vmem:[#allocation130_spill] sm:$0xff] %v10024_v32  ;;  %v1051_v44 = vrot.slane %v1045_v47, 1  ;;  %v10039_v34 = vmul.f32 %v10034_v24, %v14516_v46  ;;  %891 = vrot.lane.b32.xlu1 %v888_v22, %s14405_s2  ;;  %v10053_v61 = vmul.f32 %v9685_v49, %v10003_v37 }
 0x143   : > { %14513 = vst [vmem:[#allocation131_spill] sm:$0xff] %v10026_v57  ;;  %14515 = vst [vmem:[#allocation132_spill] sm:$0xff] %v10034_v24  ;;  %v10046_v57 = vmul.f32 %v9672_v63, %v10000_v2  ;;  %v844_v46 = vmul.f32 %v14366_v35, %v10003_v37  ;;  %v10059_v0 = vmul.f32 %v9664_v60, %v10014_v17  ;;  %v10062_v47 = vstv %s9925_s21  ;;  %v10073_v35 = vpop.permute.xlu1 %2482  ;;  %s10477_s21 = sld [smem:[#allocation3 + $0x307]] }
 0x144   : > { %14517 = vst [vmem:[#allocation133_spill] sm:$0xff] %v10039_v34  ;;  %14518 = vst [vmem:[#allocation134_spill] sm:$0xff] %v10041_v21  ;;  %726 = vrot.lane.b32.xlu0 %v723_v55, %s14405_s2  ;;  %v1218_v20 = vsel %vm351_vm0, %v1216_v15, %v14519_v3  ;;  %v1546_v22 = vrot.slane %v1540_v8, 1  ;;  %v1870_v21 = vmul.f32 %v9928_v23, %v9478_v19  ;;  %v14521_v34 = vrot.slane %v9426_v31, 1  ;;  %v14585_v23 = vld [vmem:[#allocation36_spill] sm:$0xff] }
 0x145   : > { %14520 = vst [vmem:[#allocation135_spill] sm:$0xff] %v10073_v35  ;;  %v1381_v55 = vrot.slane %v1375_v45, 1  ;;  %v1705_v7 = vmul.f32 %v9942_v38, %v9485_v48  ;;  %v679_v15 = vmul.f32 %v14369_v54, %v10014_v17  ;;  %14522 = vst [vmem:[#allocation136_spill] sm:$0xff] %v10082_v16  ;;  %v355_v8 = vrot.slane %v347_v10, 1  ;;  %v7394_v38 = vld [vmem:[%s8561_s23 + $0x198] sm:$0xff] }
 0x146   : > { %v1053_v32 = vsel %vm351_vm0, %v1051_v44, %v14521_v34  ;;  %v10087_v3 = vmul.f32 %v9710_v18, %v10062_v47  ;;  %v1174_v31 = vmul.f32 %v14372_v26, %v10062_v47  ;;  %1221 = vrot.lane.b32.xlu1 %v1218_v20, %s14405_s2  ;;  %v851_v54 = vrot.slane %v844_v46, 1 }
 0x147   : > { %v10097_v44 = vstv %s10005_s12  ;;  %v14523_v45 = vrot.slane %v9458_v11, 1  ;;  %v1876_v10 = vrot.slane %v1870_v21, 1  ;;  %v2200_v20 = vmul.f32 %v9957_v14, %v9505_v12  ;;  %v10110_v46 = vpop.permute.xlu1 %2812  ;;  %v10117_v11 = vpop.permute.xlu0 %2647  ;;  %s10509_s12 = sld [smem:[#allocation3 + $0x487]] }
 0x148   : > { %1056 = vrot.lane.b32.xlu0 %v1053_v32, %s14405_s2  ;;  %v10108_v19 = vstv %s10016_s9  ;;  %14524 = vst [vmem:[#allocation137_spill] sm:$0xff] %v10110_v46  ;;  %v14525_v34 = vrot.slane %v9473_v13, 1  ;;  %v1711_v16 = vrot.slane %v1705_v7, 1  ;;  %v686_v35 = vrot.slane %v679_v15, 1  ;;  %14526 = vst [vmem:[#allocation138_spill] sm:$0xff] %v10117_v11  ;;  %s10528_s9 = sld [smem:[#allocation3 + $0x407]] }
 0x149   : > { %v1548_v26 = vsel %vm351_vm0, %v1546_v22, %v14523_v45  ;;  %v2035_v32 = vmul.f32 %v9965_v6, %v9508_v1  ;;  %v1181_v22 = vrot.slane %v1174_v31, 1  ;;  %v10122_v12 = vmul.f32 %v9724_v43, %v10097_v44  ;;  %v10125_v45 = vld [vmem:[%s8561_s23 + $0x70] sm:$0x3]  ;;  %v14578_v6 = vld [vmem:[#allocation34_spill] sm:$0xff] }
 0x14a   : > { %v1383_v48 = vsel %vm351_vm0, %v1381_v55, %v14525_v34  ;;  %v1009_v13 = vmul.f32 %v10125_v45, %v10097_v44  ;;  %1551 = vrot.lane.b32.xlu1 %v1548_v26, %s14405_s2  ;;  %v14527_v1 = vrot.slane %v9984_v28, 1  ;;  %v14529_v7 = vrot.slane %v10046_v57, 1 }
 0x14b   : > { %v14531_v31 = vrot.slane %v10053_v61, 1  ;;  %v10149_v21 = vmul.f32 %v9732_v42, %v10108_v19  ;;  %v14534_v26 = vrot.slane %v9500_v33, 1  ;;  %v2041_v11 = vrot.slane %v2035_v32, 1 }
 0x14c   : > { %v10135_v55 = vsel %vm351_vm0, %v14527_v1, %v521_v29  ;;  %v10140_v15 = vsel %vm351_vm0, %v14529_v7, %v355_v8  ;;  %1386 = vrot.lane.b32.xlu0 %v1383_v48, %s14405_s2  ;;  %v2206_v1 = vrot.slane %v2200_v20, 1  ;;  %v2530_v8 = vmul.f32 %v9973_v51, %v9558_v41  ;;  %v10174_v20 = vpop.permute.xlu0 %376  ;;  %v10301_v51 = vld [vmem:[%s8561_s23 + $0x100] sm:$0x3] }
 0x14d   : > { %14528 = vst [vmem:[#allocation139_spill] sm:$0xff] %v10135_v55  ;;  %14530 = vst [vmem:[#allocation140_spill] sm:$0xff] %v10140_v15  ;;  %v10145_v34 = vsel %vm351_vm0, %v14531_v31, %v851_v54  ;;  %v1878_v29 = vsel %vm351_vm0, %v1876_v10, %v14534_v26  ;;  %v10158_v7 = vstv %s10071_s7  ;;  %v10162_v54 = vpop.permute.xlu1 %542  ;;  %v14536_v31 = vrot.slane %v9517_v5, 1  ;;  %v10170_v10 = vld [vmem:[%s8561_s23 + $0xb8] sm:$0x3]  ;;  %s10551_s7 = sld [smem:[#allocation3 + $0x587]] }
 0x14e   : > { %14532 = vst [vmem:[#allocation141_spill] sm:$0xff] %v10145_v34  ;;  %14533 = vst [vmem:[#allocation142_spill] sm:$0xff] %v10149_v21  ;;  %v2365_v33 = vmul.f32 %v9987_v50, %v9567_v4  ;;  %v1504_v41 = vmul.f32 %v10170_v10, %v10108_v19  ;;  %v14539_v26 = vrot.slane %v10059_v0, 1  ;;  %v14541_v5 = vrot.slane %v10087_v3, 1  ;;  %1881 = vrot.lane.b32.xlu1 %v1878_v29, %s14405_s2  ;;  %v10249_v55 = vld [vmem:[%s8561_s23 + $0xd0] sm:$0x3] }
 0x14f   : > { %14535 = vst [vmem:[#allocation143_spill] sm:$0xff] %v10162_v54  ;;  %v1713_v48 = vsel %vm351_vm0, %v1711_v16, %v14536_v31  ;;  %14537 = vst [vmem:[#allocation144_spill] sm:$0xff] %v10170_v10  ;;  %v1016_v32 = vrot.slane %v1009_v13, 1  ;;  %v10194_v46 = vstv %s10091_s24  ;;  %v2536_v29 = vrot.slane %v2530_v8, 1  ;;  %v14565_v15 = vld [vmem:[#allocation45_spill] sm:$0xff]  ;;  %s10553_s24 = sld [smem:[#allocation3 + $0x507]] }
 0x150   : > { %14538 = vst [vmem:[#allocation145_spill] sm:$0xff] %v10174_v20  ;;  %v10179_v54 = vsel %vm351_vm0, %v14539_v26, %v686_v35  ;;  %v10184_v16 = vsel %vm351_vm0, %v14541_v5, %v1181_v22  ;;  %v10191_v20 = vmul.f32 %v9744_v56, %v10158_v7  ;;  %v10197_v35 = vstv %s10099_s27  ;;  %1716 = vrot.lane.b32.xlu0 %v1713_v48, %s14405_s2  ;;  %v10206_v26 = vld [vmem:[%s8561_s23 + $0xa0] sm:$0x3]  ;;  %v10219_v8 = vpop.permute.xlu0 %707  ;;  %s10610_s27 = sld [smem:[#allocation3 + $0x687]] }
 0x151   : > { %14540 = vst [vmem:[#allocation146_spill] sm:$0xff] %v10179_v54  ;;  %14542 = vst [vmem:[#allocation147_spill] sm:$0xff] %v10184_v16  ;;  %v14545_v22 = vrot.slane %v9536_v9, 1  ;;  %v1339_v5 = vmul.f32 %v10206_v26, %v10158_v7  ;;  %v2860_v31 = vmul.f32 %v10019_v40, %v9606_v62  ;;  %v10212_v4 = vpop.permute.xlu1 %872  ;;  %v14548_v16 = vrot.slane %v9542_v36, 1  ;;  %v10226_v62 = vld [vmem:[%s8561_s23 + $0xe8] sm:$0x3] }
 0x152   : > { %14543 = vst [vmem:[#allocation148_spill] sm:$0xff] %v10191_v20  ;;  %14544 = vst [vmem:[#allocation149_spill] sm:$0xff] %v10197_v35  ;;  %v2371_v9 = vrot.slane %v2365_v33, 1  ;;  %v1511_v54 = vrot.slane %v1504_v41, 1  ;;  %v14552_v36 = vld [vmem:[#allocation90_spill] sm:$0xff]  ;;  %v10235_v33 = vstv %s10129_s30  ;;  %v14555_v41 = vld [vmem:[#allocation29_spill] sm:$0xff] }
 0x153   : > { %v2208_v13 = vsel %vm351_vm0, %v2206_v1, %v14545_v22  ;;  %14546 = vst [vmem:[#allocation150_spill] sm:$0xff] %v10206_v26  ;;  %14547 = vst [vmem:[#allocation151_spill] sm:$0xff] %v10212_v4  ;;  %v2043_v48 = vsel %vm351_vm0, %v2041_v11, %v14548_v16  ;;  %v2695_v1 = vmul.f32 %v10034_v24, %v9617_v25  ;;  %v14556_v25 = vld [vmem:[#allocation30_spill] sm:$0xff]  ;;  %v2866_v40 = vrot.slane %v2860_v31, 1  ;;  %v10276_v31 = vld [vmem:[%s8561_s23 + $0x118] sm:$0x3] }
 0x154   : > { %14549 = vst [vmem:[#allocation152_spill] sm:$0xff] %v10219_v8  ;;  %v10223_v22 = vmul.f32 %v9787_v58, %v10194_v46  ;;  %14551 = vst [vmem:[#allocation154_spill] sm:$0xff] %v10226_v62  ;;  %v1834_v4 = vmul.f32 %v10226_v62, %v10194_v46  ;;  %v10232_v11 = vmul.f32 %v14552_v36, %v10197_v35  ;;  %2211 = vrot.lane.b32.xlu1 %v2208_v13, %s14405_s2  ;;  %s10625_s30 = sld [smem:[#allocation3 + $0x607]] }
 0x155   : > { %14554 = vst [vmem:[#allocation155_spill] sm:$0xff] %v10235_v33  ;;  %v10239_v16 = vadd.f32 %v14556_v25, %v14555_v41  ;;  %v14558_v8 = vrot.slane %v10122_v12, 1  ;;  %14560 = vst [vmem:[#allocation156_spill] sm:$0xff] %v10249_v55  ;;  %v1669_v24 = vmul.f32 %v10249_v55, %v10197_v35  ;;  %2046 = vrot.lane.b32.xlu0 %v2043_v48, %s14405_s2  ;;  %v14561_v41 = vld [vmem:[#allocation24_spill] sm:$0xff]  ;;  %v2701_v48 = vrot.slane %v2695_v1, 1  ;;  %v14584_v35 = vld [vmem:[#allocation59_spill] sm:$0xff] }
 0x156   : > { %14550 = vst [vmem:[#allocation153_spill] sm:$0xff] %v10223_v22  ;;  %14553 = vst [vmem:[#allocation90_spill] sm:$0xff] %v10232_v11  ;;  %v14562_v25 = vrot.slane %v14561_v41, 1  ;;  %v10273_v41 = vmul.f32 %v9803_v52, %v10235_v33  ;;  %v1841_v1 = vrot.slane %v1834_v4, 1  ;;  %v14574_v4 = vld [vmem:[#allocation51_spill] sm:$0xff] }
 0x157   : > { %14557 = vst [vmem:[#allocation29_spill] sm:$0xff] %v10239_v16  ;;  %v10245_v34 = vsel %vm351_vm0, %v14558_v8, %v1016_v32  ;;  %v1346_v16 = vrot.slane %v1339_v5, 1  ;;  %v10260_v32 = vstv %s10160_s10  ;;  %v10266_v8 = vpop.permute.xlu1 %1202  ;;  %v10284_v5 = vpop.permute.xlu0 %1037  ;;  %14572 = vst [vmem:[#allocation161_spill] sm:$0xff] %v10301_v51  ;;  %s10657_s10 = sld [smem:[#allocation3 + $0x787]] }
 0x158   : > { %14559 = vst [vmem:[#allocation30_spill] sm:$0xff] %v10245_v34  ;;  %v2538_v13 = vsel %vm351_vm0, %v2536_v29, %v14562_v25  ;;  %14563 = vst [vmem:[#allocation24_spill] sm:$0xff] %v10260_v32  ;;  %v14566_v34 = vrot.slane %v14565_v15, 1  ;;  %v2164_v29 = vmul.f32 %v10276_v31, %v10235_v33  ;;  %v14569_v15 = vrot.slane %v10149_v21, 1  ;;  %v14582_v33 = vld [vmem:[#allocation27_spill] sm:$0xff] }
 0x159   : > { %14564 = vst [vmem:[#allocation157_spill] sm:$0xff] %v10266_v8  ;;  %14567 = vst [vmem:[#allocation45_spill] sm:$0xff] %v10273_v41  ;;  %2541 = vrot.lane.b32.xlu1 %v2538_v13, %s14405_s2  ;;  %v1676_v8 = vrot.slane %v1669_v24, 1  ;;  %v14580_v24 = vrot.slane %v10191_v20, 1  ;;  %v14583_v21 = vrot.slane %v14582_v33, 1 }
 0x15a   : > { %v2373_v50 = vsel %vm351_vm0, %v2371_v9, %v14566_v34  ;;  %14568 = vst [vmem:[#allocation158_spill] sm:$0xff] %v10284_v5  ;;  %v10289_v34 = vsel %vm351_vm0, %v14569_v15, %v1511_v54  ;;  %v10298_v5 = vmul.f32 %v9814_v27, %v10260_v32  ;;  %v1999_v54 = vmul.f32 %v10301_v51, %v10260_v32  ;;  %v14575_v9 = vld [vmem:[#allocation32_spill] sm:$0xff]  ;;  %v10505_v20 = vld [vmem:[%s8561_s23 + $0x40] sm:$0x3] }
 0x15b   : > { %14570 = vst [vmem:[#allocation159_spill] sm:$0xff] %v10289_v34  ;;  %v10306_v15 = vstv %s10199_s29  ;;  %v10310_v25 = vadd.f32 %v14575_v9, %v14574_v4  ;;  %v14577_v34 = vld [vmem:[#allocation57_spill] sm:$0xff]  ;;  %2376 = vrot.lane.b32.xlu0 %v2373_v50, %s14405_s2  ;;  %v10320_v13 = vsel %vm351_vm0, %v14580_v24, %v1346_v16  ;;  %v2868_v32 = vsel %vm351_vm0, %v2866_v40, %v14583_v21  ;;  %v10330_v4 = vpop.permute.xlu1 %1532  ;;  %v14591_v21 = vld [vmem:[#allocation40_spill] sm:$0xff]  ;;  %s10675_s29 = sld [smem:[#allocation3 + $0x707]] }
 0x15c   : > { %14571 = vst [vmem:[#allocation160_spill] sm:$0xff] %v10298_v5  ;;  %14573 = vst [vmem:[#allocation162_spill] sm:$0xff] %v10306_v15  ;;  %v10314_v14 = vadd.f32 %v14578_v6, %v14577_v34  ;;  %v10328_v9 = vadd.f32 %v14585_v23, %v14584_v35  ;;  %v14588_v6 = vld [vmem:[#allocation50_spill] sm:$0xff]  ;;  %v2171_v24 = vrot.slane %v2164_v29, 1  ;;  %v14590_v40 = vld [vmem:[#allocation61_spill] sm:$0xff]  ;;  %v10356_v29 = vmul.f32 %v9581_v30, %v10306_v15 }
 0x15d   : > { %14576 = vst [vmem:[#allocation51_spill] sm:$0xff] %v10310_v25  ;;  %14581 = vst [vmem:[#allocation57_spill] sm:$0xff] %v10320_v13  ;;  %v14589_v34 = vrot.slane %v14588_v6, 1  ;;  %v10341_v33 = vadd.f32 %v14591_v21, %v14590_v40  ;;  %v14593_v23 = vld [vmem:[#allocation81_spill] sm:$0xff]  ;;  %v10347_v6 = vpop.permute.xlu0 %1367  ;;  %2871 = vrot.lane.b32.xlu1 %v2868_v32, %s14405_s2  ;;  %v14600_v40 = vrot.slane %v10232_v11, 1  ;;  %v14603_v16 = vstv %s9661_s26  ;;  %v14613_v25 = vld [vmem:[#allocation44_spill] sm:$0xff] }
 0x15e   : > { %14579 = vst [vmem:[#allocation32_spill] sm:$0xff] %v10314_v14  ;;  %14586 = vst [vmem:[#allocation34_spill] sm:$0xff] %v10328_v9  ;;  %v7381_v14 = vld [vmem:[%s8561_s23 + $0x180] sm:$0xff]  ;;  %v14594_v35 = vld [vmem:[#allocation41_spill] sm:$0xff]  ;;  %v2972_v13 = vstv %s10280_s1  ;;  %s10442_s26 = sld [smem:[#allocation3 + $0x387]]  ;;  %s11046_s1 = sld [smem:[#allocation3 + $0x8]] }
 0x15f   : > { %14587 = vst [vmem:[#allocation27_spill] sm:$0xff] %v10330_v4  ;;  %v2703_v50 = vsel %vm351_vm0, %v2701_v48, %v14589_v34  ;;  %14592 = vst [vmem:[#allocation59_spill] sm:$0xff] %v10341_v33  ;;  %v10345_v4 = vadd.f32 %v14594_v35, %v14593_v23  ;;  %v14597_v48 = vrot.slane %v10223_v22, 1  ;;  %v10364_v21 = vsel %vm351_vm0, %v14600_v40, %v1676_v8  ;;  %v14612_v33 = vld [vmem:[#allocation84_spill] sm:$0xff]  ;;  %v14631_v22 = vld [vmem:[#allocation91_spill] sm:$0xff] }
 0x160   : > { %14596 = vst [vmem:[#allocation50_spill] sm:$0xff] %v10347_v6  ;;  %14599 = vst [vmem:[#allocation40_spill] sm:$0xff] %v10356_v29  ;;  %v14602_v23 = vstv %s9645_s22  ;;  %2706 = vrot.lane.b32.xlu0 %v2703_v50, %s14405_s2  ;;  %v2959_v32 = vmul.f32 %v7381_v14, %v14603_v16  ;;  %v3137_v6 = vstv %s10262_s18  ;;  %v10381_v40 = vstv %s10264_s0  ;;  %s10450_s22 = sld [smem:[#allocation3 + $0x703]]  ;;  %s11024_s18 = sld [smem:[#allocation3 + $0x6]] }
 0x161   : > { %14595 = vst [vmem:[#allocation36_spill] sm:$0xff] %v10345_v4  ;;  %v10352_v34 = vsel %vm351_vm0, %v14597_v48, %v1841_v1  ;;  %14601 = vst [vmem:[#allocation81_spill] sm:$0xff] %v10364_v21  ;;  %v3124_v35 = vmul.f32 %v7394_v38, %v14602_v23  ;;  %v2006_v48 = vrot.slane %v1999_v54, 1  ;;  %v14605_v54 = vld [vmem:[#allocation82_spill] sm:$0xff]  ;;  %v14606_v23 = vld [vmem:[#allocation43_spill] sm:$0xff]  ;;  %v10389_v21 = vpop.permute.xlu1 %1862  ;;  %v14609_v50 = vrot.slane %v10273_v41, 1  ;;  %v10404_v11 = vpop.permute.xlu0 %1697 }
 0x162   : > { %14598 = vst [vmem:[#allocation61_spill] sm:$0xff] %v10352_v34  ;;  %v10376_v34 = vld [vmem:[%s8561_s23 + $0x148] sm:$0x3]  ;;  %v10387_v1 = vadd.f32 %v14606_v23, %v14605_v54  ;;  %14608 = vst [vmem:[#allocation43_spill] sm:$0xff] %v10389_v21  ;;  %v10398_v4 = vstv %s10253_s15  ;;  %v10402_v9 = vadd.f32 %v14613_v25, %v14612_v33  ;;  %v10408_v23 = vstv %s10282_s14  ;;  %s10952_s15 = sld [smem:[#allocation3 + $0x86]]  ;;  %s11038_s0 = sld [smem:[#allocation3 + $0x88]] }
 0x163   : > { %14604 = vst [vmem:[#allocation41_spill] sm:$0xff] %v10376_v34  ;;  %v2494_v8 = vmul.f32 %v10376_v34, %v10306_v15  ;;  %v10394_v16 = vsel %vm351_vm0, %v14609_v50, %v2171_v24  ;;  %14611 = vst [vmem:[#allocation164_spill] sm:$0xff] %v10398_v4  ;;  %v10411_v21 = vstv %s10293_s13  ;;  %3128 = vrot.lane.b32.xlu1 %v3124_v35, %s14485_s20  ;;  %v14617_v24 = vrot.slane %v10298_v5, 1  ;;  %v10425_v33 = vld [vmem:[%s8561_s23 + $0x28] sm:$0x3]  ;;  %s11098_s14 = sld [smem:[#allocation3 + $0x188]] }
 0x164   : > { %14607 = vst [vmem:[#allocation82_spill] sm:$0xff] %v10387_v1  ;;  %14610 = vst [vmem:[#allocation163_spill] sm:$0xff] %v10394_v16  ;;  %v3139_v16 = vmul.f32 %v9763_v39, %v3137_v6  ;;  %v10422_v25 = vmul.f32 %v9693_v53, %v10381_v40  ;;  %v590_v54 = vmul.f32 %v10425_v33, %v10381_v40  ;;  %2963 = vrot.lane.b32.xlu0 %v2959_v32, %s14485_s20  ;;  %v14621_v35 = vld [vmem:[#allocation87_spill] sm:$0xff]  ;;  %v10436_v39 = vld [vmem:[%s8561_s23 + $0x130] sm:$0x3]  ;;  %s11110_s13 = sld [smem:[#allocation3 + $0x186]] }
 0x165   : > { %14614 = vst [vmem:[#allocation84_spill] sm:$0xff] %v10402_v9  ;;  %14615 = vst [vmem:[#allocation44_spill] sm:$0xff] %v10404_v11  ;;  %v10417_v50 = vsel %vm351_vm0, %v14617_v24, %v2006_v48  ;;  %v2974_v11 = vmul.f32 %v14621_v35, %v2972_v13  ;;  %v2501_v9 = vrot.slane %v2494_v8, 1  ;;  %v14622_v48 = vld [vmem:[#allocation25_spill] sm:$0xff]  ;;  %v10440_v53 = vmul.f32 %v10436_v39, %v10398_v4  ;;  %v14626_v1 = vld [vmem:[#allocation46_spill] sm:$0xff]  ;;  %v10448_v32 = vpop.permute.xlu1 %2192 }
 0x166   : > { %14616 = vst [vmem:[#allocation165_spill] sm:$0xff] %v10408_v23  ;;  %14618 = vst [vmem:[#allocation166_spill] sm:$0xff] %v10417_v50  ;;  %v10433_v24 = vmul.f32 %v14622_v48, %v10398_v4  ;;  %v14625_v50 = vld [vmem:[#allocation89_spill] sm:$0xff]  ;;  %v10454_v8 = vmul.f32 %v9672_v63, %v10411_v21  ;;  %v10457_v35 = vld [vmem:[%s8561_s23 + $0x10] sm:$0x3]  ;;  %v10462_v41 = vstv %s10337_s16  ;;  %v10475_v15 = vstv %s10358_s17  ;;  %s11122_s16 = sld [smem:[#allocation3 + $0x108]] }
 0x167   : > { %14619 = vst [vmem:[#allocation167_spill] sm:$0xff] %v10422_v25  ;;  %14620 = vst [vmem:[#allocation168_spill] sm:$0xff] %v10425_v33  ;;  %v10446_v33 = vadd.f32 %v14626_v1, %v14625_v50  ;;  %v425_v5 = vmul.f32 %v10457_v35, %v10411_v21  ;;  %v14632_v1 = vld [vmem:[#allocation48_spill] sm:$0xff]  ;;  %v14635_v4 = vld [vmem:[#allocation47_spill] sm:$0xff]  ;;  %3144 = vrot.lane.b32.xlu1 %v3139_v16, %s14405_s2  ;;  %v10495_v16 = vstv %s10383_s8  ;;  %s11151_s17 = sld [smem:[#allocation3 + $0x288]]  ;;  %s11173_s8 = sld [smem:[#allocation3 + $0x106]] }
 0x168   : > { %14623 = vst [vmem:[#allocation87_spill] sm:$0xff] %v10433_v24  ;;  %14624 = vst [vmem:[#allocation25_spill] sm:$0xff] %v10436_v39  ;;  %v10466_v50 = vadd.f32 %v14632_v1, %v14631_v22  ;;  %v10472_v63 = vmul.f32 %v14635_v4, %v10408_v23  ;;  %v597_v22 = vrot.slane %v590_v54, 2  ;;  %v10482_v1 = vstv %s10369_s19  ;;  %2979 = vrot.lane.b32.xlu0 %v2974_v11, %s14405_s2  ;;  %s11167_s19 = sld [smem:[#allocation3 + $0x208]] }
 0x169   : > { %14627 = vst [vmem:[#allocation89_spill] sm:$0xff] %v10446_v33  ;;  %14628 = vst [vmem:[#allocation46_spill] sm:$0xff] %v10448_v32  ;;  %v10468_v32 = vpop.permute.xlu0 %2027  ;;  %v3138_v33 = vmul.f32 %v7394_v38, %v3137_v6  ;;  %v10487_v38 = vmul.f32 %v9685_v49, %v10462_v41  ;;  %v10490_v6 = vld [vmem:[%s8561_s23 + $0x58] sm:$0x3]  ;;  %v432_v54 = vrot.slane %v425_v5, 2  ;;  %v10502_v11 = vmul.f32 %v9664_v60, %v10475_v15 }
 0x16a   : > { %14629 = vst [vmem:[#allocation169_spill] sm:$0xff] %v10454_v8  ;;  %14630 = vst [vmem:[#allocation170_spill] sm:$0xff] %v10457_v35  ;;  %v2973_v35 = vmul.f32 %v7381_v14, %v2972_v13  ;;  %v10497_v14 = vpop.permute.xlu1 %2522  ;;  %v755_v49 = vmul.f32 %v10505_v20, %v10475_v15  ;;  %v10521_v60 = vmul.f32 %v9710_v18, %v10482_v1  ;;  %v10524_v13 = vld [vmem:[%s8561_s23 + $0x88] sm:$0x3] }
 0x16b   : > { %14633 = vst [vmem:[#allocation91_spill] sm:$0xff] %v10466_v50  ;;  %14634 = vst [vmem:[#allocation48_spill] sm:$0xff] %v10468_v32  ;;  %v920_v32 = vmul.f32 %v10490_v6, %v10462_v41  ;;  %v14643_v50 = vrot.slane %v10356_v29, 1  ;;  %3142 = vrot.lane.b32.xlu1 %v3138_v33, %s14405_s2  ;;  %v10539_v18 = vmul.f32 %v9724_v43, %v10495_v16  ;;  %v10549_v29 = vstv %s10442_s26  ;;  %s11183_s26 = sld [smem:[#allocation3 + $0x388]] }
 0x16c   : > { %14636 = vst [vmem:[#allocation47_spill] sm:$0xff] %v10472_v63  ;;  %14637 = vst [vmem:[#allocation171_spill] sm:$0xff] %v10482_v1  ;;  %2977 = vrot.lane.b32.xlu0 %v2973_v35, %s14405_s2 }
 0x16d   : > { %14638 = vst [vmem:[#allocation172_spill] sm:$0xff] %v10490_v6  ;;  %14639 = vst [vmem:[#allocation173_spill] sm:$0xff] %v10495_v16  ;;  %v10514_v6 = vsel %vm351_vm0, %v14643_v50, %v2501_v9  ;;  %v10517_v5 = vpop.permute.xlu0 %2357  ;;  %v2336_v9 = vrot.slane %v10440_v53, 1  ;;  %v10533_v50 = vld [vmem:[%s8561_s23 + $0x178] sm:$0x3] }
 0x16e   : > { %14640 = vst [vmem:[#allocation174_spill] sm:$0xff] %v10497_v14  ;;  %14641 = vst [vmem:[#allocation175_spill] sm:$0xff] %v10502_v11  ;;  %v2824_v14 = vmul.f32 %v10533_v50, %v10408_v23  ;;  %v10555_v43 = vpop.permute.xlu1 %2852  ;;  %v10558_v23 = vstv %s10450_s22  ;;  %s11199_s22 = sld [smem:[#allocation3 + $0x308]] }
 0x16f   : > { %14642 = vst [vmem:[#allocation176_spill] sm:$0xff] %v10505_v20  ;;  %14644 = vst [vmem:[#allocation177_spill] sm:$0xff] %v10514_v6  ;;  %v1250_v20 = vmul.f32 %v10524_v13, %v10482_v1  ;;  %v14648_v6 = vrot.slane %v10422_v25, 2  ;;  %v10569_v25 = vstv %s10477_s21  ;;  %s11235_s21 = sld [smem:[#allocation3 + $0x488]] }
 0x170   : > { %14645 = vst [vmem:[#allocation178_spill] sm:$0xff] %v10517_v5  ;;  %14646 = vst [vmem:[#allocation179_spill] sm:$0xff] %v10524_v13  ;;  %v1085_v5 = vmul.f32 %v10125_v45, %v10495_v16  ;;  %v927_v13 = vrot.slane %v920_v32, 2  ;;  %v14650_v45 = vrot.slane %v10454_v8, 2 }
 0x171   : > { %14647 = vst [vmem:[#allocation180_spill] sm:$0xff] %v10533_v50  ;;  %v598_v53 = vsel %vm411_vm1, %v14648_v6, %v597_v22  ;;  %14649 = vst [vmem:[#allocation181_spill] sm:$0xff] %v10555_v43  ;;  %v762_v22 = vrot.slane %v755_v49, 2  ;;  %v10565_v32 = vpop.permute.xlu0 %2687  ;;  %v1257_v1 = vrot.slane %v1250_v20, 2  ;;  %v1580_v49 = vmul.f32 %v10170_v10, %v10549_v29  ;;  %v14655_v6 = vld [vmem:[#allocation28_spill] sm:$0xff] }
 0x172   : > { %v433_v35 = vsel %vm411_vm1, %v14650_v45, %v432_v54  ;;  %14651 = vst [vmem:[#allocation182_spill] sm:$0xff] %v10565_v32  ;;  %14652 = vst [vmem:[#allocation183_spill] sm:$0xff] %v10569_v25  ;;  %601 = vrot.lane.b32.xlu1 %v598_v53, %s14485_s20  ;;  %v1092_v8 = vrot.slane %v1085_v5, 2  ;;  %v10575_v54 = vmul.f32 %v9732_v42, %v10549_v29  ;;  %v14653_v45 = vrot.slane %v10433_v24, 1  ;;  %v14656_v5 = vld [vmem:[#allocation114_spill] sm:$0xff]  ;;  %v14657_v53 = vld [vmem:[#allocation85_spill] sm:$0xff]  ;;  %v10596_v32 = vpop.permute.xlu1 %540 }
 0x173   : > { %v10586_v33 = vmul.f32 %v14655_v6, %v10558_v23  ;;  %436 = vrot.lane.b32.xlu0 %v433_v35, %s14485_s20  ;;  %v10591_v43 = vmul.f32 %v14657_v53, %v14656_v5  ;;  %v14658_v42 = vrot.slane %v10487_v38, 2  ;;  %14659 = vst [vmem:[#allocation28_spill] sm:$0xff] %v10596_v32  ;;  %v14660_v10 = vrot.slane %v10502_v11, 2  ;;  %v14661_v5 = vld [vmem:[#allocation92_spill] sm:$0xff]  ;;  %v14664_v32 = vld [vmem:[#allocation94_spill] sm:$0xff]  ;;  %v14665_v24 = vld [vmem:[#allocation53_spill] sm:$0xff] }
 0x174   : > { %v10582_v20 = vsel %vm351_vm0, %v14653_v45, %v2336_v9  ;;  %v10603_v45 = vmul.f32 %v9744_v56, %v10569_v25  ;;  %v1415_v35 = vmul.f32 %v10206_v26, %v10569_v25  ;;  %v10623_v11 = vstv %s10528_s9  ;;  %s11309_s9 = sld [smem:[#allocation3 + $0x588]] }
 0x175   : > { %14654 = vst [vmem:[#allocation184_spill] sm:$0xff] %v10582_v20  ;;  %v928_v16 = vsel %vm411_vm1, %v14658_v42, %v927_v13  ;;  %v763_v9 = vsel %vm411_vm1, %v14660_v10, %v762_v22  ;;  %v10608_v20 = vstv %s10509_s12  ;;  %v14662_v13 = vld [vmem:[#allocation52_spill] sm:$0xff]  ;;  %v10618_v10 = vadd.f32 %v14665_v24, %v14664_v32  ;;  %v10620_v56 = vpop.permute.xlu0 %374  ;;  %s11261_s12 = sld [smem:[#allocation3 + $0x408]] }
 0x176   : > { %v10614_v42 = vadd.f32 %v14662_v13, %v14661_v5  ;;  %v2831_v22 = vrot.slane %v2824_v14, 1  ;;  %14667 = vst [vmem:[#allocation92_spill] sm:$0xff] %v10620_v56  ;;  %931 = vrot.lane.b32.xlu1 %v928_v16, %s14485_s20  ;;  %v14668_v26 = vrot.slane %v10521_v60, 2  ;;  %v14669_v5 = vrot.slane %v10539_v18, 2 }
 0x177   : > { %14666 = vst [vmem:[#allocation85_spill] sm:$0xff] %v10618_v10  ;;  %v1587_v14 = vrot.slane %v1580_v49, 2  ;;  %766 = vrot.lane.b32.xlu0 %v763_v9, %s14485_s20  ;;  %v10638_v32 = vmul.f32 %v9787_v58, %v10608_v20  ;;  %v1910_v16 = vmul.f32 %v10226_v62, %v10608_v20  ;;  %v10643_v56 = vstv %s10551_s7  ;;  %v10665_v10 = vld [vmem:[%s8561_s23 + $0x160] sm:$0x3]  ;;  %s11322_s7 = sld [smem:[#allocation3 + $0x508]] }
 0x178   : > { %14663 = vst [vmem:[#allocation114_spill] sm:$0xff] %v10614_v42  ;;  %v1258_v25 = vsel %vm411_vm1, %v14668_v26, %v1257_v1  ;;  %v1093_v13 = vsel %vm411_vm1, %v14669_v5, %v1092_v8  ;;  %14670 = vst [vmem:[#allocation52_spill] sm:$0xff] %v10643_v56  ;;  %v10646_v26 = vstv %s10553_s24  ;;  %v10648_v1 = vpop.permute.xlu1 %870  ;;  %v1422_v5 = vrot.slane %v1415_v35, 2  ;;  %v14678_v35 = vld [vmem:[#allocation88_spill] sm:$0xff]  ;;  %s11330_s24 = sld [smem:[#allocation3 + $0x286]] }
 0x179   : > { %14671 = vst [vmem:[#allocation94_spill] sm:$0xff] %v10646_v26  ;;  %14672 = vst [vmem:[#allocation53_spill] sm:$0xff] %v10648_v1  ;;  %v10653_v49 = vmul.f32 %v14552_v36, %v10623_v11  ;;  %v1745_v58 = vmul.f32 %v10249_v55, %v10623_v11  ;;  %v14674_v9 = vrot.slane %v10472_v63, 1  ;;  %v10669_v8 = vmul.f32 %v10665_v10, %v10558_v23  ;;  %v10673_v1 = vpop.permute.xlu0 %705 }
 0x17a   : > { %14676 = vst [vmem:[#allocation187_spill] sm:$0xff] %v10665_v10  ;;  %v518_v36 = vrot.slane %v10591_v43, 1  ;;  %14677 = vst [vmem:[#allocation188_spill] sm:$0xff] %v10673_v1  ;;  %1261 = vrot.lane.b32.xlu1 %v1258_v25, %s14485_s20  ;;  %v2075_v43 = vmul.f32 %v10301_v51, %v10646_v26  ;;  %v345_v1 = vmul.f32 %v14678_v35, %v10000_v2  ;;  %v14679_v25 = vrot.slane %v10575_v54, 2 }
 0x17b   : > { %14673 = vst [vmem:[#allocation185_spill] sm:$0xff] %v10653_v49  ;;  %v10662_v24 = vsel %vm351_vm0, %v14674_v9, %v2831_v22  ;;  %v10680_v22 = vmul.f32 %v9803_v52, %v10643_v56  ;;  %v2240_v9 = vmul.f32 %v10276_v31, %v10643_v56  ;;  %1096 = vrot.lane.b32.xlu0 %v1093_v13, %s14485_s20  ;;  %v1917_v31 = vrot.slane %v1910_v16, 2  ;;  %v14682_v13 = vld [vmem:[#allocation98_spill] sm:$0xff] }
 0x17c   : > { %14675 = vst [vmem:[#allocation186_spill] sm:$0xff] %v10662_v24  ;;  %v10686_v24 = vmul.f32 %v9814_v27, %v10646_v26  ;;  %v1588_v52 = vsel %vm411_vm1, %v14679_v25, %v1587_v14  ;;  %v10697_v42 = vpop.permute.xlu1 %1200  ;;  %v14681_v27 = vrot.slane %v10603_v45, 2  ;;  %v1752_v63 = vrot.slane %v1745_v58, 2  ;;  %v14683_v14 = vld [vmem:[#allocation102_spill] sm:$0xff] }
 0x17d   : > { %14680 = vst [vmem:[#allocation88_spill] sm:$0xff] %v10697_v42  ;;  %v10704_v26 = vstv %s10610_s27  ;;  %v2666_v2 = vrot.slane %v10669_v8, 1  ;;  %v842_v56 = vmul.f32 %v14682_v13, %v10003_v37  ;;  %v677_v25 = vmul.f32 %v14683_v14, %v10014_v17  ;;  %v10711_v16 = vpop.permute.xlu0 %1035  ;;  %v14694_v42 = vld [vmem:[#allocation109_spill] sm:$0xff]  ;;  %s11355_s27 = sld [smem:[#allocation3 + $0x688]] }
 0x17e   : > { %v1423_v62 = vsel %vm411_vm1, %v14681_v27, %v1422_v5  ;;  %14684 = vst [vmem:[#allocation98_spill] sm:$0xff] %v10711_v16  ;;  %v10714_v55 = vstv %s10625_s30  ;;  %1591 = vrot.lane.b32.xlu1 %v1588_v52, %s14485_s20  ;;  %v2247_v58 = vrot.slane %v2240_v9, 2  ;;  %v2082_v8 = vrot.slane %v2075_v43, 2  ;;  %v14693_v5 = vld [vmem:[#allocation106_spill] sm:$0xff]  ;;  %s11357_s30 = sld [smem:[#allocation3 + $0x608]] }
 0x17f   : > { %v14685_v51 = vrot.slane %v9984_v28, 1  ;;  %1426 = vrot.lane.b32.xlu0 %v1423_v62, %s14485_s20  ;;  %v14687_v17 = vrot.slane %v10638_v32, 2  ;;  %v10730_v52 = vmul.f32 %v9581_v30, %v10704_v26  ;;  %v2570_v9 = vmul.f32 %v10376_v34, %v10704_v26  ;;  %v14690_v30 = vld [vmem:[#allocation95_spill] sm:$0xff]  ;;  %v14698_v34 = vld [vmem:[#allocation56_spill] sm:$0xff] }
 0x180   : > { %v10734_v27 = vpop.permute.xlu1 %1530  ;;  %v14689_v28 = vrot.slane %v10653_v49, 2  ;;  %v10741_v62 = vmul.f32 %v14622_v48, %v10714_v55  ;;  %v10746_v43 = vstv %s10657_s10  ;;  %v14697_v48 = vld [vmem:[#allocation96_spill] sm:$0xff]  ;;  %s11416_s10 = sld [smem:[#allocation3 + $0x788]] }
 0x181   : > { %v10722_v37 = vsel %vm351_vm0, %v518_v36, %v14685_v51  ;;  %v1918_v16 = vsel %vm411_vm1, %v14687_v17, %v1917_v31  ;;  %14688 = vst [vmem:[#allocation189_spill] sm:$0xff] %v10734_v27  ;;  %v2405_v36 = vmul.f32 %v10436_v39, %v10714_v55  ;;  %v14691_v31 = vld [vmem:[#allocation54_spill] sm:$0xff]  ;;  %v1172_v27 = vmul.f32 %v14693_v5, %v10062_v47 }
 0x182   : > { %14686 = vst [vmem:[#allocation102_spill] sm:$0xff] %v10722_v37  ;;  %v1753_v51 = vsel %vm411_vm1, %v14689_v28, %v1752_v63  ;;  %v10750_v17 = vadd.f32 %v14691_v31, %v14690_v30  ;;  %v1007_v37 = vmul.f32 %v14694_v42, %v10097_v44  ;;  %v10756_v63 = vpop.permute.xlu0 %1365  ;;  %v10759_v28 = vstv %s10675_s29  ;;  %1921 = vrot.lane.b32.xlu1 %v1918_v16, %s14485_s20  ;;  %s11425_s29 = sld [smem:[#allocation3 + $0x708]] }
 0x183   : > { %14695 = vst [vmem:[#allocation54_spill] sm:$0xff] %v10756_v63  ;;  %14696 = vst [vmem:[#allocation106_spill] sm:$0xff] %v10759_v28  ;;  %v10763_v49 = vadd.f32 %v14698_v34, %v14697_v48  ;;  %v352_v39 = vrot.slane %v345_v1, 1  ;;  %v14700_v30 = vrot.slane %v10680_v22, 2  ;;  %v14701_v47 = vrot.slane %v10686_v24, 2  ;;  %1756 = vrot.lane.b32.xlu0 %v1753_v51, %s14485_s20 }
 0x184   : > { %14692 = vst [vmem:[#allocation95_spill] sm:$0xff] %v10750_v17  ;;  %v2577_v63 = vrot.slane %v2570_v9, 2  ;;  %v10776_v34 = vmul.f32 %v14635_v4, %v10746_v43  ;;  %v2900_v1 = vmul.f32 %v10533_v50, %v10746_v43  ;;  %v10780_v16 = vpop.permute.xlu1 %1860  ;;  %v2412_v48 = vrot.slane %v2405_v36, 2  ;;  %v14703_v9 = vld [vmem:[#allocation97_spill] sm:$0xff] }
 0x185   : > { %14699 = vst [vmem:[#allocation109_spill] sm:$0xff] %v10763_v49  ;;  %v2248_v31 = vsel %vm411_vm1, %v14700_v30, %v2247_v58  ;;  %v2083_v17 = vsel %vm411_vm1, %v14701_v47, %v2082_v8  ;;  %14702 = vst [vmem:[#allocation96_spill] sm:$0xff] %v10780_v16  ;;  %v10785_v8 = vmul.f32 %v14655_v6, %v10759_v28  ;;  %v14704_v30 = vld [vmem:[#allocation58_spill] sm:$0xff]  ;;  %v14705_v4 = vrot.slane %v10586_v33, 1 }
 0x186   : > { %v2735_v51 = vmul.f32 %v10665_v10, %v10759_v28  ;;  %v10791_v47 = vadd.f32 %v14704_v30, %v14703_v9  ;;  %v848_v16 = vrot.slane %v842_v56, 1  ;;  %v683_v50 = vrot.slane %v677_v25, 1  ;;  %v10798_v58 = vpop.permute.xlu0 %1695  ;;  %v14708_v10 = vld [vmem:[#allocation111_spill] sm:$0xff]  ;;  %2251 = vrot.lane.b32.xlu1 %v2248_v31, %s14485_s20  ;;  %v14720_v31 = vld [vmem:[#allocation62_spill] sm:$0xff] }
 0x187   : > { %v10796_v44 = vsel %vm351_vm0, %v14705_v4, %v2666_v2  ;;  %14706 = vst [vmem:[#allocation56_spill] sm:$0xff] %v10798_v58  ;;  %v14707_v36 = vrot.slane %v10046_v57, 1  ;;  %v1178_v49 = vrot.slane %v1172_v27, 1  ;;  %v1502_v28 = vmul.f32 %v14708_v10, %v10108_v19  ;;  %2086 = vrot.lane.b32.xlu0 %v2083_v17, %s14485_s20  ;;  %v14712_v4 = vld [vmem:[#allocation99_spill] sm:$0xff]  ;;  %v14724_v57 = vld [vmem:[#allocation64_spill] sm:$0xff]  ;;  %v14754_v58 = vld [vmem:[#allocation122_spill] sm:$0xff] }
 0x188   : > { %v1337_v9 = vmul.f32 %v9914_v59, %v10158_v7  ;;  %v14709_v56 = vrot.slane %v10730_v52, 2  ;;  %v2907_v25 = vrot.slane %v2900_v1, 2  ;;  %v10817_v27 = vpop.permute.xlu1 %2190  ;;  %v14711_v19 = vrot.slane %v10741_v62, 2 }
 0x189   : > { %v10803_v6 = vsel %vm351_vm0, %v352_v39, %v14707_v36  ;;  %v588_v39 = vmul.f32 %v14657_v53, %v10381_v40  ;;  %14710 = vst [vmem:[#allocation97_spill] sm:$0xff] %v10817_v27  ;;  %v2742_v30 = vrot.slane %v2735_v51, 2  ;;  %v423_v17 = vmul.f32 %v14678_v35, %v10411_v21  ;;  %v14719_v51 = vld [vmem:[#allocation100_spill] sm:$0xff]  ;;  %v14721_v35 = vld [vmem:[#allocation103_spill] sm:$0xff] }
 0x18a   : > { %v2578_v2 = vsel %vm411_vm1, %v14709_v56, %v2577_v63  ;;  %v2413_v7 = vsel %vm411_vm1, %v14711_v19, %v2412_v48  ;;  %v14713_v63 = vld [vmem:[#allocation60_spill] sm:$0xff]  ;;  %v14714_v1 = vrot.slane %v10053_v61, 1  ;;  %v14716_v53 = vrot.slane %v10059_v0, 1  ;;  %v10839_v19 = vpop.permute.xlu0 %2025 }
 0x18b   : > { %v10827_v36 = vadd.f32 %v14713_v63, %v14712_v4  ;;  %v1013_v48 = vrot.slane %v1007_v37, 1  ;;  %14718 = vst [vmem:[#allocation99_spill] sm:$0xff] %v10839_v19  ;;  %v10843_v21 = vadd.f32 %v14720_v31, %v14719_v51  ;;  %v14722_v4 = vld [vmem:[#allocation63_spill] sm:$0xff]  ;;  %v14723_v61 = vld [vmem:[#allocation104_spill] sm:$0xff]  ;;  %2581 = vrot.lane.b32.xlu1 %v2578_v2, %s14485_s20  ;;  %v1343_v0 = vrot.slane %v1337_v9, 1  ;;  %2416 = vrot.lane.b32.xlu0 %v2413_v7, %s14485_s20 }
 0x18c   : > { %v10832_v40 = vsel %vm351_vm0, %v848_v16, %v14714_v1  ;;  %v10837_v56 = vsel %vm351_vm0, %v683_v50, %v14716_v53  ;;  %v10847_v63 = vadd.f32 %v14722_v4, %v14721_v35  ;;  %v10851_v16 = vadd.f32 %v14724_v57, %v14723_v61  ;;  %v10865_v57 = vpop.permute.xlu1 %2520  ;;  %v14735_v61 = vld [vmem:[#allocation149_spill] sm:$0xff] }
 0x18d   : > { %14715 = vst [vmem:[#allocation58_spill] sm:$0xff] %v10832_v40  ;;  %14717 = vst [vmem:[#allocation111_spill] sm:$0xff] %v10837_v56  ;;  %v1508_v1 = vrot.slane %v1502_v28, 1  ;;  %v14725_v50 = vrot.slane %v10776_v34, 2  ;;  %v594_v31 = vrot.slane %v588_v39, 2  ;;  %v918_v53 = vmul.f32 %v14682_v13, %v10462_v41  ;;  %v14731_v39 = vld [vmem:[#allocation65_spill] sm:$0xff] }
 0x18e   : > { %v14726_v51 = vrot.slane %v10087_v3, 1  ;;  %14728 = vst [vmem:[#allocation100_spill] sm:$0xff] %v10865_v57  ;;  %v14729_v28 = vrot.slane %v10785_v8, 2  ;;  %v429_v2 = vrot.slane %v423_v17, 2  ;;  %v753_v7 = vmul.f32 %v14683_v14, %v10475_v15  ;;  %v14738_v17 = vld [vmem:[#allocation107_spill] sm:$0xff]  ;;  %v14740_v14 = vld [vmem:[#allocation110_spill] sm:$0xff] }
 0x18f   : > { %v2908_v37 = vsel %vm411_vm1, %v14725_v50, %v2907_v25  ;;  %v14730_v25 = vld [vmem:[#allocation105_spill] sm:$0xff]  ;;  %v14732_v41 = vrot.slane %v10122_v12, 1  ;;  %v14742_v12 = vld [vmem:[#allocation142_spill] sm:$0xff]  ;;  %v14770_v40 = vld [vmem:[#allocation127_spill] sm:$0xff] }
 0x190   : > { %v10863_v35 = vsel %vm351_vm0, %v1178_v49, %v14726_v51  ;;  %v2743_v9 = vsel %vm411_vm1, %v14729_v28, %v2742_v30  ;;  %v10874_v4 = vadd.f32 %v14731_v39, %v14730_v25  ;;  %v14734_v49 = vld [vmem:[#allocation115_spill] sm:$0xff]  ;;  %v14736_v50 = vld [vmem:[#allocation117_spill] sm:$0xff]  ;;  %v10885_v30 = vpop.permute.xlu0 %2355  ;;  %v14739_v28 = vld [vmem:[#allocation66_spill] sm:$0xff]  ;;  %v14743_v57 = vrot.slane %v14742_v12, 1  ;;  %2911 = vrot.lane.b32.xlu1 %v2908_v37, %s14485_s20 }
 0x191   : > { %14727 = vst [vmem:[#allocation60_spill] sm:$0xff] %v10863_v35  ;;  %v10879_v3 = vsel %vm351_vm0, %v1013_v48, %v14732_v41  ;;  %v1832_v13 = vmul.f32 %v14734_v49, %v10194_v46  ;;  %v1667_v51 = vmul.f32 %v14736_v50, %v14735_v61  ;;  %14737 = vst [vmem:[#allocation103_spill] sm:$0xff] %v10885_v30  ;;  %v14741_v25 = vld [vmem:[#allocation67_spill] sm:$0xff]  ;;  %v14746_v46 = vld [vmem:[#allocation120_spill] sm:$0xff]  ;;  %2746 = vrot.lane.b32.xlu0 %v2743_v9, %s14485_s20 }
 0x192   : > { %14733 = vst [vmem:[#allocation62_spill] sm:$0xff] %v10879_v3  ;;  %v10889_v15 = vadd.f32 %v14739_v28, %v14738_v17  ;;  %v10893_v39 = vadd.f32 %v14741_v25, %v14740_v14  ;;  %v10898_v48 = vsel %vm351_vm0, %v1508_v1, %v14743_v57  ;;  %v14745_v41 = vld [vmem:[#allocation155_spill] sm:$0xff]  ;;  %v14747_v61 = vld [vmem:[#allocation148_spill] sm:$0xff]  ;;  %v924_v25 = vrot.slane %v918_v53, 2  ;;  %v14756_v37 = vld [vmem:[#allocation169_spill] sm:$0xff] }
 0x193   : > { %14744 = vst [vmem:[#allocation63_spill] sm:$0xff] %v10898_v48  ;;  %v2162_v19 = vmul.f32 %v14746_v46, %v14745_v41  ;;  %v14748_v30 = vrot.slane %v14747_v61, 1  ;;  %v14750_v17 = vld [vmem:[#allocation167_spill] sm:$0xff]  ;;  %v14753_v57 = vld [vmem:[#allocation24_spill] sm:$0xff]  ;;  %v10916_v48 = vpop.permute.xlu1 %2850  ;;  %v14757_v61 = vrot.slane %v14756_v37, 2  ;;  %v1838_v53 = vrot.slane %v1832_v13, 1 }
 0x194   : > { %v14751_v28 = vrot.slane %v14750_v17, 2  ;;  %v14752_v12 = vld [vmem:[#allocation171_spill] sm:$0xff]  ;;  %v1997_v41 = vmul.f32 %v14754_v58, %v14753_v57  ;;  %14755 = vst [vmem:[#allocation64_spill] sm:$0xff] %v10916_v48  ;;  %v14759_v17 = vld [vmem:[#allocation112_spill] sm:$0xff]  ;;  %v10929_v57 = vpop.permute.xlu0 %2685  ;;  %v14764_v48 = vld [vmem:[#allocation113_spill] sm:$0xff] }
 0x195   : > { %v10906_v27 = vsel %vm351_vm0, %v1343_v0, %v14748_v30  ;;  %v1248_v1 = vmul.f32 %v14693_v5, %v14752_v12  ;;  %v431_v0 = vsel %vm411_vm1, %v429_v2, %v14757_v61  ;;  %v759_v30 = vrot.slane %v753_v7, 2  ;;  %v14760_v3 = vld [vmem:[#allocation68_spill] sm:$0xff]  ;;  %v14761_v5 = vld [vmem:[#allocation162_spill] sm:$0xff]  ;;  %14763 = vst [vmem:[#allocation105_spill] sm:$0xff] %v10929_v57  ;;  %v14765_v56 = vld [vmem:[#allocation69_spill] sm:$0xff] }
 0x196   : > { %14749 = vst [vmem:[#allocation104_spill] sm:$0xff] %v10906_v27  ;;  %v596_v14 = vsel %vm411_vm1, %v594_v31, %v14751_v28  ;;  %v14758_v27 = vld [vmem:[#allocation173_spill] sm:$0xff]  ;;  %v10925_v31 = vadd.f32 %v14760_v3, %v14759_v17  ;;  %v1673_v28 = vrot.slane %v1667_v51, 1  ;;  %v14762_v12 = vld [vmem:[#allocation124_spill] sm:$0xff]  ;;  %v10933_v37 = vadd.f32 %v14765_v56, %v14764_v48  ;;  %v14767_v7 = vld [vmem:[#allocation70_spill] sm:$0xff]  ;;  %434 = vrot.lane.b32.xlu0 %v431_v0, %s14485_s20 }
 0x197   : > { %v1083_v9 = vmul.f32 %v14694_v42, %v14758_v27  ;;  %v2492_v35 = vmul.f32 %v14762_v12, %v14761_v5  ;;  %v14766_v2 = vld [vmem:[#allocation116_spill] sm:$0xff]  ;;  %v2168_v42 = vrot.slane %v2162_v19, 1  ;;  %599 = vrot.lane.b32.xlu1 %v596_v14, %s14485_s20  ;;  %v14771_v13 = vld [vmem:[#allocation118_spill] sm:$0xff]  ;;  %v14772_v51 = vld [vmem:[#allocation71_spill] sm:$0xff]  ;;  %v14774_v5 = vrot.slane %v10487_v38, 2 }
 0x198   : > { %v10937_v61 = vadd.f32 %v14767_v7, %v14766_v2  ;;  %v14769_v27 = vld [vmem:[#allocation164_spill] sm:$0xff]  ;;  %v10944_v17 = vadd.f32 %v14772_v51, %v14771_v13  ;;  %v1254_v48 = vrot.slane %v1248_v1, 2  ;;  %v1578_v2 = vmul.f32 %v14708_v10, %v10549_v29  ;;  %v10954_v7 = vpop.permute.xlu1 %563  ;;  %v14776_v14 = vld [vmem:[#allocation175_spill] sm:$0xff]  ;;  %v14779_v38 = vld [vmem:[#allocation153_spill] sm:$0xff] }
 0x199   : > { %v2327_v3 = vmul.f32 %v14770_v40, %v14769_v27  ;;  %v926_v56 = vsel %vm411_vm1, %v924_v25, %v14774_v5  ;;  %v2003_v19 = vrot.slane %v1997_v41, 1  ;;  %14775 = vst [vmem:[#allocation149_spill] sm:$0xff] %v10954_v7  ;;  %v14777_v27 = vrot.slane %v14776_v14, 2  ;;  %v14778_v57 = vld [vmem:[#allocation183_spill] sm:$0xff]  ;;  %v14781_v1 = vld [vmem:[#allocation90_spill] sm:$0xff]  ;;  %v14783_v5 = vld [vmem:[#allocation165_spill] sm:$0xff] }
 0x19a   : > { %14768 = vst [vmem:[#allocation65_spill] sm:$0xff] %v10937_v61  ;;  %14773 = vst [vmem:[#allocation115_spill] sm:$0xff] %v10944_v17  ;;  %v1089_v51 = vrot.slane %v1083_v9, 2  ;;  %v1413_v0 = vmul.f32 %v9914_v59, %v14778_v57  ;;  %v14780_v17 = vrot.slane %v14779_v38, 1  ;;  %v14782_v29 = vrot.slane %v14781_v1, 1  ;;  %v14784_v7 = vld [vmem:[#allocation129_spill] sm:$0xff]  ;;  %v10973_v61 = vpop.permute.xlu0 %397 }
 0x19b   : > { %v761_v13 = vsel %vm411_vm1, %v759_v30, %v14777_v27  ;;  %v2498_v41 = vrot.slane %v2492_v35, 1  ;;  %v2822_v14 = vmul.f32 %v14784_v7, %v14783_v5  ;;  %14785 = vst [vmem:[#allocation117_spill] sm:$0xff] %v10973_v61  ;;  %v14786_v30 = vld [vmem:[#allocation121_spill] sm:$0xff]  ;;  %v14787_v9 = vld [vmem:[#allocation72_spill] sm:$0xff]  ;;  %929 = vrot.lane.b32.xlu1 %v926_v56, %s14485_s20  ;;  %v14791_v35 = vld [vmem:[#allocation123_spill] sm:$0xff]  ;;  %v14793_v5 = vrot.slane %v10521_v60, 2 }
 0x19c   : > { %v10964_v25 = vsel %vm351_vm0, %v1838_v53, %v14780_v17  ;;  %v10969_v10 = vsel %vm351_vm0, %v1673_v28, %v14782_v29  ;;  %v10977_v27 = vadd.f32 %v14787_v9, %v14786_v30  ;;  %v14788_v59 = vld [vmem:[#allocation45_spill] sm:$0xff]  ;;  %v2333_v17 = vrot.slane %v2327_v3, 1  ;;  %v14790_v38 = vld [vmem:[#allocation132_spill] sm:$0xff]  ;;  %764 = vrot.lane.b32.xlu0 %v761_v13, %s14485_s20  ;;  %v11002_v56 = vpop.permute.xlu1 %893 }
 0x19d   : > { %v14789_v57 = vrot.slane %v14788_v59, 1  ;;  %v2657_v28 = vmul.f32 %v14790_v38, %v10558_v23  ;;  %v14792_v1 = vld [vmem:[#allocation73_spill] sm:$0xff]  ;;  %v1256_v30 = vsel %vm411_vm1, %v1254_v48, %v14793_v5  ;;  %v1584_v9 = vrot.slane %v1578_v2, 2  ;;  %v14794_v3 = vld [vmem:[#allocation160_spill] sm:$0xff]  ;;  %14797 = vst [vmem:[#allocation66_spill] sm:$0xff] %v11002_v56  ;;  %v14800_v2 = vld [vmem:[#allocation74_spill] sm:$0xff] }
 0x19e   : > { %v10989_v29 = vadd.f32 %v14792_v1, %v14791_v35  ;;  %v14795_v59 = vrot.slane %v14794_v3, 1  ;;  %v1419_v13 = vrot.slane %v1413_v0, 2  ;;  %v1743_v60 = vmul.f32 %v14736_v50, %v10623_v11  ;;  %v14799_v48 = vld [vmem:[#allocation125_spill] sm:$0xff]  ;;  %v14807_v11 = vld [vmem:[#allocation130_spill] sm:$0xff]  ;;  %v14808_v50 = vld [vmem:[#allocation76_spill] sm:$0xff] }
 0x19f   : > { %v10982_v53 = vsel %vm351_vm0, %v2168_v42, %v14789_v57  ;;  %v1908_v42 = vmul.f32 %v14734_v49, %v10608_v20  ;;  %v14798_v57 = vrot.slane %v10539_v18, 2  ;;  %v11011_v1 = vadd.f32 %v14800_v2, %v14799_v48  ;;  %v14801_v20 = vld [vmem:[#allocation128_spill] sm:$0xff]  ;;  %v14802_v49 = vld [vmem:[#allocation75_spill] sm:$0xff]  ;;  %v14810_v48 = vld [vmem:[#allocation78_spill] sm:$0xff]  ;;  %1259 = vrot.lane.b32.xlu1 %v1256_v30, %s14485_s20 }
 0x1a0   : > { %v11000_v23 = vsel %vm351_vm0, %v2003_v19, %v14795_v59  ;;  %v11015_v5 = vadd.f32 %v14802_v49, %v14801_v20  ;;  %v14803_v19 = vld [vmem:[#allocation40_spill] sm:$0xff]  ;;  %v2828_v18 = vrot.slane %v2822_v14, 1  ;;  %v11028_v0 = vadd.f32 %v14808_v50, %v14807_v11  ;;  %v14811_v20 = vld [vmem:[#allocation87_spill] sm:$0xff] }
 0x1a1   : > { %14796 = vst [vmem:[#allocation107_spill] sm:$0xff] %v11000_v23  ;;  %v1091_v35 = vsel %vm411_vm1, %v1089_v51, %v14798_v57  ;;  %v14804_v3 = vrot.slane %v14803_v19, 1  ;;  %v11022_v51 = vpop.permute.xlu0 %728  ;;  %v14809_v57 = vld [vmem:[#allocation34_spill] sm:$0xff]  ;;  %v14812_v49 = vrot.slane %v14811_v20, 1  ;;  %v2663_v56 = vrot.slane %v2657_v28, 1  ;;  %v14815_v11 = vld [vmem:[#allocation52_spill] sm:$0xff] }
 0x1a2   : > { %14806 = vst [vmem:[#allocation67_spill] sm:$0xff] %v11022_v51  ;;  %v509_v2 = vadd.f32 %v14810_v48, %v14809_v57  ;;  %1094 = vrot.lane.b32.xlu0 %v1091_v35, %s14485_s20  ;;  %v2238_v50 = vmul.f32 %v14746_v46, %v14815_v11  ;;  %v14817_v28 = vld [vmem:[#allocation51_spill] sm:$0xff]  ;;  %v11053_v48 = vpop.permute.xlu1 %1223  ;;  %v14820_v35 = vrot.slane %v10603_v45, 2  ;;  %v1749_v20 = vrot.slane %v1743_v60, 2  ;;  %v14823_v46 = vld [vmem:[#allocation77_spill] sm:$0xff]  ;;  %v14824_v11 = vld [vmem:[#allocation32_spill] sm:$0xff] }
 0x1a3   : > { %v11020_v59 = vsel %vm351_vm0, %v2498_v41, %v14804_v3  ;;  %v11035_v19 = vsel %vm351_vm0, %v2333_v17, %v14812_v49  ;;  %v14814_v41 = vrot.slane %v10575_v54, 2  ;;  %v1914_v3 = vrot.slane %v1908_v42, 2  ;;  %v14818_v57 = vld [vmem:[#allocation79_spill] sm:$0xff]  ;;  %14819 = vst [vmem:[#allocation120_spill] sm:$0xff] %v11053_v48  ;;  %v14822_v49 = vld [vmem:[#allocation133_spill] sm:$0xff] }
 0x1a4   : > { %14805 = vst [vmem:[#allocation110_spill] sm:$0xff] %v11020_v59  ;;  %14813 = vst [vmem:[#allocation142_spill] sm:$0xff] %v11035_v19  ;;  %v11049_v17 = vstv %s10952_s15  ;;  %v342_v30 = vadd.f32 %v14818_v57, %v14817_v28  ;;  %v1421_v54 = vsel %vm411_vm1, %v1419_v13, %v14820_v35  ;;  %v14825_v51 = vld [vmem:[#allocation21_spill] sm:$0xff]  ;;  %v14827_v59 = vld [vmem:[#allocation31_spill] sm:$0xff]  ;;  %s11462_s15 = sld [smem:[#allocation3 + $0x206]] }
 0x1a5   : > { %v1586_v14 = vsel %vm411_vm1, %v1584_v9, %v14814_v41  ;;  %14816 = vst [vmem:[#allocation155_spill] sm:$0xff] %v11049_v17  ;;  %v14821_v9 = vld [vmem:[#allocation94_spill] sm:$0xff]  ;;  %v11062_v41 = vadd.f32 %v14823_v46, %v14822_v49  ;;  %v839_v61 = vadd.f32 %v14825_v51, %v14824_v11  ;;  %v14826_v19 = vld [vmem:[#allocation29_spill] sm:$0xff]  ;;  %v14828_v57 = vld [vmem:[#allocation47_spill] sm:$0xff]  ;;  %v11073_v13 = vpop.permute.xlu0 %1058  ;;  %v14840_v46 = vrot.slane %v10638_v32, 2 }
 0x1a6   : > { %v2073_v42 = vmul.f32 %v14754_v58, %v14821_v9  ;;  %v674_v28 = vadd.f32 %v14827_v59, %v14826_v19  ;;  %v14829_v48 = vrot.slane %v14828_v57, 1  ;;  %14831 = vst [vmem:[#allocation167_spill] sm:$0xff] %v11073_v13  ;;  %v14832_v60 = vld [vmem:[#allocation59_spill] sm:$0xff]  ;;  %1589 = vrot.lane.b32.xlu1 %v1586_v14, %s14485_s20  ;;  %v8240_v49 = vld [vmem:[%s8561_s23 + $0x20] sm:$0xff]  ;;  %v14837_v59 = vld [vmem:[#allocation168_spill] sm:$0xff]  ;;  %1424 = vrot.lane.b32.xlu0 %v1421_v54, %s14485_s20  ;;  %v2244_v14 = vrot.slane %v2238_v50, 2 }
 0x1a7   : > { %v14833_v35 = vld [vmem:[#allocation19_spill] sm:$0xff]  ;;  %v11083_v51 = vmul.f32 %v8240_v49, %v11049_v17  ;;  %v573_v19 = vmul.f32 %v14837_v59, %v11049_v17  ;;  %v2568_v11 = vmul.f32 %v14762_v12, %v10704_v26  ;;  %v14841_v57 = vld [vmem:[#allocation140_spill] sm:$0xff]  ;;  %v14847_v26 = vld [vmem:[#allocation33_spill] sm:$0xff]  ;;  %v11292_v17 = vstv %s11199_s22  ;;  %s11997_s22 = sld [smem:[#allocation3 + $0x885]] }
 0x1a8   : > { %v11071_v45 = vsel %vm351_vm0, %v2828_v18, %v14829_v48  ;;  %v1169_v58 = vadd.f32 %v14833_v35, %v14832_v60  ;;  %v14834_v9 = vld [vmem:[#allocation139_spill] sm:$0xff]  ;;  %v14838_v18 = vrot.slane %v10586_v33, 1  ;;  %v11101_v60 = vadd.f32 %v14841_v57, %v342_v30  ;;  %v11103_v33 = vpop.permute.xlu1 %1553  ;;  %v14846_v50 = vld [vmem:[#allocation36_spill] sm:$0xff]  ;;  %v14850_v30 = vld [vmem:[#allocation146_spill] sm:$0xff]  ;;  %14893 = vst [vmem:[#allocation72_spill] sm:$0xff] %v11292_v17 }
 0x1a9   : > { %14830 = vst [vmem:[#allocation148_spill] sm:$0xff] %v11071_v45  ;;  %v11078_v23 = vadd.f32 %v14834_v9, %v509_v2  ;;  %14836 = vst [vmem:[#allocation24_spill] sm:$0xff] %v11083_v51  ;;  %v1916_v2 = vsel %vm411_vm1, %v1914_v3, %v14840_v46  ;;  %v2079_v32 = vrot.slane %v2073_v42, 2  ;;  %v2403_v3 = vmul.f32 %v14770_v40, %v10714_v55  ;;  %v14848_v9 = vld [vmem:[#allocation141_spill] sm:$0xff]  ;;  %v11120_v57 = vpop.permute.xlu0 %1388  ;;  %v14854_v42 = vld [vmem:[#allocation147_spill] sm:$0xff] }
 0x1aa   : > { %v11090_v48 = vsel %vm351_vm0, %v2663_v56, %v14838_v18  ;;  %14842 = vst [vmem:[#allocation169_spill] sm:$0xff] %v11101_v60  ;;  %14843 = vst [vmem:[#allocation173_spill] sm:$0xff] %v11103_v33  ;;  %v14844_v56 = vld [vmem:[#allocation185_spill] sm:$0xff]  ;;  %v1004_v12 = vadd.f32 %v14847_v26, %v14846_v50  ;;  %v11115_v18 = vadd.f32 %v14848_v9, %v839_v61  ;;  %1919 = vrot.lane.b32.xlu1 %v1916_v2, %s14485_s20 }
 0x1ab   : > { %14835 = vst [vmem:[#allocation171_spill] sm:$0xff] %v11078_v23  ;;  %14839 = vst [vmem:[#allocation122_spill] sm:$0xff] %v11090_v48  ;;  %v14845_v35 = vrot.slane %v14844_v56, 2  ;;  %v11118_v46 = vadd.f32 %v14850_v30, %v674_v28  ;;  %v11128_v55 = vadd.f32 %v14854_v42, %v1169_v58  ;;  %v11132_v40 = vstv %s11038_s0  ;;  %v14904_v23 = vld [vmem:[#allocation37_spill] sm:$0xff]  ;;  %s11483_s0 = sld [smem:[#allocation3 + $0x804]] }
 0x1ac   : > { %14849 = vst [vmem:[#allocation112_spill] sm:$0xff] %v11115_v18  ;;  %14852 = vst [vmem:[#allocation162_spill] sm:$0xff] %v11120_v57  ;;  %v580_v56 = vrot.slane %v573_v19, 2  ;;  %v14856_v28 = vrot.slane %v10680_v22, 2  ;;  %v2574_v50 = vrot.slane %v2568_v11, 2  ;;  %v2898_v26 = vmul.f32 %v14784_v7, %v10746_v43  ;;  %v11144_v58 = vpop.permute.xlu1 %1883  ;;  %v14859_v19 = vld [vmem:[#allocation106_spill] sm:$0xff] }
 0x1ad   : > { %v1751_v54 = vsel %vm411_vm1, %v1749_v20, %v14845_v35  ;;  %14851 = vst [vmem:[#allocation68_spill] sm:$0xff] %v11118_v46  ;;  %v11125_v20 = vstv %s11024_s18  ;;  %14855 = vst [vmem:[#allocation113_spill] sm:$0xff] %v11128_v55  ;;  %v11142_v9 = vstv %s11046_s1  ;;  %v14858_v2 = vrot.slane %v10686_v24, 2  ;;  %v8241_v22 = vld [vmem:[%s8561_s23 + $0x8] sm:$0xff]  ;;  %v14861_v11 = vld [vmem:[#allocation82_spill] sm:$0xff]  ;;  %v11162_v24 = vpop.permute.xlu0 %1718  ;;  %s11476_s18 = sld [smem:[#allocation3 + $0x884]] }
 0x1ae   : > { %14853 = vst [vmem:[#allocation124_spill] sm:$0xff] %v11125_v20  ;;  %1754 = vrot.lane.b32.xlu0 %v1751_v54, %s14485_s20  ;;  %v2246_v35 = vsel %vm411_vm1, %v2244_v14, %v14856_v28  ;;  %14857 = vst [vmem:[#allocation69_spill] sm:$0xff] %v11144_v58  ;;  %v2409_v42 = vrot.slane %v2403_v3, 2  ;;  %v2733_v54 = vmul.f32 %v14790_v38, %v14859_v19  ;;  %v14862_v43 = vld [vmem:[#allocation20_spill] sm:$0xff]  ;;  %v14863_v28 = vld [vmem:[#allocation30_spill] sm:$0xff]  ;;  %v14867_v19 = vrot.slane %v11083_v51, 2 }
 0x1af   : > { %v2081_v30 = vsel %vm411_vm1, %v2079_v32, %v14858_v2  ;;  %v11155_v14 = vmul.f32 %v8241_v22, %v11125_v20  ;;  %v1499_v7 = vadd.f32 %v14862_v43, %v14861_v11  ;;  %v11160_v61 = vadd.f32 %v14863_v28, %v1004_v12  ;;  %14865 = vst [vmem:[#allocation164_spill] sm:$0xff] %v11162_v24  ;;  %v14866_v38 = vld [vmem:[#allocation170_spill] sm:$0xff]  ;;  %v14869_v43 = vld [vmem:[#allocation84_spill] sm:$0xff]  ;;  %v14886_v57 = vld [vmem:[#allocation89_spill] sm:$0xff]  ;;  %s11531_s1 = sld [smem:[#allocation3 + $0x880]] }
 0x1b0   : > { %v11165_v32 = vmul.f32 %v8240_v49, %v11132_v40  ;;  %v11171_v3 = vmul.f32 %v14866_v38, %v11125_v20  ;;  %2249 = vrot.lane.b32.xlu1 %v2246_v35, %s14485_s20  ;;  %v611_v12 = vmul.f32 %v14837_v59, %v11132_v40  ;;  %v11179_v2 = vmul.f32 %v8241_v22, %v11142_v9  ;;  %v14870_v35 = vld [vmem:[#allocation35_spill] sm:$0xff] }
 0x1b1   : > { %14860 = vst [vmem:[#allocation116_spill] sm:$0xff] %v11155_v14  ;;  %14864 = vst [vmem:[#allocation70_spill] sm:$0xff] %v11160_v61  ;;  %v446_v49 = vmul.f32 %v14866_v38, %v11142_v9  ;;  %v11188_v11 = vsel %vm411_vm1, %v14867_v19, %v580_v56  ;;  %v1334_v28 = vadd.f32 %v14870_v35, %v14869_v43  ;;  %v14871_v59 = vrot.slane %v10730_v52, 2  ;;  %v11201_v38 = vpop.permute.xlu1 %2213  ;;  %v14875_v52 = vld [vmem:[#allocation159_spill] sm:$0xff] }
 0x1b2   : > { %14868 = vst [vmem:[#allocation127_spill] sm:$0xff] %v11188_v11  ;;  %2084 = vrot.lane.b32.xlu0 %v2081_v30, %s14485_s20  ;;  %v2904_v24 = vrot.slane %v2898_v26, 2  ;;  %v11197_v58 = vstv %s11098_s14  ;;  %14872 = vst [vmem:[#allocation118_spill] sm:$0xff] %v11201_v38  ;;  %v14873_v56 = vrot.slane %v10741_v62, 2  ;;  %v2739_v11 = vrot.slane %v2733_v54, 2  ;;  %s11533_s14 = sld [smem:[#allocation3 + $0x800]] }
 0x1b3   : > { %v2576_v22 = vsel %vm411_vm1, %v2574_v50, %v14871_v59  ;;  %v11208_v30 = vstv %s11110_s13  ;;  %v11211_v35 = vadd.f32 %v14875_v52, %v1499_v7  ;;  %v11213_v50 = vpop.permute.xlu0 %2048  ;;  %v11217_v59 = vstv %s11122_s16  ;;  %v14878_v52 = vld [vmem:[#allocation57_spill] sm:$0xff]  ;;  %s11748_s13 = sld [smem:[#allocation3 + $0x386]] }
 0x1b4   : > { %v2411_v19 = vsel %vm411_vm1, %v2409_v42, %v14873_v56  ;;  %14874 = vst [vmem:[#allocation71_spill] sm:$0xff] %v11208_v30  ;;  %14877 = vst [vmem:[#allocation183_spill] sm:$0xff] %v11213_v50  ;;  %v415_v38 = vrot.slane %v11171_v3, 2  ;;  %2579 = vrot.lane.b32.xlu1 %v2576_v22, %s14485_s20  ;;  %v618_v62 = vrot.slane %v611_v12, 2  ;;  %v453_v54 = vrot.slane %v446_v49, 2  ;;  %v8242_v56 = vld [vmem:[%s8561_s23 + $0x50] sm:$0xff] }
 0x1b5   : > { %14876 = vst [vmem:[#allocation175_spill] sm:$0xff] %v11211_v35  ;;  %v11224_v7 = vmul.f32 %v8242_v56, %v11197_v58  ;;  %v11227_v43 = vadd.f32 %v14878_v52, %v1334_v28  ;;  %v14880_v26 = vrot.slane %v10776_v34, 2  ;;  %v14881_v12 = vld [vmem:[#allocation172_spill] sm:$0xff]  ;;  %v11238_v49 = vmul.f32 %v8242_v56, %v11208_v30  ;;  %v11240_v42 = vpop.permute.xlu1 %2543  ;;  %v8243_v52 = vld [vmem:[%s8561_s23 + $0x38] sm:$0xff]  ;;  %v14887_v56 = vld [vmem:[#allocation18_spill] sm:$0xff]  ;;  %s11799_s16 = sld [smem:[#allocation3 + $0x306]] }
 0x1b6   : > { %2414 = vrot.lane.b32.xlu0 %v2411_v19, %s14485_s20  ;;  %v941_v22 = vmul.f32 %v14881_v12, %v11197_v58  ;;  %14883 = vst [vmem:[#allocation165_spill] sm:$0xff] %v11240_v42  ;;  %v14884_v28 = vrot.slane %v10785_v8, 2  ;;  %v11247_v34 = vmul.f32 %v8243_v52, %v11217_v59  ;;  %v11252_v50 = vstv %s11151_s17  ;;  %s11801_s17 = sld [smem:[#allocation3 + $0x486]] }
 0x1b7   : > { %14879 = vst [vmem:[#allocation153_spill] sm:$0xff] %v11227_v43  ;;  %v2906_v3 = vsel %vm411_vm1, %v2904_v24, %v14880_v26  ;;  %14882 = vst [vmem:[#allocation90_spill] sm:$0xff] %v11238_v49  ;;  %v14885_v24 = vld [vmem:[#allocation176_spill] sm:$0xff]  ;;  %v1829_v33 = vadd.f32 %v14887_v56, %v14886_v57  ;;  %v11256_v42 = vpop.permute.xlu0 %2378  ;;  %v11259_v8 = vstv %s11167_s19  ;;  %v14890_v13 = vrot.slane %v11165_v32, 2  ;;  %v11298_v43 = vld [vmem:[%s8561_s23 + $0x68] sm:$0xff]  ;;  %s11816_s19 = sld [smem:[#allocation3 + $0x406]] }
 0x1b8   : > { %v2741_v19 = vsel %vm411_vm1, %v2739_v11, %v14884_v28  ;;  %v776_v26 = vmul.f32 %v14885_v24, %v11217_v59  ;;  %14888 = vst [vmem:[#allocation129_spill] sm:$0xff] %v11256_v42  ;;  %v11265_v11 = vmul.f32 %v14881_v12, %v11208_v30  ;;  %v11268_v28 = vstv %s11173_s8  ;;  %2909 = vrot.lane.b32.xlu1 %v2906_v3, %s14485_s20  ;;  %v11283_v30 = vld [vmem:[%s8561_s23 + $0x80] sm:$0xff]  ;;  %s11882_s8 = sld [smem:[#allocation3 + $0x586]] }
 0x1b9   : > { %14889 = vst [vmem:[#allocation121_spill] sm:$0xff] %v11268_v28  ;;  %v619_v57 = vsel %vm411_vm1, %v14890_v13, %v618_v62  ;;  %v14891_v56 = vrot.slane %v11179_v2, 2  ;;  %v11279_v20 = vstv %s11183_s26  ;;  %v948_v12 = vrot.slane %v941_v22, 2  ;;  %v14892_v13 = vld [vmem:[#allocation179_spill] sm:$0xff]  ;;  %s11969_s26 = sld [smem:[#allocation3 + $0x506]] }
 0x1ba   : > { %2744 = vrot.lane.b32.xlu0 %v2741_v19, %s14485_s20  ;;  %v11287_v3 = vmul.f32 %v11283_v30, %v11252_v50  ;;  %v1271_v62 = vmul.f32 %v14892_v13, %v11252_v50  ;;  %v783_v51 = vrot.slane %v776_v26, 2  ;;  %v11302_v22 = vmul.f32 %v11298_v43, %v11259_v8  ;;  %v11305_v19 = vld [vmem:[%s8561_s23 + $0x70] sm:$0x3] }
 0x1bb   : > { %v454_v42 = vsel %vm411_vm1, %v14891_v56, %v453_v54  ;;  %v11294_v54 = vpop.permute.xlu1 %2873  ;;  %14896 = vst [vmem:[#allocation123_spill] sm:$0xff] %v11305_v19  ;;  %v1106_v35 = vmul.f32 %v11305_v19, %v11259_v8  ;;  %v11311_v61 = vpop.permute.xlu0 %2708  ;;  %v14900_v56 = vld [vmem:[#allocation144_spill] sm:$0xff]  ;;  %v14901_v46 = vrot.slane %v11155_v14, 2  ;;  %v14910_v60 = vrot.slane %v11224_v7, 2 }
 0x1bc   : > { %14894 = vst [vmem:[#allocation45_spill] sm:$0xff] %v11294_v54  ;;  %14895 = vst [vmem:[#allocation132_spill] sm:$0xff] %v11302_v22  ;;  %v11314_v54 = vld [vmem:[%s8561_s23 + $0xb0] sm:$0xff]  ;;  %v1601_v55 = vmul.f32 %v14900_v56, %v11279_v20  ;;  %622 = vrot.lane.b32.xlu1 %v619_v57, %s14405_s2  ;;  %v11339_v56 = vld [vmem:[%s8561_s23 + $0x98] sm:$0xff]  ;;  %v11353_v57 = vstv %s11235_s21  ;;  %v11373_v19 = vmul.f32 %v8243_v52, %v11268_v28  ;;  %s12011_s21 = sld [smem:[#allocation3 + $0x805]] }
 0x1bd   : > { %14897 = vst [vmem:[#allocation73_spill] sm:$0xff] %v11311_v61  ;;  %14898 = vst [vmem:[#allocation160_spill] sm:$0xff] %v11314_v54  ;;  %v11318_v26 = vmul.f32 %v11314_v54, %v11279_v20  ;;  %v11327_v18 = vsel %vm411_vm1, %v14901_v46, %v415_v38  ;;  %v14903_v61 = vld [vmem:[#allocation91_spill] sm:$0xff]  ;;  %v14905_v54 = vld [vmem:[#allocation61_spill] sm:$0xff]  ;;  %v11343_v14 = vmul.f32 %v11339_v56, %v11292_v17 }
 0x1be   : > { %14902 = vst [vmem:[#allocation74_spill] sm:$0xff] %v11327_v18  ;;  %v1664_v48 = vadd.f32 %v14904_v23, %v14903_v61  ;;  %v11335_v45 = vadd.f32 %v14905_v54, %v1829_v33  ;;  %14907 = vst [vmem:[#allocation75_spill] sm:$0xff] %v11339_v56  ;;  %v14909_v46 = vld [vmem:[#allocation150_spill] sm:$0xff]  ;;  %457 = vrot.lane.b32.xlu0 %v454_v42, %s14405_s2  ;;  %v949_v23 = vsel %vm411_vm1, %v14910_v60, %v948_v12 }
 0x1bf   : > { %14899 = vst [vmem:[#allocation125_spill] sm:$0xff] %v11318_v26  ;;  %14908 = vst [vmem:[#allocation40_spill] sm:$0xff] %v11343_v14  ;;  %v1436_v38 = vmul.f32 %v14909_v46, %v11292_v17  ;;  %v1278_v61 = vrot.slane %v1271_v62, 2  ;;  %v11359_v54 = vpop.permute.xlu1 %3130  ;;  %v14913_v46 = vrot.slane %v11247_v34, 2  ;;  %v910_v60 = vrot.slane %v11265_v11, 2  ;;  %v11366_v12 = vpop.permute.xlu0 %2965  ;;  %v14920_v18 = vld [vmem:[#allocation114_spill] sm:$0xff] }
 0x1c0   : > { %14906 = vst [vmem:[#allocation128_spill] sm:$0xff] %v11335_v45  ;;  %14911 = vst [vmem:[#allocation130_spill] sm:$0xff] %v11353_v57  ;;  %v1113_v45 = vrot.slane %v1106_v35, 2  ;;  %v1608_v33 = vrot.slane %v1601_v55, 2  ;;  %v11370_v56 = vstv %s11261_s12  ;;  %952 = vrot.lane.b32.xlu1 %v949_v23, %s14405_s2  ;;  %v11378_v35 = vld [vmem:[%s8561_s23 + $0xe0] sm:$0xff]  ;;  %s12013_s12 = sld [smem:[#allocation3 + $0x686]] }
 0x1c1   : > { %14912 = vst [vmem:[#allocation76_spill] sm:$0xff] %v11359_v54  ;;  %v784_v42 = vsel %vm411_vm1, %v14913_v46, %v783_v51  ;;  %14914 = vst [vmem:[#allocation34_spill] sm:$0xff] %v11366_v12  ;;  %v1443_v46 = vrot.slane %v1436_v38, 2  ;;  %v11382_v11 = vmul.f32 %v11378_v35, %v11353_v57  ;;  %v14919_v55 = vld [vmem:[#allocation154_spill] sm:$0xff]  ;;  %v14922_v54 = vld [vmem:[#allocation81_spill] sm:$0xff]  ;;  %v14924_v38 = vrot.slane %v11287_v3, 2 }
 0x1c2   : > { %14915 = vst [vmem:[#allocation78_spill] sm:$0xff] %v11370_v56  ;;  %14916 = vst [vmem:[#allocation87_spill] sm:$0xff] %v11373_v19  ;;  %v1931_v62 = vmul.f32 %v14919_v55, %v11353_v57  ;;  %v14921_v12 = vld [vmem:[#allocation22_spill] sm:$0xff]  ;;  %v11389_v17 = vadd.f32 %v14922_v54, %v1664_v48  ;;  %787 = vrot.lane.b32.xlu0 %v784_v42, %s14405_s2  ;;  %v11397_v51 = vmul.f32 %v14885_v24, %v11268_v28  ;;  %v14929_v54 = vld [vmem:[#allocation156_spill] sm:$0xff] }
 0x1c3   : > { %14917 = vst [vmem:[#allocation52_spill] sm:$0xff] %v11378_v35  ;;  %14918 = vst [vmem:[#allocation51_spill] sm:$0xff] %v11382_v11  ;;  %v2159_v52 = vadd.f32 %v14921_v12, %v14920_v18  ;;  %v1279_v23 = vsel %vm411_vm1, %v14924_v38, %v1278_v61  ;;  %v11399_v35 = vpop.permute.xlu1 %561  ;;  %v14926_v55 = vrot.slane %v11302_v22, 2  ;;  %v11405_v12 = vld [vmem:[%s8561_s23 + $0xc8] sm:$0xff]  ;;  %v1766_v61 = vmul.f32 %v14929_v54, %v11370_v56  ;;  %v14931_v24 = vld [vmem:[#allocation85_spill] sm:$0xff] }
 0x1c4   : > { %14923 = vst [vmem:[#allocation79_spill] sm:$0xff] %v11389_v17  ;;  %14925 = vst [vmem:[#allocation94_spill] sm:$0xff] %v11399_v35  ;;  %v11409_v48 = vmul.f32 %v11405_v12, %v11370_v56  ;;  %v11414_v42 = vstv %s11309_s9  ;;  %v14932_v38 = vld [vmem:[#allocation38_spill] sm:$0xff]  ;;  %v14935_v28 = vrot.slane %v11238_v49, 2  ;;  %v11433_v17 = vstv %s11330_s24  ;;  %1282 = vrot.lane.b32.xlu1 %v1279_v23, %s14405_s2  ;;  %v11452_v23 = vld [vmem:[%s8561_s23 + $0x118] sm:$0x3] }
 0x1c5   : > { %v1114_v18 = vsel %vm411_vm1, %v14926_v55, %v1113_v45  ;;  %14927 = vst [vmem:[#allocation133_spill] sm:$0xff] %v11405_v12  ;;  %14930 = vst [vmem:[#allocation32_spill] sm:$0xff] %v11414_v42  ;;  %v1994_v35 = vadd.f32 %v14932_v38, %v14931_v24  ;;  %v11420_v45 = vpop.permute.xlu0 %395  ;;  %v11423_v55 = vstv %s11322_s7  ;;  %v14938_v12 = vrot.slane %v11318_v26, 2  ;;  %v14948_v49 = vld [vmem:[#allocation161_spill] sm:$0xff]  ;;  %s12018_s9 = sld [smem:[#allocation3 + $0x606]]  ;;  %s12097_s7 = sld [smem:[#allocation3 + $0x887]] }
 0x1c6   : > { %14928 = vst [vmem:[#allocation77_spill] sm:$0xff] %v11409_v48  ;;  %14933 = vst [vmem:[#allocation21_spill] sm:$0xff] %v11420_v45  ;;  %v11430_v54 = vsel %vm411_vm1, %v14935_v28, %v910_v60  ;;  %v14939_v38 = vrot.slane %v11343_v14, 2  ;;  %v1938_v22 = vrot.slane %v1931_v62, 2  ;;  %1117 = vrot.lane.b32.xlu0 %v1114_v18, %s14405_s2  ;;  %v11445_v28 = vld [vmem:[%s8561_s23 + $0x110] sm:$0xff]  ;;  %v1773_v18 = vrot.slane %v1766_v61, 2 }
 0x1c7   : > { %14934 = vst [vmem:[#allocation29_spill] sm:$0xff] %v11423_v55  ;;  %14936 = vst [vmem:[#allocation31_spill] sm:$0xff] %v11430_v54  ;;  %v1609_v24 = vsel %vm411_vm1, %v14938_v12, %v1608_v33  ;;  %v11449_v60 = vmul.f32 %v11445_v28, %v11414_v42  ;;  %v2261_v33 = vmul.f32 %v11452_v23, %v11414_v42  ;;  %v11457_v12 = vstv %s11355_s27  ;;  %v11464_v62 = vpop.permute.xlu1 %891  ;;  %s12109_s24 = sld [smem:[#allocation3 + $0x807]]  ;;  %s12125_s27 = sld [smem:[#allocation3 + $0x786]] }
 0x1c8   : > { %14937 = vst [vmem:[#allocation47_spill] sm:$0xff] %v11433_v17  ;;  %v1444_v45 = vsel %vm411_vm1, %v14939_v38, %v1443_v46  ;;  %14940 = vst [vmem:[#allocation59_spill] sm:$0xff] %v11445_v28  ;;  %v11460_v54 = vstv %s11357_s30  ;;  %v11468_v38 = vld [vmem:[%s8561_s23 + $0xf8] sm:$0xff]  ;;  %v14949_v28 = vld [vmem:[#allocation163_spill] sm:$0xff]  ;;  %v745_v46 = vrot.slane %v11397_v51, 2  ;;  %1612 = vrot.lane.b32.xlu1 %v1609_v24, %s14405_s2  ;;  %s12164_s30 = sld [smem:[#allocation3 + $0x706]] }
 0x1c9   : > { %14941 = vst [vmem:[#allocation19_spill] sm:$0xff] %v11449_v60  ;;  %14942 = vst [vmem:[#allocation139_spill] sm:$0xff] %v11452_v23  ;;  %v11472_v56 = vmul.f32 %v11468_v38, %v11423_v55  ;;  %v2096_v23 = vmul.f32 %v14948_v49, %v11423_v55  ;;  %v11479_v14 = vadd.f32 %v14949_v28, %v2159_v52  ;;  %v11481_v42 = vpop.permute.xlu0 %726  ;;  %v11493_v49 = vld [vmem:[%s8561_s23 + $0x140] sm:$0xff]  ;;  %v14954_v28 = vld [vmem:[#allocation41_spill] sm:$0xff] }
 0x1ca   : > { %14943 = vst [vmem:[#allocation168_spill] sm:$0xff] %v11457_v12  ;;  %14944 = vst [vmem:[#allocation140_spill] sm:$0xff] %v11460_v54  ;;  %v11497_v52 = vmul.f32 %v11493_v49, %v11457_v12  ;;  %v14958_v24 = vld [vmem:[#allocation166_spill] sm:$0xff]  ;;  %1447 = vrot.lane.b32.xlu0 %v1444_v45, %s14405_s2  ;;  %v14964_v45 = vld [vmem:[#allocation95_spill] sm:$0xff] }
 0x1cb   : > { %14945 = vst [vmem:[#allocation185_spill] sm:$0xff] %v11464_v62  ;;  %14946 = vst [vmem:[#allocation36_spill] sm:$0xff] %v11468_v38  ;;  %v11489_v62 = vmul.f32 %v11283_v30, %v11433_v17  ;;  %v14957_v30 = vld [vmem:[#allocation25_spill] sm:$0xff]  ;;  %v11511_v38 = vadd.f32 %v14958_v24, %v1994_v35  ;;  %v11518_v26 = vpop.permute.xlu1 %1221  ;;  %v11525_v35 = vstv %s11416_s10  ;;  %v14965_v24 = vld [vmem:[#allocation23_spill] sm:$0xff]  ;;  %s12177_s10 = sld [smem:[#allocation3 + $0x888]] }
 0x1cc   : > { %14947 = vst [vmem:[#allocation33_spill] sm:$0xff] %v11472_v56  ;;  %14950 = vst [vmem:[#allocation141_spill] sm:$0xff] %v11479_v14  ;;  %v11502_v14 = vld [vmem:[%s8561_s23 + $0x128] sm:$0xff]  ;;  %v2426_v61 = vmul.f32 %v14957_v30, %v11460_v54  ;;  %v11552_v30 = vld [vmem:[%s8561_s23 + $0x170] sm:$0xff] }
 0x1cd   : > { %14951 = vst [vmem:[#allocation146_spill] sm:$0xff] %v11481_v42  ;;  %14952 = vst [vmem:[#allocation147_spill] sm:$0xff] %v11489_v62  ;;  %v2591_v42 = vmul.f32 %v14954_v28, %v11457_v12  ;;  %v11506_v51 = vmul.f32 %v11502_v14, %v11460_v54  ;;  %v14212_v28 = vrot.slane %v11449_v60, 2  ;;  %v2268_v12 = vrot.slane %v2261_v33, 2  ;;  %v11535_v33 = vpop.permute.xlu0 %1056 }
 0x1ce   : > { %14953 = vst [vmem:[#allocation106_spill] sm:$0xff] %v11493_v49  ;;  %14955 = vst [vmem:[#allocation82_spill] sm:$0xff] %v11502_v14  ;;  %v14960_v49 = vrot.slane %v11382_v11, 2  ;;  %v14962_v14 = vrot.slane %v11409_v48, 2  ;;  %v2103_v54 = vrot.slane %v2096_v23, 2  ;;  %v14966_v11 = vld [vmem:[#allocation109_spill] sm:$0xff]  ;;  %v11542_v23 = vmul.f32 %v14892_v13, %v11433_v17 }
 0x1cf   : > { %14956 = vst [vmem:[#allocation20_spill] sm:$0xff] %v11506_v51  ;;  %14959 = vst [vmem:[#allocation30_spill] sm:$0xff] %v11511_v38  ;;  %v2489_v38 = vadd.f32 %v14965_v24, %v14964_v45  ;;  %v2433_v24 = vrot.slane %v2426_v61, 2  ;;  %v11556_v13 = vmul.f32 %v11552_v30, %v11525_v35  ;;  %v11563_v61 = vpop.permute.xlu1 %1551  ;;  %v11578_v17 = vld [vmem:[%s8561_s23 + $0x1a8] sm:$0x3] }
 0x1d0   : > { %v1939_v55 = vsel %vm411_vm1, %v14960_v49, %v1938_v22  ;;  %14961 = vst [vmem:[#allocation170_spill] sm:$0xff] %v11518_v26  ;;  %v1774_v57 = vsel %vm411_vm1, %v14962_v14, %v1773_v18  ;;  %14963 = vst [vmem:[#allocation84_spill] sm:$0xff] %v11525_v35  ;;  %v14967_v22 = vld [vmem:[#allocation39_spill] sm:$0xff]  ;;  %v11538_v14 = vstv %s11425_s29  ;;  %v11561_v18 = vstv %s11462_s15  ;;  %s12185_s29 = sld [smem:[#allocation3 + $0x808]]  ;;  %s12334_s15 = sld [smem:[#allocation3 + $0x883]] }
 0x1d1   : > { %v2324_v49 = vadd.f32 %v14967_v22, %v14966_v11  ;;  %14968 = vst [vmem:[#allocation35_spill] sm:$0xff] %v11535_v33  ;;  %14969 = vst [vmem:[#allocation159_spill] sm:$0xff] %v11538_v14  ;;  %1942 = vrot.lane.b32.xlu1 %v1939_v55, %s14405_s2  ;;  %v2598_v11 = vrot.slane %v2591_v42, 2  ;;  %1777 = vrot.lane.b32.xlu0 %v1774_v57, %s14405_s2  ;;  %v2269_v22 = vsel %vm411_vm1, %v14212_v28, %v2268_v12  ;;  %v14971_v55 = vld [vmem:[#allocation180_spill] sm:$0xff]  ;;  %v11569_v12 = vld [vmem:[%s8561_s23 + $0x158] sm:$0xff]  ;;  %v11590_v60 = vpop.permute.xlu0 %1386 }
 0x1d2   : > { %14970 = vst [vmem:[#allocation57_spill] sm:$0xff] %v11552_v30  ;;  %v2921_v42 = vmul.f32 %v14971_v55, %v11525_v35  ;;  %14972 = vst [vmem:[#allocation172_spill] sm:$0xff] %v11563_v61  ;;  %v14973_v57 = vrot.slane %v11472_v56, 2  ;;  %v11573_v28 = vmul.f32 %v11569_v12, %v11538_v14  ;;  %v14975_v33 = vld [vmem:[#allocation187_spill] sm:$0xff]  ;;  %v11581_v55 = vstv %s11476_s18  ;;  %v14977_v61 = vld [vmem:[#allocation42_spill] sm:$0xff]  ;;  %s12503_s18 = sld [smem:[#allocation6]] }
 0x1d3   : > { %14974 = vst [vmem:[#allocation176_spill] sm:$0xff] %v11569_v12  ;;  %v2756_v26 = vmul.f32 %v14975_v33, %v11538_v14  ;;  %14976 = vst [vmem:[#allocation89_spill] sm:$0xff] %v11578_v17  ;;  %v2819_v30 = vadd.f32 %v14977_v61, %v10791_v47  ;;  %v14978_v56 = vld [vmem:[#allocation26_spill] sm:$0xff]  ;;  %v11593_v12 = vld [vmem:[%s8561_s23 + $0x190] sm:$0x3]  ;;  %v11596_v33 = vstv %s11483_s0  ;;  %v14985_v47 = vrot.slane %v11497_v52, 2 }
 0x1d4   : > { %v2104_v45 = vsel %vm411_vm1, %v14973_v57, %v2103_v54  ;;  %v2654_v54 = vadd.f32 %v14978_v56, %v10827_v36  ;;  %v14979_v57 = vld [vmem:[#allocation177_spill] sm:$0xff]  ;;  %14981 = vst [vmem:[#allocation179_spill] sm:$0xff] %v11590_v60  ;;  %14982 = vst [vmem:[#allocation144_spill] sm:$0xff] %v11593_v12  ;;  %v14983_v14 = vld [vmem:[#allocation184_spill] sm:$0xff]  ;;  %v14986_v36 = vrot.slane %v11506_v51, 2  ;;  %s12527_s0 = sld [smem:[#allocation6 + $0x3]] }
 0x1d5   : > { %v11588_v35 = vadd.f32 %v14979_v57, %v2489_v38  ;;  %v11599_v48 = vadd.f32 %v14983_v14, %v2324_v49  ;;  %2272 = vrot.lane.b32.xlu1 %v2269_v22, %s14405_s2  ;;  %v2599_v61 = vsel %vm411_vm1, %v14985_v47, %v2598_v11  ;;  %v14987_v38 = vrot.slane %v11373_v19, 2  ;;  %2107 = vrot.lane.b32.xlu0 %v2104_v45, %s14405_s2  ;;  %v11616_v22 = vld [vmem:[%s8561_s23 + $0x1a0] sm:$0xff]  ;;  %v11624_v47 = vpop.permute.xlu1 %1881  ;;  %v14994_v51 = vld [vmem:[#allocation80_spill] sm:$0xff] }
 0x1d6   : > { %v2434_v56 = vsel %vm411_vm1, %v14986_v36, %v2433_v24  ;;  %v2928_v14 = vrot.slane %v2921_v42, 2  ;;  %v11620_v11 = vmul.f32 %v11616_v22, %v11581_v55  ;;  %v3171_v24 = vmul.f32 %v11578_v17, %v11581_v55  ;;  %14989 = vst [vmem:[#allocation61_spill] sm:$0xff] %v11624_v47  ;;  %v14990_v49 = vld [vmem:[#allocation186_spill] sm:$0xff] }
 0x1d7   : > { %14980 = vst [vmem:[#allocation18_spill] sm:$0xff] %v11588_v35  ;;  %14984 = vst [vmem:[#allocation91_spill] sm:$0xff] %v11599_v48  ;;  %v11611_v57 = vsel %vm411_vm1, %v14987_v38, %v745_v46  ;;  %v2763_v36 = vrot.slane %v2756_v26, 2  ;;  %v11628_v38 = vld [vmem:[%s8561_s23 + $0x188] sm:$0xff]  ;;  %v3006_v42 = vmul.f32 %v11593_v12, %v11596_v33  ;;  %v11637_v60 = vadd.f32 %v14990_v49, %v2819_v30  ;;  %v11644_v46 = vpop.permute.xlu0 %1716  ;;  %v14992_v26 = vld [vmem:[#allocation49_spill] sm:$0xff] }
 0x1d8   : > { %14988 = vst [vmem:[#allocation37_spill] sm:$0xff] %v11611_v57  ;;  %v11632_v45 = vmul.f32 %v11628_v38, %v11596_v33  ;;  %v11640_v57 = vadd.f32 %v10796_v44, %v2654_v54  ;;  %v14227_v47 = vstv %s11531_s1  ;;  %14991 = vst [vmem:[#allocation150_spill] sm:$0xff] %v11644_v46  ;;  %v508_v48 = vadd.f32 %v14992_v26, %v10843_v21  ;;  %v14993_v35 = vld [vmem:[#allocation55_spill] sm:$0xff] }
 0x1d9   : > { %v341_v17 = vadd.f32 %v14993_v35, %v10847_v63  ;;  %v838_v12 = vadd.f32 %v14994_v51, %v10851_v16  ;;  %v14995_v30 = vld [vmem:[#allocation83_spill] sm:$0xff]  ;;  %2602 = vrot.lane.b32.xlu1 %v2599_v61, %s14405_s2  ;;  %2437 = vrot.lane.b32.xlu0 %v2434_v56, %s14405_s2  ;;  %v14996_v44 = vrot.slane %v11556_v13, 2  ;;  %v3178_v26 = vrot.slane %v3171_v24, 1  ;;  %v11661_v63 = vld [vmem:[%s8561_s23 + $0x18] sm:$0xff]  ;;  %v11665_v51 = vpop.permute.xlu1 %2211  ;;  %v14999_v24 = vld [vmem:[#allocation86_spill] sm:$0xff] }
 0x1da   : > { %v673_v49 = vadd.f32 %v14995_v30, %v10874_v4  ;;  %v609_v16 = vmul.f32 %v11661_v63, %v11132_v40  ;;  %14997 = vst [vmem:[#allocation154_spill] sm:$0xff] %v11665_v51  ;;  %v14998_v4 = vrot.slane %v11573_v28, 2  ;;  %v3013_v56 = vrot.slane %v3006_v42, 1  ;;  %v11672_v30 = vld [vmem:[%s8561_s23] sm:$0xff]  ;;  %v15000_v40 = vld [vmem:[#allocation93_spill] sm:$0xff] }
 0x1db   : > { %v2929_v54 = vsel %vm411_vm1, %v14996_v44, %v2928_v14  ;;  %v444_v14 = vmul.f32 %v11672_v30, %v11142_v9  ;;  %v1168_v44 = vadd.f32 %v14999_v24, %v10889_v15  ;;  %v1003_v21 = vadd.f32 %v15000_v40, %v10893_v39  ;;  %v11690_v42 = vpop.permute.xlu0 %2046  ;;  %v15005_v61 = vld [vmem:[#allocation102_spill] sm:$0xff]  ;;  %v15007_v39 = vld [vmem:[#allocation111_spill] sm:$0xff] }
 0x1dc   : > { %v2764_v35 = vsel %vm411_vm1, %v14998_v4, %v2763_v36  ;;  %v11683_v19 = vmul.f32 %v11616_v22, %v14227_v47  ;;  %v15002_v36 = vstv %s11533_s14  ;;  %15004 = vst [vmem:[#allocation81_spill] sm:$0xff] %v11690_v42  ;;  %v11693_v51 = vadd.f32 %v15005_v61, %v508_v48  ;;  %v15006_v15 = vld [vmem:[#allocation58_spill] sm:$0xff] }
 0x1dd   : > { %v11688_v4 = vmul.f32 %v11628_v38, %v15002_v36  ;;  %v11696_v9 = vadd.f32 %v10803_v6, %v341_v17  ;;  %v11699_v24 = vadd.f32 %v15006_v15, %v838_v12  ;;  %v11702_v40 = vadd.f32 %v15007_v39, %v673_v49  ;;  %2932 = vrot.lane.b32.xlu1 %v2929_v54, %s14405_s2  ;;  %v15009_v36 = vld [vmem:[#allocation101_spill] sm:$0xff]  ;;  %v11712_v6 = vld [vmem:[%s8561_s23 + $0x48] sm:$0xff]  ;;  %v15011_v12 = vld [vmem:[#allocation108_spill] sm:$0xff]  ;;  %v11718_v15 = vpop.permute.xlu1 %2541 }
 0x1de   : > { %15001 = vst [vmem:[#allocation114_spill] sm:$0xff] %v11683_v19  ;;  %v1498_v47 = vadd.f32 %v15009_v36, %v10925_v31  ;;  %2767 = vrot.lane.b32.xlu0 %v2764_v35, %s14405_s2  ;;  %v15010_v42 = vrot.slane %v11620_v11, 1  ;;  %v615_v61 = vrot.slane %v609_v16, 2  ;;  %v939_v17 = vmul.f32 %v11712_v6, %v11197_v58  ;;  %15012 = vst [vmem:[#allocation85_spill] sm:$0xff] %v11718_v15  ;;  %v11724_v39 = vld [vmem:[%s8561_s23 + $0x30] sm:$0xff]  ;;  %v15014_v16 = vld [vmem:[#allocation65_spill] sm:$0xff] }
 0x1df   : > { %15003 = vst [vmem:[#allocation22_spill] sm:$0xff] %v11688_v4  ;;  %15008 = vst [vmem:[#allocation156_spill] sm:$0xff] %v11702_v40  ;;  %v1333_v49 = vadd.f32 %v15011_v12, %v10933_v37  ;;  %v15013_v54 = vrot.slane %v11632_v45, 1  ;;  %v450_v35 = vrot.slane %v444_v14, 2  ;;  %v15016_v58 = vld [vmem:[#allocation60_spill] sm:$0xff]  ;;  %v15017_v37 = vld [vmem:[#allocation62_spill] sm:$0xff]  ;;  %v11736_v15 = vpop.permute.xlu0 %2376 }
 0x1e0   : > { %v3179_v48 = vsel %vm351_vm0, %v15010_v42, %v3178_v26  ;;  %v774_v26 = vmul.f32 %v11724_v39, %v11217_v59  ;;  %v15015_v42 = vld [vmem:[#allocation119_spill] sm:$0xff]  ;;  %v11731_v46 = vadd.f32 %v15016_v58, %v1168_v44  ;;  %v11734_v12 = vadd.f32 %v15017_v37, %v1003_v21  ;;  %15018 = vst [vmem:[#allocation38_spill] sm:$0xff] %v11736_v15  ;;  %v15022_v40 = vld [vmem:[#allocation134_spill] sm:$0xff]  ;;  %v15077_v15 = vld [vmem:[#allocation152_spill] sm:$0xff] }
 0x1e1   : > { %v3014_v31 = vsel %vm351_vm0, %v15013_v54, %v3013_v56  ;;  %v1828_v36 = vadd.f32 %v15015_v42, %v15014_v16  ;;  %v15019_v14 = vld [vmem:[#allocation115_spill] sm:$0xff]  ;;  %v15020_v54 = vld [vmem:[#allocation126_spill] sm:$0xff]  ;;  %v1993_v16 = vadd.f32 %v15022_v40, %v10989_v29  ;;  %3182 = vrot.lane.b32.xlu1 %v3179_v48, %s14485_s20  ;;  %v15025_v37 = vrot.slane %v11165_v32, 2  ;;  %v11765_v48 = vpop.permute.xlu1 %2871 }
 0x1e2   : > { %v1663_v4 = vadd.f32 %v15020_v54, %v15019_v14  ;;  %v15021_v19 = vld [vmem:[#allocation131_spill] sm:$0xff]  ;;  %3017 = vrot.lane.b32.xlu0 %v3014_v31, %s14485_s20  ;;  %15027 = vst [vmem:[#allocation161_spill] sm:$0xff] %v11765_v48  ;;  %v780_v31 = vrot.slane %v774_v26, 2 }
 0x1e3   : > { %v2158_v59 = vadd.f32 %v15021_v19, %v10977_v27  ;;  %v15023_v44 = vld [vmem:[#allocation135_spill] sm:$0xff]  ;;  %v617_v14 = vsel %vm411_vm1, %v615_v61, %v15025_v37  ;;  %v945_v27 = vrot.slane %v939_v17, 2  ;;  %v11758_v19 = vld [vmem:[%s8561_s23 + $0x78] sm:$0xff]  ;;  %v15029_v61 = vld [vmem:[#allocation136_spill] sm:$0xff] }
 0x1e4   : > { %v2488_v42 = vadd.f32 %v15023_v44, %v11011_v1  ;;  %v15024_v21 = vld [vmem:[#allocation63_spill] sm:$0xff]  ;;  %v1269_v29 = vmul.f32 %v11758_v19, %v11252_v50  ;;  %v15026_v1 = vld [vmem:[#allocation104_spill] sm:$0xff]  ;;  %v11771_v44 = vld [vmem:[%s8561_s23 + $0x60] sm:$0xff]  ;;  %v2323_v17 = vadd.f32 %v15029_v61, %v11015_v5  ;;  %v11787_v26 = vadd.f32 %v10969_v10, %v1663_v4 }
 0x1e5   : > { %v11751_v58 = vadd.f32 %v15024_v21, %v1498_v47  ;;  %v11763_v40 = vadd.f32 %v15026_v1, %v1333_v49  ;;  %v15028_v47 = vrot.slane %v11179_v2, 2  ;;  %v1104_v32 = vmul.f32 %v11771_v44, %v11259_v8  ;;  %v15030_v50 = vld [vmem:[#allocation137_spill] sm:$0xff]  ;;  %v15031_v21 = vld [vmem:[#allocation138_spill] sm:$0xff]  ;;  %v15034_v1 = vld [vmem:[#allocation107_spill] sm:$0xff]  ;;  %620 = vrot.lane.b32.xlu1 %v617_v14, %s14405_s2 }
 0x1e6   : > { %v2818_v49 = vadd.f32 %v15030_v50, %v11028_v0  ;;  %v2653_v37 = vadd.f32 %v15031_v21, %v11062_v41  ;;  %v11782_v2 = vadd.f32 %v10964_v25, %v1828_v36  ;;  %v11790_v8 = vadd.f32 %v10982_v53, %v2158_v59  ;;  %v11808_v41 = vld [vmem:[%s8561_s23 + $0xa8] sm:$0xff]  ;;  %v11818_v59 = vpop.permute.xlu1 %3128  ;;  %v11824_v14 = vld [vmem:[%s8561_s23 + $0x90] sm:$0xff] }
 0x1e7   : > { %v452_v54 = vsel %vm411_vm1, %v450_v35, %v15028_v47  ;;  %v11784_v35 = vpop.permute.xlu0 %2706  ;;  %v11793_v5 = vadd.f32 %v15034_v1, %v1993_v16  ;;  %v15036_v47 = vld [vmem:[#allocation110_spill] sm:$0xff]  ;;  %v15038_v25 = vrot.slane %v11224_v7, 2  ;;  %v1275_v53 = vrot.slane %v1269_v29, 2  ;;  %15040 = vst [vmem:[#allocation23_spill] sm:$0xff] %v11818_v59  ;;  %v15043_v29 = vld [vmem:[#allocation123_spill] sm:$0xff]  ;;  %v15046_v50 = vld [vmem:[#allocation148_spill] sm:$0xff] }
 0x1e8   : > { %15032 = vst [vmem:[#allocation163_spill] sm:$0xff] %v11784_v35  ;;  %15033 = vst [vmem:[#allocation41_spill] sm:$0xff] %v11790_v8  ;;  %v11796_v0 = vadd.f32 %v15036_v47, %v2488_v42  ;;  %455 = vrot.lane.b32.xlu0 %v452_v54, %s14405_s2  ;;  %v1599_v4 = vmul.f32 %v11808_v41, %v11279_v20  ;;  %v11814_v36 = vmul.f32 %v11298_v43, %v11561_v18  ;;  %v15044_v54 = vld [vmem:[#allocation142_spill] sm:$0xff]  ;;  %v15051_v47 = vld [vmem:[#allocation171_spill] sm:$0xff] }
 0x1e9   : > { %15035 = vst [vmem:[#allocation25_spill] sm:$0xff] %v11793_v5  ;;  %v947_v10 = vsel %vm411_vm1, %v945_v27, %v15038_v25  ;;  %v15041_v7 = vrot.slane %v11247_v34, 2  ;;  %v1110_v42 = vrot.slane %v1104_v32, 2  ;;  %v15042_v27 = vld [vmem:[#allocation72_spill] sm:$0xff]  ;;  %v1068_v43 = vmul.f32 %v15043_v29, %v11561_v18  ;;  %v15048_v34 = vld [vmem:[#allocation122_spill] sm:$0xff]  ;;  %v15052_v25 = vld [vmem:[#allocation143_spill] sm:$0xff] }
 0x1ea   : > { %15037 = vst [vmem:[#allocation166_spill] sm:$0xff] %v11796_v0  ;;  %15039 = vst [vmem:[#allocation95_spill] sm:$0xff] %v11814_v36  ;;  %v1434_v20 = vmul.f32 %v11824_v14, %v15042_v27  ;;  %v11831_v61 = vadd.f32 %v15044_v54, %v2323_v17  ;;  %v11834_v21 = vadd.f32 %v15046_v50, %v2818_v49  ;;  %v1240_v32 = vrot.slane %v11542_v23, 2  ;;  %v15054_v27 = vld [vmem:[#allocation169_spill] sm:$0xff]  ;;  %v15073_v35 = vld [vmem:[#allocation112_spill] sm:$0xff] }
 0x1eb   : > { %v782_v16 = vsel %vm411_vm1, %v780_v31, %v15041_v7  ;;  %v11837_v1 = vadd.f32 %v15048_v34, %v2653_v37  ;;  %v11839_v31 = vpop.permute.xlu0 %2963  ;;  %v11844_v7 = vadd.f32 %v15052_v25, %v15051_v47  ;;  %v15055_v29 = vld [vmem:[#allocation145_spill] sm:$0xff]  ;;  %v15057_v49 = vstv %s11531_s1  ;;  %950 = vrot.lane.b32.xlu1 %v947_v10, %s14405_s2  ;;  %v15060_v25 = vld [vmem:[#allocation130_spill] sm:$0xff]  ;;  %v15062_v10 = vld [vmem:[#allocation132_spill] sm:$0xff]  ;;  %s12529_s1 = sld [smem:[#allocation6 + $0x2]] }
 0x1ec   : > { %15045 = vst [vmem:[#allocation109_spill] sm:$0xff] %v11831_v61  ;;  %15047 = vst [vmem:[#allocation39_spill] sm:$0xff] %v11834_v21  ;;  %v11848_v56 = vadd.f32 %v15055_v29, %v15054_v27  ;;  %v11851_v17 = vld [vmem:[%s8561_s23 + $0x198] sm:$0xff]  ;;  %v11860_v23 = vstv %s11748_s13  ;;  %785 = vrot.lane.b32.xlu0 %v782_v16, %s14405_s2  ;;  %v15059_v37 = vrot.slane %v11287_v3, 2  ;;  %v1605_v34 = vrot.slane %v1599_v4, 2  ;;  %v11878_v3 = vld [vmem:[%s8561_s23 + $0xc0] sm:$0xff] }
 0x1ed   : > { %15049 = vst [vmem:[#allocation180_spill] sm:$0xff] %v11837_v1  ;;  %15050 = vst [vmem:[#allocation187_spill] sm:$0xff] %v11839_v31  ;;  %v11856_v54 = vmul.f32 %v11851_v17, %v15057_v49  ;;  %v11867_v47 = vld [vmem:[%s8561_s23 + $0xd8] sm:$0xff]  ;;  %v11872_v49 = vpop.permute.xlu1 %3144  ;;  %v15063_v31 = vrot.slane %v15062_v10, 2  ;;  %v1440_v16 = vrot.slane %v1434_v20, 2  ;;  %v15066_v29 = vstv %s11533_s14  ;;  %v15071_v10 = vld [vmem:[#allocation160_spill] sm:$0xff] }
 0x1ee   : > { %15053 = vst [vmem:[#allocation42_spill] sm:$0xff] %v11844_v7  ;;  %15056 = vst [vmem:[#allocation26_spill] sm:$0xff] %v11848_v56  ;;  %v1277_v50 = vsel %vm411_vm1, %v1275_v53, %v15059_v37  ;;  %v1929_v27 = vmul.f32 %v11867_v47, %v15060_v25  ;;  %v15065_v53 = vld [vmem:[#allocation78_spill] sm:$0xff]  ;;  %v1075_v37 = vrot.slane %v1068_v43, 2  ;;  %v15069_v20 = vrot.slane %v11489_v62, 2  ;;  %v15074_v48 = vld [vmem:[#allocation151_spill] sm:$0xff] }
 0x1ef   : > { %15058 = vst [vmem:[#allocation177_spill] sm:$0xff] %v11856_v54  ;;  %15061 = vst [vmem:[#allocation184_spill] sm:$0xff] %v11872_v49  ;;  %v1112_v59 = vsel %vm411_vm1, %v1110_v42, %v15063_v31  ;;  %v1764_v4 = vmul.f32 %v11878_v3, %v15065_v53  ;;  %v11885_v25 = vld [vmem:[%s8561_s23 + $0x180] sm:$0xff]  ;;  %v11892_v42 = vpop.permute.xlu0 %2979  ;;  %v11901_v43 = vmul.f32 %v15071_v10, %v11860_v23  ;;  %v8272_v53 = vld [vmem:[%s8561_s23 + $0xb8] sm:$0x3]  ;;  %1280 = vrot.lane.b32.xlu1 %v1277_v50, %s14405_s2  ;;  %s12550_s14 = sld [smem:[#allocation6 + $0x5]] }
 0x1f0   : > { %15064 = vst [vmem:[#allocation186_spill] sm:$0xff] %v11878_v3  ;;  %v11890_v49 = vmul.f32 %v11885_v25, %v15066_v29  ;;  %15068 = vst [vmem:[#allocation55_spill] sm:$0xff] %v11892_v42  ;;  %v11897_v31 = vsel %vm411_vm1, %v15069_v20, %v1240_v32  ;;  %v1563_v54 = vmul.f32 %v8272_v53, %v11860_v23  ;;  %v11915_v32 = vstv %s11799_s16  ;;  %v15079_v10 = vld [vmem:[#allocation125_spill] sm:$0xff]  ;;  %v11938_v7 = vld [vmem:[%s8561_s23 + $0xf0] sm:$0xff]  ;;  %s12552_s13 = sld [smem:[#allocation6 + $0x4]]  ;;  %s12561_s16 = sld [smem:[#allocation6 + $0x7]] }
 0x1f1   : > { %15070 = vst [vmem:[#allocation80_spill] sm:$0xff] %v11897_v31  ;;  %15072 = vst [vmem:[#allocation83_spill] sm:$0xff] %v11901_v43  ;;  %v11907_v29 = vadd.f32 %v15074_v48, %v15073_v35  ;;  %v11918_v20 = vstv %s11801_s17  ;;  %1115 = vrot.lane.b32.xlu0 %v1112_v59, %s14405_s2  ;;  %v15080_v31 = vrot.slane %v15079_v10, 2  ;;  %v1935_v56 = vrot.slane %v1929_v27, 2  ;;  %v11925_v48 = vld [vmem:[%s8561_s23 + $0x108] sm:$0xff]  ;;  %v15082_v35 = vld [vmem:[#allocation32_spill] sm:$0xff]  ;;  %v11932_v50 = vpop.permute.xlu1 %3142 }
 0x1f2   : > { %15067 = vst [vmem:[#allocation49_spill] sm:$0xff] %v11890_v49  ;;  %v15076_v49 = vld [vmem:[#allocation68_spill] sm:$0xff]  ;;  %15081 = vst [vmem:[#allocation102_spill] sm:$0xff] %v11925_v48  ;;  %v1770_v10 = vrot.slane %v1764_v4, 2  ;;  %v1570_v21 = vrot.slane %v1563_v54, 2  ;;  %v15094_v54 = vld [vmem:[#allocation133_spill] sm:$0xff] }
 0x1f3   : > { %15075 = vst [vmem:[#allocation86_spill] sm:$0xff] %v11907_v29  ;;  %v11911_v42 = vadd.f32 %v15077_v15, %v15076_v49  ;;  %v1607_v53 = vsel %vm411_vm1, %v1605_v34, %v15080_v31  ;;  %v2259_v15 = vmul.f32 %v11925_v48, %v15082_v35  ;;  %v11930_v49 = vstv %s11816_s19  ;;  %15084 = vst [vmem:[#allocation111_spill] sm:$0xff] %v11932_v50  ;;  %v15088_v34 = vld [vmem:[#allocation29_spill] sm:$0xff]  ;;  %v11947_v1 = vpop.permute.xlu0 %2977  ;;  %v8275_v4 = vld [vmem:[%s8561_s23 + $0xa0] sm:$0x3]  ;;  %s12575_s17 = sld [smem:[#allocation6 + $0x6]] }
 0x1f4   : > { %15083 = vst [vmem:[#allocation58_spill] sm:$0xff] %v11930_v49  ;;  %15087 = vst [vmem:[#allocation101_spill] sm:$0xff] %v11938_v7  ;;  %v2094_v27 = vmul.f32 %v11938_v7, %v15088_v34  ;;  %v15089_v31 = vrot.slane %v11814_v36, 2  ;;  %1610 = vrot.lane.b32.xlu1 %v1607_v53, %s14405_s2  ;;  %v15093_v34 = vld [vmem:[#allocation52_spill] sm:$0xff]  ;;  %v11965_v50 = vmul.f32 %v15094_v54, %v11930_v49  ;;  %v15097_v53 = vld [vmem:[#allocation157_spill] sm:$0xff]  ;;  %s12607_s19 = sld [smem:[#allocation6 + $0x9]] }
 0x1f5   : > { %15078 = vst [vmem:[#allocation93_spill] sm:$0xff] %v11911_v42  ;;  %v15085_v42 = vld [vmem:[#allocation40_spill] sm:$0xff]  ;;  %15091 = vst [vmem:[#allocation65_spill] sm:$0xff] %v11947_v1  ;;  %v11959_v61 = vmul.f32 %v15093_v34, %v11918_v20  ;;  %v15099_v34 = vld [vmem:[#allocation51_spill] sm:$0xff]  ;;  %v2265_v0 = vrot.slane %v2259_v15, 2  ;;  %v11984_v48 = vpop.permute.xlu1 %601 }
 0x1f6   : > { %v15086_v29 = vrot.slane %v15085_v42, 2  ;;  %v11945_v35 = vsel %vm411_vm1, %v15089_v31, %v1075_v37  ;;  %v15092_v42 = vld [vmem:[#allocation75_spill] sm:$0xff]  ;;  %15095 = vst [vmem:[#allocation119_spill] sm:$0xff] %v11965_v50  ;;  %v15100_v36 = vrot.slane %v15099_v34, 2  ;;  %v11980_v5 = vld [vmem:[%s8561_s23 + $0x138] sm:$0xff]  ;;  %v15102_v54 = vld [vmem:[#allocation168_spill] sm:$0xff] }
 0x1f7   : > { %15090 = vst [vmem:[#allocation108_spill] sm:$0xff] %v11945_v35  ;;  %v8276_v37 = vld [vmem:[%s8561_s23 + $0xe8] sm:$0x3]  ;;  %15101 = vst [vmem:[#allocation62_spill] sm:$0xff] %v11980_v5  ;;  %v2589_v7 = vmul.f32 %v11980_v5, %v15102_v54  ;;  %v12003_v54 = vpop.permute.xlu0 %436 }
 0x1f8   : > { %v1442_v59 = vsel %vm411_vm1, %v1440_v16, %v15086_v29  ;;  %v11952_v16 = vmul.f32 %v15092_v42, %v11915_v32  ;;  %v1398_v29 = vmul.f32 %v8275_v4, %v11915_v32  ;;  %v1893_v31 = vmul.f32 %v8276_v37, %v11918_v20  ;;  %v8277_v42 = vld [vmem:[%s8561_s23 + $0xd0] sm:$0x3]  ;;  %v15096_v4 = vld [vmem:[#allocation113_spill] sm:$0xff]  ;;  %15103 = vst [vmem:[#allocation115_spill] sm:$0xff] %v11984_v48  ;;  %v12025_v48 = vld [vmem:[%s8561_s23 + $0x168] sm:$0xff] }
 0x1f9   : > { %v1728_v1 = vmul.f32 %v8277_v42, %v11930_v49  ;;  %v11973_v35 = vadd.f32 %v15097_v53, %v15096_v4  ;;  %1445 = vrot.lane.b32.xlu0 %v1442_v59, %s14405_s2  ;;  %v1937_v37 = vsel %vm411_vm1, %v1935_v56, %v15100_v36  ;;  %v15104_v42 = vld [vmem:[#allocation77_spill] sm:$0xff]  ;;  %v2100_v4 = vrot.slane %v2094_v27, 2  ;;  %v11990_v53 = vld [vmem:[%s8561_s23 + $0x120] sm:$0xff]  ;;  %v15107_v59 = vld [vmem:[#allocation140_spill] sm:$0xff]  ;;  %15111 = vst [vmem:[#allocation134_spill] sm:$0xff] %v12003_v54 }
 0x1fa   : > { %v15105_v8 = vrot.slane %v15104_v42, 2  ;;  %15106 = vst [vmem:[#allocation126_spill] sm:$0xff] %v11990_v53  ;;  %v2424_v34 = vmul.f32 %v11990_v53, %v15107_v59  ;;  %v15108_v56 = vld [vmem:[#allocation70_spill] sm:$0xff]  ;;  %v15112_v42 = vrot.slane %v11901_v43, 2  ;;  %v1405_v27 = vrot.slane %v1398_v29, 2  ;;  %1940 = vrot.lane.b32.xlu1 %v1937_v37, %s14405_s2  ;;  %15116 = vst [vmem:[#allocation63_spill] sm:$0xff] %v12025_v48 }
 0x1fb   : > { %15098 = vst [vmem:[#allocation60_spill] sm:$0xff] %v11973_v35  ;;  %v11995_v35 = vstv %s11882_s8  ;;  %v15109_v36 = vld [vmem:[#allocation158_spill] sm:$0xff]  ;;  %v1735_v54 = vrot.slane %v1728_v1, 2  ;;  %v15118_v59 = vld [vmem:[#allocation59_spill] sm:$0xff]  ;;  %v15130_v49 = vld [vmem:[#allocation128_spill] sm:$0xff]  ;;  %s12613_s8 = sld [smem:[#allocation6 + $0x8]] }
 0x1fc   : > { %v1772_v3 = vsel %vm411_vm1, %v1770_v10, %v15105_v8  ;;  %v12001_v15 = vadd.f32 %v15109_v36, %v15108_v56  ;;  %v12008_v8 = vsel %vm411_vm1, %v15112_v42, %v1570_v21  ;;  %v1900_v56 = vrot.slane %v1893_v31, 2  ;;  %v15114_v21 = vld [vmem:[#allocation19_spill] sm:$0xff] }
 0x1fd   : > { %15113 = vst [vmem:[#allocation135_spill] sm:$0xff] %v12008_v8  ;;  %1775 = vrot.lane.b32.xlu0 %v1772_v3, %s14405_s2  ;;  %v15115_v42 = vrot.slane %v15114_v21, 2  ;;  %v2595_v10 = vrot.slane %v2589_v7, 2  ;;  %v15117_v8 = vld [vmem:[#allocation84_spill] sm:$0xff]  ;;  %v12031_v31 = vmul.f32 %v15118_v59, %v11995_v35  ;;  %v15120_v36 = vld [vmem:[#allocation175_spill] sm:$0xff]  ;;  %v12037_v3 = vpop.permute.xlu1 %931  ;;  %v15124_v21 = vld [vmem:[#allocation33_spill] sm:$0xff] }
 0x1fe   : > { %15110 = vst [vmem:[#allocation131_spill] sm:$0xff] %v12001_v15  ;;  %v2919_v37 = vmul.f32 %v12025_v48, %v15117_v8  ;;  %v15121_v1 = vld [vmem:[#allocation27_spill] sm:$0xff]  ;;  %15123 = vst [vmem:[#allocation137_spill] sm:$0xff] %v12037_v3  ;;  %v15125_v53 = vrot.slane %v15124_v21, 2  ;;  %v2430_v7 = vrot.slane %v2424_v34, 2  ;;  %v15127_v48 = vld [vmem:[#allocation153_spill] sm:$0xff] }
 0x1ff   : > { %v2267_v29 = vsel %vm411_vm1, %v2265_v0, %v15115_v42  ;;  %15119 = vst [vmem:[#allocation104_spill] sm:$0xff] %v12031_v31  ;;  %v12035_v15 = vadd.f32 %v15121_v1, %v15120_v36  ;;  %v12043_v42 = vld [vmem:[%s8561_s23 + $0x150] sm:$0xff]  ;;  %v15126_v43 = vld [vmem:[#allocation159_spill] sm:$0xff]  ;;  %v15128_v59 = vld [vmem:[#allocation50_spill] sm:$0xff]  ;;  %v12055_v1 = vpop.permute.xlu0 %766  ;;  %v15134_v21 = vrot.slane %v11952_v16, 2 }
 0x200   : > { %v2102_v0 = vsel %vm411_vm1, %v2100_v4, %v15125_v53  ;;  %v2754_v8 = vmul.f32 %v12043_v42, %v15126_v43  ;;  %v12049_v5 = vadd.f32 %v15128_v59, %v15127_v48  ;;  %v15131_v62 = vld [vmem:[#allocation43_spill] sm:$0xff]  ;;  %15133 = vst [vmem:[#allocation110_spill] sm:$0xff] %v12055_v1  ;;  %v15138_v3 = vld [vmem:[#allocation44_spill] sm:$0xff]  ;;  %2270 = vrot.lane.b32.xlu1 %v2267_v29, %s14405_s2  ;;  %v12080_v59 = vstv %s11969_s26  ;;  %s12624_s26 = sld [smem:[#allocation6 + $0xb]] }
 0x201   : > { %15122 = vst [vmem:[#allocation136_spill] sm:$0xff] %v12035_v15  ;;  %v12053_v36 = vadd.f32 %v15131_v62, %v15130_v49  ;;  %v12060_v4 = vsel %vm411_vm1, %v15134_v21, %v1405_v27  ;;  %v15136_v53 = vld [vmem:[#allocation139_spill] sm:$0xff]  ;;  %v15140_v62 = vrot.slane %v11959_v61, 2  ;;  %v15142_v49 = vrot.slane %v11965_v50, 2  ;;  %2105 = vrot.lane.b32.xlu0 %v2102_v0, %s14405_s2 }
 0x202   : > { %15129 = vst [vmem:[#allocation138_spill] sm:$0xff] %v12049_v5  ;;  %15135 = vst [vmem:[#allocation72_spill] sm:$0xff] %v12060_v4  ;;  %v2223_v34 = vmul.f32 %v15136_v53, %v11995_v35  ;;  %v15137_v43 = vld [vmem:[#allocation79_spill] sm:$0xff]  ;;  %v2925_v21 = vrot.slane %v2919_v37, 2  ;;  %v2760_v1 = vrot.slane %v2754_v8, 2  ;;  %v3189_v0 = vstv %s11997_s22  ;;  %v15149_v37 = vld [vmem:[#allocation36_spill] sm:$0xff] }
 0x203   : > { %15132 = vst [vmem:[#allocation107_spill] sm:$0xff] %v12053_v36  ;;  %v12066_v15 = vadd.f32 %v15138_v3, %v15137_v43  ;;  %v12072_v48 = vsel %vm411_vm1, %v15140_v62, %v1900_v56  ;;  %v12077_v27 = vsel %vm411_vm1, %v15142_v49, %v1735_v54  ;;  %v15144_v3 = vrot.slane %v11497_v52, 2  ;;  %v12089_v43 = vpop.permute.xlu1 %1261  ;;  %v15146_v54 = vld [vmem:[#allocation20_spill] sm:$0xff]  ;;  %v15152_v8 = vld [vmem:[#allocation46_spill] sm:$0xff]  ;;  %s12635_s22 = sld [smem:[#allocation6 + $0xa]] }
 0x204   : > { %15141 = vst [vmem:[#allocation142_spill] sm:$0xff] %v12072_v48  ;;  %15143 = vst [vmem:[#allocation148_spill] sm:$0xff] %v12077_v27  ;;  %v3169_v56 = vmul.f32 %v11851_v17, %v11581_v55  ;;  %v15147_v62 = vrot.slane %v15146_v54, 2  ;;  %v3004_v52 = vmul.f32 %v11885_v25, %v11596_v33  ;;  %v2230_v55 = vrot.slane %v2223_v34, 2  ;;  %v15154_v33 = vld [vmem:[#allocation30_spill] sm:$0xff]  ;;  %v15161_v36 = vld [vmem:[#allocation144_spill] sm:$0xff] }
 0x205   : > { %15139 = vst [vmem:[#allocation123_spill] sm:$0xff] %v12066_v15  ;;  %v2597_v29 = vsel %vm411_vm1, %v2595_v10, %v15144_v3  ;;  %15145 = vst [vmem:[#allocation122_spill] sm:$0xff] %v12089_v43  ;;  %v12099_v10 = vpop.permute.xlu0 %1096  ;;  %v12103_v3 = vmul.f32 %v15149_v37, %v12080_v59  ;;  %v3024_v53 = vstv %s12011_s21  ;;  %v12107_v43 = vstv %s12013_s12  ;;  %v8282_v34 = vld [vmem:[%s8561_s23 + $0x100] sm:$0x3]  ;;  %s12653_s21 = sld [smem:[#allocation6 + $0xd]]  ;;  %s12664_s12 = sld [smem:[#allocation6 + $0xc]] }
 0x206   : > { %v2432_v49 = vsel %vm411_vm1, %v2430_v7, %v15147_v62  ;;  %15148 = vst [vmem:[#allocation171_spill] sm:$0xff] %v12099_v10  ;;  %v15151_v7 = vld [vmem:[#allocation141_spill] sm:$0xff]  ;;  %v15155_v62 = vld [vmem:[#allocation48_spill] sm:$0xff]  ;;  %2600 = vrot.lane.b32.xlu1 %v2597_v29, %s14405_s2  ;;  %v2058_v10 = vmul.f32 %v8282_v34, %v12080_v59  ;;  %v12123_v37 = vstv %s12018_s9  ;;  %v15157_v48 = vrot.slane %v11556_v13, 2  ;;  %s12668_s9 = sld [smem:[#allocation6 + $0xf]] }
 0x207   : > { %15150 = vst [vmem:[#allocation143_spill] sm:$0xff] %v12103_v3  ;;  %v12113_v54 = vadd.f32 %v15152_v8, %v15151_v7  ;;  %v12117_v27 = vadd.f32 %v15155_v62, %v15154_v33  ;;  %2435 = vrot.lane.b32.xlu0 %v2432_v49, %s14405_s2  ;;  %v3175_v8 = vrot.slane %v3169_v56, 1  ;;  %v3191_v33 = vmul.f32 %v11616_v22, %v3189_v0  ;;  %v15158_v62 = vld [vmem:[#allocation89_spill] sm:$0xff]  ;;  %v12133_v29 = vpop.permute.xlu1 %1591  ;;  %v15165_v56 = vld [vmem:[#allocation106_spill] sm:$0xff] }
 0x208   : > { %v2927_v7 = vsel %vm411_vm1, %v2925_v21, %v15157_v48  ;;  %v3192_v4 = vmul.f32 %v15158_v62, %v3189_v0  ;;  %15159 = vst [vmem:[#allocation130_spill] sm:$0xff] %v12133_v29  ;;  %v15160_v34 = vrot.slane %v11573_v28, 2  ;;  %v3026_v15 = vmul.f32 %v11628_v38, %v3024_v53  ;;  %v8283_v28 = vld [vmem:[%s8561_s23 + $0x148] sm:$0x3] }
 0x209   : > { %15153 = vst [vmem:[#allocation169_spill] sm:$0xff] %v12113_v54  ;;  %15156 = vst [vmem:[#allocation145_spill] sm:$0xff] %v12117_v27  ;;  %v3010_v54 = vrot.slane %v3004_v52, 1  ;;  %v3027_v49 = vmul.f32 %v15161_v36, %v3024_v53  ;;  %v12140_v5 = vpop.permute.xlu0 %1426  ;;  %v15163_v13 = vrot.slane %v12031_v31, 2  ;;  %v12150_v29 = vmul.f32 %v15165_v56, %v12107_v43  ;;  %v15167_v52 = vld [vmem:[#allocation18_spill] sm:$0xff] }
 0x20a   : > { %v2762_v27 = vsel %vm411_vm1, %v2760_v1, %v15160_v34  ;;  %15162 = vst [vmem:[#allocation132_spill] sm:$0xff] %v12140_v5  ;;  %v2553_v1 = vmul.f32 %v8283_v28, %v12107_v43  ;;  %v15168_v34 = vld [vmem:[#allocation174_spill] sm:$0xff]  ;;  %2930 = vrot.lane.b32.xlu1 %v2927_v7, %s14405_s2  ;;  %v2065_v5 = vrot.slane %v2058_v10, 2  ;;  %v3190_v21 = vmul.f32 %v11851_v17, %v3189_v0 }
 0x20b   : > { %v12145_v48 = vsel %vm411_vm1, %v15163_v13, %v2230_v55  ;;  %15166 = vst [vmem:[#allocation160_spill] sm:$0xff] %v12150_v29  ;;  %v12156_v50 = vadd.f32 %v15168_v34, %v15167_v52  ;;  %v15170_v55 = vld [vmem:[#allocation82_spill] sm:$0xff]  ;;  %2765 = vrot.lane.b32.xlu0 %v2762_v27, %s14405_s2  ;;  %v15172_v56 = vrot.slane %v11620_v11, 1  ;;  %v3197_v52 = vrot.slane %v3191_v33, 1  ;;  %v12171_v7 = vpop.permute.xlu1 %1921 }
 0x20c   : > { %15164 = vst [vmem:[#allocation78_spill] sm:$0xff] %v12145_v48  ;;  %v12161_v13 = vmul.f32 %v15170_v55, %v12123_v37  ;;  %v3199_v34 = vrot.slane %v3192_v4, 1  ;;  %v3025_v10 = vmul.f32 %v11885_v25, %v3024_v53  ;;  %15173 = vst [vmem:[#allocation68_spill] sm:$0xff] %v12171_v7  ;;  %v15174_v55 = vrot.slane %v11632_v45, 1  ;;  %v8284_v4 = vld [vmem:[%s8561_s23 + $0x130] sm:$0x3] }
 0x20d   : > { %15169 = vst [vmem:[#allocation112_spill] sm:$0xff] %v12156_v50  ;;  %v3177_v28 = vsel %vm351_vm0, %v3175_v8, %v15172_v56  ;;  %v3032_v48 = vrot.slane %v3026_v15, 1  ;;  %v3034_v50 = vrot.slane %v3027_v49, 1  ;;  %v3227_v31 = vstv %s12097_s7  ;;  %v12179_v11 = vpop.permute.xlu0 %1756  ;;  %v15176_v45 = vld [vmem:[#allocation91_spill] sm:$0xff]  ;;  %v15177_v56 = vld [vmem:[#allocation178_spill] sm:$0xff]  ;;  %s12678_s7 = sld [smem:[#allocation6 + $0xe]] }
 0x20e   : > { %15171 = vst [vmem:[#allocation151_spill] sm:$0xff] %v12161_v13  ;;  %v3012_v0 = vsel %vm351_vm0, %v3010_v54, %v15174_v55  ;;  %15175 = vst [vmem:[#allocation152_spill] sm:$0xff] %v12179_v11  ;;  %v2560_v8 = vrot.slane %v2553_v1, 2  ;;  %v2388_v53 = vmul.f32 %v8284_v4, %v12123_v37  ;;  %v3062_v33 = vstv %s12109_s24  ;;  %3180 = vrot.lane.b32.xlu1 %v3177_v28, %s14485_s20  ;;  %s12772_s24 = sld [smem:[#allocation3 + $0x886]] }
 0x20f   : > { %v12189_v54 = vadd.f32 %v15177_v56, %v15176_v45  ;;  %v15179_v15 = vrot.slane %v12103_v3, 2  ;;  %v3196_v55 = vrot.slane %v3190_v21, 1  ;;  %v12198_v27 = vstv %s12125_s27  ;;  %3015 = vrot.lane.b32.xlu0 %v3012_v0, %s14485_s20  ;;  %v12204_v28 = vpop.permute.xlu1 %2251  ;;  %v15182_v0 = vld [vmem:[#allocation181_spill] sm:$0xff]  ;;  %s12814_s27 = sld [smem:[#allocation3 + $0x806]] }
 0x210   : > { %v3200_v1 = vsel %vm351_vm0, %v3197_v52, %v3199_v34  ;;  %v3031_v4 = vrot.slane %v3025_v10, 1  ;;  %v3229_v11 = vmul.f32 %v11616_v22, %v3227_v31  ;;  %v3230_v45 = vmul.f32 %v15158_v62, %v3227_v31  ;;  %15181 = vst [vmem:[#allocation40_spill] sm:$0xff] %v12204_v28 }
 0x211   : > { %15178 = vst [vmem:[#allocation125_spill] sm:$0xff] %v12189_v54  ;;  %v12195_v49 = vsel %vm411_vm1, %v15179_v15, %v2065_v5  ;;  %v3035_v56 = vsel %vm351_vm0, %v3032_v48, %v3034_v50  ;;  %v3064_v21 = vmul.f32 %v11628_v38, %v3062_v33  ;;  %v3065_v15 = vmul.f32 %v15161_v36, %v3062_v33  ;;  %v12214_v10 = vpop.permute.xlu0 %2086  ;;  %v15187_v50 = vld [vmem:[#allocation57_spill] sm:$0xff]  ;;  %v15188_v5 = vld [vmem:[#allocation182_spill] sm:$0xff] }
 0x212   : > { %15180 = vst [vmem:[#allocation32_spill] sm:$0xff] %v12195_v49  ;;  %v12212_v34 = vadd.f32 %v15182_v0, %v11637_v60  ;;  %15184 = vst [vmem:[#allocation75_spill] sm:$0xff] %v12214_v10  ;;  %v15185_v7 = vrot.slane %v12150_v29, 2  ;;  %v2395_v28 = vrot.slane %v2388_v53, 2  ;;  %v12223_v54 = vmul.f32 %v15187_v50, %v12198_v27  ;;  %3203 = vrot.lane.b32.xlu1 %v3200_v1, %s14405_s2  ;;  %v8285_v0 = vld [vmem:[%s8561_s23 + $0x178] sm:$0x3] }
 0x213   : > { %v12227_v3 = vadd.f32 %v15188_v5, %v11640_v57  ;;  %v3198_v60 = vsel %vm351_vm0, %v3196_v55, %v3197_v52  ;;  %v2883_v10 = vmul.f32 %v8285_v0, %v12198_v27  ;;  %3038 = vrot.lane.b32.xlu0 %v3035_v56, %s14405_s2  ;;  %v3235_v53 = vrot.slane %v3229_v11, 2  ;;  %v12239_v5 = vpop.permute.xlu1 %2581  ;;  %v15192_v0 = vld [vmem:[#allocation176_spill] sm:$0xff]  ;;  %v8286_v56 = vld [vmem:[%s8561_s23 + $0x160] sm:$0x3]  ;;  %v15193_v11 = vld [vmem:[#allocation155_spill] sm:$0xff] }
 0x214   : > { %15183 = vst [vmem:[#allocation29_spill] sm:$0xff] %v12212_v34  ;;  %v12219_v49 = vsel %vm411_vm1, %v15185_v7, %v2560_v8  ;;  %v12234_v7 = vstv %s12164_s30  ;;  %v3033_v8 = vsel %vm351_vm0, %v3031_v4, %v3032_v48  ;;  %v3237_v50 = vrot.slane %v3230_v45, 2  ;;  %15190 = vst [vmem:[#allocation113_spill] sm:$0xff] %v12239_v5  ;;  %v15194_v45 = vld [vmem:[#allocation28_spill] sm:$0xff]  ;;  %s8404_s30 = smov 16  }
 0x215   : > { %15186 = vst [vmem:[#allocation52_spill] sm:$0xff] %v12219_v49  ;;  %15189 = vst [vmem:[#allocation133_spill] sm:$0xff] %v12227_v3  ;;  %v3228_v57 = vmul.f32 %v11851_v17, %v3227_v31  ;;  %v3070_v1 = vrot.slane %v3064_v21, 2  ;;  %v3072_v49 = vrot.slane %v3065_v15, 2  ;;  %v3063_v52 = vmul.f32 %v11885_v25, %v3062_v33  ;;  %v12243_v3 = vpop.permute.xlu0 %2416 }
 0x216   : > { %v3248_v55 = vstv %s12177_s10  ;;  %15191 = vst [vmem:[#allocation157_spill] sm:$0xff] %v12243_v3  ;;  %v12247_v34 = vmul.f32 %v15192_v0, %v12234_v7  ;;  %v2718_v48 = vmul.f32 %v8286_v56, %v12234_v7  ;;  %v571_v4 = vmul.f32 %v11661_v63, %v15193_v11  ;;  %3201 = vrot.lane.b32.xlu1 %v3198_v60, %s14405_s2  ;;  %s8405_s10 = smov 32  }
 0x217   : > { %v3083_v31 = vstv %s12185_s29  ;;  %v12256_v21 = vadd.f32 %v15194_v45, %v11693_v51  ;;  %v15196_v33 = vrot.slane %v12161_v13, 2  ;;  %v2890_v3 = vrot.slane %v2883_v10, 2  ;;  %3036 = vrot.lane.b32.xlu0 %v3033_v8, %s14405_s2  ;;  %v12271_v45 = vpop.permute.xlu1 %2911  ;;  %v15199_v8 = vld [vmem:[#allocation92_spill] sm:$0xff]  ;;  %v15203_v13 = vld [vmem:[#allocation121_spill] sm:$0xff]  ;;  %s8406_s29 = smov 48  }
 0x218   : > { %v3238_v56 = vsel %vm411_vm1, %v3235_v53, %v3237_v50  ;;  %v3234_v63 = vrot.slane %v3228_v57, 2  ;;  %v12268_v11 = vmul.f32 %v11616_v22, %v3248_v55  ;;  %v3251_v51 = vmul.f32 %v15158_v62, %v3248_v55  ;;  %15198 = vst [vmem:[#allocation77_spill] sm:$0xff] %v12271_v45  ;;  %v15201_v45 = vld [vmem:[#allocation124_spill] sm:$0xff] }
 0x219   : > { %15195 = vst [vmem:[#allocation51_spill] sm:$0xff] %v12256_v21  ;;  %v12261_v15 = vsel %vm411_vm1, %v15196_v33, %v2395_v28  ;;  %v3073_v28 = vsel %vm411_vm1, %v3070_v1, %v3072_v49  ;;  %v3069_v33 = vrot.slane %v3063_v52, 2  ;;  %v12275_v60 = vmul.f32 %v11628_v38, %v3083_v31  ;;  %v12283_v5 = vpop.permute.xlu0 %2746  ;;  %v15202_v52 = vld [vmem:[#allocation71_spill] sm:$0xff] }
 0x21a   : > { %15197 = vst [vmem:[#allocation168_spill] sm:$0xff] %v12261_v15  ;;  %v3086_v10 = vmul.f32 %v15161_v36, %v3083_v31  ;;  %v12280_v0 = vadd.f32 %v15199_v8, %v11696_v9  ;;  %v2725_v57 = vrot.slane %v2718_v48, 2  ;;  %15200 = vst [vmem:[#allocation140_spill] sm:$0xff] %v12283_v5  ;;  %v577_v21 = vrot.slane %v571_v4, 2  ;;  %3241 = vrot.lane.b32.xlu1 %v3238_v56, %s14485_s20  ;;  %v15204_v36 = vld [vmem:[#allocation47_spill] sm:$0xff] }
 0x21b   : > { %v405_v49 = vmul.f32 %v11672_v30, %v15201_v45  ;;  %v901_v15 = vmul.f32 %v11712_v6, %v15202_v52  ;;  %v736_v29 = vmul.f32 %v11724_v39, %v15203_v13  ;;  %v1231_v9 = vmul.f32 %v11758_v19, %v15204_v36  ;;  %3076 = vrot.lane.b32.xlu0 %v3073_v28, %s14485_s20  ;;  %v12298_v50 = vpop.permute.xlu1 %599  ;;  %v15206_v19 = vld [vmem:[#allocation53_spill] sm:$0xff]  ;;  %v15207_v13 = vld [vmem:[#allocation156_spill] sm:$0xff] }
 0x21c   : > { %v3236_v48 = vsel %vm411_vm1, %v3234_v63, %v3235_v53  ;;  %v3256_v4 = vrot.slane %v12268_v11, 2  ;;  %v3258_v8 = vrot.slane %v3251_v51, 2  ;;  %v3249_v56 = vmul.f32 %v11851_v17, %v3248_v55  ;;  %15205 = vst [vmem:[#allocation70_spill] sm:$0xff] %v12298_v50  ;;  %v15208_v53 = vld [vmem:[#allocation188_spill] sm:$0xff] }
 0x21d   : > { %v3071_v30 = vsel %vm411_vm1, %v3069_v33, %v3070_v1  ;;  %v3091_v6 = vrot.slane %v12275_v60, 2  ;;  %v3093_v45 = vrot.slane %v3086_v10, 2  ;;  %v3084_v39 = vmul.f32 %v11885_v25, %v3083_v31  ;;  %v15210_v51 = vld [vmem:[#allocation24_spill] sm:$0xff]  ;;  %v12321_v33 = vpop.permute.xlu0 %434 }
 0x21e   : > { %v12305_v36 = vadd.f32 %v15206_v19, %v11699_v24  ;;  %v12309_v63 = vadd.f32 %v15208_v53, %v15207_v13  ;;  %v15209_v11 = vrot.slane %v12223_v54, 2  ;;  %v15211_v1 = vrot.slane %v15210_v51, 2  ;;  %15212 = vst [vmem:[#allocation158_spill] sm:$0xff] %v12321_v33  ;;  %v15213_v31 = vld [vmem:[#allocation88_spill] sm:$0xff]  ;;  %3239 = vrot.lane.b32.xlu1 %v3236_v48, %s14485_s20 }
 0x21f   : > { %v12325_v24 = vadd.f32 %v15213_v31, %v11731_v46  ;;  %v412_v60 = vrot.slane %v405_v49, 2  ;;  %v907_v10 = vrot.slane %v901_v15, 2  ;;  %v1066_v52 = vmul.f32 %v11771_v44, %v11561_v18  ;;  %3074 = vrot.lane.b32.xlu0 %v3071_v30, %s14485_s20  ;;  %v12341_v15 = vpop.permute.xlu1 %929  ;;  %s12344_s20 = sld [smem:[#allocation3 + $0x803]]  ;;  %v15221_v53 = vld [vmem:[#allocation116_spill] sm:$0xff]  ;;  %v15225_v31 = vld [vmem:[#allocation87_spill] sm:$0xff] }
 0x220   : > { %v12314_v55 = vsel %vm411_vm1, %v15209_v11, %v2890_v3  ;;  %v12319_v28 = vsel %vm411_vm1, %v577_v21, %v15211_v1  ;;  %v742_v3 = vrot.slane %v736_v29, 2  ;;  %v3259_v19 = vsel %vm411_vm1, %v3256_v4, %v3258_v8  ;;  %15215 = vst [vmem:[#allocation19_spill] sm:$0xff] %v12341_v15  ;;  %v15216_v29 = vld [vmem:[#allocation98_spill] sm:$0xff] }
 0x221   : > { %v3255_v21 = vrot.slane %v3249_v56, 2  ;;  %v1561_v13 = vmul.f32 %v11808_v41, %v11860_v23  ;;  %v15214_v46 = vrot.slane %v12247_v34, 2  ;;  %v3094_v18 = vsel %vm411_vm1, %v3091_v6, %v3093_v45  ;;  %v15217_v41 = vld [vmem:[#allocation189_spill] sm:$0xff]  ;;  %v15218_v56 = vld [vmem:[#allocation54_spill] sm:$0xff]  ;;  %v12358_v30 = vpop.permute.xlu0 %764  ;;  %v15220_v45 = vld [vmem:[#allocation96_spill] sm:$0xff] }
 0x222   : > { %v1237_v44 = vrot.slane %v1231_v9, 2  ;;  %v3090_v48 = vrot.slane %v3084_v39, 2  ;;  %v12348_v8 = vadd.f32 %v15216_v29, %v11734_v12  ;;  %v12352_v23 = vadd.f32 %v15217_v41, %v11751_v58  ;;  %15219 = vst [vmem:[#allocation84_spill] sm:$0xff] %v12358_v30  ;;  %v15223_v58 = vld [vmem:[#allocation90_spill] sm:$0xff]  ;;  %3262 = vrot.lane.b32.xlu1 %v3259_v19, %s14405_s2  ;;  %v15227_v29 = vld [vmem:[#allocation56_spill] sm:$0xff]  ;;  %v15228_v41 = vld [vmem:[#allocation147_spill] sm:$0xff] }
 0x223   : > { %v12339_v49 = vsel %vm411_vm1, %v15214_v46, %v2725_v57  ;;  %v12356_v57 = vadd.f32 %v15218_v56, %v11763_v40  ;;  %v1396_v9 = vmul.f32 %v11824_v14, %v11915_v32  ;;  %v12364_v39 = vadd.f32 %v15220_v45, %v11782_v2  ;;  %3097 = vrot.lane.b32.xlu0 %v3094_v18, %s14405_s2  ;;  %v12395_v56 = vpop.permute.xlu1 %1259  ;;  %v15231_v18 = vld [vmem:[#allocation58_spill] sm:$0xff]  ;;  %v15234_v45 = vld [vmem:[#allocation97_spill] sm:$0xff]  ;;  %v15332_v5 = vld [vmem:[#allocation168_spill] sm:$0xff] }
 0x224   : > { %v15222_v12 = vrot.slane %v15221_v53, 2  ;;  %v15224_v51 = vrot.slane %v15223_v58, 2  ;;  %v1072_v40 = vrot.slane %v1066_v52, 2  ;;  %v15226_v46 = vrot.slane %v15225_v31, 2  ;;  %15230 = vst [vmem:[#allocation59_spill] sm:$0xff] %v12395_v56  ;;  %v15236_v53 = vld [vmem:[#allocation102_spill] sm:$0xff] }
 0x225   : > { %v3257_v2 = vsel %vm411_vm1, %v3255_v21, %v3256_v4  ;;  %v1567_v32 = vrot.slane %v1561_v13, 2  ;;  %v15229_v19 = vrot.slane %v15228_v41, 2  ;;  %v15232_v4 = vld [vmem:[#allocation186_spill] sm:$0xff]  ;;  %v15233_v13 = vld [vmem:[#allocation41_spill] sm:$0xff]  ;;  %v15239_v31 = vld [vmem:[#allocation99_spill] sm:$0xff] }
 0x226   : > { %v12369_v11 = vsel %vm411_vm1, %v412_v60, %v15222_v12  ;;  %v12374_v1 = vsel %vm411_vm1, %v907_v10, %v15224_v51  ;;  %v12380_v14 = vsel %vm411_vm1, %v742_v3, %v15226_v46  ;;  %v1891_v60 = vmul.f32 %v11867_v47, %v11918_v20  ;;  %v12404_v20 = vpop.permute.xlu0 %1094  ;;  %v15237_v12 = vld [vmem:[#allocation101_spill] sm:$0xff]  ;;  %v15241_v46 = vld [vmem:[#allocation100_spill] sm:$0xff]  ;;  %v15242_v41 = vld [vmem:[#allocation95_spill] sm:$0xff]  ;;  %3260 = vrot.lane.b32.xlu1 %v3257_v2, %s14405_s2 }
 0x227   : > { %v12388_v10 = vadd.f32 %v15227_v29, %v11787_v26  ;;  %v12393_v52 = vsel %vm411_vm1, %v1237_v44, %v15229_v19  ;;  %v3092_v3 = vsel %vm411_vm1, %v3090_v48, %v3091_v6  ;;  %v1726_v21 = vmul.f32 %v15232_v4, %v15231_v18  ;;  %15235 = vst [vmem:[#allocation175_spill] sm:$0xff] %v12404_v20  ;;  %v15238_v51 = vld [vmem:[#allocation25_spill] sm:$0xff]  ;;  %v15240_v48 = vld [vmem:[#allocation166_spill] sm:$0xff]  ;;  %v15249_v2 = vld [vmem:[#allocation63_spill] sm:$0xff] }
 0x228   : > { %v12402_v47 = vadd.f32 %v15234_v45, %v15233_v13  ;;  %v1402_v26 = vrot.slane %v1396_v9, 2  ;;  %v2221_v44 = vmul.f32 %v15236_v53, %v11995_v35  ;;  %v2056_v58 = vmul.f32 %v15237_v12, %v12080_v59  ;;  %v15244_v35 = vld [vmem:[#allocation62_spill] sm:$0xff]  ;;  %3095 = vrot.lane.b32.xlu0 %v3092_v3, %s14405_s2  ;;  %v15245_v59 = vld [vmem:[#allocation83_spill] sm:$0xff]  ;;  %v12433_v12 = vpop.permute.xlu1 %1589  ;;  %v15250_v3 = vld [vmem:[#allocation109_spill] sm:$0xff]  ;;  %s12501_s2 = sld [smem:[#allocation6 + $0x1]] }
 0x229   : > { %v12412_v6 = vadd.f32 %v15239_v31, %v15238_v51  ;;  %v12416_v29 = vadd.f32 %v15241_v46, %v15240_v48  ;;  %v15243_v19 = vrot.slane %v15242_v41, 2  ;;  %v2551_v9 = vmul.f32 %v15244_v35, %v12107_v43  ;;  %15247 = vst [vmem:[#allocation27_spill] sm:$0xff] %v12433_v12  ;;  %v15251_v41 = vld [vmem:[#allocation103_spill] sm:$0xff] }
 0x22a   : > { %v15246_v4 = vrot.slane %v15245_v59, 2  ;;  %v1897_v45 = vrot.slane %v1891_v60, 2  ;;  %v3151_v53 = vstv %s12334_s15  ;;  %v1732_v51 = vrot.slane %v1726_v21, 2  ;;  %v12450_v21 = vpop.permute.xlu0 %1424  ;;  %s8407_s15 = smov 64  }
 0x22b   : > { %v12421_v18 = vsel %vm411_vm1, %v1072_v40, %v15243_v19  ;;  %v15248_v40 = vld [vmem:[#allocation126_spill] sm:$0xff]  ;;  %v2881_v48 = vmul.f32 %v15249_v2, %v12198_v27  ;;  %v2986_v46 = vstv %s12344_s20  ;;  %v14244_v43 = vmov 0.0   ;;  %15253 = vst [vmem:[#allocation33_spill] sm:$0xff] %v12450_v21  ;;  %v15254_v2 = vld [vmem:[#allocation39_spill] sm:$0xff]  ;;  %s13208_s20 = sld [smem:[#allocation6 + $0x11]] }
 0x22c   : > { %v12430_v13 = vsel %vm411_vm1, %v1567_v32, %v15246_v4  ;;  %v2386_v31 = vmul.f32 %v15248_v40, %v12123_v37  ;;  %4297 = vmatprep.mubr.f32.mxu0 %v14244_v43  ;;  %v12443_v19 = vadd.f32 %v15251_v41, %v15250_v3  ;;  %v15252_v32 = vrot.slane %v11952_v16, 2  ;;  %v15255_v3 = vld [vmem:[#allocation64_spill] sm:$0xff] }
 0x22d   : > { %v2227_v35 = vrot.slane %v2221_v44, 2  ;;  %v2062_v37 = vrot.slane %v2056_v58, 2  ;;  %v2557_v59 = vrot.slane %v2551_v9, 2  ;;  %v2716_v27 = vmul.f32 %v12043_v42, %v12234_v7  ;;  %v15257_v58 = vld [vmem:[#allocation144_spill] sm:$0xff]  ;;  %v15259_v42 = vld [vmem:[#allocation119_spill] sm:$0xff] }
 0x22e   : > { %v12448_v60 = vsel %vm411_vm1, %v1402_v26, %v15252_v32  ;;  %v3153_v4 = vmul.f32 %v11616_v22, %v3151_v53  ;;  %v3154_v40 = vmul.f32 %v15158_v62, %v3151_v53  ;;  %v12458_v41 = vadd.f32 %v15255_v3, %v15254_v2  ;;  %v12467_v32 = vpop.permute.xlu1 %1919  ;;  %v15261_v3 = vld [vmem:[#allocation180_spill] sm:$0xff] }
 0x22f   : > { %v15256_v16 = vrot.slane %v11959_v61, 2  ;;  %v2988_v44 = vmul.f32 %v11628_v38, %v2986_v46  ;;  %v2989_v9 = vmul.f32 %v15257_v58, %v2986_v46  ;;  %15258 = vst [vmem:[#allocation159_spill] sm:$0xff] %v12467_v32  ;;  %v15260_v7 = vrot.slane %v15259_v42, 2  ;;  %v15262_v61 = vld [vmem:[#allocation105_spill] sm:$0xff]  ;;  %v15264_v38 = vld [vmem:[#allocation104_spill] sm:$0xff]  ;;  %v15266_v32 = vld [vmem:[#allocation143_spill] sm:$0xff] }
 0x230   : > { %v2392_v62 = vrot.slane %v2386_v31, 2  ;;  %v2887_v43 = vrot.slane %v2881_v48, 2  ;;  %v3152_v2 = vmul.f32 %v11851_v17, %v3151_v53  ;;  %v12477_v21 = vadd.f32 %v15262_v61, %v15261_v3  ;;  %v15268_v48 = vld [vmem:[#allocation160_spill] sm:$0xff] }
 0x231   : > { %v12463_v26 = vsel %vm411_vm1, %v1897_v45, %v15256_v16  ;;  %v12472_v22 = vsel %vm411_vm1, %v1732_v51, %v15260_v7  ;;  %v12479_v45 = vpop.permute.xlu0 %1754  ;;  %v15265_v16 = vrot.slane %v15264_v38, 2  ;;  %v15267_v42 = vrot.slane %v15266_v32, 2  ;;  %v15271_v38 = vld [vmem:[#allocation149_spill] sm:$0xff] }
 0x232   : > { %15263 = vst [vmem:[#allocation153_spill] sm:$0xff] %v12479_v45  ;;  %v2987_v31 = vmul.f32 %v11885_v25, %v2986_v46  ;;  %v15269_v17 = vrot.slane %v15268_v48, 2  ;;  %v2722_v7 = vrot.slane %v2716_v27, 2  ;;  %v3159_v3 = vrot.slane %v3153_v4, 1  ;;  %v15270_v45 = vld [vmem:[#allocation42_spill] sm:$0xff]  ;;  %v15277_v27 = vld [vmem:[#allocation151_spill] sm:$0xff] }
 0x233   : > { %v12484_v58 = vsel %vm411_vm1, %v2227_v35, %v15265_v16  ;;  %v12489_v51 = vsel %vm411_vm1, %v2062_v37, %v15267_v42  ;;  %v3161_v61 = vrot.slane %v3154_v40, 1  ;;  %v568_v12 = vadd.f32 %v15271_v38, %v15270_v45  ;;  %v15272_v35 = vld [vmem:[#allocation26_spill] sm:$0xff]  ;;  %v15273_v16 = vld [vmem:[#allocation117_spill] sm:$0xff]  ;;  %v15281_v48 = vld [vmem:[#allocation67_spill] sm:$0xff] }
 0x234   : > { %v12495_v53 = vsel %vm411_vm1, %v2557_v59, %v15269_v17  ;;  %v402_v20 = vadd.f32 %v15273_v16, %v15272_v35  ;;  %v2994_v32 = vrot.slane %v2988_v44, 1  ;;  %v2996_v56 = vrot.slane %v2989_v9, 1  ;;  %v15274_v25 = vld [vmem:[#allocation86_spill] sm:$0xff]  ;;  %v12507_v59 = vpop.permute.xlu1 %2249  ;;  %v15280_v9 = vld [vmem:[#allocation93_spill] sm:$0xff]  ;;  %v15282_v38 = vld [vmem:[#allocation60_spill] sm:$0xff] }
 0x235   : > { %v15275_v46 = vld [vmem:[#allocation66_spill] sm:$0xff]  ;;  %15276 = vst [vmem:[#allocation50_spill] sm:$0xff] %v12507_v59  ;;  %v15278_v4 = vrot.slane %v15277_v27, 2  ;;  %v15279_v45 = vrot.slane %v12223_v54, 2  ;;  %v3158_v44 = vrot.slane %v3152_v2, 1  ;;  %v733_v17 = vadd.f32 %v15281_v48, %v15280_v9  ;;  %v15283_v35 = vld [vmem:[#allocation120_spill] sm:$0xff]  ;;  %v12525_v30 = vpop.permute.xlu0 %2084 }
 0x236   : > { %v898_v37 = vadd.f32 %v15275_v46, %v15274_v25  ;;  %v1228_v16 = vadd.f32 %v15283_v35, %v15282_v38  ;;  %v15284_v25 = vld [vmem:[#allocation131_spill] sm:$0xff]  ;;  %15286 = vst [vmem:[#allocation128_spill] sm:$0xff] %v12525_v30  ;;  %v2993_v54 = vrot.slane %v2987_v31, 1  ;;  %v15289_v2 = vld [vmem:[#allocation138_spill] sm:$0xff]  ;;  %v15292_v48 = vld [vmem:[#allocation69_spill] sm:$0xff]  ;;  %v15293_v38 = vrot.slane %v12247_v34, 2 }
 0x237   : > { %v12512_v40 = vsel %vm411_vm1, %v2392_v62, %v15278_v4  ;;  %v12517_v42 = vsel %vm411_vm1, %v2887_v43, %v15279_v45  ;;  %v15285_v46 = vld [vmem:[#allocation167_spill] sm:$0xff]  ;;  %v15287_v62 = vld [vmem:[#allocation136_spill] sm:$0xff]  ;;  %v15288_v43 = vld [vmem:[#allocation173_spill] sm:$0xff]  ;;  %v12545_v31 = vsel %vm351_vm0, %v3159_v3, %v3161_v61 }
 0x238   : > { %v1063_v59 = vadd.f32 %v15285_v46, %v15284_v25  ;;  %v1558_v27 = vadd.f32 %v15288_v43, %v15287_v62  ;;  %v15290_v4 = vld [vmem:[#allocation162_spill] sm:$0xff]  ;;  %v15291_v9 = vld [vmem:[#allocation107_spill] sm:$0xff]  ;;  %v12540_v35 = vsel %vm411_vm1, %v2722_v7, %v15293_v38  ;;  %15297 = vst [vmem:[#allocation139_spill] sm:$0xff] %v12545_v31  ;;  %v12548_v62 = vsel %vm351_vm0, %v2994_v32, %v2996_v56  ;;  %v15307_v38 = vld [vmem:[#allocation80_spill] sm:$0xff] }
 0x239   : > { %v1393_v45 = vadd.f32 %v15290_v4, %v15289_v2  ;;  %v1888_v15 = vadd.f32 %v15292_v48, %v15291_v9  ;;  %15294 = vst [vmem:[#allocation43_spill] sm:$0xff] %v12540_v35  ;;  %v15295_v25 = vld [vmem:[#allocation127_spill] sm:$0xff]  ;;  %v15296_v30 = vld [vmem:[#allocation74_spill] sm:$0xff]  ;;  %15298 = vst [vmem:[#allocation79_spill] sm:$0xff] %v12548_v62  ;;  %v12564_v56 = vsel %vm351_vm0, %v3158_v44, %v3159_v3 }
 0x23a   : > { %v585_v46 = vadd.f32 %v15295_v25, %v568_v12  ;;  %v420_v33 = vadd.f32 %v15296_v30, %v402_v20  ;;  %v15299_v43 = vld [vmem:[#allocation123_spill] sm:$0xff]  ;;  %v15300_v2 = vld [vmem:[#allocation164_spill] sm:$0xff]  ;;  %v15301_v4 = vld [vmem:[#allocation169_spill] sm:$0xff]  ;;  %v12559_v30 = vpop.permute.xlu1 %2579  ;;  %15305 = vst [vmem:[#allocation20_spill] sm:$0xff] %v12564_v56  ;;  %v12568_v25 = vadd.f32 %v15307_v38, %v1228_v16 }
 0x23b   : > { %v1723_v34 = vadd.f32 %v15300_v2, %v15299_v43  ;;  %v15302_v7 = vld [vmem:[#allocation118_spill] sm:$0xff]  ;;  %v15303_v48 = vld [vmem:[#allocation31_spill] sm:$0xff]  ;;  %15304 = vst [vmem:[#allocation44_spill] sm:$0xff] %v12559_v30  ;;  %v15306_v20 = vld [vmem:[#allocation37_spill] sm:$0xff] }
 0x23c   : > { %v2218_v9 = vadd.f32 %v15302_v7, %v15301_v4  ;;  %v915_v12 = vadd.f32 %v15303_v48, %v898_v37  ;;  %v750_v61 = vadd.f32 %v15306_v20, %v733_v17  ;;  %v15308_v43 = vld [vmem:[#allocation108_spill] sm:$0xff]  ;;  %v12573_v4 = vpop.permute.xlu0 %2414  ;;  %v12578_v37 = vsel %vm351_vm0, %v2993_v54, %v2994_v32  ;;  %v15311_v7 = vld [vmem:[#allocation145_spill] sm:$0xff]  ;;  %v15312_v48 = vld [vmem:[#allocation183_spill] sm:$0xff] }
 0x23d   : > { %v12571_v2 = vadd.f32 %v15308_v43, %v1063_v59  ;;  %15309 = vst [vmem:[#allocation36_spill] sm:$0xff] %v12573_v4  ;;  %15310 = vst [vmem:[#allocation141_spill] sm:$0xff] %v12578_v37  ;;  %v2053_v62 = vadd.f32 %v15312_v48, %v15311_v7  ;;  %v15313_v3 = vld [vmem:[#allocation135_spill] sm:$0xff]  ;;  %v15314_v17 = vld [vmem:[#allocation72_spill] sm:$0xff] }
 0x23e   : > { %v12583_v44 = vadd.f32 %v15313_v3, %v1558_v27  ;;  %v12586_v16 = vadd.f32 %v15314_v17, %v1393_v45  ;;  %v15315_v20 = vld [vmem:[#allocation142_spill] sm:$0xff]  ;;  %v15316_v38 = vld [vmem:[#allocation112_spill] sm:$0xff]  ;;  %v15317_v43 = vld [vmem:[#allocation165_spill] sm:$0xff] }
 0x23f   : > { %v12589_v59 = vadd.f32 %v15315_v20, %v1888_v15  ;;  %v2548_v56 = vadd.f32 %v15317_v43, %v15316_v38  ;;  %v15318_v54 = vld [vmem:[#allocation125_spill] sm:$0xff]  ;;  %v15322_v3 = vld [vmem:[#allocation148_spill] sm:$0xff]  ;;  %v15323_v45 = vld [vmem:[#allocation78_spill] sm:$0xff]  ;;  %v12605_v15 = vpop.permute.xlu1 %2909 }
 0x240   : > { %v15319_v37 = vld [vmem:[#allocation129_spill] sm:$0xff]  ;;  %v12600_v30 = vadd.f32 %v15322_v3, %v1723_v34  ;;  %v12603_v17 = vadd.f32 %v15323_v45, %v2218_v9  ;;  %15324 = vst [vmem:[#allocation46_spill] sm:$0xff] %v12605_v15  ;;  %v12611_v32 = vpop.permute.xlu0 %2744  ;;  %v3318_v3 = vlaneseq  ;;  %v15329_v45 = vld [vmem:[#allocation115_spill] sm:$0xff]  ;;  %v15330_v15 = vld [vmem:[#allocation52_spill] sm:$0xff] }
 0x241   : > { %v2383_v4 = vadd.f32 %v15319_v37, %v15318_v54  ;;  %v15320_v7 = vld [vmem:[#allocation29_spill] sm:$0xff]  ;;  %15327 = vst [vmem:[#allocation30_spill] sm:$0xff] %v12611_v32  ;;  %v15328_v54 = vld [vmem:[#allocation32_spill] sm:$0xff]  ;;  %v606_v31 = vadd.f32 %v15329_v45, %v585_v46  ;;  %v12622_v50 = vadd.f32 %v15330_v15, %v2548_v56  ;;  %v15331_v32 = vld [vmem:[#allocation134_spill] sm:$0xff] }
 0x242   : > { %v15321_v48 = vld [vmem:[#allocation45_spill] sm:$0xff]  ;;  %v12618_v9 = vadd.f32 %v15328_v54, %v2053_v62  ;;  %v441_v37 = vadd.f32 %v15331_v32, %v420_v33  ;;  %v8403_v33 = vmov 1934713408   ;;  %v15339_v46 = vld [vmem:[#allocation34_spill] sm:$0xff] }
 0x243   : > { %v2878_v27 = vadd.f32 %v15321_v48, %v15320_v7  ;;  %v15325_v20 = vld [vmem:[#allocation133_spill] sm:$0xff]  ;;  %v8402_v7 = vmov 1983009808   ;;  %v12630_v34 = vadd.f32 %v15332_v5, %v2383_v4  ;;  %v623_v54 = vpop.permute.xlu1 %622  ;;  %v3380_v32 = vunpack.c.l.s4 %v8403_v33  ;;  %v15335_v5 = vld [vmem:[#allocation114_spill] sm:$0xff]  ;;  %v15336_v4 = vld [vmem:[#allocation76_spill] sm:$0xff] }
 0x244   : > { %v15326_v38 = vld [vmem:[#allocation73_spill] sm:$0xff]  ;;  %v3316_v48 = vunpack.c.l.s4 %v8402_v7  ;;  %v627_v15 = vadd.f32 %v623_v54, %v606_v31  ;;  %v458_v7 = vpop.permute.xlu0 %457  ;;  %v15342_v31 = vld [vmem:[#allocation94_spill] sm:$0xff]  ;;  %v15344_v33 = vstv %s12501_s2 }
 0x245   : > { %v2713_v43 = vadd.f32 %v15326_v38, %v15325_v20  ;;  %v12633_v62 = vadd.f32 %v12314_v55, %v2878_v27  ;;  %v12644_v38 = vadd.f32 %v15336_v4, %v15335_v5  ;;  %v462_v55 = vadd.f32 %v458_v7, %v441_v37  ;;  %v15343_v54 = vld [vmem:[#allocation137_spill] sm:$0xff] }
 0x246   : > { %v3317_v27 = vunpack.c.0.s8 %v3316_v48  ;;  %v3319_v20 = vshrl.u32 %v3318_v3, 7  ;;  %v936_v45 = vadd.f32 %v15343_v54, %v915_v12  ;;  %v15345_v5 = vld [vmem:[#allocation21_spill] sm:$0xff]  ;;  %v1949_v3 = vstv %s12607_s19 }
 0x247   : > { %15333 = vst [vmem:[#allocation48_spill] sm:$0xff] %v12633_v62  ;;  %v12639_v56 = vadd.f32 %v12339_v49, %v2713_v43  ;;  %15337 = vst [vmem:[#allocation106_spill] sm:$0xff] %v12644_v38  ;;  %v15338_v62 = vld [vmem:[#allocation22_spill] sm:$0xff]  ;;  %v15341_v49 = vld [vmem:[#allocation51_spill] sm:$0xff]  ;;  %v401_v4 = vadd.f32 %v15345_v5, %v12280_v0  ;;  %v953_v48 = vpop.permute.xlu1 %952  ;;  %v15347_v7 = vstv %s12503_s18  ;;  %v2279_v5 = vstv %s12624_s26 }
 0x248   : > { %v12648_v35 = vadd.f32 %v15339_v46, %v15338_v62  ;;  %v567_v43 = vadd.f32 %v15342_v31, %v15341_v49  ;;  %v15346_v38 = vld [vmem:[#allocation110_spill] sm:$0xff]  ;;  %v466_v62 = vadd.f32 %v15347_v7, %v462_v55  ;;  %v957_v46 = vadd.f32 %v953_v48, %v936_v45 }
 0x249   : > { %15334 = vst [vmem:[#allocation89_spill] sm:$0xff] %v12639_v56  ;;  %v631_v56 = vadd.f32 %v15344_v33, %v627_v15  ;;  %v771_v37 = vadd.f32 %v15346_v38, %v750_v61  ;;  %v1784_v49 = vstv %s12613_s8  ;;  %v3381_v31 = vunpack.c.0.s8 %v3380_v32  ;;  %v15348_v15 = vld [vmem:[#allocation185_spill] sm:$0xff]  ;;  %v15349_v45 = vld [vmem:[#allocation122_spill] sm:$0xff]  ;;  %s8412_s8 = smov [#allocation8]  }
 0x24a   : > { %15340 = vst [vmem:[#allocation18_spill] sm:$0xff] %v12648_v35  ;;  %v788_v35 = vpop.permute.xlu0 %787  ;;  %v897_v54 = vadd.f32 %v15348_v15, %v12305_v36  ;;  %v468_v61 = vmax.f32 %v466_v62, 0.0  ;;  %v12670_v38 = vsub.s32 %v3317_v27, %v3319_v20  ;;  %v1266_v55 = vadd.f32 %v15349_v45, %v12568_v25  ;;  %s8327_s26 = sshll.u32 %s8412_s8, 4  ;;  %s8328_s26 = int_to_ptr.vmem [resolvable:$false] %s8327_s26 }
 0x24b   : > { %v633_v12 = vmax.f32 %v631_v56, 0.0  ;;  %v792_v0 = vadd.f32 %v788_v35, %v771_v37  ;;  %v12675_v33 = vadd.f32 %v12319_v28, %v567_v43  ;;  %v15350_v56 = vstv %s12527_s0  ;;  %v15351_v35 = vld [vmem:[#allocation171_spill] sm:$0xff]  ;;  %v1283_v27 = vpop.permute.xlu1 %1282  ;;  %v15353_v43 = vld [vmem:[#allocation146_spill] sm:$0xff] }
 0x24c   : > { %v961_v36 = vadd.f32 %v15350_v56, %v957_v46  ;;  %v1101_v32 = vadd.f32 %v15351_v35, %v12571_v2  ;;  %v12686_v37 = vadd.f32 %v12369_v11, %v401_v4  ;;  %v2114_v48 = vstv %s12635_s22  ;;  %471 = vst.msk [vmem:[#allocation2 + $0x8] sm:$0xff] %vm469_vm2, %v468_v61  ;;  %v15354_v11 = vld [vmem:[#allocation170_spill] sm:$0xff]  ;;  %s8329_s22 = scalar_lea.vmem %s8328_s26, 12288 }
 0x24d   : > { %636 = vst.msk [vmem:[#allocation2 + $0x18] sm:$0xff] %vm469_vm2, %v633_v12  ;;  %v15352_v28 = vstv %s12529_s1  ;;  %v732_v7 = vadd.f32 %v15353_v43, %v12309_v63  ;;  %v1287_v62 = vadd.f32 %v1283_v27, %v1266_v55  ;;  %v12694_v15 = vsub.s32 %v3381_v31, %v3319_v20  ;;  %v15356_v63 = vld [vmem:[#allocation130_spill] sm:$0xff] }
 0x24e   : > { %v796_v25 = vadd.f32 %v15352_v28, %v792_v0  ;;  %v1118_v12 = vpop.permute.xlu0 %1117  ;;  %v963_v46 = vmax.f32 %v961_v36, 0.0  ;;  %v1227_v2 = vadd.f32 %v15354_v11, %v12325_v24  ;;  %v12699_v4 = vadd.f32 %v12374_v1, %v897_v54  ;;  %v15355_v0 = vld [vmem:[#allocation35_spill] sm:$0xff]  ;;  %v15358_v24 = vld [vmem:[#allocation172_spill] sm:$0xff] }
 0x24f   : > { %v1122_v45 = vadd.f32 %v1118_v12, %v1101_v32  ;;  %v1062_v56 = vadd.f32 %v15355_v0, %v12348_v8  ;;  %v1596_v55 = vadd.f32 %v15356_v63, %v12583_v44  ;;  %v14249_v35 = vstv %s12653_s21  ;;  %v15359_v1 = vld [vmem:[#allocation179_spill] sm:$0xff]  ;;  %v15360_v32 = vld [vmem:[#allocation132_spill] sm:$0xff]  ;;  %v1613_v8 = vpop.permute.xlu1 %1612 }
 0x250   : > { %v798_v61 = vmax.f32 %v796_v25, 0.0  ;;  %966 = vst.msk [vmem:[#allocation2 + $0x38] sm:$0xff] %vm469_vm2, %v963_v46  ;;  %v15357_v20 = vstv %s12550_s14  ;;  %v1557_v36 = vadd.f32 %v15358_v24, %v12352_v23  ;;  %v1392_v54 = vadd.f32 %v15359_v1, %v12356_v57  ;;  %v15362_v0 = vld [vmem:[#allocation68_spill] sm:$0xff]  ;;  %v15367_v1 = vld [vmem:[#allocation150_spill] sm:$0xff] }
 0x251   : > { %v1291_v31 = vadd.f32 %v15357_v20, %v1287_v62  ;;  %v1431_v27 = vadd.f32 %v15360_v32, %v12586_v16  ;;  %v15361_v44 = vstv %s12552_s13  ;;  %v12719_v25 = vadd.f32 %v12380_v14, %v732_v7 }
 0x252   : > { %801 = vst.msk [vmem:[#allocation2 + $0x28] sm:$0xff] %vm469_vm2, %v798_v61  ;;  %v1126_v28 = vadd.f32 %v15361_v44, %v1122_v45  ;;  %v1617_v43 = vadd.f32 %v1613_v8, %v1596_v55  ;;  %v1448_v62 = vpop.permute.xlu0 %1447  ;;  %v14248_v12 = vstv %s12664_s12  ;;  %v12723_v57 = vadd.f32 %v12393_v52, %v1227_v2  ;;  %v15364_v55 = vld [vmem:[#allocation152_spill] sm:$0xff] }
 0x253   : > { %v1293_v23 = vmax.f32 %v1291_v31, 0.0  ;;  %v1452_v46 = vadd.f32 %v1448_v62, %v1431_v27  ;;  %v14247_v11 = vstv %s12668_s9  ;;  %v1926_v63 = vadd.f32 %v15362_v0, %v12589_v59  ;;  %v1943_v31 = vpop.permute.xlu1 %1942 }
 0x254   : > { %v1128_v16 = vmax.f32 %v1126_v28, 0.0  ;;  %v12729_v61 = vadd.f32 %v12421_v18, %v1062_v56  ;;  %v14246_v45 = vstv %s12678_s7  ;;  %v15363_v14 = vstv %s12561_s16  ;;  %v15366_v56 = vld [vmem:[#allocation61_spill] sm:$0xff] }
 0x255   : > { %1296 = vst.msk [vmem:[#allocation2 + $0x58] sm:$0xff] %vm469_vm2, %v1293_v23  ;;  %v1621_v7 = vadd.f32 %v15363_v14, %v1617_v43  ;;  %v1761_v20 = vadd.f32 %v15364_v55, %v12600_v30  ;;  %v12738_v52 = vadd.f32 %v12430_v13, %v1557_v36  ;;  %v12741_v2 = vadd.f32 %v12448_v60, %v1392_v54  ;;  %v15368_v36 = vld [vmem:[#allocation154_spill] sm:$0xff]  ;;  %v15369_v54 = vld [vmem:[#allocation81_spill] sm:$0xff]  ;;  %v15375_v14 = vld [vmem:[#allocation75_spill] sm:$0xff] }
 0x256   : > { %1131 = vst.msk [vmem:[#allocation2 + $0x48] sm:$0xff] %vm469_vm2, %v1128_v16  ;;  %v15365_v18 = vstv %s12575_s17  ;;  %v1887_v24 = vadd.f32 %v15366_v56, %v12364_v39  ;;  %v1722_v32 = vadd.f32 %v15367_v1, %v12388_v10  ;;  %v1947_v30 = vadd.f32 %v1943_v31, %v1926_v63  ;;  %v1778_v27 = vpop.permute.xlu0 %1777  ;;  %v15370_v43 = vld [vmem:[#allocation85_spill] sm:$0xff]  ;;  %v15371_v39 = vld [vmem:[#allocation38_spill] sm:$0xff]  ;;  %v15372_v10 = vld [vmem:[#allocation40_spill] sm:$0xff] }
 0x257   : > { %v1456_v59 = vadd.f32 %v15365_v18, %v1452_v46  ;;  %v1623_v13 = vmax.f32 %v1621_v7, 0.0  ;;  %v2217_v60 = vadd.f32 %v15368_v36, %v12402_v47  ;;  %v2052_v8 = vadd.f32 %v15369_v54, %v12412_v6  ;;  %v15373_v47 = vld [vmem:[#allocation161_spill] sm:$0xff]  ;;  %v15374_v6 = vld [vmem:[#allocation163_spill] sm:$0xff]  ;;  %v2273_v55 = vpop.permute.xlu1 %2272 }
 0x258   : > { %v1782_v44 = vadd.f32 %v1778_v27, %v1761_v20  ;;  %v2547_v62 = vadd.f32 %v15370_v43, %v12416_v29  ;;  %v2382_v23 = vadd.f32 %v15371_v39, %v12443_v19  ;;  %v2256_v46 = vadd.f32 %v15372_v10, %v12603_v17  ;;  %v12786_v56 = vld [vmem:[#allocation2 + $0x38] sm:$0xff]  ;;  %v15380_v54 = vld [vmem:[#allocation23_spill] sm:$0xff] }
 0x259   : > { %v1458_v28 = vmax.f32 %v1456_v59, 0.0  ;;  %v1951_v16 = vadd.f32 %v1949_v3, %v1947_v30  ;;  %1626 = vst.msk [vmem:[#allocation2 + $0x78] sm:$0xff] %vm469_vm2, %v1623_v13  ;;  %v2877_v0 = vadd.f32 %v15373_v47, %v12458_v41  ;;  %v2712_v63 = vadd.f32 %v15374_v6, %v12477_v21  ;;  %v15378_v13 = vld [vmem:[#allocation43_spill] sm:$0xff]  ;;  %v12812_v36 = vld [vmem:[#allocation2 + $0x18] sm:$0xff]  ;;  %v15383_v6 = vld [vmem:[#allocation106_spill] sm:$0xff] }
 0x25a   : > { %v2091_v7 = vadd.f32 %v15375_v14, %v12618_v9  ;;  %v1786_v29 = vadd.f32 %v1784_v49, %v1782_v44  ;;  %v12775_v19 = vadd.f32 %v12463_v26, %v1887_v24  ;;  %v12778_v17 = vadd.f32 %v12472_v22, %v1722_v32  ;;  %v2108_v21 = vpop.permute.xlu0 %2107  ;;  %v15376_v26 = vld [vmem:[#allocation113_spill] sm:$0xff]  ;;  %v12799_v32 = vld [vmem:[#allocation2 + $0x28] sm:$0xff] }
 0x25b   : > { %1461 = vst.msk [vmem:[#allocation2 + $0x68] sm:$0xff] %vm469_vm2, %v1458_v28  ;;  %v1953_v41 = vmax.f32 %v1951_v16, 0.0  ;;  %v2277_v20 = vadd.f32 %v2273_v55, %v2256_v46  ;;  %v12781_v9 = vadd.f32 %v12484_v58, %v2217_v60  ;;  %v12784_v31 = vadd.f32 %v12489_v51, %v2052_v8  ;;  %v15377_v51 = vld [vmem:[#allocation157_spill] sm:$0xff]  ;;  %v12820_v28 = vld [vmem:[#allocation2 + $0x8] sm:$0xff] }
 0x25c   : > { %v1788_v18 = vmax.f32 %v1786_v29, 0.0  ;;  %v2112_v59 = vadd.f32 %v2108_v21, %v2091_v7  ;;  %v2586_v24 = vadd.f32 %v15376_v26, %v12622_v50  ;;  %v12791_v22 = vadd.f32 %v12495_v53, %v2547_v62  ;;  %v15379_v60 = vld [vmem:[#allocation177_spill] sm:$0xff]  ;;  %v15382_v39 = vld [vmem:[#allocation187_spill] sm:$0xff]  ;;  %v15385_v7 = vld [vmem:[#allocation48_spill] sm:$0xff] }
 0x25d   : > { %v12794_v1 = vadd.f32 %v12512_v40, %v2382_v23  ;;  %1956 = vst.msk [vmem:[#allocation2 + $0x98] sm:$0xff] %vm469_vm2, %v1953_v41  ;;  %v2281_v58 = vadd.f32 %v2279_v5, %v2277_v20  ;;  %v2421_v30 = vadd.f32 %v15377_v51, %v12630_v34  ;;  %v12804_v27 = vadd.f32 %v12517_v42, %v2877_v0  ;;  %v2603_v40 = vpop.permute.xlu1 %2602  ;;  %v15381_v62 = vld [vmem:[#allocation49_spill] sm:$0xff]  ;;  %v12843_v20 = vld [vmem:[#allocation2 + $0x48] sm:$0xff]  ;;  %v15388_v26 = vld [vmem:[#allocation140_spill] sm:$0xff] }
 0x25e   : > { %v12807_v50 = vadd.f32 %v15378_v13, %v2712_v63  ;;  %1791 = vst.msk [vmem:[#allocation2 + $0x88] sm:$0xff] %vm469_vm2, %v1788_v18  ;;  %v2116_v53 = vadd.f32 %v2114_v48, %v2112_v59  ;;  %v12818_v8 = vadd.f32 %v15380_v54, %v15379_v60  ;;  %v2607_v42 = vadd.f32 %v2603_v40, %v2586_v24  ;;  %v2438_v44 = vpop.permute.xlu0 %2437  ;;  %v12828_v16 = vld [vmem:[#allocation2 + $0x58] sm:$0xff]  ;;  %v15384_v63 = vld [vmem:[#allocation184_spill] sm:$0xff] }
 0x25f   : > { %v2283_v34 = vmax.f32 %v2281_v58, 0.0  ;;  %v3667_v43 = vcombine.low %v12812_v36, %v12786_v56  ;;  %v12826_v23 = vadd.f32 %v15382_v39, %v15381_v62  ;;  %v2442_v46 = vadd.f32 %v2438_v44, %v2421_v30  ;;  %v15386_v29 = vld [vmem:[#allocation77_spill] sm:$0xff] }
 0x260   : > { %v2118_v10 = vmax.f32 %v2116_v53, 0.0  ;;  %v12830_v47 = vld [vmem:[#allocation2 + $0x78] sm:$0xff]  ;;  %v3651_v0 = vcombine.low %v12820_v28, %v12799_v32  ;;  %v12836_v14 = vadd.f32 %v15384_v63, %v15383_v6  ;;  %v2916_v55 = vadd.f32 %v15386_v29, %v15385_v7  ;;  %v8287_v63 = vld [vmem:[%s8561_s23 + $0x1a0] sm:$0xff]  ;;  %v8288_v29 = vld [vmem:[%s8561_s23 + $0x1a8] sm:$0x3] }
 0x261   : > { %2286 = vst.msk [vmem:[#allocation2 + $0xb8] sm:$0xff] %vm469_vm2, %v2283_v34  ;;  %v2611_v41 = vadd.f32 %v14249_v35, %v2607_v42  ;;  %v3699_v18 = vcombine.low %v12828_v16, %v12830_v47  ;;  %v15387_v59 = vld [vmem:[#allocation89_spill] sm:$0xff]  ;;  %v2446_v58 = vadd.f32 %v14248_v12, %v2442_v46  ;;  %v2933_v51 = vpop.permute.xlu1 %2932  ;;  %v12857_v13 = vstv %s12772_s24  ;;  %v15390_v46 = vld [vmem:[#allocation55_spill] sm:$0xff] }
 0x262   : > { %v12845_v21 = vld [vmem:[#allocation2 + $0x68] sm:$0xff]  ;;  %v2751_v24 = vadd.f32 %v15388_v26, %v15387_v59  ;;  %2121 = vst.msk [vmem:[#allocation2 + $0xa8] sm:$0xff] %vm469_vm2, %v2118_v10  ;;  %v2937_v40 = vadd.f32 %v2933_v51, %v2916_v55  ;;  %v2768_v60 = vpop.permute.xlu0 %2767  ;;  %v12860_v54 = vrot.slane %v3667_v43, %v12670_v38  ;;  %v12866_v62 = vrot.slane %v3651_v0, %v12670_v38  ;;  %v15389_v10 = vld [vmem:[#allocation18_spill] sm:$0xff] }
 0x263   : > { %v3683_v30 = vcombine.low %v12843_v20, %v12845_v21  ;;  %v2613_v53 = vmax.f32 %v2611_v41, 0.0  ;;  %v12863_v34 = vrot.slane %v3699_v18, %v12670_v38  ;;  %v2448_v42 = vmax.f32 %v2446_v58, 0.0  ;;  %v15391_v0 = vld [vmem:[#allocation70_spill] sm:$0xff] }
 0x264   : > { %v2772_v44 = vadd.f32 %v2768_v60, %v2751_v24  ;;  %v12873_v6 = vadd.f32 %v15390_v46, %v15389_v10  ;;  %v2941_v43 = vadd.f32 %v14247_v11, %v2937_v40  ;;  %v12880_v7 = vmul.f32 %v8287_v63, %v12857_v13  ;;  %v15392_v58 = vld [vmem:[#allocation158_spill] sm:$0xff]  ;;  %v15394_v40 = vld [vmem:[#allocation84_spill] sm:$0xff]  ;;  %v15396_v46 = vld [vmem:[#allocation175_spill] sm:$0xff] }
 0x265   : > { %v12869_v39 = vrot.slane %v3683_v30, %v12670_v38  ;;  %2616 = vst.msk [vmem:[#allocation2 + $0xd8] sm:$0xff] %vm469_vm2, %v2613_v53  ;;  %v12884_v55 = vmul.f32 %v8288_v29, %v12857_v13  ;;  %v605_v41 = vadd.f32 %v15391_v0, %v12675_v33  ;;  %2451 = vst.msk [vmem:[#allocation2 + $0xc8] sm:$0xff] %vm469_vm2, %v2448_v42  ;;  %v12891_v59 = vpop.permute.xlu1 %3182  ;;  %v12896_v24 = vstv %s12814_s27  ;;  %v15393_v30 = vld [vmem:[#allocation19_spill] sm:$0xff] }
 0x266   : > { %v2776_v18 = vadd.f32 %v14246_v45, %v2772_v44  ;;  %v440_v51 = vadd.f32 %v15392_v58, %v12686_v37  ;;  %v935_v53 = vadd.f32 %v15393_v30, %v12699_v4  ;;  %v770_v33 = vadd.f32 %v15394_v40, %v12719_v25  ;;  %v12904_v42 = vpop.permute.xlu0 %3017  ;;  %v15395_v44 = vld [vmem:[#allocation59_spill] sm:$0xff]  ;;  %v15398_v25 = vld [vmem:[#allocation33_spill] sm:$0xff] }
 0x267   : > { %v3747_v26 = vcombine.low %v12869_v39, %v12863_v34  ;;  %v2943_v60 = vmax.f32 %v2941_v43, 0.0  ;;  %v1265_v10 = vadd.f32 %v15395_v44, %v12723_v57  ;;  %v12910_v63 = vadd.f32 %v15396_v46, %v12729_v61  ;;  %v15397_v4 = vld [vmem:[#allocation27_spill] sm:$0xff]  ;;  %v15400_v40 = vld [vmem:[#allocation153_spill] sm:$0xff] }
 0x268   : > { %v2778_v29 = vmax.f32 %v2776_v18, 0.0  ;;  %v12912_v0 = vld [vmem:[#allocation2 + $0xb8] sm:$0xff]  ;;  %v3715_v37 = vcombine.low %v12866_v62, %v12860_v54  ;;  %v12918_v58 = vadd.f32 %v15397_v4, %v12738_v52  ;;  %v12922_v43 = vadd.f32 %v15398_v25, %v12741_v2  ;;  %v15399_v57 = vld [vmem:[#allocation159_spill] sm:$0xff]  ;;  %v15401_v52 = vld [vmem:[#allocation50_spill] sm:$0xff] }
 0x269   : > { %v12926_v30 = vadd.f32 %v15399_v57, %v12775_v19  ;;  %2946 = vst.msk [vmem:[#allocation2 + $0xf8] sm:$0xff] %vm469_vm2, %v2943_v60  ;;  %v12929_v61 = vld [vmem:[#allocation2 + $0xa8] sm:$0xff]  ;;  %v3668_v18 = vcombine.high %v12812_v36, %v12786_v56  ;;  %v12935_v44 = vadd.f32 %v15400_v40, %v12778_v17  ;;  %v12939_v46 = vadd.f32 %v15401_v52, %v12781_v9  ;;  %v621_v2 = vpop.permute.xlu1 %620  ;;  %v3296_v60 = vld [vmem:[#allocation2 + $0x98] sm:$0xff]  ;;  %v15402_v17 = vld [vmem:[#allocation128_spill] sm:$0xff] }
 0x26a   : > { %2781 = vst.msk [vmem:[#allocation2 + $0xe8] sm:$0xff] %vm469_vm2, %v2778_v29  ;;  %v12942_v19 = vld [vmem:[#allocation2 + $0x88] sm:$0xff]  ;;  %v12945_v4 = vrot.slane %v3747_v26, %v12694_v15  ;;  %v3652_v56 = vcombine.high %v12820_v28, %v12799_v32  ;;  %v12951_v36 = vadd.f32 %v15402_v17, %v12784_v31  ;;  %v626_v9 = vadd.f32 %v621_v2, %v605_v41  ;;  %v456_v25 = vpop.permute.xlu0 %455  ;;  %v15403_v31 = vld [vmem:[#allocation44_spill] sm:$0xff] }
 0x26b   : > { %v3787_v29 = vcombine.low %v12942_v19, %v12929_v61  ;;  %v3803_v57 = vcombine.low %v3296_v60, %v12912_v0  ;;  %v461_v40 = vadd.f32 %v456_v25, %v440_v51  ;;  %v12957_v52 = vrot.slane %v3715_v37, %v12694_v15  ;;  %v15404_v41 = vld [vmem:[#allocation36_spill] sm:$0xff] }
 0x26c   : > { %v3684_v26 = vcombine.high %v12843_v20, %v12845_v21  ;;  %v3700_v32 = vcombine.high %v12828_v16, %v12830_v47  ;;  %v12965_v28 = vadd.f32 %v15403_v31, %v12791_v22  ;;  %v12969_v2 = vadd.f32 %v15404_v41, %v12794_v1  ;;  %v3304_v41 = vld [vmem:[#allocation2 + $0xd8] sm:$0xff] }
 0x26d   : > { %v15405_v17 = vstv %s12501_s2  ;;  %v12974_v51 = vrot.slane %v3668_v18, %v12670_v38  ;;  %v15406_v37 = vstv %s12503_s18  ;;  %v951_v11 = vpop.permute.xlu1 %950  ;;  %v3716_v16 = vcombine.high %v12866_v62, %v12860_v54  ;;  %s13210_s2 = sld [smem:[#allocation6 + $0x10]]  ;;  %s8409_s18 = smov 96  }
 0x26e   : > { %v630_v45 = vadd.f32 %v15405_v17, %v626_v9  ;;  %v465_v25 = vadd.f32 %v15406_v37, %v461_v40  ;;  %v12981_v47 = vrot.slane %v3652_v56, %v12670_v38  ;;  %v956_v20 = vadd.f32 %v951_v11, %v935_v53  ;;  %v786_v21 = vpop.permute.xlu0 %785  ;;  %v3302_v53 = vld [vmem:[#allocation2 + $0xc8] sm:$0xff] }
 0x26f   : > { %v3795_v9 = vrot.slane %v3787_v29, %v12670_v38  ;;  %v3811_v18 = vrot.slane %v3803_v57, %v12670_v38  ;;  %v791_v31 = vadd.f32 %v786_v21, %v770_v33  ;;  %v12988_v54 = vrot.slane %v3684_v26, %v12670_v38 }
 0x270   : > { %v632_v1 = vmax.f32 %v630_v45, 0.0  ;;  %v467_v40 = vmax.f32 %v465_v25, 0.0  ;;  %v3308_v17 = vld [vmem:[#allocation2 + $0xf8] sm:$0xff]  ;;  %v12991_v62 = vrot.slane %v3700_v32, %v12670_v38  ;;  %v15407_v45 = vstv %s12527_s0  ;;  %s8410_s0 = smov 112  }
 0x271   : > { %v960_v11 = vadd.f32 %v15407_v45, %v956_v20  ;;  %v3306_v56 = vld [vmem:[#allocation2 + $0xe8] sm:$0xff]  ;;  %v3835_v29 = vcombine.low %v3304_v41, %v3308_v17  ;;  %v3804_v37 = vcombine.high %v3296_v60, %v12912_v0  ;;  %v3836_v57 = vcombine.high %v3304_v41, %v3308_v17  ;;  %v1281_v26 = vpop.permute.xlu1 %1280 }
 0x272   : > { %635 = vst.msk [vmem:[#allocation2 + $0x10] sm:$0xff] %vm469_vm2, %v632_v1  ;;  %470 = vst.msk [vmem:[#allocation2] sm:$0xff] %vm469_vm2, %v467_v40  ;;  %v15408_v33 = vstv %s12529_s1  ;;  %v3819_v21 = vcombine.low %v3302_v53, %v3306_v56  ;;  %v3788_v32 = vcombine.high %v12942_v19, %v12929_v61  ;;  %v3820_v22 = vcombine.high %v3302_v53, %v3306_v56  ;;  %v1116_v45 = vpop.permute.xlu0 %1115 }
 0x273   : > { %v795_v25 = vadd.f32 %v15408_v33, %v791_v31  ;;  %v962_v1 = vmax.f32 %v960_v11, 0.0  ;;  %v1286_v20 = vadd.f32 %v1281_v26, %v1265_v10  ;;  %v3843_v12 = vrot.slane %v3835_v29, %v12670_v38 }
 0x274   : > { %v3851_v35 = vcombine.low %v3795_v9, %v3811_v18  ;;  %v1121_v60 = vadd.f32 %v1116_v45, %v12910_v63  ;;  %v3827_v40 = vrot.slane %v3819_v21, %v12670_v38  ;;  %v3748_v31 = vcombine.high %v12869_v39, %v12863_v34 }
 0x275   : > { %v797_v0 = vmax.f32 %v795_v25, 0.0  ;;  %965 = vst.msk [vmem:[#allocation2 + $0x30] sm:$0xff] %vm469_vm2, %v962_v1  ;;  %v15409_v41 = vstv %s12550_s14  ;;  %v3852_v19 = vcombine.high %v3795_v9, %v3811_v18  ;;  %v13011_v17 = vrot.slane %v3804_v37, %v12670_v38  ;;  %v1611_v53 = vpop.permute.xlu1 %1610 }
 0x276   : > { %v1290_v61 = vadd.f32 %v15409_v41, %v1286_v20  ;;  %v13014_v10 = vrot.slane %v3836_v57, %v12670_v38  ;;  %v15410_v11 = vstv %s12552_s13  ;;  %v3883_v56 = vcombine.low %v3827_v40, %v3843_v12  ;;  %v1446_v18 = vpop.permute.xlu0 %1445 }
 0x277   : > { %800 = vst.msk [vmem:[#allocation2 + $0x20] sm:$0xff] %vm469_vm2, %v797_v0  ;;  %v1125_v63 = vadd.f32 %v15410_v11, %v1121_v60  ;;  %v3884_v29 = vcombine.high %v3827_v40, %v3843_v12  ;;  %v13020_v34 = vrot.slane %v3820_v22, %v12670_v38  ;;  %v1616_v9 = vadd.f32 %v1611_v53, %v12918_v58 }
 0x278   : > { %v1292_v39 = vmax.f32 %v1290_v61, 0.0  ;;  %v13024_v37 = vrot.slane %v3851_v35, %v12694_v15  ;;  %v13027_v57 = vrot.slane %v3788_v32, %v12670_v38  ;;  %v1451_v25 = vadd.f32 %v1446_v18, %v12922_v43 }
 0x279   : > { %v1127_v33 = vmax.f32 %v1125_v63, 0.0  ;;  %v13031_v26 = vrot.slane %v3883_v56, %v12694_v15  ;;  %v13034_v12 = vrot.slane %v3884_v29, %v12694_v15  ;;  %v15411_v22 = vstv %s12561_s16  ;;  %v1941_v20 = vpop.permute.xlu1 %1940  ;;  %v15413_v56 = vld [vmem:[#allocation46_spill] sm:$0xff]  ;;  %s15427_s16 = sld [smem:[#allocation193_spill]] }
 0x27a   : > { %1295 = vst.msk [vmem:[#allocation2 + $0x50] sm:$0xff] %vm469_vm2, %v1292_v39  ;;  %v1620_v58 = vadd.f32 %v15411_v22, %v1616_v9  ;;  %v3780_v35 = vcombine.high %v12957_v52, %v12945_v4  ;;  %v13042_v21 = vrot.slane %v3716_v16, %v12694_v15  ;;  %v13045_v32 = vrot.slane %v3748_v31, %v12694_v15  ;;  %v1776_v31 = vpop.permute.xlu0 %1775  ;;  %v15414_v39 = vld [vmem:[#allocation30_spill] sm:$0xff] }
 0x27b   : > { %1130 = vst.msk [vmem:[#allocation2 + $0x40] sm:$0xff] %vm469_vm2, %v1127_v33  ;;  %v15412_v43 = vstv %s12575_s17  ;;  %v3916_v45 = vcombine.high %v13024_v37, %v13031_v26  ;;  %v3866_v0 = vrot.slane %v3852_v19, %v12694_v15  ;;  %v3899_v60 = vcombine.low %v13020_v34, %v13014_v10 }
 0x27c   : > { %v1455_v1 = vadd.f32 %v15412_v43, %v1451_v25  ;;  %v1622_v16 = vmax.f32 %v1620_v58, 0.0  ;;  %v1946_v40 = vadd.f32 %v1941_v20, %v12926_v30  ;;  %v3763_v41 = vcombine.low %v12988_v54, %v12991_v62 }
 0x27d   : > { %v3867_v61 = vcombine.low %v13027_v57, %v13011_v17  ;;  %v1781_v63 = vadd.f32 %v1776_v31, %v12935_v44  ;;  %v8120_v53 = vpack.i.bf16 %v3916_v45, %v3780_v35  ;;  %v3917_v19 = vcombine.low %v3866_v0, %v13034_v12 }
 0x27e   : > { %v1457_v11 = vmax.f32 %v1455_v1, 0.0  ;;  %v13064_v29 = vadd.f32 %v15413_v56, %v12804_v27  ;;  %v13068_v30 = vadd.f32 %v15414_v39, %v12807_v50  ;;  %1625 = vst.msk [vmem:[#allocation2 + $0x70] sm:$0xff] %vm469_vm2, %v1622_v16  ;;  %v1950_v9 = vadd.f32 %v1949_v3, %v1946_v40  ;;  %v2271_v27 = vpop.permute.xlu1 %2270  ;;  %v2106_v58 = vpop.permute.xlu0 %2105 }
 0x27f   : > { %v3731_v18 = vcombine.low %v12981_v47, %v12974_v51  ;;  %v1785_v44 = vadd.f32 %v1784_v49, %v1781_v63  ;;  %8121 = vrot.lane.b32.xlu0 %v8120_v53, %s8404_s30  ;;  %v3781_v50 = vcombine.low %v13042_v21, %v13045_v32  ;;  %v13082_v33 = vrot.slane %v3899_v60, %v12694_v15  ;;  %v13095_v60 = vld [vmem:[#allocation2 + $0x20] sm:$0xff] }
 0x280   : > { %1460 = vst.msk [vmem:[#allocation2 + $0x60] sm:$0xff] %vm469_vm2, %v1457_v11  ;;  %v3732_v3 = vcombine.high %v12981_v47, %v12974_v51  ;;  %v1952_v25 = vmax.f32 %v1950_v9, 0.0  ;;  %v2276_v22 = vadd.f32 %v2271_v27, %v12939_v46  ;;  %v13088_v49 = vrot.slane %v3763_v41, %v12694_v15  ;;  %v13107_v41 = vld [vmem:[#allocation2 + $0x30] sm:$0xff]  ;;  %v15419_v47 = vld [vmem:[#allocation111_spill] sm:$0xff] }
 0x281   : > { %v13091_v35 = vrot.slane %v3867_v61, %v12694_v15  ;;  %v1787_v43 = vmax.f32 %v1785_v44, 0.0  ;;  %v2111_v1 = vadd.f32 %v2106_v58, %v12951_v36  ;;  %v8130_v20 = vpack.i.bf16 %v3917_v19, %v3781_v50  ;;  %v13124_v11 = vld [vmem:[#allocation2 + $0x10] sm:$0xff] }
 0x282   : > { %v3918_v45 = vcombine.high %v3866_v0, %v13034_v12  ;;  %1955 = vst.msk [vmem:[#allocation2 + $0x90] sm:$0xff] %vm469_vm2, %v1952_v25  ;;  %v2280_v46 = vadd.f32 %v2279_v5, %v2276_v22  ;;  %v13101_v16 = vrot.slane %v3731_v18, %v12694_v15  ;;  %v3764_v40 = vcombine.high %v12988_v54, %v12991_v62  ;;  %v2601_v12 = vpop.permute.xlu1 %2600  ;;  %v13117_v54 = vld [vmem:[#allocation2] sm:$0xff]  ;;  %v13129_v19 = vld [vmem:[#allocation2 + $0x50] sm:$0xff] }
 0x283   : > { %v3900_v31 = vcombine.high %v13020_v34, %v13014_v10  ;;  %1790 = vst.msk [vmem:[#allocation2 + $0x80] sm:$0xff] %vm469_vm2, %v1787_v43  ;;  %v2115_v36 = vadd.f32 %v2114_v48, %v2111_v1  ;;  %8131 = vrot.lane.b32.xlu0 %v8130_v20, %s8405_s10  ;;  %v3782_v5 = vcombine.high %v13042_v21, %v13045_v32  ;;  %v2436_v48 = vpop.permute.xlu0 %2435  ;;  %v15415_v39 = vstv %s12653_s21  ;;  %v13143_v27 = vld [vmem:[#allocation2 + $0x40] sm:$0xff] }
 0x284   : > { %v3919_v0 = vcombine.low %v13091_v35, %v13082_v33  ;;  %v3915_v62 = vcombine.low %v13024_v37, %v13031_v26  ;;  %v2282_v10 = vmax.f32 %v2280_v46, 0.0  ;;  %v2606_v34 = vadd.f32 %v2601_v12, %v12965_v28 }
 0x285   : > { %v3783_v61 = vcombine.low %v13101_v16, %v13088_v49  ;;  %v3313_v21 = vcombine.low %v13117_v54, %v13095_v60  ;;  %v2117_v32 = vmax.f32 %v2115_v36, 0.0  ;;  %v2441_v63 = vadd.f32 %v2436_v48, %v12969_v2  ;;  %v13131_v56 = vld [vmem:[#allocation2 + $0x70] sm:$0xff] }
 0x286   : > { %v8140_v53 = vpack.i.bf16 %v3918_v45, %v3782_v5  ;;  %v3329_v28 = vcombine.low %v13124_v11, %v13107_v41  ;;  %2285 = vst.msk [vmem:[#allocation2 + $0xb0] sm:$0xff] %vm469_vm2, %v2282_v10  ;;  %v2610_v9 = vadd.f32 %v15415_v39, %v2606_v34  ;;  %v3868_v18 = vcombine.high %v13027_v57, %v13011_v17  ;;  %v2931_v58 = vpop.permute.xlu1 %2930  ;;  %v8289_v10 = vld [vmem:[%s8561_s23 + $0x188] sm:$0xff] }
 0x287   : > { %v13141_v44 = vrot.slane %v3900_v31, %v12694_v15  ;;  %v13145_v2 = vld [vmem:[#allocation2 + $0x60] sm:$0xff]  ;;  %v3361_v50 = vcombine.low %v13129_v19, %v13131_v56  ;;  %2120 = vst.msk [vmem:[#allocation2 + $0xa0] sm:$0xff] %vm469_vm2, %v2117_v32  ;;  %v15416_v25 = vstv %s12664_s12  ;;  %v8150_v17 = vpack.i.bf16 %v3919_v0, %v3783_v61  ;;  %v2766_v45 = vpop.permute.xlu0 %2765 }
 0x288   : > { %v2445_v22 = vadd.f32 %v15416_v25, %v2441_v63  ;;  %8141 = vrot.lane.b32.xlu0 %v8140_v53, %s8406_s29  ;;  %v3920_v57 = vcombine.high %v13091_v35, %v13082_v33  ;;  %v3345_v43 = vcombine.low %v13143_v27, %v13145_v2  ;;  %v2612_v1 = vmax.f32 %v2610_v9, 0.0 }
 0x289   : > { %v2936_v20 = vadd.f32 %v2931_v58, %v13064_v29  ;;  %v13159_v46 = vrot.slane %v3313_v21, %v12670_v38  ;;  %v13162_v31 = vrot.slane %v3361_v50, %v12670_v38  ;;  %v2771_v12 = vadd.f32 %v2766_v45, %v13068_v30  ;;  %v8290_v30 = vld [vmem:[%s8561_s23 + $0x190] sm:$0x3]  ;;  %v8291_v50 = vld [vmem:[%s8561_s23 + $0x198] sm:$0xff] }
 0x28a   : > { %v2447_v36 = vmax.f32 %v2445_v22, 0.0  ;;  %v13166_v33 = vrot.slane %v3329_v28, %v12670_v38  ;;  %v13169_v35 = vrot.slane %v3345_v43, %v12670_v38  ;;  %2615 = vst.msk [vmem:[#allocation2 + $0xd0] sm:$0xff] %vm469_vm2, %v2612_v1  ;;  %v15417_v29 = vstv %s12668_s9  ;;  %v13187_v32 = vpop.permute.xlu1 %3180  ;;  %v8292_v22 = vld [vmem:[%s8561_s23 + $0x180] sm:$0xff]  ;;  %s8408_s23 = smov 80  }
 0x28b   : > { %v2940_v5 = vadd.f32 %v15417_v29, %v2936_v20  ;;  %v13175_v0 = vrot.slane %v3764_v40, %v12694_v15  ;;  %v13179_v34 = vmul.f32 %v8289_v10, %v12896_v24  ;;  %v3048_v48 = vmul.f32 %v8290_v30, %v12896_v24  ;;  %v13196_v39 = vpop.permute.xlu0 %3015 }
 0x28c   : > { %2450 = vst.msk [vmem:[#allocation2 + $0xc0] sm:$0xff] %vm469_vm2, %v2447_v36  ;;  %v15418_v61 = vstv %s12678_s7  ;;  %8151 = vrot.lane.b32.xlu0 %v8150_v17, %s8407_s15  ;;  %v3784_v40 = vcombine.high %v13101_v16, %v13088_v49  ;;  %v13192_v63 = vrot.slane %v3868_v18, %v12694_v15  ;;  %v3409_v53 = vcombine.low %v13169_v35, %v13162_v31 }
 0x28d   : > { %v2775_v21 = vadd.f32 %v15418_v61, %v2771_v12  ;;  %v2942_v28 = vmax.f32 %v2940_v5, 0.0  ;;  %v13202_v9 = vrot.slane %v3732_v3, %v12694_v15  ;;  %v3211_v25 = vmul.f32 %v8291_v50, %v12857_v13  ;;  %v15420_v13 = vld [vmem:[#allocation65_spill] sm:$0xff]  ;;  %v15422_v12 = vld [vmem:[#allocation79_spill] sm:$0xff]  ;;  %v13239_v61 = vld [vmem:[#allocation2 + $0x80] sm:$0xff] }
 0x28e   : > { %v3046_v49 = vmul.f32 %v8292_v22, %v12896_v24  ;;  %v8160_v18 = vpack.i.bf16 %v3920_v57, %v3784_v40  ;;  %v3921_v58 = vcombine.low %v13192_v63, %v13141_v44  ;;  %v3377_v51 = vcombine.low %v13159_v46, %v13166_v33  ;;  %v13223_v1 = vld [vmem:[#allocation2 + $0xa0] sm:$0xff]  ;;  %v13225_v57 = vld [vmem:[#allocation2 + $0xb0] sm:$0xff]  ;;  %v3204_v20 = vpop.permute.xlu1 %3203 }
 0x28f   : > { %v2777_v16 = vmax.f32 %v2775_v21, 0.0  ;;  %v3148_v3 = vadd.f32 %v15419_v47, %v12818_v8  ;;  %v2983_v17 = vadd.f32 %v15420_v13, %v12826_v23  ;;  %2945 = vst.msk [vmem:[#allocation2 + $0xf0] sm:$0xff] %vm469_vm2, %v2942_v28  ;;  %v3218_v24 = vrot.slane %v12880_v7, 2  ;;  %v3039_v5 = vpop.permute.xlu0 %3038  ;;  %v13241_v21 = vld [vmem:[#allocation2 + $0x90] sm:$0xff]  ;;  %v15424_v28 = vld [vmem:[#allocation141_spill] sm:$0xff] }
 0x290   : > { %v3220_v43 = vrot.slane %v12884_v55, 2  ;;  %8161 = vrot.lane.b32.xlu0 %v8160_v18, %s8408_s23  ;;  %v3785_v8 = vcombine.low %v13202_v9, %v13175_v0  ;;  %v3053_v23 = vrot.slane %v13179_v34, 2  ;;  %v3055_v45 = vrot.slane %v3048_v48, 2  ;;  %v15421_v55 = vld [vmem:[#allocation139_spill] sm:$0xff] }
 0x291   : > { %2780 = vst.msk [vmem:[#allocation2 + $0xe0] sm:$0xff] %vm469_vm2, %v2777_v16  ;;  %v13233_v7 = vrot.slane %v3409_v53, %v12694_v15  ;;  %v3166_v36 = vadd.f32 %v15421_v55, %v12836_v14  ;;  %v3001_v29 = vadd.f32 %v15422_v12, %v12873_v6  ;;  %v3217_v10 = vrot.slane %v3211_v25, 2  ;;  %v15423_v53 = vld [vmem:[#allocation20_spill] sm:$0xff] }
 0x292   : > { %v3052_v30 = vrot.slane %v3046_v49, 2  ;;  %v8170_v40 = vpack.i.bf16 %v3921_v58, %v3785_v8  ;;  %v13244_v34 = vrot.slane %v3377_v51, %v12694_v15  ;;  %v3449_v48 = vcombine.low %v13239_v61, %v13223_v1  ;;  %v3202_v49 = vpop.permute.xlu1 %3201  ;;  %v3303_v13 = vld [vmem:[#allocation2 + $0xd0] sm:$0xff] }
 0x293   : > { %v3465_v14 = vcombine.low %v13241_v21, %v13225_v57  ;;  %v3165_v6 = vadd.f32 %v15423_v53, %v3148_v3  ;;  %v3000_v50 = vadd.f32 %v15424_v28, %v2983_v17  ;;  %v3314_v25 = vcombine.high %v13117_v54, %v13095_v60  ;;  %v3037_v47 = vpop.permute.xlu0 %3036 }
 0x294   : > { %v3330_v22 = vcombine.high %v13124_v11, %v13107_v41  ;;  %8171 = vrot.lane.b32.xlu0 %v8170_v40, %s8409_s18  ;;  %v3221_v16 = vsel %vm411_vm1, %v3218_v24, %v3220_v43  ;;  %v3056_v18 = vsel %vm411_vm1, %v3053_v23, %v3055_v45  ;;  %v3346_v58 = vcombine.high %v13143_v27, %v13145_v2  ;;  %v3301_v45 = vld [vmem:[#allocation2 + $0xc0] sm:$0xff] }
 0x295   : > { %v3441_v51 = vcombine.low %v13244_v34, %v13233_v7  ;;  %v3219_v60 = vsel %vm411_vm1, %v3217_v10, %v3218_v24  ;;  %v3054_v54 = vsel %vm411_vm1, %v3052_v30, %v3053_v23  ;;  %v3269_v41 = vstv %s13208_s20 }
 0x296   : > { %v3104_v11 = vstv %s13210_s2  ;;  %v3187_v3 = vadd.f32 %v12891_v59, %v3166_v36  ;;  %v3307_v17 = vld [vmem:[#allocation2 + $0xf0] sm:$0xff]  ;;  %v3457_v43 = vrot.slane %v3449_v48, %v12670_v38  ;;  %v3473_v8 = vrot.slane %v3465_v14, %v12670_v38  ;;  %v3242_v36 = vpop.permute.xlu1 %3241  ;;  %s298_s2 = sand.u32 1, %s8385_s25  }
 0x297   : > { %v3362_v27 = vcombine.high %v13129_v19, %v13131_v56  ;;  %v3022_v2 = vadd.f32 %v12904_v42, %v3001_v29  ;;  %v3497_v24 = vcombine.low %v3303_v13, %v3307_v17  ;;  %v13274_v23 = vrot.slane %v3314_v25, %v12670_v38  ;;  %v3077_v42 = vpop.permute.xlu0 %3076 }
 0x298   : > { %v3305_v55 = vld [vmem:[#allocation2 + $0xe0] sm:$0xff]  ;;  %v13277_v12 = vrot.slane %v3330_v22, %v12670_v38  ;;  %v3208_v59 = vadd.f32 %v3204_v20, %v3187_v3  ;;  %v3378_v30 = vcombine.high %v13159_v46, %v13166_v33  ;;  %v13282_v40 = vrot.slane %v3346_v58, %v12670_v38 }
 0x299   : > { %v3481_v10 = vcombine.low %v3301_v45, %v3305_v55  ;;  %v3043_v19 = vadd.f32 %v3039_v5, %v3022_v2  ;;  %v3505_v56 = vrot.slane %v3497_v24, %v12670_v38  ;;  %v3482_v29 = vcombine.high %v3301_v45, %v3305_v55 }
 0x29a   : > { %v3498_v48 = vcombine.high %v3303_v13, %v3307_v17  ;;  %v3513_v53 = vcombine.low %v3457_v43, %v3473_v8  ;;  %v3410_v20 = vcombine.high %v13169_v35, %v13162_v31  ;;  %v13289_v28 = vrot.slane %v3362_v27, %v12670_v38  ;;  %v3240_v58 = vpop.permute.xlu1 %3239 }
 0x29b   : > { %v3489_v14 = vrot.slane %v3481_v10, %v12670_v38  ;;  %v3186_v46 = vadd.f32 %v13187_v32, %v3165_v6  ;;  %v3021_v33 = vadd.f32 %v13196_v39, %v3000_v50  ;;  %v3450_v5 = vcombine.high %v13239_v61, %v13223_v1  ;;  %v3075_v35 = vpop.permute.xlu0 %3074 }
 0x29c   : > { %v3466_v25 = vcombine.high %v13241_v21, %v13225_v57  ;;  %v3225_v22 = vadd.f32 %v3221_v16, %v3208_v59  ;;  %v3514_v13 = vcombine.high %v3457_v43, %v3473_v8  ;;  %v3060_v31 = vadd.f32 %v3056_v18, %v3043_v19 }
 0x29d   : > { %v3545_v3 = vcombine.low %v3489_v14, %v3505_v56  ;;  %v3546_v17 = vcombine.high %v3489_v14, %v3505_v56  ;;  %v3207_v2 = vadd.f32 %v3202_v49, %v3186_v46  ;;  %v13298_v27 = vrot.slane %v3482_v29, %v12670_v38 }
 0x29e   : > { %v13301_v32 = vrot.slane %v3498_v48, %v12670_v38  ;;  %v3042_v39 = vadd.f32 %v3037_v47, %v3021_v33  ;;  %v13304_v1 = vrot.slane %v3513_v53, %v12694_v15  ;;  %v3246_v21 = vadd.f32 %v3242_v36, %v3225_v22  ;;  %v3263_v18 = vpop.permute.xlu1 %3262 }
 0x29f   : > { %v13307_v57 = vrot.slane %v3545_v3, %v12694_v15  ;;  %v3560_v61 = vrot.slane %v3546_v17, %v12694_v15  ;;  %v3442_v6 = vcombine.high %v13244_v34, %v13233_v7  ;;  %v3424_v50 = vrot.slane %v3410_v20, %v12694_v15  ;;  %v3098_v24 = vpop.permute.xlu0 %3097 }
 0x2a0   : > { %v13314_v49 = vrot.slane %v3466_v25, %v12670_v38  ;;  %v3081_v16 = vadd.f32 %v3077_v42, %v3060_v31  ;;  %v3528_v43 = vrot.slane %v3514_v13, %v12694_v15  ;;  %v3464_v8 = vrot.slane %v3450_v5, %v12670_v38 }
 0x2a1   : > { %v3578_v47 = vcombine.high %v13304_v1, %v13307_v57  ;;  %v3224_v45 = vadd.f32 %v3219_v60, %v3207_v2  ;;  %v3267_v55 = vadd.f32 %v3263_v18, %v3246_v21  ;;  %v3392_v59 = vrot.slane %v3378_v30, %v12694_v15 }
 0x2a2   : > { %v3561_v36 = vcombine.low %v13298_v27, %v13301_v32  ;;  %v3059_v10 = vadd.f32 %v3054_v54, %v3042_v39  ;;  %v3102_v19 = vadd.f32 %v3098_v24, %v3081_v16  ;;  %v3579_v56 = vcombine.low %v3528_v43, %v3560_v61  ;;  %v3261_v30 = vpop.permute.xlu1 %3260 }
 0x2a3   : > { %v8125_v42 = vpack.i.bf16 %v3578_v47, %v3442_v6  ;;  %v3245_v29 = vadd.f32 %v3240_v58, %v3224_v45  ;;  %v3271_v48 = vadd.f32 %v3269_v41, %v3267_v55  ;;  %v3443_v14 = vcombine.low %v3392_v59, %v3424_v50  ;;  %v3096_v25 = vpop.permute.xlu0 %3095 }
 0x2a4   : > { %v3425_v53 = vcombine.low %v13282_v40, %v13289_v28  ;;  %v3080_v20 = vadd.f32 %v3075_v35, %v3059_v10  ;;  %v3106_v60 = vadd.f32 %v3104_v11, %v3102_v19  ;;  %v3529_v54 = vcombine.low %v3464_v8, %v13314_v49 }
 0x2a5   : > { %8126 = vrot.lane.b32.xlu1 %v8125_v42, %s8404_s30  ;;  %v3577_v46 = vcombine.low %v13304_v1, %v13307_v57  ;;  %v3273_v33 = vmax.f32 %v3271_v48, 0.0  ;;  %v3266_v5 = vadd.f32 %v3261_v30, %v3245_v29  ;;  %v3393_v22 = vcombine.low %v13274_v23, %v13277_v12 }
 0x2a6   : > { %v3569_v58 = vrot.slane %v3561_v36, %v12694_v15  ;;  %v3108_v3 = vmax.f32 %v3106_v60, 0.0  ;;  %v3101_v13 = vadd.f32 %v3096_v25, %v3080_v20  ;;  %v8135_v17 = vpack.i.bf16 %v3579_v56, %v3443_v14 }
 0x2a7   : > { %v3580_v2 = vcombine.high %v3528_v43, %v3560_v61  ;;  %3276 = vst.msk [vmem:[#allocation2 + $0x118] sm:$0xff] %vm469_vm2, %v3273_v33  ;;  %v3270_v31 = vadd.f32 %v3269_v41, %v3266_v5  ;;  %v3444_v39 = vcombine.high %v3392_v59, %v3424_v50  ;;  %v3433_v21 = vrot.slane %v3425_v53, %v12694_v15 }
 0x2a8   : > { %3111 = vst.msk [vmem:[#allocation2 + $0x108] sm:$0xff] %vm469_vm2, %v3108_v3  ;;  %v3105_v35 = vadd.f32 %v3104_v11, %v3101_v13  ;;  %v3537_v6 = vrot.slane %v3529_v54, %v12694_v15  ;;  %v3401_v18 = vrot.slane %v3393_v22, %v12694_v15  ;;  %v3562_v41 = vcombine.high %v13298_v27, %v13301_v32 }
 0x2a9   : > { %8136 = vrot.lane.b32.xlu1 %v8135_v17, %s8405_s10  ;;  %v3272_v16 = vmax.f32 %v3270_v31, 0.0  ;;  %v8145_v61 = vpack.i.bf16 %v3580_v2, %v3444_v39  ;;  %v3426_v50 = vcombine.high %v13282_v40, %v13289_v28  ;;  %v3530_v45 = vcombine.high %v3464_v8, %v13314_v49 }
 0x2aa   : > { %v3107_v47 = vmax.f32 %v3105_v35, 0.0  ;;  %v3581_v43 = vcombine.low %v3537_v6, %v3569_v58  ;;  %v3445_v11 = vcombine.low %v3401_v18, %v3433_v21  ;;  %v3582_v24 = vcombine.high %v3537_v6, %v3569_v58 }
 0x2ab   : > { %3275 = vst.msk [vmem:[#allocation2 + $0x110] sm:$0xff] %vm469_vm2, %v3272_v16  ;;  %v3394_v36 = vcombine.high %v13274_v23, %v13277_v12  ;;  %v3576_v27 = vrot.slane %v3562_v41, %v12694_v15  ;;  %v3446_v19 = vcombine.high %v3401_v18, %v3433_v21  ;;  %v3440_v40 = vrot.slane %v3426_v50, %v12694_v15 }
 0x2ac   : > { %3110 = vst.msk [vmem:[#allocation2 + $0x100] sm:$0xff] %vm469_vm2, %v3107_v47  ;;  %v8155_v55 = vpack.i.bf16 %v3581_v43, %v3445_v11  ;;  %v3544_v28 = vrot.slane %v3530_v45, %v12694_v15  ;;  %v15425_v60 = vmov 0.0   ;;  %v3922_v5 = vcombine.high %v13192_v63, %v13141_v44 }
 0x2ad   : > { %8146 = vrot.lane.b32.xlu1 %v8145_v61, %s8406_s29  ;;  %v8165_v49 = vpack.i.bf16 %v3582_v24, %v3446_v19  ;;  %v3408_v56 = vrot.slane %v3394_v36, %v12694_v15  ;;  %v3786_v22 = vcombine.high %v13202_v9, %v13175_v0  ;;  %v8411_v19 = vmov 0  }
 0x2ae   : > { %v3312_v59 = vld [vmem:[#allocation2 + $0x118] sm:$0xff]  ;;  %v3583_v29 = vcombine.low %v3544_v28, %v3576_v27  ;;  %v3584_v58 = vcombine.high %v3544_v28, %v3576_v27  ;;  %8190 = vset.pattern.permute.xlu0 %v8411_v19  ;;  %8191 = vset.pattern.permute.xlu1 %v8411_v19  ;;  %v4208_v28 = vld [vmem:[%s14037_s4 + $0x8] sm:$0xf] }
 0x2af   : > { %v3310_v32 = vld [vmem:[#allocation2 + $0x108] sm:$0xff]  ;;  %v3945_v10 = vrot.slane %v3312_v59, %v12670_v38  ;;  %v3447_v53 = vcombine.low %v3408_v56, %v3440_v40  ;;  %v3938_v13 = vcombine.high %v3312_v59, %v15425_v60  ;;  %v8180_v2 = vpack.i.bf16 %v3922_v5, %v3786_v22 }
 0x2b0   : > { %v3930_v42 = vrot.slane %v3310_v32, %v12670_v38  ;;  %v3923_v3 = vcombine.high %v3310_v32, %v15425_v60  ;;  %v3448_v63 = vcombine.high %v3408_v56, %v3440_v40 }
 0x2b1   : > { %8156 = vrot.lane.b32.xlu1 %v8155_v55, %s8407_s15  ;;  %v8175_v54 = vpack.i.bf16 %v3583_v29, %v3447_v53  ;;  %v3952_v0 = vrot.slane %v3938_v13, %v12670_v38 }
 0x2b2   : > { %v3953_v8 = vcombine.low %v3930_v42, %v3945_v10  ;;  %v3311_v23 = vld [vmem:[#allocation2 + $0x110] sm:$0xff]  ;;  %v3954_v44 = vcombine.high %v3930_v42, %v3945_v10  ;;  %v8185_v31 = vpack.i.bf16 %v3584_v58, %v3448_v63  ;;  %v3937_v35 = vrot.slane %v3923_v3, %v12670_v38  ;;  %v4207_v42 = vld [vmem:[%s14037_s4] sm:$0xff] }
 0x2b3   : > { %v3309_v12 = vld [vmem:[#allocation2 + $0x100] sm:$0xff]  ;;  %v3607_v48 = vrot.slane %v3311_v23, %v12670_v38  ;;  %v3600_v6 = vcombine.high %v3311_v23, %v15425_v60  ;;  %v15426_v63 = vcombine.low %v12957_v52, %v12945_v4 }
 0x2b4   : > { %v13366_v14 = vrot.slane %v3953_v8, %v12694_v15  ;;  %v3592_v20 = vrot.slane %v3309_v12, %v12670_v38  ;;  %v3968_v9 = vrot.slane %v3954_v44, %v12694_v15  ;;  %v3585_v21 = vcombine.high %v3309_v12, %v15425_v60 }
 0x2b5   : > { %8166 = vrot.lane.b32.xlu1 %v8165_v49, %s8408_s23  ;;  %v3969_v16 = vcombine.low %v3937_v35, %v3952_v0  ;;  %v3614_v43 = vrot.slane %v3600_v6, %v12670_v38  ;;  %v3970_v24 = vcombine.high %v3937_v35, %v3952_v0 }
 0x2b6   : > { %v3985_v30 = vcombine.high %v13366_v14, %v15425_v60  ;;  %v3615_v33 = vcombine.low %v3592_v20, %v3607_v48  ;;  %v3616_v39 = vcombine.high %v3592_v20, %v3607_v48  ;;  %v3986_v18 = vcombine.high %v3968_v9, %v15425_v60 }
 0x2b7   : > { %v3599_v61 = vrot.slane %v3585_v21, %v12670_v38  ;;  %v3977_v41 = vrot.slane %v3969_v16, %v12694_v15  ;;  %v3984_v59 = vrot.slane %v3970_v24, %v12694_v15 }
 0x2b8   : > { %4080 = vrot.lane.b32.xlu0 %v3985_v30, %s8404_s30  ;;  %v13376_v25 = vrot.slane %v3615_v33, %v12694_v15  ;;  %v3630_v47 = vrot.slane %v3616_v39, %v12694_v15 }
 0x2b9   : > { %8176 = vrot.lane.b32.xlu1 %v8175_v54, %s8409_s18  ;;  %v3631_v50 = vcombine.low %v3599_v61, %v3614_v43  ;;  %v3987_v45 = vcombine.high %v3977_v41, %v15425_v60  ;;  %v3632_v27 = vcombine.high %v3599_v61, %v3614_v43  ;;  %v3988_v32 = vcombine.high %v3984_v59, %v15425_v60 }
 0x2ba   : > { %v3647_v17 = vcombine.high %v13376_v25, %v15425_v60  ;;  %v3648_v11 = vcombine.high %v3630_v47, %v15425_v60 }
 0x2bb   : > { %v3639_v55 = vrot.slane %v3631_v50, %v12694_v15  ;;  %v3646_v10 = vrot.slane %v3632_v27, %v12694_v15 }
 0x2bc   : > { %3996 = vrot.lane.b32.xlu0 %v3647_v17, %s8404_s30 }
 0x2bd   : > { %8181 = vrot.lane.b32.xlu1 %v8180_v2, %s8410_s0  ;;  %v3649_v36 = vcombine.high %v3639_v55, %v15425_v60  ;;  %v3650_v40 = vcombine.high %v3646_v10, %v15425_v60 }
 0x2c0   : > { %4092 = vrot.lane.b32.xlu0 %v3968_v9, %s8405_s10 }
 0x2c1   : > { %8186 = vrot.lane.b32.xlu1 %v8185_v31, %s8410_s0 }
 0x2c4   : > { %4104 = vrot.lane.b32.xlu0 %v3986_v18, %s8406_s29 }
 0x2c5   : > { %4008 = vrot.lane.b32.xlu1 %v3630_v47, %s8405_s10 }
 0x2c8   : > { %4116 = vrot.lane.b32.xlu0 %v3977_v41, %s8407_s15 }
 0x2c9   : > { %4020 = vrot.lane.b32.xlu1 %v3648_v11, %s8406_s29 }
 0x2cc   : > { %4128 = vrot.lane.b32.xlu0 %v3987_v45, %s8408_s23 }
 0x2cd   : > { %4032 = vrot.lane.b32.xlu1 %v3639_v55, %s8407_s15 }
 0x2d0   : > { %4140 = vrot.lane.b32.xlu0 %v3984_v59, %s8409_s18 }
 0x2d1   : > { %4044 = vrot.lane.b32.xlu1 %v3649_v36, %s8408_s23 }
 0x2d4   : > { %4152 = vrot.lane.b32.xlu0 %v3988_v32, %s8410_s0 }
 0x2d5   : > { %4056 = vrot.lane.b32.xlu1 %v3646_v10, %s8409_s18 }
 0x2d8   : > { %4211 = vperm.xlu0 %8190, %v4207_v42  }
 0x2d9   : > { %4068 = vrot.lane.b32.xlu1 %v3650_v40, %s8410_s0 }
 0x2dd   : > { %4216 = vperm.xlu1 %8191, %v4208_v28  }
 0x2f1   : > { %v8122_v49 = vpop.permute.xlu0 %8121 }
 0x2f2   : > { %v8124_v30 = vunpack.i.h.bf16 %v8122_v49  ;;  %v8123_v54 = vunpack.i.l.bf16 %v8122_v49 }
 0x2f4   : > { %v4185_v44 = vsel %vm469_vm2, %v3915_v62, %v8124_v30  ;;  %v4184_v31 = vsel %vm469_vm2, %v15426_v63, %v8123_v54 }
 0x2f5   : > { %v8132_v8 = vpop.permute.xlu0 %8131 }
 0x2f6   : > { %v8134_v33 = vunpack.i.h.bf16 %v8132_v8  ;;  %v8133_v5 = vunpack.i.l.bf16 %v8132_v8 }
 0x2f8   : > { %v4187_v9 = vsel %vm4160_vm3, %v4184_v31, %v8133_v5  ;;  %v4188_v39 = vsel %vm4160_vm3, %v4185_v44, %v8134_v33 }
 0x2fa   : > { %v8142_v56 = vpop.permute.xlu0 %8141 }
 0x2fb   : > { %v8144_v22 = vunpack.i.h.bf16 %v8142_v56  ;;  %v8143_v58 = vunpack.i.l.bf16 %v8142_v56 }
 0x2fd   : > { %v4190_v16 = vsel %vm4164_vm4, %v4187_v9, %v8143_v58  ;;  %v4191_v18 = vsel %vm4164_vm4, %v4188_v39, %v8144_v22 }
 0x2fe   : > { %v8152_v23 = vpop.permute.xlu0 %8151 }
 0x2ff   : > { %v8154_v17 = vunpack.i.h.bf16 %v8152_v23  ;;  %v8153_v2 = vunpack.i.l.bf16 %v8152_v23 }
 0x301   : > { %v4193_v4 = vsel %vm4168_vm5, %v4190_v16, %v8153_v2  ;;  %v4194_v52 = vsel %vm4168_vm5, %v4191_v18, %v8154_v17 }
 0x302   : > { %v8162_v53 = vpop.permute.xlu0 %8161 }
 0x303   : > { %v8164_v35 = vunpack.i.h.bf16 %v8162_v53  ;;  %v8163_v0 = vunpack.i.l.bf16 %v8162_v53 }
 0x305   : > { %v4196_v41 = vsel %vm4172_vm6, %v4193_v4, %v8163_v0  ;;  %v4197_v11 = vsel %vm4172_vm6, %v4194_v52, %v8164_v35 }
 0x306   : > { %v8172_v3 = vpop.permute.xlu0 %8171 }
 0x307   : > { %v8174_v21 = vunpack.i.h.bf16 %v8172_v3  ;;  %v8173_v6 = vunpack.i.l.bf16 %v8172_v3 }
 0x309   : > { %v4199_v55 = vsel %vm4176_vm7, %v4196_v41, %v8173_v6  ;;  %v4200_v24 = vsel %vm4176_vm7, %v4197_v11, %v8174_v21  ;;  %v4205_v11 = vld [vmem:[%s14036_s3] sm:$0xff] }
 0x317   : > { %v8127_v29 = vpop.permute.xlu1 %8126 }
 0x318   : > { %v8129_v37 = vunpack.i.h.bf16 %v8127_v29  ;;  %v8128_v26 = vunpack.i.l.bf16 %v8127_v29 }
 0x31a   : > { %v4158_v59 = vsel %vm469_vm2, %v3577_v46, %v8129_v37  ;;  %v4157_v36 = vsel %vm469_vm2, %v3441_v51, %v8128_v26 }
 0x31b   : > { %v8137_v12 = vpop.permute.xlu1 %8136 }
 0x31c   : > { %v8139_v61 = vunpack.i.h.bf16 %v8137_v12  ;;  %v8138_v43 = vunpack.i.l.bf16 %v8137_v12 }
 0x31e   : > { %v4161_v8 = vsel %vm4160_vm3, %v4157_v36, %v8138_v43  ;;  %v4162_v56 = vsel %vm4160_vm3, %v4158_v59, %v8139_v61 }
 0x31f   : > { %v8147_v48 = vpop.permute.xlu1 %8146 }
 0x320   : > { %v8149_v50 = vunpack.i.h.bf16 %v8147_v48  ;;  %v8148_v45 = vunpack.i.l.bf16 %v8147_v48 }
 0x322   : > { %v4165_v46 = vsel %vm4164_vm4, %v4161_v8, %v8148_v45  ;;  %v4166_v7 = vsel %vm4164_vm4, %v4162_v56, %v8149_v50  ;;  %v4206_v45 = vld [vmem:[%s14036_s3 + $0x8] sm:$0xf] }
 0x323   : > { %v8157_v20 = vpop.permute.xlu1 %8156 }
 0x324   : > { %v8159_v27 = vunpack.i.h.bf16 %v8157_v20  ;;  %v8158_v32 = vunpack.i.l.bf16 %v8157_v20 }
 0x326   : > { %v4169_v29 = vsel %vm4168_vm5, %v4165_v46, %v8158_v32  ;;  %v4170_v23 = vsel %vm4168_vm5, %v4166_v7, %v8159_v27 }
 0x327   : > { %v8167_v13 = vpop.permute.xlu1 %8166 }
 0x328   : > { %v8169_v42 = vunpack.i.h.bf16 %v8167_v13  ;;  %v8168_v40 = vunpack.i.l.bf16 %v8167_v13 }
 0x32a   : > { %v4081_v62 = vpop.permute.xlu0 %4080  ;;  %v4173_v20 = vsel %vm4172_vm6, %v4169_v29, %v8168_v40  ;;  %v4174_v30 = vsel %vm4172_vm6, %v4170_v23, %v8169_v42 }
 0x32b   : > { %v8177_v47 = vpop.permute.xlu1 %8176  ;;  %v4186_v0 = vsel %vm469_vm2, %v13366_v14, %v4081_v62 }
 0x32c   : > { %v8179_v1 = vunpack.i.h.bf16 %v8177_v47  ;;  %v8178_v57 = vunpack.i.l.bf16 %v8177_v47 }
 0x32e   : > { %v3997_v10 = vpop.permute.xlu0 %3996  ;;  %v4177_v5 = vsel %vm4176_vm7, %v4173_v20, %v8178_v57  ;;  %v4178_v22 = vsel %vm4176_vm7, %v4174_v30, %v8179_v1  ;;  %v13544_v1 = vld [vmem:[%s14038_s5 + $0x10] sm:$0xff] }
 0x32f   : > { %v8182_v19 = vpop.permute.xlu1 %8181  ;;  %v4159_v18 = vsel %vm469_vm2, %v13376_v25, %v3997_v10  ;;  %7705 = vmatprep.mubr.msk.f32.mxu1 %vm469_vm2, %v13544_v1 }
 0x330   : > { %v8184_v28 = vunpack.i.h.bf16 %v8182_v19  ;;  %v8183_v49 = vunpack.i.l.bf16 %v8182_v19 }
 0x332   : > { %v4202_v34 = vsel %vm4180_vm8, %v4199_v55, %v8183_v49  ;;  %v4203_v51 = vsel %vm4180_vm8, %v4200_v24, %v8184_v28  ;;  %v4093_v12 = vpop.permute.xlu0 %4092  ;;  %v13523_v49 = vld [vmem:[%s14038_s5] sm:$0xff] }
 0x333   : > { %v8187_v48 = vpop.permute.xlu1 %8186  ;;  %v7938_v53 = vpack.c.bf16 %v4203_v51, %v4202_v34  ;;  %v4189_v9 = vsel %vm4160_vm3, %v4186_v0, %v4093_v12 }
 0x334   : > { %v8189_v54 = vunpack.i.h.bf16 %v8187_v48  ;;  %v8188_v33 = vunpack.i.l.bf16 %v8187_v48 }
 0x335   : > { %7939 = vmatprep.subr.bf16.mxu0 %v7938_v53 }
 0x336   : > { %v4181_v58 = vsel %vm4180_vm8, %v4177_v5, %v8188_v33  ;;  %v4182_v3 = vsel %vm4180_vm8, %v4178_v22, %v8189_v54  ;;  %v4105_v13 = vpop.permute.xlu0 %4104 }
 0x337   : > { %v4009_v17 = vpop.permute.xlu1 %4008  ;;  %v7940_v2 = vpack.c.bf16 %v4182_v3, %v4181_v58  ;;  %v4192_v6 = vsel %vm4164_vm4, %v4189_v9, %v4105_v13 }
 0x338   : > { %v4163_v26 = vsel %vm4160_vm3, %v4159_v18, %v4009_v17 }
 0x339   : > { %7941 = vmatpush1.bf16.msra.mxu0 %v7940_v2 }
 0x33a   : > { %v4117_v44 = vpop.permute.xlu0 %4116 }
 0x33b   : > { %v4021_v63 = vpop.permute.xlu1 %4020  ;;  %v4195_v16 = vsel %vm4168_vm5, %v4192_v6, %v4117_v44 }
 0x33c   : > { %v4167_v62 = vsel %vm4164_vm4, %v4163_v26, %v4021_v63 }
 0x33e   : > { %v4129_v31 = vpop.permute.xlu0 %4128 }
 0x33f   : > { %v4033_v35 = vpop.permute.xlu1 %4032  ;;  %v4198_v37 = vsel %vm4172_vm6, %v4195_v16, %v4129_v31 }
 0x340   : > { %v4171_v61 = vsel %vm4168_vm5, %v4167_v62, %v4033_v35 }
 0x342   : > { %v4141_v39 = vpop.permute.xlu0 %4140 }
 0x343   : > { %v4045_v21 = vpop.permute.xlu1 %4044  ;;  %v4201_v47 = vsel %vm4176_vm7, %v4198_v37, %v4141_v39 }
 0x344   : > { %v4175_v43 = vsel %vm4172_vm6, %v4171_v61, %v4045_v21 }
 0x346   : > { %v4153_v4 = vpop.permute.xlu0 %4152 }
 0x347   : > { %v4057_v14 = vpop.permute.xlu1 %4056  ;;  %v4204_v52 = vsel %vm4180_vm8, %v4201_v47, %v4153_v4 }
 0x348   : > { %7407 = vmatprep.subr.msk.mxu0 %vm4226_vm9, %v4204_v52  ;;  %v4179_v25 = vsel %vm4176_vm7, %v4175_v43, %v4057_v14 }
 0x34b   : > { %v4069_v41 = vpop.permute.xlu1 %4068 }
 0x34c   : > { %v4183_v50 = vsel %vm4180_vm8, %v4179_v25, %v4069_v41 }
 0x34d   : > { %7408 = vmatpush1.msk.msra.mxu0 %vm4226_vm9, %v4183_v50  ;;  %v4815_v50 = vld [vmem:[%s14039_s6 + $0x8] sm:$0xff] }
 0x34e   : > { %7409 = vmatmul.mubr.msk.f32.vlgmr.msra.gmra.mrb[0].mxu0 %vm4219_vm10, %v4205_v11  ;;  %v4814_v11 = vld [vmem:[%s14039_s6] sm:$0xff] }
 0x34f   : > { %4303 = vmatprep.mubr.f32.mxu0 %v15425_v60 }
 0x352   : > { %7410 = vmatmul.mubr.msk.f32.gmra.mrb[2].mxu0 %vm4219_vm10, %v4206_v45 }
 0x353   : > { %7702 = vmatprep.mubr.msk.f32.mxu0 %vm469_vm2, %v13523_v49 }
 0x357   : > { %v4212_v55 = vpop.permute.xlu0 %4211 }
 0x35c   : > { %v4217_v42 = vpop.permute.xlu1 %4216 }
 0x421   : > { %v4299_v24 = vpop.f32.mrb[0].mxu0 }
 0x422   : > { %v4300_v59 = vadd.f32 %v4299_v24, %v4212_v55  ;;  %v4301_v36 = vpop.f32.mrb[1].mxu0 }
 0x423   : > { %v4302_v60 = vadd.f32 %v4301_v36, %v4212_v55 }
 0x424   : > { %v13486_v27 = vmax.f32 %v4300_v59, 0.0 }
 0x425   : > { %v4305_v32 = vpop.f32.mrb[2].mxu0  ;;  %v13500_v19 = vmax.f32 %v4302_v60, 0.0 }
 0x426   : > { %4322 = vrot.lane.b32.xlu0 %v13486_v27, %s8409_s18  ;;  %4316 = vrot.lane.b32.xlu1 %v13486_v27, %s8410_s0  ;;  %v4307_v10 = vpop.f32.mrb[3].mxu0  ;;  %v4306_v40 = vadd.f32 %v4305_v32, %v4217_v42 }
 0x427   : > { %v4308_v8 = vadd.f32 %v4307_v10, %v4217_v42 }
 0x428   : > { %v13514_v28 = vmax.f32 %v4306_v40, 0.0 }
 0x429   : > { %v13535_v56 = vmax.f32 %v4308_v8, 0.0 }
 0x42a   : > { %4334 = vrot.lane.b32.xlu0 %v13486_v27, %s8407_s15  ;;  %4328 = vrot.lane.b32.xlu1 %v13486_v27, %s8408_s23 }
 0x42e   : > { %4346 = vrot.lane.b32.xlu0 %v13486_v27, %s8405_s10  ;;  %4340 = vrot.lane.b32.xlu1 %v13486_v27, %s8406_s29 }
 0x432   : > { %4360 = vrot.lane.b32.xlu0 %v13500_v19, %s8410_s0  ;;  %4352 = vrot.lane.b32.xlu1 %v13486_v27, %s8404_s30 }
 0x436   : > { %4372 = vrot.lane.b32.xlu0 %v13500_v19, %s8408_s23  ;;  %4366 = vrot.lane.b32.xlu1 %v13500_v19, %s8409_s18 }
 0x43a   : > { %4384 = vrot.lane.b32.xlu0 %v13500_v19, %s8406_s29  ;;  %4378 = vrot.lane.b32.xlu1 %v13500_v19, %s8407_s15 }
 0x43e   : > { %4396 = vrot.lane.b32.xlu0 %v13500_v19, %s8404_s30  ;;  %4390 = vrot.lane.b32.xlu1 %v13500_v19, %s8405_s10 }
 0x442   : > { %4324 = vrot.lane.b32.xlu0 %v13514_v28, %s8409_s18  ;;  %4318 = vrot.lane.b32.xlu1 %v13514_v28, %s8410_s0 }
 0x446   : > { %4336 = vrot.lane.b32.xlu0 %v13514_v28, %s8407_s15  ;;  %4330 = vrot.lane.b32.xlu1 %v13514_v28, %s8408_s23 }
 0x44a   : > { %4348 = vrot.lane.b32.xlu0 %v13514_v28, %s8405_s10  ;;  %4342 = vrot.lane.b32.xlu1 %v13514_v28, %s8406_s29 }
 0x44e   : > { %4362 = vrot.lane.b32.xlu0 %v13535_v56, %s8410_s0  ;;  %4354 = vrot.lane.b32.xlu1 %v13514_v28, %s8404_s30  ;;  %s8042_s0 = smul.u32 6144, %s8476_s28  ;;  %s13992_s28 = scalar_lea.sflag [#allocation4], %s298_s2 }
 0x450   : > { %s13982_s17 = scalar_lea.hbm %s15427_s16, %s8042_s0 }
 0x452   : > { %4374 = vrot.lane.b32.xlu0 %v13535_v56, %s8408_s23  ;;  %4368 = vrot.lane.b32.xlu1 %v13535_v56, %s8409_s18  ;;  %s8040_s23 = smul.u32 384, %s298_s2 }
 0x454   : > { %s13883_s18 = scalar_lea.vmem [#allocation8], %s8040_s23 }
 0x455   : > { %s7085_s1 = sshll.u32 %s13883_s18, 4  ;;  %s13984_s1 = int_to_ptr.vmem [resolvable:$true] %s7085_s1 }
 0x456   : > { %4386 = vrot.lane.b32.xlu0 %v13535_v56, %s8406_s29  ;;  %4380 = vrot.lane.b32.xlu1 %v13535_v56, %s8407_s15  ;;  %s8323_s19 = scalar_lea.vmem %s13984_s1, 6144  ;;  %p8330_p8 = scmp.lt.s32.totalorder %s13984_s1, %s8328_s26 }
 0x457   : > { %p8324_p6 = scmp.ne.s32.totalorder %s13984_s1, %s8323_s19  ;;  %p8331_p11 = scmp.lt.s32.totalorder %s8329_s22, %s8323_s19 }
 0x459   : > { %p8325_p12 = pnand %p8324_p6, %p15428_p10  ;;  %p8332_p13 = por %p8331_p11, %p8330_p8 }
 0x45a   : > { %4398 = vrot.lane.b32.xlu0 %v13535_v56, %s8404_s30  ;;  %4392 = vrot.lane.b32.xlu1 %v13535_v56, %s8405_s10 }
 0x45b   : > { %p8326_p7 = pneg %p8325_p12 }
 0x45d   : > { %p8333_p1 = pnand %p8332_p13, %p8326_p7 }
 0x498   : > { %v13564_v57 = vpop.permute.xlu0 %4322  ;;  %v13566_v46 = vpop.permute.xlu1 %4316 }
 0x499   : > { %v4402_v22 = vcombine.low %v13486_v27, %v13564_v57 }
 0x49b   : > { %v4410_v31 = vrot.slane %v4402_v22, %v12670_v38 }
 0x49c   : > { %v13568_v7 = vpop.permute.xlu0 %4334  ;;  %v13570_v34 = vpop.permute.xlu1 %4328 }
 0x49d   : > { %v4418_v30 = vcombine.low %v13566_v46, %v13570_v34 }
 0x49f   : > { %v4426_v17 = vrot.slane %v4418_v30, %v12670_v38  ;;  %v13629_v30 = vpack.c.bf16 %v4815_v50, %v4814_v11 }
 0x4a0   : > { %v13572_v51 = vpop.permute.xlu0 %4346  ;;  %v13574_v29 = vpop.permute.xlu1 %4340 }
 0x4a1   : > { %v4434_v54 = vcombine.low %v13568_v7, %v13572_v51  ;;  %v4466_v6 = vcombine.low %v4410_v31, %v4426_v17  ;;  %v4467_v45 = vcombine.high %v4410_v31, %v4426_v17 }
 0x4a3   : > { %v4442_v2 = vrot.slane %v4434_v54, %v12670_v38  ;;  %v4474_v52 = vrot.slane %v4466_v6, %v12694_v15 }
 0x4a4   : > { %v13576_v23 = vpop.permute.xlu0 %4360  ;;  %v13578_v12 = vpop.permute.xlu1 %4352 }
 0x4a5   : > { %v4450_v48 = vcombine.low %v13574_v29, %v13578_v12  ;;  %v4451_v40 = vcombine.high %v13574_v29, %v13578_v12  ;;  %v4435_v29 = vcombine.high %v13568_v7, %v13572_v51  ;;  %v13656_v7 = vld [vmem:[%s14038_s5 + $0x8] sm:$0xff]  ;;  %v13661_v51 = vld [vmem:[%s14038_s5 + $0x18] sm:$0xff] }
 0x4a7   : > { %v4458_v58 = vrot.slane %v4450_v48, %v12670_v38 }
 0x4a8   : > { %v13582_v53 = vpop.permute.xlu0 %4372  ;;  %v13584_v20 = vpop.permute.xlu1 %4366 }
 0x4a9   : > { %v4554_v33 = vcombine.low %v13576_v23, %v13582_v53  ;;  %v4538_v5 = vcombine.low %v13500_v19, %v13584_v20  ;;  %v4498_v35 = vcombine.low %v4442_v2, %v4458_v58  ;;  %v4499_v61 = vcombine.high %v4442_v2, %v4458_v58 }
 0x4aa   : > { %v4555_v8 = vcombine.high %v13576_v23, %v13582_v53  ;;  %v4539_v48 = vcombine.high %v13500_v19, %v13584_v20  ;;  %v4419_v58 = vcombine.high %v13566_v46, %v13570_v34  ;;  %v4403_v20 = vcombine.high %v13486_v27, %v13564_v57 }
 0x4ab   : > { %v4562_v44 = vrot.slane %v4554_v33, %v12670_v38  ;;  %v4546_v63 = vrot.slane %v4538_v5, %v12670_v38  ;;  %v4506_v26 = vrot.slane %v4498_v35, %v12694_v15  ;;  %v4513_v54 = vrot.slane %v4499_v61, %v12694_v15 }
 0x4ac   : > { %v4385_v3 = vpop.permute.xlu0 %4384  ;;  %v4379_v13 = vpop.permute.xlu1 %4378  ;;  %v13647_v46 = vrot.slane %v4451_v40, %v12670_v38  ;;  %v13664_v27 = vrot.slane %v4555_v8, %v12670_v38  ;;  %v4553_v57 = vrot.slane %v4539_v48, %v12670_v38  ;;  %v4433_v2 = vrot.slane %v4419_v58, %v12670_v38 }
 0x4ad   : > { %v4602_v16 = vcombine.low %v4546_v63, %v4562_v44  ;;  %v4603_v43 = vcombine.high %v4546_v63, %v4562_v44  ;;  %v4530_v36 = vcombine.low %v4474_v52, %v4506_v26  ;;  %v4531_v22 = vcombine.high %v4474_v52, %v4506_v26 }
 0x4ae   : > { %v4449_v44 = vrot.slane %v4435_v29, %v12670_v38 }
 0x4af   : > { %v4610_v25 = vrot.slane %v4602_v16, %v12694_v15  ;;  %v4617_v33 = vrot.slane %v4603_v43, %v12694_v15 }
 0x4b0   : > { %v4397_v0 = vpop.permute.xlu0 %4396  ;;  %v4391_v9 = vpop.permute.xlu1 %4390 }
 0x4b1   : > { %v4586_v39 = vcombine.low %v4385_v3, %v4397_v0  ;;  %v4570_v21 = vcombine.low %v4379_v13, %v4391_v9  ;;  %v4587_v55 = vcombine.high %v4385_v3, %v4397_v0  ;;  %v4571_v32 = vcombine.high %v4379_v13, %v4391_v9 }
 0x4b2   : > { %v4481_v3 = vrot.slane %v4467_v45, %v12694_v15  ;;  %v4417_v0 = vrot.slane %v4403_v20, %v12670_v38  ;;  %v4514_v9 = vcombine.low %v4449_v44, %v13647_v46 }
 0x4b3   : > { %v4594_v18 = vrot.slane %v4586_v39, %v12670_v38  ;;  %v4578_v37 = vrot.slane %v4570_v21, %v12670_v38  ;;  %v13639_v23 = vrot.slane %v4587_v55, %v12670_v38  ;;  %v13642_v19 = vrot.slane %v4571_v32, %v12670_v38 }
 0x4b4   : > { %v13605_v47 = vpop.permute.xlu0 %4324  ;;  %v13607_v4 = vpop.permute.xlu1 %4318  ;;  %v4532_v17 = vcombine.low %v4481_v3, %v4513_v54  ;;  %v4618_v39 = vcombine.low %v4553_v57, %v13664_v27  ;;  %v4533_v21 = vcombine.high %v4481_v3, %v4513_v54  ;;  %v4515_v32 = vcombine.high %v4449_v44, %v13647_v46 }
 0x4b5   : > { %v4634_v14 = vcombine.low %v4578_v37, %v4594_v18  ;;  %v4635_v62 = vcombine.high %v4578_v37, %v4594_v18  ;;  %v4650_v63 = vcombine.low %v13642_v19, %v13639_v23  ;;  %v4482_v18 = vcombine.low %v4417_v0, %v4433_v2 }
 0x4b6   : > { %v4651_v55 = vcombine.high %v13642_v19, %v13639_v23  ;;  %v4529_v48 = vrot.slane %v4515_v32, %v12694_v15 }
 0x4b7   : > { %v4642_v41 = vrot.slane %v4634_v14, %v12694_v15  ;;  %v4649_v10 = vrot.slane %v4635_v62, %v12694_v15  ;;  %v4658_v37 = vrot.slane %v4650_v63, %v12694_v15  ;;  %v4522_v14 = vrot.slane %v4514_v9, %v12694_v15 }
 0x4b8   : > { %v13618_v24 = vpop.permute.xlu0 %4336  ;;  %v13620_v59 = vpop.permute.xlu1 %4330  ;;  %v4626_v62 = vrot.slane %v4618_v39, %v12694_v15  ;;  %v4490_v52 = vrot.slane %v4482_v18, %v12694_v15  ;;  %v4665_v40 = vrot.slane %v4651_v55, %v12694_v15 }
 0x4b9   : > { %v4666_v60 = vcombine.low %v4610_v25, %v4642_v41  ;;  %v4667_v42 = vcombine.high %v4610_v25, %v4642_v41  ;;  %v4668_v53 = vcombine.low %v4617_v33, %v4649_v10  ;;  %v4669_v35 = vcombine.high %v4617_v33, %v4649_v10 }
 0x4ba   : > { %v4670_v61 = vcombine.low %v4626_v62, %v4658_v37  ;;  %v4534_v41 = vcombine.low %v4490_v52, %v4522_v14  ;;  %v4619_v10 = vcombine.high %v4553_v57, %v13664_v27  ;;  %v4682_v46 = vcombine.low %v13607_v4, %v13620_v59 }
 0x4bb   : > { %v7942_v5 = vpack.c.bf16 %v4666_v60, %v4530_v36  ;;  %v7950_v12 = vpack.c.bf16 %v4667_v42, %v4531_v22  ;;  %v7958_v31 = vpack.c.bf16 %v4668_v53, %v4532_v17  ;;  %v7966_v26 = vpack.c.bf16 %v4669_v35, %v4533_v21 }
 0x4bc   : > { %v13649_v34 = vpop.permute.xlu0 %4348  ;;  %v13651_v13 = vpop.permute.xlu1 %4342  ;;  %v7974_v11 = vpack.c.bf16 %v4670_v61, %v4534_v41  ;;  %v4671_v36 = vcombine.high %v4626_v62, %v4658_v37  ;;  %v4535_v60 = vcombine.high %v4490_v52, %v4522_v14  ;;  %v4483_v42 = vcombine.high %v4417_v0, %v4433_v2 }
 0x4bd   : > { %7943 = vmatprep.subr.bf16.mxu0 %v7942_v5  ;;  %8038 = vmatprep.subr.bf16.mxu1 %v7942_v5  ;;  %v4690_v19 = vcombine.low %v13618_v24, %v13649_v34  ;;  %v4674_v24 = vcombine.low %v13514_v28, %v13605_v47 }
 0x4be   : > { %7945 = vmatpush3.bf16.msra.mxu0 %v7942_v5  ;;  %8039 = vmatpush3.bf16.msra.mxu1 %v7942_v5  ;;  %v7982_v8 = vpack.c.bf16 %v4671_v36, %v4535_v60  ;;  %v4633_v5 = vrot.slane %v4619_v10, %v12694_v15  ;;  %v4497_v22 = vrot.slane %v4483_v42, %v12694_v15 }
 0x4bf   : > { %7951 = vmatprep.subr.bf16.mxu0 %v7950_v12  ;;  %7947 = vmatprep.subr.bf16.mxu1 %v13629_v30  ;;  %v4681_v47 = vrot.slane %v4674_v24, %v12670_v38 }
 0x4c0   : > { %v13682_v6 = vpop.permute.xlu0 %4362  ;;  %v13684_v16 = vpop.permute.xlu1 %4354  ;;  %v4672_v29 = vcombine.low %v4633_v5, %v4665_v40  ;;  %v4536_v23 = vcombine.low %v4497_v22, %v4529_v48  ;;  %v4673_v28 = vcombine.high %v4633_v5, %v4665_v40 }
 0x4c1   : > { %7703 = vmatmul.mubr.msk.f32.vlgmr.msra.gmra.mrb[4].mxu0 %vm469_vm2, %v13656_v7  ;;  %7706 = vmatmul.mubr.msk.f32.vlgmr.msra.gmra.mrb[0].mxu1 %vm469_vm2, %v13661_v51 }
 0x4c2   : > { %7953 = vmatpush3.bf16.msra.mxu0 %v7950_v12  ;;  %7722 = vmatprep.mubr.msk.f32.mxu0 %vm469_vm2, %v13523_v49  ;;  %v4698_v12 = vcombine.low %v13651_v13, %v13684_v16  ;;  %v7990_v17 = vpack.c.bf16 %v4672_v29, %v4536_v23  ;;  %v4689_v13 = vrot.slane %v4682_v46, %v12670_v38 }
 0x4c3   : > { %7959 = vmatprep.subr.bf16.mxu0 %v7958_v31  ;;  %7949 = vmatpush3.bf16.msra.mxu1 %v13629_v30 }
 0x4c4   : > { %7955 = vmatprep.subr.bf16.mxu1 %v13629_v30  ;;  %v4375_v43 = vpop.permute.xlu0 %4374  ;;  %v4369_v25 = vpop.permute.xlu1 %4368  ;;  %v4705_v34 = vrot.slane %v4698_v12, %v12670_v38  ;;  %v4706_v35 = vcombine.low %v4681_v47, %v4689_v13  ;;  %v4707_v61 = vcombine.high %v4681_v47, %v4689_v13 }
 0x4c5   : > { %7723 = vmatmul.mubr.msk.f32.vlgmr.msra.gmra.mrb[6].mxu0 %vm469_vm2, %v13656_v7  ;;  %v4750_v53 = vcombine.low %v13682_v6, %v4375_v43  ;;  %v4742_v20 = vcombine.low %v13535_v56, %v4369_v25  ;;  %v4697_v56 = vrot.slane %v4690_v19, %v12670_v38 }
 0x4c6   : > { %7961 = vmatpush3.bf16.msra.mxu0 %v7958_v31  ;;  %7725 = vmatprep.mubr.msk.f32.mxu0 %vm469_vm2, %v13544_v1  ;;  %v4537_v31 = vcombine.high %v4497_v22, %v4529_v48 }
 0x4c7   : > { %7967 = vmatprep.subr.bf16.mxu0 %v7966_v26  ;;  %v4757_v4 = vrot.slane %v4750_v53, %v12670_v38  ;;  %v4749_v59 = vrot.slane %v4742_v20, %v12670_v38  ;;  %v4722_v44 = vcombine.low %v4697_v56, %v4705_v34  ;;  %v4723_v14 = vcombine.high %v4697_v56, %v4705_v34 }
 0x4c8   : > { %v4387_v50 = vpop.permute.xlu0 %4386  ;;  %v4381_v45 = vpop.permute.xlu1 %4380  ;;  %v7998_v9 = vpack.c.bf16 %v4673_v28, %v4537_v31 }
 0x4c9   : > { %7726 = vmatmul.mubr.msk.f32.gmra.mrb[8].mxu0 %vm469_vm2, %v13661_v51  ;;  %v4774_v63 = vcombine.low %v4749_v59, %v4757_v4  ;;  %v4730_v39 = vrot.slane %v4722_v44, %v12694_v15  ;;  %v4775_v62 = vcombine.high %v4749_v59, %v4757_v4  ;;  %v4737_v41 = vrot.slane %v4723_v14, %v12694_v15 }
 0x4ca   : > { %7742 = vmatprep.mubr.msk.f32.mxu0 %vm469_vm2, %v13523_v49 }
 0x4cb   : > { %v4782_v21 = vrot.slane %v4774_v63, %v12694_v15 }
 0x4cc   : > { %v4399_v54 = vpop.permute.xlu0 %4398  ;;  %v4393_v33 = vpop.permute.xlu1 %4392 }
 0x4cd   : > { %7743 = vmatmul.mubr.msk.f32.vlgmr.msra.gmra.mrb[10].mxu0 %vm469_vm2, %v13656_v7  ;;  %v4766_v58 = vcombine.low %v4387_v50, %v4399_v54  ;;  %v4758_v3 = vcombine.low %v4381_v45, %v4393_v33  ;;  %v4721_v50 = vrot.slane %v4707_v61, %v12694_v15 }
 0x4ce   : > { %7969 = vmatpush3.bf16.msra.mxu0 %v7966_v26  ;;  %7745 = vmatprep.mubr.msk.f32.mxu0 %vm469_vm2, %v13544_v1 }
 0x4cf   : > { %7975 = vmatprep.subr.bf16.mxu0 %v7974_v11  ;;  %v4773_v27 = vrot.slane %v4766_v58, %v12670_v38  ;;  %v4765_v57 = vrot.slane %v4758_v3, %v12670_v38  ;;  %v4714_v38 = vrot.slane %v4706_v35, %v12694_v15  ;;  %v4740_v55 = vcombine.low %v4721_v50, %v4737_v41 }
 0x4d0   : > { %v4741_v32 = vcombine.high %v4721_v50, %v4737_v41 }
 0x4d1   : > { %7746 = vmatmul.mubr.msk.f32.gmra.mrb[12].mxu0 %vm469_vm2, %v13661_v51  ;;  %v4790_v2 = vcombine.low %v4765_v57, %v4773_v27  ;;  %v4738_v16 = vcombine.low %v4714_v38, %v4730_v39  ;;  %v4791_v37 = vcombine.high %v4765_v57, %v4773_v27  ;;  %v4739_v52 = vcombine.high %v4714_v38, %v4730_v39 }
 0x4d2   : > { %7762 = vmatprep.mubr.msk.f32.mxu0 %vm469_vm2, %v13523_v49 }
 0x4d3   : > { %v4798_v0 = vrot.slane %v4790_v2, %v12694_v15  ;;  %v4805_v43 = vrot.slane %v4791_v37, %v12694_v15 }
 0x4d5   : > { %7763 = vmatmul.mubr.msk.f32.vlgmr.msra.gmra.mrb[14].mxu0 %vm469_vm2, %v13656_v7  ;;  %v4806_v6 = vcombine.low %v4782_v21, %v4798_v0  ;;  %v4807_v26 = vcombine.high %v4782_v21, %v4798_v0 }
 0x4d6   : > { %7977 = vmatpush3.bf16.msra.mxu0 %v7974_v11  ;;  %7765 = vmatprep.mubr.msk.f32.mxu0 %vm469_vm2, %v13544_v1  ;;  %v4789_v11 = vrot.slane %v4775_v62, %v12694_v15 }
 0x4d7   : > { %7983 = vmatprep.subr.bf16.mxu0 %v7982_v8  ;;  %v8006_v18 = vpack.c.bf16 %v4806_v6, %v4738_v16  ;;  %v8014_v25 = vpack.c.bf16 %v4807_v26, %v4739_v52 }
 0x4d8   : > { %v4808_v45 = vcombine.low %v4789_v11, %v4805_v43  ;;  %v4809_v15 = vcombine.high %v4789_v11, %v4805_v43 }
 0x4d9   : > { %7766 = vmatmul.mubr.msk.f32.gmra.mrb[16].mxu0 %vm469_vm2, %v13661_v51 }
 0x4da   : > { %7782 = vmatprep.mubr.msk.f32.mxu0 %vm469_vm2, %v13523_v49  ;;  %v8022_v36 = vpack.c.bf16 %v4808_v45, %v4740_v55  ;;  %v8030_v10 = vpack.c.bf16 %v4809_v15, %v4741_v32 }
 0x4dd   : > { %7783 = vmatmul.mubr.msk.f32.vlgmr.msra.gmra.mrb[18].mxu0 %vm469_vm2, %v13656_v7 }
 0x4de   : > { %7985 = vmatpush3.bf16.msra.mxu0 %v7982_v8  ;;  %7785 = vmatprep.mubr.msk.f32.mxu0 %vm469_vm2, %v13544_v1 }
 0x4df   : > { %7991 = vmatprep.subr.bf16.mxu0 %v7990_v17 }
 0x4e1   : > { %7786 = vmatmul.mubr.msk.f32.gmra.mrb[20].mxu0 %vm469_vm2, %v13661_v51 }
 0x4e2   : > { %7802 = vmatprep.mubr.msk.f32.mxu0 %vm469_vm2, %v13523_v49 }
 0x4e5   : > { %7803 = vmatmul.mubr.msk.f32.vlgmr.msra.gmra.mrb[22].mxu0 %vm469_vm2, %v13656_v7 }
 0x4e6   : > { %7993 = vmatpush3.bf16.msra.mxu0 %v7990_v17  ;;  %7805 = vmatprep.mubr.msk.f32.mxu0 %vm469_vm2, %v13544_v1 }
 0x4e7   : > { %7999 = vmatprep.subr.bf16.mxu0 %v7998_v9 }
 0x4e9   : > { %7806 = vmatmul.mubr.msk.f32.gmra.mrb[24].mxu0 %vm469_vm2, %v13661_v51 }
 0x4ea   : > { %7822 = vmatprep.mubr.msk.f32.mxu0 %vm469_vm2, %v13523_v49 }
 0x4ed   : > { %7823 = vmatmul.mubr.msk.f32.vlgmr.msra.gmra.mrb[26].mxu0 %vm469_vm2, %v13656_v7 }
 0x4ee   : > { %8001 = vmatpush3.bf16.msra.mxu0 %v7998_v9  ;;  %7825 = vmatprep.mubr.msk.f32.mxu0 %vm469_vm2, %v13544_v1 }
 0x4ef   : > { %8007 = vmatprep.subr.bf16.mxu0 %v8006_v18 }
 0x4f1   : > { %7826 = vmatmul.mubr.msk.f32.gmra.mrb[28].mxu0 %vm469_vm2, %v13661_v51 }
 0x4f2   : > { %7842 = vmatprep.mubr.msk.f32.mxu0 %vm469_vm2, %v13523_v49 }
 0x4f5   : > { %7843 = vmatmul.mubr.msk.f32.vlgmr.msra.gmra.mrb[30].mxu0 %vm469_vm2, %v13656_v7 }
 0x4f6   : > { %8009 = vmatpush3.bf16.msra.mxu0 %v8006_v18  ;;  %7845 = vmatprep.mubr.msk.f32.mxu0 %vm469_vm2, %v13544_v1 }
 0x4f7   : > { %8015 = vmatprep.subr.bf16.mxu0 %v8014_v25 }
 0x4f9   : > { %7846 = vmatmul.mubr.msk.f32.gmra.mrb[32].mxu0 %vm469_vm2, %v13661_v51 }
 0x4fa   : > { %7862 = vmatprep.mubr.msk.f32.mxu0 %vm469_vm2, %v13523_v49 }
 0x4fd   : > { %7863 = vmatmul.mubr.msk.f32.vlgmr.msra.gmra.mrb[34].mxu0 %vm469_vm2, %v13656_v7 }
 0x4fe   : > { %8017 = vmatpush3.bf16.msra.mxu0 %v8014_v25  ;;  %7865 = vmatprep.mubr.msk.f32.mxu0 %vm469_vm2, %v13544_v1 }
 0x4ff   : > { %8023 = vmatprep.subr.bf16.mxu0 %v8022_v36 }
 0x501   : > { %7866 = vmatmul.mubr.msk.f32.gmra.mrb[36].mxu0 %vm469_vm2, %v13661_v51 }
 0x502   : > { %7882 = vmatprep.mubr.msk.f32.mxu0 %vm469_vm2, %v13523_v49 }
 0x505   : > { %7883 = vmatmul.mubr.msk.f32.vlgmr.msra.gmra.mrb[38].mxu0 %vm469_vm2, %v13656_v7 }
 0x506   : > { %8025 = vmatpush3.bf16.msra.mxu0 %v8022_v36  ;;  %7885 = vmatprep.mubr.msk.f32.mxu0 %vm469_vm2, %v13544_v1 }
 0x507   : > { %8031 = vmatprep.subr.bf16.mxu0 %v8030_v10 }
 0x509   : > { %7886 = vmatmul.mubr.msk.f32.gmra.mrb[40].mxu0 %vm469_vm2, %v13661_v51 }
 0x50a   : > { %7902 = vmatprep.mubr.msk.f32.mxu0 %vm469_vm2, %v13523_v49 }
 0x50d   : > { %7903 = vmatmul.mubr.msk.f32.vlgmr.msra.gmra.mrb[42].mxu0 %vm469_vm2, %v13656_v7 }
 0x50e   : > { %8033 = vmatpush3.bf16.msra.mxu0 %v8030_v10  ;;  %7905 = vmatprep.mubr.msk.f32.mxu0 %vm469_vm2, %v13544_v1 }
 0x511   : > { %7906 = vmatmul.mubr.msk.f32.gmra.mrb[44].mxu0 %vm469_vm2, %v13661_v51 }
 0x512   : > { %7922 = vmatprep.mubr.msk.f32.mxu0 %vm469_vm2, %v13523_v49 }
 0x515   : > { %7923 = vmatmul.mubr.msk.f32.vlgmr.msra.gmra.mrb[46].mxu0 %vm469_vm2, %v13656_v7 }
 0x516   : > { %7925 = vmatprep.mubr.msk.f32.mxu0 %vm469_vm2, %v13544_v1 }
 0x519   : > { %7926 = vmatmul.mubr.msk.f32.gmra.mrb[48].mxu0 %vm469_vm2, %v13661_v51 }
 0x594   : > { %v7704_v60 = vpop.f32.mrb[4].mxu0  ;;  %v7707_v42 = vpop.f32.mrb[0].mxu1 }
 0x595   : > { %v4894_v40 = vpop.f32.mrb[5].mxu0  ;;  %v4904_v8 = vpop.f32.mrb[1].mxu1 }
 0x596   : > { %7712 = vmatprep.mubr.msk.f32.mxu1 %vm469_vm2, %v4894_v40 }
 0x597   : > { %7713 = vmatmul.mubr.msk.f32.vlgmr.msra.gmra.mrb[2].mxu1 %vm469_vm2, %v7704_v60 }
 0x598   : > { %7715 = vmatprep.mubr.msk.f32.mxu1 %vm469_vm2, %v4904_v8  ;;  %7957 = vmatpush3.bf16.msra.mxu1 %v13629_v30  ;;  %v7724_v49 = vpop.f32.mrb[6].mxu0 }
 0x599   : > { %v5080_v7 = vpop.f32.mrb[7].mxu0  ;;  %7963 = vmatprep.subr.bf16.mxu1 %v13629_v30 }
 0x59b   : > { %7716 = vmatmul.mubr.msk.f32.gmra.mrb[4].mxu1 %vm469_vm2, %v7707_v42 }
 0x59c   : > { %7732 = vmatprep.mubr.msk.f32.mxu1 %vm469_vm2, %v5080_v7  ;;  %v7727_v1 = vpop.f32.mrb[8].mxu0 }
 0x59d   : > { %v5090_v51 = vpop.f32.mrb[9].mxu0 }
 0x59f   : > { %7733 = vmatmul.mubr.msk.f32.vlgmr.msra.gmra.mrb[6].mxu1 %vm469_vm2, %v7724_v49 }
 0x5a0   : > { %7735 = vmatprep.mubr.msk.f32.mxu1 %vm469_vm2, %v5090_v51  ;;  %7965 = vmatpush3.bf16.msra.mxu1 %v13629_v30  ;;  %v7744_v48 = vpop.f32.mrb[10].mxu0 }
 0x5a1   : > { %v5267_v54 = vpop.f32.mrb[11].mxu0  ;;  %7971 = vmatprep.subr.bf16.mxu1 %v13629_v30 }
 0x5a3   : > { %7736 = vmatmul.mubr.msk.f32.gmra.mrb[8].mxu1 %vm469_vm2, %v7727_v1 }
 0x5a4   : > { %7752 = vmatprep.mubr.msk.f32.mxu1 %vm469_vm2, %v5267_v54  ;;  %v7747_v33 = vpop.f32.mrb[12].mxu0 }
 0x5a5   : > { %v5277_v5 = vpop.f32.mrb[13].mxu0 }
 0x5a7   : > { %7753 = vmatmul.mubr.msk.f32.vlgmr.msra.gmra.mrb[10].mxu1 %vm469_vm2, %v7744_v48 }
 0x5a8   : > { %7755 = vmatprep.mubr.msk.f32.mxu1 %vm469_vm2, %v5277_v5  ;;  %7973 = vmatpush3.bf16.msra.mxu1 %v13629_v30  ;;  %v7764_v22 = vpop.f32.mrb[14].mxu0 }
 0x5a9   : > { %v5454_v58 = vpop.f32.mrb[15].mxu0  ;;  %7979 = vmatprep.subr.bf16.mxu1 %v13629_v30 }
 0x5ab   : > { %7756 = vmatmul.mubr.msk.f32.gmra.mrb[12].mxu1 %vm469_vm2, %v7747_v33 }
 0x5ac   : > { %7772 = vmatprep.mubr.msk.f32.mxu1 %vm469_vm2, %v5454_v58  ;;  %v7767_v3 = vpop.f32.mrb[16].mxu0 }
 0x5ad   : > { %v5464_v29 = vpop.f32.mrb[17].mxu0 }
 0x5af   : > { %7773 = vmatmul.mubr.msk.f32.vlgmr.msra.gmra.mrb[14].mxu1 %vm469_vm2, %v7764_v22 }
 0x5b0   : > { %7775 = vmatprep.mubr.msk.f32.mxu1 %vm469_vm2, %v5464_v29  ;;  %7981 = vmatpush3.bf16.msra.mxu1 %v13629_v30  ;;  %v7784_v23 = vpop.f32.mrb[18].mxu0 }
 0x5b1   : > { %v5641_v19 = vpop.f32.mrb[19].mxu0  ;;  %7987 = vmatprep.subr.bf16.mxu1 %v13629_v30 }
 0x5b3   : > { %7776 = vmatmul.mubr.msk.f32.gmra.mrb[16].mxu1 %vm469_vm2, %v7767_v3 }
 0x5b4   : > { %7792 = vmatprep.mubr.msk.f32.mxu1 %vm469_vm2, %v5641_v19  ;;  %v7787_v12 = vpop.f32.mrb[20].mxu0 }
 0x5b5   : > { %v5651_v53 = vpop.f32.mrb[21].mxu0 }
 0x5b7   : > { %7793 = vmatmul.mubr.msk.f32.vlgmr.msra.gmra.mrb[18].mxu1 %vm469_vm2, %v7784_v23 }
 0x5b8   : > { %7795 = vmatprep.mubr.msk.f32.mxu1 %vm469_vm2, %v5651_v53  ;;  %7989 = vmatpush3.bf16.msra.mxu1 %v13629_v30  ;;  %v7804_v20 = vpop.f32.mrb[22].mxu0 }
 0x5b9   : > { %v5828_v46 = vpop.f32.mrb[23].mxu0  ;;  %7995 = vmatprep.subr.bf16.mxu1 %v13629_v30 }
 0x5bb   : > { %7796 = vmatmul.mubr.msk.f32.gmra.mrb[20].mxu1 %vm469_vm2, %v7787_v12 }
 0x5bc   : > { %7812 = vmatprep.mubr.msk.f32.mxu1 %vm469_vm2, %v5828_v46  ;;  %v7807_v27 = vpop.f32.mrb[24].mxu0 }
 0x5bd   : > { %v5838_v57 = vpop.f32.mrb[25].mxu0 }
 0x5bf   : > { %7813 = vmatmul.mubr.msk.f32.vlgmr.msra.gmra.mrb[22].mxu1 %vm469_vm2, %v7804_v20 }
 0x5c0   : > { %7815 = vmatprep.mubr.msk.f32.mxu1 %vm469_vm2, %v5838_v57  ;;  %7997 = vmatpush3.bf16.msra.mxu1 %v13629_v30  ;;  %v7824_v17 = vpop.f32.mrb[26].mxu0 }
 0x5c1   : > { %v6015_v24 = vpop.f32.mrb[27].mxu0  ;;  %8003 = vmatprep.subr.bf16.mxu1 %v13629_v30 }
 0x5c3   : > { %7816 = vmatmul.mubr.msk.f32.gmra.mrb[24].mxu1 %vm469_vm2, %v7807_v27 }
 0x5c4   : > { %7832 = vmatprep.mubr.msk.f32.mxu1 %vm469_vm2, %v6015_v24  ;;  %v7827_v56 = vpop.f32.mrb[28].mxu0 }
 0x5c5   : > { %v6025_v34 = vpop.f32.mrb[29].mxu0 }
 0x5c7   : > { %7833 = vmatmul.mubr.msk.f32.vlgmr.msra.gmra.mrb[26].mxu1 %vm469_vm2, %v7824_v17 }
 0x5c8   : > { %7835 = vmatprep.mubr.msk.f32.mxu1 %vm469_vm2, %v6025_v34  ;;  %8005 = vmatpush3.bf16.msra.mxu1 %v13629_v30  ;;  %v7844_v4 = vpop.f32.mrb[30].mxu0 }
 0x5c9   : > { %v6202_v59 = vpop.f32.mrb[31].mxu0  ;;  %8011 = vmatprep.subr.bf16.mxu1 %v13629_v30 }
 0x5cb   : > { %7836 = vmatmul.mubr.msk.f32.gmra.mrb[28].mxu1 %vm469_vm2, %v7827_v56 }
 0x5cc   : > { %7852 = vmatprep.mubr.msk.f32.mxu1 %vm469_vm2, %v6202_v59  ;;  %v7847_v13 = vpop.f32.mrb[32].mxu0 }
 0x5cd   : > { %v6212_v2 = vpop.f32.mrb[33].mxu0 }
 0x5cf   : > { %7853 = vmatmul.mubr.msk.f32.vlgmr.msra.gmra.mrb[30].mxu1 %vm469_vm2, %v7844_v4 }
 0x5d0   : > { %7855 = vmatprep.mubr.msk.f32.mxu1 %vm469_vm2, %v6212_v2  ;;  %8013 = vmatpush3.bf16.msra.mxu1 %v13629_v30  ;;  %v7864_v28 = vpop.f32.mrb[34].mxu0 }
 0x5d1   : > { %v6389_v47 = vpop.f32.mrb[35].mxu0  ;;  %8019 = vmatprep.subr.bf16.mxu1 %v13629_v30 }
 0x5d3   : > { %7856 = vmatmul.mubr.msk.f32.gmra.mrb[32].mxu1 %vm469_vm2, %v7847_v13 }
 0x5d4   : > { %7872 = vmatprep.mubr.msk.f32.mxu1 %vm469_vm2, %v6389_v47  ;;  %v7867_v44 = vpop.f32.mrb[36].mxu0 }
 0x5d5   : > { %v6399_v63 = vpop.f32.mrb[37].mxu0 }
 0x5d7   : > { %7873 = vmatmul.mubr.msk.f32.vlgmr.msra.gmra.mrb[34].mxu1 %vm469_vm2, %v7864_v28 }
 0x5d8   : > { %7875 = vmatprep.mubr.msk.f32.mxu1 %vm469_vm2, %v6399_v63  ;;  %8021 = vmatpush3.bf16.msra.mxu1 %v13629_v30  ;;  %v7884_v31 = vpop.f32.mrb[38].mxu0 }
 0x5d9   : > { %v6576_v35 = vpop.f32.mrb[39].mxu0  ;;  %8027 = vmatprep.subr.bf16.mxu1 %v13629_v30 }
 0x5db   : > { %7876 = vmatmul.mubr.msk.f32.gmra.mrb[36].mxu1 %vm469_vm2, %v7867_v44 }
 0x5dc   : > { %7892 = vmatprep.mubr.msk.f32.mxu1 %vm469_vm2, %v6576_v35  ;;  %v7887_v0 = vpop.f32.mrb[40].mxu0 }
 0x5dd   : > { %v6586_v9 = vpop.f32.mrb[41].mxu0 }
 0x5df   : > { %7893 = vmatmul.mubr.msk.f32.vlgmr.msra.gmra.mrb[38].mxu1 %vm469_vm2, %v7884_v31 }
 0x5e0   : > { %7895 = vmatprep.mubr.msk.f32.mxu1 %vm469_vm2, %v6586_v9  ;;  %8029 = vmatpush3.bf16.msra.mxu1 %v13629_v30  ;;  %v7904_v39 = vpop.f32.mrb[42].mxu0 }
 0x5e1   : > { %v6763_v21 = vpop.f32.mrb[43].mxu0  ;;  %8035 = vmatprep.subr.bf16.mxu1 %v13629_v30 }
 0x5e3   : > { %7896 = vmatmul.mubr.msk.f32.gmra.mrb[40].mxu1 %vm469_vm2, %v7887_v0 }
 0x5e4   : > { %7912 = vmatprep.mubr.msk.f32.mxu1 %vm469_vm2, %v6763_v21  ;;  %v7907_v38 = vpop.f32.mrb[44].mxu0 }
 0x5e5   : > { %v6773_v6 = vpop.f32.mrb[45].mxu0 }
 0x5e7   : > { %7913 = vmatmul.mubr.msk.f32.vlgmr.msra.gmra.mrb[42].mxu1 %vm469_vm2, %v7904_v39 }
 0x5e8   : > { %7915 = vmatprep.mubr.msk.f32.mxu1 %vm469_vm2, %v6773_v6  ;;  %8037 = vmatpush3.bf16.msra.mxu1 %v13629_v30  ;;  %v7924_v16 = vpop.f32.mrb[46].mxu0 }
 0x5e9   : > { %v6950_v18 = vpop.f32.mrb[47].mxu0 }
 0x5eb   : > { %7916 = vmatmul.mubr.msk.f32.gmra.mrb[44].mxu1 %vm469_vm2, %v7907_v38 }
 0x5ec   : > { %7932 = vmatprep.mubr.msk.f32.mxu1 %vm469_vm2, %v6950_v18  ;;  %v7927_v37 = vpop.f32.mrb[48].mxu0 }
 0x5ed   : > { %v6960_v26 = vpop.f32.mrb[49].mxu0 }
 0x5ef   : > { %7933 = vmatmul.mubr.msk.f32.vlgmr.msra.gmra.mrb[46].mxu1 %vm469_vm2, %v7924_v16 }
 0x5f0   : > { %7935 = vmatprep.mubr.msk.f32.mxu1 %vm469_vm2, %v6960_v26 }
 0x5f3   : > { %7936 = vmatmul.mubr.msk.f32.gmra.mrb[48].mxu1 %vm469_vm2, %v7927_v37 }
 0x66a   : > { %v7714_v14 = vpop.f32.mrb[2].mxu1 }
 0x66b   : > { %5011 = vst.msk [vmem:[%s13883_s18 + $0x8] sm:$0xff] %vm4160_vm3, %v7714_v14  ;;  %v4991_v30 = vpop.f32.mrb[3].mxu1 }
 0x66c   : > { %5010 = vst.msk [vmem:[%s13883_s18] sm:$0xff] %vm4160_vm3, %v4991_v30 }
 0x66e   : > { %v7717_v62 = vpop.f32.mrb[4].mxu1 }
 0x66f   : > { %5013 = vst.msk [vmem:[%s13883_s18 + $0x18] sm:$0xff] %vm4160_vm3, %v7717_v62  ;;  %v5001_v52 = vpop.f32.mrb[5].mxu1 }
 0x670   : > { %5012 = vst.msk [vmem:[%s13883_s18 + $0x10] sm:$0xff] %vm4160_vm3, %v5001_v52 }
 0x672   : > { %v7734_v61 = vpop.f32.mrb[6].mxu1 }
 0x673   : > { %7428 = vst.msk [vmem:[%s13883_s18 + $0x28] sm:$0xff] %vm4160_vm3, %v7734_v61  ;;  %v5177_v43 = vpop.f32.mrb[7].mxu1 }
 0x674   : > { %7427 = vst.msk [vmem:[%s13883_s18 + $0x20] sm:$0xff] %vm4160_vm3, %v5177_v43 }
 0x676   : > { %v7737_v25 = vpop.f32.mrb[8].mxu1 }
 0x677   : > { %7430 = vst.msk [vmem:[%s13883_s18 + $0x38] sm:$0xff] %vm4160_vm3, %v7737_v25  ;;  %v5187_v41 = vpop.f32.mrb[9].mxu1 }
 0x678   : > { %7429 = vst.msk [vmem:[%s13883_s18 + $0x30] sm:$0xff] %vm4160_vm3, %v5187_v41 }
 0x67a   : > { %v7754_v11 = vpop.f32.mrb[10].mxu1 }
 0x67b   : > { %7440 = vst.msk [vmem:[%s13883_s18 + $0x48] sm:$0xff] %vm4160_vm3, %v7754_v11  ;;  %v5364_v50 = vpop.f32.mrb[11].mxu1 }
 0x67c   : > { %7439 = vst.msk [vmem:[%s13883_s18 + $0x40] sm:$0xff] %vm4160_vm3, %v5364_v50 }
 0x67e   : > { %v7757_v45 = vpop.f32.mrb[12].mxu1 }
 0x67f   : > { %7442 = vst.msk [vmem:[%s13883_s18 + $0x58] sm:$0xff] %vm4160_vm3, %v7757_v45  ;;  %v5374_v55 = vpop.f32.mrb[13].mxu1 }
 0x680   : > { %7441 = vst.msk [vmem:[%s13883_s18 + $0x50] sm:$0xff] %vm4160_vm3, %v5374_v55 }
 0x682   : > { %v7774_v36 = vpop.f32.mrb[14].mxu1 }
 0x683   : > { %7452 = vst.msk [vmem:[%s13883_s18 + $0x68] sm:$0xff] %vm4160_vm3, %v7774_v36  ;;  %v5551_v15 = vpop.f32.mrb[15].mxu1 }
 0x684   : > { %7451 = vst.msk [vmem:[%s13883_s18 + $0x60] sm:$0xff] %vm4160_vm3, %v5551_v15 }
 0x686   : > { %v7777_v32 = vpop.f32.mrb[16].mxu1 }
 0x687   : > { %7454 = vst.msk [vmem:[%s13883_s18 + $0x78] sm:$0xff] %vm4160_vm3, %v7777_v32  ;;  %v5561_v10 = vpop.f32.mrb[17].mxu1 }
 0x688   : > { %7453 = vst.msk [vmem:[%s13883_s18 + $0x70] sm:$0xff] %vm4160_vm3, %v5561_v10 }
 0x68a   : > { %v7794_v60 = vpop.f32.mrb[18].mxu1 }
 0x68b   : > { %7464 = vst.msk [vmem:[%s13883_s18 + $0x88] sm:$0xff] %vm4160_vm3, %v7794_v60  ;;  %v5738_v42 = vpop.f32.mrb[19].mxu1 }
 0x68c   : > { %7463 = vst.msk [vmem:[%s13883_s18 + $0x80] sm:$0xff] %vm4160_vm3, %v5738_v42 }
 0x68e   : > { %v7797_v40 = vpop.f32.mrb[20].mxu1 }
 0x68f   : > { %7466 = vst.msk [vmem:[%s13883_s18 + $0x98] sm:$0xff] %vm4160_vm3, %v7797_v40  ;;  %v5748_v8 = vpop.f32.mrb[21].mxu1 }
 0x690   : > { %7465 = vst.msk [vmem:[%s13883_s18 + $0x90] sm:$0xff] %vm4160_vm3, %v5748_v8 }
 0x692   : > { %v7814_v49 = vpop.f32.mrb[22].mxu1 }
 0x693   : > { %7476 = vst.msk [vmem:[%s13883_s18 + $0xa8] sm:$0xff] %vm4160_vm3, %v7814_v49  ;;  %v5925_v7 = vpop.f32.mrb[23].mxu1 }
 0x694   : > { %7475 = vst.msk [vmem:[%s13883_s18 + $0xa0] sm:$0xff] %vm4160_vm3, %v5925_v7 }
 0x696   : > { %v7817_v1 = vpop.f32.mrb[24].mxu1 }
 0x697   : > { %7478 = vst.msk [vmem:[%s13883_s18 + $0xb8] sm:$0xff] %vm4160_vm3, %v7817_v1  ;;  %v5935_v51 = vpop.f32.mrb[25].mxu1 }
 0x698   : > { %7477 = vst.msk [vmem:[%s13883_s18 + $0xb0] sm:$0xff] %vm4160_vm3, %v5935_v51 }
 0x69a   : > { %v7834_v48 = vpop.f32.mrb[26].mxu1 }
 0x69b   : > { %7488 = vst.msk [vmem:[%s13883_s18 + $0xc8] sm:$0xff] %vm4160_vm3, %v7834_v48  ;;  %v6112_v54 = vpop.f32.mrb[27].mxu1 }
 0x69c   : > { %7487 = vst.msk [vmem:[%s13883_s18 + $0xc0] sm:$0xff] %vm4160_vm3, %v6112_v54 }
 0x69e   : > { %v7837_v33 = vpop.f32.mrb[28].mxu1 }
 0x69f   : > { %7490 = vst.msk [vmem:[%s13883_s18 + $0xd8] sm:$0xff] %vm4160_vm3, %v7837_v33  ;;  %v6122_v5 = vpop.f32.mrb[29].mxu1 }
 0x6a0   : > { %7489 = vst.msk [vmem:[%s13883_s18 + $0xd0] sm:$0xff] %vm4160_vm3, %v6122_v5 }
 0x6a2   : > { %v7854_v22 = vpop.f32.mrb[30].mxu1 }
 0x6a3   : > { %7500 = vst.msk [vmem:[%s13883_s18 + $0xe8] sm:$0xff] %vm4160_vm3, %v7854_v22  ;;  %v6299_v58 = vpop.f32.mrb[31].mxu1 }
 0x6a4   : > { %7499 = vst.msk [vmem:[%s13883_s18 + $0xe0] sm:$0xff] %vm4160_vm3, %v6299_v58 }
 0x6a6   : > { %v7857_v3 = vpop.f32.mrb[32].mxu1 }
 0x6a7   : > { %7502 = vst.msk [vmem:[%s13883_s18 + $0xf8] sm:$0xff] %vm4160_vm3, %v7857_v3  ;;  %v6309_v29 = vpop.f32.mrb[33].mxu1 }
 0x6a8   : > { %7501 = vst.msk [vmem:[%s13883_s18 + $0xf0] sm:$0xff] %vm4160_vm3, %v6309_v29 }
 0x6aa   : > { %v7874_v23 = vpop.f32.mrb[34].mxu1 }
 0x6ab   : > { %7512 = vst.msk [vmem:[%s13883_s18 + $0x108] sm:$0xff] %vm4160_vm3, %v7874_v23  ;;  %v6486_v19 = vpop.f32.mrb[35].mxu1 }
 0x6ac   : > { %7511 = vst.msk [vmem:[%s13883_s18 + $0x100] sm:$0xff] %vm4160_vm3, %v6486_v19 }
 0x6ae   : > { %v7877_v12 = vpop.f32.mrb[36].mxu1 }
 0x6af   : > { %7514 = vst.msk [vmem:[%s13883_s18 + $0x118] sm:$0xff] %vm4160_vm3, %v7877_v12  ;;  %v6496_v53 = vpop.f32.mrb[37].mxu1 }
 0x6b0   : > { %7513 = vst.msk [vmem:[%s13883_s18 + $0x110] sm:$0xff] %vm4160_vm3, %v6496_v53 }
 0x6b2   : > { %v7894_v20 = vpop.f32.mrb[38].mxu1 }
 0x6b3   : > { %7524 = vst.msk [vmem:[%s13883_s18 + $0x128] sm:$0xff] %vm4160_vm3, %v7894_v20  ;;  %v6673_v46 = vpop.f32.mrb[39].mxu1 }
 0x6b4   : > { %7523 = vst.msk [vmem:[%s13883_s18 + $0x120] sm:$0xff] %vm4160_vm3, %v6673_v46 }
 0x6b6   : > { %v7897_v27 = vpop.f32.mrb[40].mxu1 }
 0x6b7   : > { %7526 = vst.msk [vmem:[%s13883_s18 + $0x138] sm:$0xff] %vm4160_vm3, %v7897_v27  ;;  %v6683_v57 = vpop.f32.mrb[41].mxu1 }
 0x6b8   : > { %7525 = vst.msk [vmem:[%s13883_s18 + $0x130] sm:$0xff] %vm4160_vm3, %v6683_v57 }
 0x6ba   : > { %v7914_v17 = vpop.f32.mrb[42].mxu1 }
 0x6bb   : > { %7536 = vst.msk [vmem:[%s13883_s18 + $0x148] sm:$0xff] %vm4160_vm3, %v7914_v17  ;;  %v6860_v24 = vpop.f32.mrb[43].mxu1 }
 0x6bc   : > { %7535 = vst.msk [vmem:[%s13883_s18 + $0x140] sm:$0xff] %vm4160_vm3, %v6860_v24 }
 0x6be   : > { %v7917_v56 = vpop.f32.mrb[44].mxu1 }
 0x6bf   : > { %7538 = vst.msk [vmem:[%s13883_s18 + $0x158] sm:$0xff] %vm4160_vm3, %v7917_v56  ;;  %v6870_v34 = vpop.f32.mrb[45].mxu1 }
 0x6c0   : > { %7537 = vst.msk [vmem:[%s13883_s18 + $0x150] sm:$0xff] %vm4160_vm3, %v6870_v34 }
 0x6c2   : > { %v7934_v4 = vpop.f32.mrb[46].mxu1 }
 0x6c3   : > { %7548 = vst.msk [vmem:[%s13883_s18 + $0x168] sm:$0xff] %vm4160_vm3, %v7934_v4  ;;  %v7047_v59 = vpop.f32.mrb[47].mxu1 }
 0x6c4   : > { %7547 = vst.msk [vmem:[%s13883_s18 + $0x160] sm:$0xff] %vm4160_vm3, %v7047_v59 }
 0x6c6   : > { %v7937_v13 = vpop.f32.mrb[48].mxu1 }
 0x6c7   : > { %7550 = vst.msk [vmem:[%s13883_s18 + $0x178] sm:$0xff] %vm4160_vm3, %v7937_v13  ;;  %v7057_v2 = vpop.f32.mrb[49].mxu1 }
 0x6c8   : > { %7549 = vst.msk [vmem:[%s13883_s18 + $0x170] sm:$0xff] %vm4160_vm3, %v7057_v2 }
 0x6c9   : > { %8336 = shalt.err (!%p8333_p1)
}
 0x6ca   : > { %s8337_s21 = scalar_lea.hbm %s13982_s17, 6144  ;;  %s8341_s7 = scalar_lea.hbm %s15427_s16, 12288 }
 0x6cb   : > { %p8338_p2 = scmp.ne.s32.totalorder %s13982_s17, %s8337_s21  ;;  %p8342_p9 = scmp.lt.u32.totalorder %s13982_s17, %s15427_s16 }
 0x6cc   : > { %p8343_p0 = scmp.lt.u32.totalorder %s8341_s7, %s8337_s21  ;;  %p8345_p6 = scmp.lt.u32.totalorder %s8337_s21, %s13982_s17 }
 0x6cd   : > { %p8339_p3 = pnand %p8338_p2, %p15428_p10 }
 0x6ce   : > { %p8344_p5 = por %p8343_p0, %p8342_p9 }
 0x6cf   : > { %p8340_p4 = pneg %p8339_p3 }
 0x6d0   : > { %p8346_p12 = por %p8345_p6, %p8344_p5 }
 0x6d2   : > { %p8347_p7 = pnand %p8346_p12, %p8340_p4 }
 0x6d4   : > { %8350 = shalt.err (!%p8347_p7)
}
 0x6d5   : > { %s8413_s30 = smov 128   ;;  %s8414_s10 = smov 8  }
 0x6d6   : > { %8051 = dma.vmem_to_hbm [thread:$0]  (%p15428_p10), %s13984_s1, 6144, %s13982_s17, %s13992_s28, %s8413_s30, %s8413_s30, %s8414_s10  }
 0x6d7 PF: > { %s15429_s29 = sld [smem:[#allocation14_spill]]  ;;  %s15430_s15 = sld [smem:[#allocation12_spill]] }
 0x6d8   : > { %s15431_s20 = sld [smem:[#allocation17_spill]] }
 0x6dd   : > { %p8068_p8 = scmp.ge.s32.totalorder %s15429_s29, 2  ;;  %s7100_s2 = sand.u32 1, %s15430_s15  }
 0x6de   : > { %p15432_p11 = scmp.ne.s32.totalorder %s15431_s20, 0  ;;  %s7101_s23 = scalar_lea.sflag [#allocation4], %s7100_s2 }
 0x6e0   : > { %p8061_p13 = pnand %p8068_p8, %p15432_p11 }
 0x6e2   : > { %8376 = dma.done.wait (!%p8061_p13), %s7101_s23, 6144  }
 0x6e3   : > { %8378 = vsyncadd (!%p8061_p13), %s7101_s23, 4294961152  ;;  %s15433_s27 = sld [smem:[#allocation15_spill]]  ;;  %s15434_s18 = sld [smem:[#allocation13_spill]] }
 0x6e4   : > { %s15435_s26 = sld [smem:[#allocation16_spill]]  ;;  %s15436_s24 = smov %s8385_s25 }
 0x6e9   : > { %p19_p1 = scmp.ge.s32.totalorder %s15433_s27, 4   ;;  %s15437_s25 = smov %s15434_s18 }
 0x6eb   :  { %21 = sbr.rel (!%p19_p1) target bundleno = 10 (0xa), region = 137 }
 0x6f2   :  { %7106 = vsyncpa [#allocation4], 1 }
 0x6f3   :  { %7108 = vsyncpa [#allocation4 + $0x1], 1 }
 0x6f4   :  { %7109 = vsyncpa [#allocation5], 1 }
 0x6f5   :  { %7111 = vsyncpa [#allocation5 + $0x1], 1 }
 0x6f6   :  { %7112 = vsyncpa [#allocation7], 1 }

</bundles_post_ra>
